<compile_context>
chip_gen: v6e
topology: v6e:2x2x1
jax: 0.10.0
libtpu: 0.0.40
codegen_flags: <defaults>
</compile_context>

<pallas_src>
import functools

import numpy as np
import jax
import jax.numpy as jnp
from jax import lax
from jax.experimental import pallas as pl
from jax.experimental.pallas import tpu as pltpu


# ------------------------------ helpers ------------------------------------ #
def _split_const(v, d):
    """(v // d, v % d) for an int32 vector and a Python-int constant d."""
    if d & (d - 1) == 0:
        k = d.bit_length() - 1
        return v >> k, v & (d - 1)
    q = v // d           # non-power-of-two fallback (exact integer math)
    return q, v - q * d


# ----------------------------- Pallas kernel ------------------------------- #
def _mcae_kernel(x1_ref, x2_ref, w1_ref, w2_ref, out_ref, *,
                 H, W, N, cin1, cin2, cout1, cout2):
    HW = H * W
    NHW = N * HW

    # Per-lane per-sample (h, w) coordinates, integer ops, hoisted once and
    # shared by every boundary mask (also zeroes roll wrap at sample borders).
    pos = lax.broadcasted_iota(jnp.int32, (1, NHW), 1)
    _, s = _split_const(pos, HW)          # pixel index within its sample
    hi, wi = _split_const(s, W)

    row_ok = {dy: ((hi + dy >= 0) & (hi + dy < H))
              for dy in range(-2, 3) if dy != 0}
    col_ok = {dx: ((wi + dx >= 0) & (wi + dx < W))
              for dx in range(-2, 3) if dx != 0}
    mask = {}
    for dy in range(-2, 3):
        for dx in range(-2, 3):
            if dy == 0 and dx == 0:
                mask[(dy, dx)] = None
            elif dy == 0:
                mask[(dy, dx)] = col_ok[dx]
            elif dx == 0:
                mask[(dy, dx)] = row_ok[dy]
            else:
                mask[(dy, dx)] = row_ok[dy] & col_ok[dx]

    def shifted(img, dy, dx):
        # img sampled at (h + dy, w + dx) per output pixel, zero outside the
        # image (and outside the sample).  XLU roll + VPU select, no VMEM
        # round-trip; masks are precomputed above.
        if dy == 0 and dx == 0:
            return img
        shift = (-(dy * W + dx)) % NHW
        rolled = pltpu.roll(img, shift, 1)
        return jnp.where(mask[(dy, dx)], rolled, 0.0)

    def avgpool3(img):
        # AvgPool2d(3, stride=1, pad=1), count_include_pad=True -> /9 always.
        hs = shifted(img, 0, -1) + img + shifted(img, 0, 1)
        vs = shifted(hs, -1, 0) + hs + shifted(hs, 1, 0)
        return vs * (1.0 / 9.0)

    def run_encoder(x_ref, w_ref, cin, cout):
        c2 = 2 * cout
        bcol = w_ref.shape[1] - 4          # first bias column

        x = x_ref[...]                                    # (cin, NHW)
        w1 = w_ref[0:c2, 0:cin]                           # [w1a; w1b]
        b1 = w_ref[0:c2, bcol:bcol + 1]
        dw = w_ref[c2:2 * c2, 0:25]                       # loaded once
        bdw = w_ref[0:c2, bcol + 1:bcol + 2]
        w31 = w_ref[2 * c2:3 * c2, 0:c2]
        b31 = w_ref[0:c2, bcol + 2:bcol + 3]
        w32 = w_ref[3 * c2:4 * c2, 0:c2]
        b32 = w_ref[0:c2, bcol + 3:bcol + 4]

        # Both branch 1x1 convs as one stacked MXU matmul: (2C,Cin)@(Cin,NHW).
        y = jnp.dot(w1, x, preferred_element_type=jnp.float32) + b1

        # Stacked depthwise: single 25-tap pass; the top half's 3x3 kernel is
        # embedded (zero-padded) in a 5x5, the bottom half is the real 5x5.
        acc = None
        for dy in range(-2, 3):
            for dx in range(-2, 3):
                t = (dy + 2) * 5 + (dx + 2)
                term = dw[:, t:t + 1] * shifted(y, dy, dx)
                acc = term if acc is None else acc + term
        z = acc + bdw

        # Pool + tanh on the stacked slab; rows [0:C) = f2, rows [C:2C) = f3.
        t_slab = jnp.tanh(avgpool3(z))

        # forward_pass3 on cat([f2, f3]): one (2C,2C) contraction, tanh, x2.
        h = jnp.tanh(jnp.dot(w31, t_slab, preferred_element_type=jnp.float32)
                     + b31)
        F = jnp.tanh(jnp.dot(w32, h, preferred_element_type=jnp.float32)
                     + b32)

        out_ref[0:c2, :] = F
        out_ref[c2:2 * c2, :] = t_slab     # rows beyond 4*cout stay unused

    @pl.when(pl.program_id(0) == 0)
    def _():
        run_encoder(x1_ref, w1_ref, cin1, cout1)

    @pl.when(pl.program_id(0) == 1)
    def _():
        run_encoder(x2_ref, w2_ref, cin2, cout2)


# ------------------------------- wrapper ------------------------------------ #
def mcae_forward_pallas(x1, x2, slab1, slab2):
    N, cin1, H, W = x1.shape
    _, cin2, _, _ = x2.shape
    cout1 = slab1.shape[0] // 8            # slab rows = 4 * (2*cout)
    cout2 = slab2.shape[0] // 8
    HW = H * W
    NHW = N * HW
    rows = 4 * max(cout1, cout2)           # shared (padded) output row count

    # Lane-dense layout: (C, N*HW); sample n occupies lanes [n*HW, (n+1)*HW).
    x1f = x1.transpose(1, 0, 2, 3).reshape(cin1, NHW)
    x2f = x2.transpose(1, 0, 2, 3).reshape(cin2, NHW)

    out = pl.pallas_call(
        functools.partial(_mcae_kernel, H=H, W=W, N=N, cin1=cin1, cin2=cin2,
                          cout1=cout1, cout2=cout2),
        grid=(2,),
        in_specs=[pl.BlockSpec(x1f.shape, lambda p: (0, 0)),
                  pl.BlockSpec(x2f.shape, lambda p: (0, 0)),
                  pl.BlockSpec(slab1.shape, lambda p: (0, 0)),
                  pl.BlockSpec(slab2.shape, lambda p: (0, 0))],
        out_specs=pl.BlockSpec((None, rows, NHW), lambda p: (p, 0, 0)),
        out_shape=jax.ShapeDtypeStruct((2, rows, NHW), jnp.float32),
        compiler_params=pltpu.CompilerParams(
            dimension_semantics=("parallel",)),
    )(x1f, x2f, slab1, slab2)

    def unpack(slot, cout):
        c2 = 2 * cout

        def img(rows_slab):
            v = rows_slab.reshape(-1, N, HW).transpose(1, 0, 2)
            return v.reshape(N, -1, H, W)

        F = img(out[slot, 0:c2])
        f2 = img(out[slot, c2:c2 + cout])
        f3 = img(out[slot, c2 + cout:2 * c2])
        return F, f2, f3

    F1, f1_2, f1_3 = unpack(0, cout1)
    F2, f2_2, f2_3 = unpack(1, cout2)
    return F1, f1_2, f1_3, F2, f2_2, f2_3


mcae_forward = jax.jit(mcae_forward_pallas)


# ------------------------- parameters (deterministic) ----------------------- #
def init_encoder_params(key, cin, cout):
    keys = jax.random.split(key, 12)

    def xavier(k, shape):  # shape is OIHW
        o, i, kh, kw = shape
        bound = float(np.sqrt(6.0 / ((i + o) * kh * kw)))
        return jax.random.uniform(k, shape, jnp.float32, -bound, bound)

    def bias(k, n):
        return jax.random.uniform(k, (n,), jnp.float32, -0.1, 0.1)

    return dict(
        w1a=xavier(keys[0], (cout, cin, 1, 1)),      b1a=bias(keys[1], cout),
        dw3=xavier(keys[2], (cout, 1, 3, 3)),        bdw3=bias(keys[3], cout),
        w1b=xavier(keys[4], (cout, cin, 1, 1)),      b1b=bias(keys[5], cout),
        dw5=xavier(keys[6], (cout, 1, 5, 5)),        bdw5=bias(keys[7], cout),
        w31=xavier(keys[8], (2 * cout, 2 * cout, 1, 1)), b31=bias(keys[9], 2 * cout),
        w32=xavier(keys[10], (2 * cout, 2 * cout, 1, 1)), b32=bias(keys[11], 2 * cout),
    )


def to_kernel_format(p):
    """Pack all OIHW torch-style params of one encoder into ONE dense f32 slab.

    Slab layout (rows x (max(25,cin,2C)+4) cols), row sections of 2C each:
      rows [0:2C)    cols [0:cin)  -> [w1a; w1b]
      rows [2C:4C)   cols [0:25)   -> [dw3 embedded in 5x5; dw5]
      rows [4C:6C)   cols [0:2C)   -> w31
      rows [6C:8C)   cols [0:2C)   -> w32
      rows [0:2C)    last 4 cols   -> [b1a;b1b], [bdw3;bdw5], b31, b32
    """
    cout = int(p['b1a'].shape[0])
    cin = int(p['w1a'].shape[1])
    c2 = 2 * cout
    bcol = max(25, cin, c2)
    slab = np.zeros((4 * c2, bcol + 4), np.float32)

    slab[0:cout, 0:cin] = np.asarray(p['w1a'])[:, :, 0, 0]
    slab[cout:c2, 0:cin] = np.asarray(p['w1b'])[:, :, 0, 0]

    dw3 = np.asarray(p['dw3'])[:, 0]                 # (cout, 3, 3)
    dw5 = np.asarray(p['dw5'])[:, 0]                 # (cout, 5, 5)
    dw3_55 = np.zeros((cout, 5, 5), np.float32)
    dw3_55[:, 1:4, 1:4] = dw3
    slab[c2:c2 + cout, 0:25] = dw3_55.reshape(cout, 25)
    slab[c2 + cout:2 * c2, 0:25] = dw5.reshape(cout, 25)

    slab[2 * c2:3 * c2, 0:c2] = np.asarray(p['w31'])[:, :, 0, 0]
    slab[3 * c2:4 * c2, 0:c2] = np.asarray(p['w32'])[:, :, 0, 0]

    slab[0:cout, bcol] = np.asarray(p['b1a'])
    slab[cout:c2, bcol] = np.asarray(p['b1b'])
    slab[0:cout, bcol + 1] = np.asarray(p['bdw3'])
    slab[cout:c2, bcol + 1] = np.asarray(p['bdw5'])
    slab[0:c2, bcol + 2] = np.asarray(p['b31'])
    slab[0:c2, bcol + 3] = np.asarray(p['b32'])
    return jnp.asarray(slab)


# -------------------------- pure-JAX reference ------------------------------ #
def _ref_encoder(x, p):
    hp = lax.Precision.HIGHEST

    def conv(x, w, b, pad, groups=1):
        y = lax.conv_general_dilated(
            x, w, (1, 1), [(pad, pad), (pad, pad)],
            dimension_numbers=('NCHW', 'OIHW', 'NCHW'),
            feature_group_count=groups, precision=hp)
        return y + b[None, :, None, None]

    def avgpool(x):
        s = lax.reduce_window(x, 0.0, lax.add, (1, 1, 3, 3), (1, 1, 1, 1),
                              [(0, 0), (0, 0), (1, 1), (1, 1)])
        return s / 9.0

    cout = p['b1a'].shape[0]
    f2 = jnp.tanh(avgpool(conv(conv(x, p['w1a'], p['b1a'], 0),
                               p['dw3'], p['bdw3'], 1, groups=cout)))
    f3 = jnp.tanh(avgpool(conv(conv(x, p['w1b'], p['b1b'], 0),
                               p['dw5'], p['bdw5'], 2, groups=cout)))
    cat = jnp.concatenate([f2, f3], axis=1)
    h = jnp.tanh(conv(cat, p['w31'], p['b31'], 0))
    fo = jnp.tanh(conv(h, p['w32'], p['b32'], 0))
    return fo, f2, f3


# ---------------------------------- main ------------------------------------ #
if __name__ == "__main__":
    key = jax.random.PRNGKey(0)
    kx1, kx2, kparam1, kparam2 = jax.random.split(key, 4)

    N, H, W = 2, 16, 16
    in_ch1, out_ch1 = 4, 8
    in_ch2, out_ch2 = 6, 4

    x1 = jax.random.normal(kx1, (N, in_ch1, H, W), jnp.float32)
    x2 = jax.random.normal(kx2, (N, in_ch2, H, W), jnp.float32)

    p1 = init_encoder_params(kparam1, in_ch1, out_ch1)
    p2 = init_encoder_params(kparam2, in_ch2, out_ch2)
    slab1 = to_kernel_format(p1)
    slab2 = to_kernel_format(p2)

    outs = mcae_forward(x1, x2, slab1, slab2)
    outs = jax.block_until_ready(outs)

    ref = _ref_encoder(x1, p1) + _ref_encoder(x2, p2)
    for got, want in zip(outs, ref):
        g = np.asarray(got)
        w = np.asarray(want)
        if not np.allclose(g, w, atol=1e-4, rtol=1e-4):
            raise RuntimeError(
                "Pallas MCAE output mismatch vs JAX reference: max abs err "
                f"{np.max(np.abs(g - w))}")

    print("KERNEL_OK")
</pallas_src>

<mosaic_0001>
module attributes {stable_mosaic.version = 11 : i64} {
  func.func @_mcae_kernel(%arg0: i32, %arg1: memref<4x512xf32, #tpu.memory_space<vmem>>, %arg2: memref<6x512xf32, #tpu.memory_space<vmem>>, %arg3: memref<64x29xf32, #tpu.memory_space<vmem>>, %arg4: memref<32x29xf32, #tpu.memory_space<vmem>>, %arg5: memref<1x32x512xf32, #tpu.memory_space<vmem>>) attributes {dimension_semantics = [#tpu.dimension_semantics<parallel>], iteration_bounds = array<i64: 2>, scalar_prefetch = 0 : i64, scratch_operands = 0 : i64, tpu.core_type = #tpu.core_type<tc>, window_params = [{pipeline_mode = #tpu.pipeline_mode<synchronous>, transform_indices = @transform_0, window_bounds = array<i64: 4, 512>}, {pipeline_mode = #tpu.pipeline_mode<synchronous>, transform_indices = @transform_1, window_bounds = array<i64: 6, 512>}, {pipeline_mode = #tpu.pipeline_mode<synchronous>, transform_indices = @transform_2, window_bounds = array<i64: 64, 29>}, {pipeline_mode = #tpu.pipeline_mode<synchronous>, transform_indices = @transform_3, window_bounds = array<i64: 32, 29>}, {transform_indices = @transform_4, window_bounds = array<i64: 1, 32, 512>}]} {
    %0 = tpu.iota {dimensions = array<i32: 1>} : vector<1x512xi32>
    %c255_i32 = arith.constant 255 : i32
    %1 = vector.broadcast %c255_i32 : i32 to vector<1x512xi32>
    %2 = arith.andi %0, %1 : vector<1x512xi32>
    %c4_i32 = arith.constant 4 : i32
    %3 = vector.broadcast %c4_i32 : i32 to vector<1x512xi32>
    %4 = arith.shrsi %2, %3 : vector<1x512xi32>
    %c15_i32 = arith.constant 15 : i32
    %5 = vector.broadcast %c15_i32 : i32 to vector<1x512xi32>
    %6 = arith.andi %2, %5 : vector<1x512xi32>
    %c-2_i32 = arith.constant -2 : i32
    %7 = vector.broadcast %c-2_i32 : i32 to vector<1x512xi32>
    %8 = arith.addi %4, %7 : vector<1x512xi32>
    %c0_i32 = arith.constant 0 : i32
    %9 = vector.broadcast %c0_i32 : i32 to vector<1x512xi32>
    %10 = arith.cmpi sge, %8, %9 : vector<1x512xi32>
    %c-2_i32_0 = arith.constant -2 : i32
    %11 = vector.broadcast %c-2_i32_0 : i32 to vector<1x512xi32>
    %12 = arith.addi %4, %11 : vector<1x512xi32>
    %c16_i32 = arith.constant 16 : i32
    %13 = vector.broadcast %c16_i32 : i32 to vector<1x512xi32>
    %14 = arith.cmpi slt, %12, %13 : vector<1x512xi32>
    %15 = arith.andi %10, %14 : vector<1x512xi1>
    %c-1_i32 = arith.constant -1 : i32
    %16 = vector.broadcast %c-1_i32 : i32 to vector<1x512xi32>
    %17 = arith.addi %4, %16 : vector<1x512xi32>
    %c0_i32_1 = arith.constant 0 : i32
    %18 = vector.broadcast %c0_i32_1 : i32 to vector<1x512xi32>
    %19 = arith.cmpi sge, %17, %18 : vector<1x512xi32>
    %c-1_i32_2 = arith.constant -1 : i32
    %20 = vector.broadcast %c-1_i32_2 : i32 to vector<1x512xi32>
    %21 = arith.addi %4, %20 : vector<1x512xi32>
    %c16_i32_3 = arith.constant 16 : i32
    %22 = vector.broadcast %c16_i32_3 : i32 to vector<1x512xi32>
    %23 = arith.cmpi slt, %21, %22 : vector<1x512xi32>
    %24 = arith.andi %19, %23 : vector<1x512xi1>
    %c1_i32 = arith.constant 1 : i32
    %25 = vector.broadcast %c1_i32 : i32 to vector<1x512xi32>
    %26 = arith.addi %4, %25 : vector<1x512xi32>
    %c0_i32_4 = arith.constant 0 : i32
    %27 = vector.broadcast %c0_i32_4 : i32 to vector<1x512xi32>
    %28 = arith.cmpi sge, %26, %27 : vector<1x512xi32>
    %c1_i32_5 = arith.constant 1 : i32
    %29 = vector.broadcast %c1_i32_5 : i32 to vector<1x512xi32>
    %30 = arith.addi %4, %29 : vector<1x512xi32>
    %c16_i32_6 = arith.constant 16 : i32
    %31 = vector.broadcast %c16_i32_6 : i32 to vector<1x512xi32>
    %32 = arith.cmpi slt, %30, %31 : vector<1x512xi32>
    %33 = arith.andi %28, %32 : vector<1x512xi1>
    %c2_i32 = arith.constant 2 : i32
    %34 = vector.broadcast %c2_i32 : i32 to vector<1x512xi32>
    %35 = arith.addi %4, %34 : vector<1x512xi32>
    %c0_i32_7 = arith.constant 0 : i32
    %36 = vector.broadcast %c0_i32_7 : i32 to vector<1x512xi32>
    %37 = arith.cmpi sge, %35, %36 : vector<1x512xi32>
    %c2_i32_8 = arith.constant 2 : i32
    %38 = vector.broadcast %c2_i32_8 : i32 to vector<1x512xi32>
    %39 = arith.addi %4, %38 : vector<1x512xi32>
    %c16_i32_9 = arith.constant 16 : i32
    %40 = vector.broadcast %c16_i32_9 : i32 to vector<1x512xi32>
    %41 = arith.cmpi slt, %39, %40 : vector<1x512xi32>
    %42 = arith.andi %37, %41 : vector<1x512xi1>
    %c-2_i32_10 = arith.constant -2 : i32
    %43 = vector.broadcast %c-2_i32_10 : i32 to vector<1x512xi32>
    %44 = arith.addi %6, %43 : vector<1x512xi32>
    %c0_i32_11 = arith.constant 0 : i32
    %45 = vector.broadcast %c0_i32_11 : i32 to vector<1x512xi32>
    %46 = arith.cmpi sge, %44, %45 : vector<1x512xi32>
    %c-2_i32_12 = arith.constant -2 : i32
    %47 = vector.broadcast %c-2_i32_12 : i32 to vector<1x512xi32>
    %48 = arith.addi %6, %47 : vector<1x512xi32>
    %c16_i32_13 = arith.constant 16 : i32
    %49 = vector.broadcast %c16_i32_13 : i32 to vector<1x512xi32>
    %50 = arith.cmpi slt, %48, %49 : vector<1x512xi32>
    %51 = arith.andi %46, %50 : vector<1x512xi1>
    %c-1_i32_14 = arith.constant -1 : i32
    %52 = vector.broadcast %c-1_i32_14 : i32 to vector<1x512xi32>
    %53 = arith.addi %6, %52 : vector<1x512xi32>
    %c0_i32_15 = arith.constant 0 : i32
    %54 = vector.broadcast %c0_i32_15 : i32 to vector<1x512xi32>
    %55 = arith.cmpi sge, %53, %54 : vector<1x512xi32>
    %c-1_i32_16 = arith.constant -1 : i32
    %56 = vector.broadcast %c-1_i32_16 : i32 to vector<1x512xi32>
    %57 = arith.addi %6, %56 : vector<1x512xi32>
    %c16_i32_17 = arith.constant 16 : i32
    %58 = vector.broadcast %c16_i32_17 : i32 to vector<1x512xi32>
    %59 = arith.cmpi slt, %57, %58 : vector<1x512xi32>
    %60 = arith.andi %55, %59 : vector<1x512xi1>
    %c1_i32_18 = arith.constant 1 : i32
    %61 = vector.broadcast %c1_i32_18 : i32 to vector<1x512xi32>
    %62 = arith.addi %6, %61 : vector<1x512xi32>
    %c0_i32_19 = arith.constant 0 : i32
    %63 = vector.broadcast %c0_i32_19 : i32 to vector<1x512xi32>
    %64 = arith.cmpi sge, %62, %63 : vector<1x512xi32>
    %c1_i32_20 = arith.constant 1 : i32
    %65 = vector.broadcast %c1_i32_20 : i32 to vector<1x512xi32>
    %66 = arith.addi %6, %65 : vector<1x512xi32>
    %c16_i32_21 = arith.constant 16 : i32
    %67 = vector.broadcast %c16_i32_21 : i32 to vector<1x512xi32>
    %68 = arith.cmpi slt, %66, %67 : vector<1x512xi32>
    %69 = arith.andi %64, %68 : vector<1x512xi1>
    %c2_i32_22 = arith.constant 2 : i32
    %70 = vector.broadcast %c2_i32_22 : i32 to vector<1x512xi32>
    %71 = arith.addi %6, %70 : vector<1x512xi32>
    %c0_i32_23 = arith.constant 0 : i32
    %72 = vector.broadcast %c0_i32_23 : i32 to vector<1x512xi32>
    %73 = arith.cmpi sge, %71, %72 : vector<1x512xi32>
    %c2_i32_24 = arith.constant 2 : i32
    %74 = vector.broadcast %c2_i32_24 : i32 to vector<1x512xi32>
    %75 = arith.addi %6, %74 : vector<1x512xi32>
    %c16_i32_25 = arith.constant 16 : i32
    %76 = vector.broadcast %c16_i32_25 : i32 to vector<1x512xi32>
    %77 = arith.cmpi slt, %75, %76 : vector<1x512xi32>
    %78 = arith.andi %73, %77 : vector<1x512xi1>
    %79 = arith.andi %15, %51 : vector<1x512xi1>
    %80 = arith.andi %15, %60 : vector<1x512xi1>
    %81 = arith.andi %15, %69 : vector<1x512xi1>
    %82 = arith.andi %15, %78 : vector<1x512xi1>
    %83 = arith.andi %24, %51 : vector<1x512xi1>
    %84 = arith.andi %24, %60 : vector<1x512xi1>
    %85 = arith.andi %24, %69 : vector<1x512xi1>
    %86 = arith.andi %24, %78 : vector<1x512xi1>
    %87 = arith.andi %33, %51 : vector<1x512xi1>
    %88 = arith.andi %33, %60 : vector<1x512xi1>
    %89 = arith.andi %33, %69 : vector<1x512xi1>
    %90 = arith.andi %33, %78 : vector<1x512xi1>
    %91 = arith.andi %42, %51 : vector<1x512xi1>
    %92 = arith.andi %42, %60 : vector<1x512xi1>
    %93 = arith.andi %42, %69 : vector<1x512xi1>
    %94 = arith.andi %42, %78 : vector<1x512xi1>
    %c0_i32_26 = arith.constant 0 : i32
    %95 = arith.cmpi eq, %arg0, %c0_i32_26 : i32
    %96 = arith.extui %95 : i1 to i32
    %c0_i32_27 = arith.constant 0 : i32
    %97 = arith.cmpi ne, %96, %c0_i32_27 : i32
    scf.if %97 {
      %c0 = arith.constant 0 : index
      %c0_30 = arith.constant 0 : index
      %101 = vector.load %arg1[%c0, %c0_30] : memref<4x512xf32, #tpu.memory_space<vmem>>, vector<4x512xf32>
      %c0_31 = arith.constant 0 : index
      %c0_32 = arith.constant 0 : index
      %102 = vector.load %arg3[%c0_31, %c0_32] : memref<64x29xf32, #tpu.memory_space<vmem>>, vector<16x4xf32>
      %c0_33 = arith.constant 0 : index
      %c25 = arith.constant 25 : index
      %103 = vector.load %arg3[%c0_33, %c25] : memref<64x29xf32, #tpu.memory_space<vmem>>, vector<16x1xf32>
      %c16 = arith.constant 16 : index
      %c0_34 = arith.constant 0 : index
      %104 = vector.load %arg3[%c16, %c0_34] : memref<64x29xf32, #tpu.memory_space<vmem>>, vector<16x25xf32>
      %c0_35 = arith.constant 0 : index
      %c26 = arith.constant 26 : index
      %105 = vector.load %arg3[%c0_35, %c26] : memref<64x29xf32, #tpu.memory_space<vmem>>, vector<16x1xf32>
      %c32 = arith.constant 32 : index
      %c0_36 = arith.constant 0 : index
      %106 = vector.load %arg3[%c32, %c0_36] : memref<64x29xf32, #tpu.memory_space<vmem>>, vector<16x16xf32>
      %c0_37 = arith.constant 0 : index
      %c27 = arith.constant 27 : index
      %107 = vector.load %arg3[%c0_37, %c27] : memref<64x29xf32, #tpu.memory_space<vmem>>, vector<16x1xf32>
      %c48 = arith.constant 48 : index
      %c0_38 = arith.constant 0 : index
      %108 = vector.load %arg3[%c48, %c0_38] : memref<64x29xf32, #tpu.memory_space<vmem>>, vector<16x16xf32>
      %c0_39 = arith.constant 0 : index
      %c28 = arith.constant 28 : index
      %109 = vector.load %arg3[%c0_39, %c28] : memref<64x29xf32, #tpu.memory_space<vmem>>, vector<16x1xf32>
      %cst = arith.constant dense<0.000000e+00> : vector<16x512xf32>
      %110 = tpu.matmul %102, %101, %cst {dimension_numbers = #tpu.dot_dimension_numbers<[1], [0], [0], [1], [0, 0, 1, 1], [], []>} : vector<16x4xf32>, vector<4x512xf32>, vector<16x512xf32> -> vector<16x512xf32>
      %111 = vector.broadcast %103 : vector<16x1xf32> to vector<16x512xf32>
      %112 = arith.addf %110, %111 : vector<16x512xf32>
      %113 = vector.extract_strided_slice %104 {offsets = [0, 0], sizes = [16, 1], strides = [1, 1]} : vector<16x25xf32> to vector<16x1xf32>
      %c34_i32 = arith.constant 34 : i32
      %114 = tpu.dynamic_rotate %112 by %c34_i32 dim 1 : vector<16x512xf32>, i32 -> vector<16x512xf32>
      %cst_40 = arith.constant 0.000000e+00 : f32
      %115 = vector.shape_cast %79 : vector<1x512xi1> to vector<1x512xi1>
      %116 = vector.broadcast %115 : vector<1x512xi1> to vector<16x512xi1>
      %117 = vector.broadcast %cst_40 : f32 to vector<16x512xf32>
      %118 = arith.select %116, %114, %117 : vector<16x512xi1>, vector<16x512xf32>
      %119 = vector.broadcast %113 : vector<16x1xf32> to vector<16x512xf32>
      %120 = arith.mulf %119, %118 : vector<16x512xf32>
      %121 = vector.extract_strided_slice %104 {offsets = [0, 1], sizes = [16, 1], strides = [1, 1]} : vector<16x25xf32> to vector<16x1xf32>
      %c33_i32 = arith.constant 33 : i32
      %122 = tpu.dynamic_rotate %112 by %c33_i32 dim 1 : vector<16x512xf32>, i32 -> vector<16x512xf32>
      %cst_41 = arith.constant 0.000000e+00 : f32
      %123 = vector.shape_cast %80 : vector<1x512xi1> to vector<1x512xi1>
      %124 = vector.broadcast %123 : vector<1x512xi1> to vector<16x512xi1>
      %125 = vector.broadcast %cst_41 : f32 to vector<16x512xf32>
      %126 = arith.select %124, %122, %125 : vector<16x512xi1>, vector<16x512xf32>
      %127 = vector.broadcast %121 : vector<16x1xf32> to vector<16x512xf32>
      %128 = arith.mulf %127, %126 : vector<16x512xf32>
      %129 = arith.addf %120, %128 : vector<16x512xf32>
      %130 = vector.extract_strided_slice %104 {offsets = [0, 2], sizes = [16, 1], strides = [1, 1]} : vector<16x25xf32> to vector<16x1xf32>
      %c32_i32 = arith.constant 32 : i32
      %131 = tpu.dynamic_rotate %112 by %c32_i32 dim 1 : vector<16x512xf32>, i32 -> vector<16x512xf32>
      %cst_42 = arith.constant 0.000000e+00 : f32
      %132 = vector.shape_cast %15 : vector<1x512xi1> to vector<1x512xi1>
      %133 = vector.broadcast %132 : vector<1x512xi1> to vector<16x512xi1>
      %134 = vector.broadcast %cst_42 : f32 to vector<16x512xf32>
      %135 = arith.select %133, %131, %134 : vector<16x512xi1>, vector<16x512xf32>
      %136 = vector.broadcast %130 : vector<16x1xf32> to vector<16x512xf32>
      %137 = arith.mulf %136, %135 : vector<16x512xf32>
      %138 = arith.addf %129, %137 : vector<16x512xf32>
      %139 = vector.extract_strided_slice %104 {offsets = [0, 3], sizes = [16, 1], strides = [1, 1]} : vector<16x25xf32> to vector<16x1xf32>
      %c31_i32 = arith.constant 31 : i32
      %140 = tpu.dynamic_rotate %112 by %c31_i32 dim 1 : vector<16x512xf32>, i32 -> vector<16x512xf32>
      %cst_43 = arith.constant 0.000000e+00 : f32
      %141 = vector.shape_cast %81 : vector<1x512xi1> to vector<1x512xi1>
      %142 = vector.broadcast %141 : vector<1x512xi1> to vector<16x512xi1>
      %143 = vector.broadcast %cst_43 : f32 to vector<16x512xf32>
      %144 = arith.select %142, %140, %143 : vector<16x512xi1>, vector<16x512xf32>
      %145 = vector.broadcast %139 : vector<16x1xf32> to vector<16x512xf32>
      %146 = arith.mulf %145, %144 : vector<16x512xf32>
      %147 = arith.addf %138, %146 : vector<16x512xf32>
      %148 = vector.extract_strided_slice %104 {offsets = [0, 4], sizes = [16, 1], strides = [1, 1]} : vector<16x25xf32> to vector<16x1xf32>
      %c30_i32 = arith.constant 30 : i32
      %149 = tpu.dynamic_rotate %112 by %c30_i32 dim 1 : vector<16x512xf32>, i32 -> vector<16x512xf32>
      %cst_44 = arith.constant 0.000000e+00 : f32
      %150 = vector.shape_cast %82 : vector<1x512xi1> to vector<1x512xi1>
      %151 = vector.broadcast %150 : vector<1x512xi1> to vector<16x512xi1>
      %152 = vector.broadcast %cst_44 : f32 to vector<16x512xf32>
      %153 = arith.select %151, %149, %152 : vector<16x512xi1>, vector<16x512xf32>
      %154 = vector.broadcast %148 : vector<16x1xf32> to vector<16x512xf32>
      %155 = arith.mulf %154, %153 : vector<16x512xf32>
      %156 = arith.addf %147, %155 : vector<16x512xf32>
      %157 = vector.extract_strided_slice %104 {offsets = [0, 5], sizes = [16, 1], strides = [1, 1]} : vector<16x25xf32> to vector<16x1xf32>
      %c18_i32 = arith.constant 18 : i32
      %158 = tpu.dynamic_rotate %112 by %c18_i32 dim 1 : vector<16x512xf32>, i32 -> vector<16x512xf32>
      %cst_45 = arith.constant 0.000000e+00 : f32
      %159 = vector.shape_cast %83 : vector<1x512xi1> to vector<1x512xi1>
      %160 = vector.broadcast %159 : vector<1x512xi1> to vector<16x512xi1>
      %161 = vector.broadcast %cst_45 : f32 to vector<16x512xf32>
      %162 = arith.select %160, %158, %161 : vector<16x512xi1>, vector<16x512xf32>
      %163 = vector.broadcast %157 : vector<16x1xf32> to vector<16x512xf32>
      %164 = arith.mulf %163, %162 : vector<16x512xf32>
      %165 = arith.addf %156, %164 : vector<16x512xf32>
      %166 = vector.extract_strided_slice %104 {offsets = [0, 6], sizes = [16, 1], strides = [1, 1]} : vector<16x25xf32> to vector<16x1xf32>
      %c17_i32 = arith.constant 17 : i32
      %167 = tpu.dynamic_rotate %112 by %c17_i32 dim 1 : vector<16x512xf32>, i32 -> vector<16x512xf32>
      %cst_46 = arith.constant 0.000000e+00 : f32
      %168 = vector.shape_cast %84 : vector<1x512xi1> to vector<1x512xi1>
      %169 = vector.broadcast %168 : vector<1x512xi1> to vector<16x512xi1>
      %170 = vector.broadcast %cst_46 : f32 to vector<16x512xf32>
      %171 = arith.select %169, %167, %170 : vector<16x512xi1>, vector<16x512xf32>
      %172 = vector.broadcast %166 : vector<16x1xf32> to vector<16x512xf32>
      %173 = arith.mulf %172, %171 : vector<16x512xf32>
      %174 = arith.addf %165, %173 : vector<16x512xf32>
      %175 = vector.extract_strided_slice %104 {offsets = [0, 7], sizes = [16, 1], strides = [1, 1]} : vector<16x25xf32> to vector<16x1xf32>
      %c16_i32_47 = arith.constant 16 : i32
      %176 = tpu.dynamic_rotate %112 by %c16_i32_47 dim 1 : vector<16x512xf32>, i32 -> vector<16x512xf32>
      %cst_48 = arith.constant 0.000000e+00 : f32
      %177 = vector.shape_cast %24 : vector<1x512xi1> to vector<1x512xi1>
      %178 = vector.broadcast %177 : vector<1x512xi1> to vector<16x512xi1>
      %179 = vector.broadcast %cst_48 : f32 to vector<16x512xf32>
      %180 = arith.select %178, %176, %179 : vector<16x512xi1>, vector<16x512xf32>
      %181 = vector.broadcast %175 : vector<16x1xf32> to vector<16x512xf32>
      %182 = arith.mulf %181, %180 : vector<16x512xf32>
      %183 = arith.addf %174, %182 : vector<16x512xf32>
      %184 = vector.extract_strided_slice %104 {offsets = [0, 8], sizes = [16, 1], strides = [1, 1]} : vector<16x25xf32> to vector<16x1xf32>
      %c15_i32_49 = arith.constant 15 : i32
      %185 = tpu.dynamic_rotate %112 by %c15_i32_49 dim 1 : vector<16x512xf32>, i32 -> vector<16x512xf32>
      %cst_50 = arith.constant 0.000000e+00 : f32
      %186 = vector.shape_cast %85 : vector<1x512xi1> to vector<1x512xi1>
      %187 = vector.broadcast %186 : vector<1x512xi1> to vector<16x512xi1>
      %188 = vector.broadcast %cst_50 : f32 to vector<16x512xf32>
      %189 = arith.select %187, %185, %188 : vector<16x512xi1>, vector<16x512xf32>
      %190 = vector.broadcast %184 : vector<16x1xf32> to vector<16x512xf32>
      %191 = arith.mulf %190, %189 : vector<16x512xf32>
      %192 = arith.addf %183, %191 : vector<16x512xf32>
      %193 = vector.extract_strided_slice %104 {offsets = [0, 9], sizes = [16, 1], strides = [1, 1]} : vector<16x25xf32> to vector<16x1xf32>
      %c14_i32 = arith.constant 14 : i32
      %194 = tpu.dynamic_rotate %112 by %c14_i32 dim 1 : vector<16x512xf32>, i32 -> vector<16x512xf32>
      %cst_51 = arith.constant 0.000000e+00 : f32
      %195 = vector.shape_cast %86 : vector<1x512xi1> to vector<1x512xi1>
      %196 = vector.broadcast %195 : vector<1x512xi1> to vector<16x512xi1>
      %197 = vector.broadcast %cst_51 : f32 to vector<16x512xf32>
      %198 = arith.select %196, %194, %197 : vector<16x512xi1>, vector<16x512xf32>
      %199 = vector.broadcast %193 : vector<16x1xf32> to vector<16x512xf32>
      %200 = arith.mulf %199, %198 : vector<16x512xf32>
      %201 = arith.addf %192, %200 : vector<16x512xf32>
      %202 = vector.extract_strided_slice %104 {offsets = [0, 10], sizes = [16, 1], strides = [1, 1]} : vector<16x25xf32> to vector<16x1xf32>
      %c2_i32_52 = arith.constant 2 : i32
      %203 = tpu.dynamic_rotate %112 by %c2_i32_52 dim 1 : vector<16x512xf32>, i32 -> vector<16x512xf32>
      %cst_53 = arith.constant 0.000000e+00 : f32
      %204 = vector.shape_cast %51 : vector<1x512xi1> to vector<1x512xi1>
      %205 = vector.broadcast %204 : vector<1x512xi1> to vector<16x512xi1>
      %206 = vector.broadcast %cst_53 : f32 to vector<16x512xf32>
      %207 = arith.select %205, %203, %206 : vector<16x512xi1>, vector<16x512xf32>
      %208 = vector.broadcast %202 : vector<16x1xf32> to vector<16x512xf32>
      %209 = arith.mulf %208, %207 : vector<16x512xf32>
      %210 = arith.addf %201, %209 : vector<16x512xf32>
      %211 = vector.extract_strided_slice %104 {offsets = [0, 11], sizes = [16, 1], strides = [1, 1]} : vector<16x25xf32> to vector<16x1xf32>
      %c1_i32_54 = arith.constant 1 : i32
      %212 = tpu.dynamic_rotate %112 by %c1_i32_54 dim 1 : vector<16x512xf32>, i32 -> vector<16x512xf32>
      %cst_55 = arith.constant 0.000000e+00 : f32
      %213 = vector.shape_cast %60 : vector<1x512xi1> to vector<1x512xi1>
      %214 = vector.broadcast %213 : vector<1x512xi1> to vector<16x512xi1>
      %215 = vector.broadcast %cst_55 : f32 to vector<16x512xf32>
      %216 = arith.select %214, %212, %215 : vector<16x512xi1>, vector<16x512xf32>
      %217 = vector.broadcast %211 : vector<16x1xf32> to vector<16x512xf32>
      %218 = arith.mulf %217, %216 : vector<16x512xf32>
      %219 = arith.addf %210, %218 : vector<16x512xf32>
      %220 = vector.extract_strided_slice %104 {offsets = [0, 12], sizes = [16, 1], strides = [1, 1]} : vector<16x25xf32> to vector<16x1xf32>
      %221 = vector.broadcast %220 : vector<16x1xf32> to vector<16x512xf32>
      %222 = arith.mulf %221, %112 : vector<16x512xf32>
      %223 = arith.addf %219, %222 : vector<16x512xf32>
      %224 = vector.extract_strided_slice %104 {offsets = [0, 13], sizes = [16, 1], strides = [1, 1]} : vector<16x25xf32> to vector<16x1xf32>
      %c511_i32 = arith.constant 511 : i32
      %225 = tpu.dynamic_rotate %112 by %c511_i32 dim 1 : vector<16x512xf32>, i32 -> vector<16x512xf32>
      %cst_56 = arith.constant 0.000000e+00 : f32
      %226 = vector.shape_cast %69 : vector<1x512xi1> to vector<1x512xi1>
      %227 = vector.broadcast %226 : vector<1x512xi1> to vector<16x512xi1>
      %228 = vector.broadcast %cst_56 : f32 to vector<16x512xf32>
      %229 = arith.select %227, %225, %228 : vector<16x512xi1>, vector<16x512xf32>
      %230 = vector.broadcast %224 : vector<16x1xf32> to vector<16x512xf32>
      %231 = arith.mulf %230, %229 : vector<16x512xf32>
      %232 = arith.addf %223, %231 : vector<16x512xf32>
      %233 = vector.extract_strided_slice %104 {offsets = [0, 14], sizes = [16, 1], strides = [1, 1]} : vector<16x25xf32> to vector<16x1xf32>
      %c510_i32 = arith.constant 510 : i32
      %234 = tpu.dynamic_rotate %112 by %c510_i32 dim 1 : vector<16x512xf32>, i32 -> vector<16x512xf32>
      %cst_57 = arith.constant 0.000000e+00 : f32
      %235 = vector.shape_cast %78 : vector<1x512xi1> to vector<1x512xi1>
      %236 = vector.broadcast %235 : vector<1x512xi1> to vector<16x512xi1>
      %237 = vector.broadcast %cst_57 : f32 to vector<16x512xf32>
      %238 = arith.select %236, %234, %237 : vector<16x512xi1>, vector<16x512xf32>
      %239 = vector.broadcast %233 : vector<16x1xf32> to vector<16x512xf32>
      %240 = arith.mulf %239, %238 : vector<16x512xf32>
      %241 = arith.addf %232, %240 : vector<16x512xf32>
      %242 = vector.extract_strided_slice %104 {offsets = [0, 15], sizes = [16, 1], strides = [1, 1]} : vector<16x25xf32> to vector<16x1xf32>
      %c498_i32 = arith.constant 498 : i32
      %243 = tpu.dynamic_rotate %112 by %c498_i32 dim 1 : vector<16x512xf32>, i32 -> vector<16x512xf32>
      %cst_58 = arith.constant 0.000000e+00 : f32
      %244 = vector.shape_cast %87 : vector<1x512xi1> to vector<1x512xi1>
      %245 = vector.broadcast %244 : vector<1x512xi1> to vector<16x512xi1>
      %246 = vector.broadcast %cst_58 : f32 to vector<16x512xf32>
      %247 = arith.select %245, %243, %246 : vector<16x512xi1>, vector<16x512xf32>
      %248 = vector.broadcast %242 : vector<16x1xf32> to vector<16x512xf32>
      %249 = arith.mulf %248, %247 : vector<16x512xf32>
      %250 = arith.addf %241, %249 : vector<16x512xf32>
      %251 = vector.extract_strided_slice %104 {offsets = [0, 16], sizes = [16, 1], strides = [1, 1]} : vector<16x25xf32> to vector<16x1xf32>
      %c497_i32 = arith.constant 497 : i32
      %252 = tpu.dynamic_rotate %112 by %c497_i32 dim 1 : vector<16x512xf32>, i32 -> vector<16x512xf32>
      %cst_59 = arith.constant 0.000000e+00 : f32
      %253 = vector.shape_cast %88 : vector<1x512xi1> to vector<1x512xi1>
      %254 = vector.broadcast %253 : vector<1x512xi1> to vector<16x512xi1>
      %255 = vector.broadcast %cst_59 : f32 to vector<16x512xf32>
      %256 = arith.select %254, %252, %255 : vector<16x512xi1>, vector<16x512xf32>
      %257 = vector.broadcast %251 : vector<16x1xf32> to vector<16x512xf32>
      %258 = arith.mulf %257, %256 : vector<16x512xf32>
      %259 = arith.addf %250, %258 : vector<16x512xf32>
      %260 = vector.extract_strided_slice %104 {offsets = [0, 17], sizes = [16, 1], strides = [1, 1]} : vector<16x25xf32> to vector<16x1xf32>
      %c496_i32 = arith.constant 496 : i32
      %261 = tpu.dynamic_rotate %112 by %c496_i32 dim 1 : vector<16x512xf32>, i32 -> vector<16x512xf32>
      %cst_60 = arith.constant 0.000000e+00 : f32
      %262 = vector.shape_cast %33 : vector<1x512xi1> to vector<1x512xi1>
      %263 = vector.broadcast %262 : vector<1x512xi1> to vector<16x512xi1>
      %264 = vector.broadcast %cst_60 : f32 to vector<16x512xf32>
      %265 = arith.select %263, %261, %264 : vector<16x512xi1>, vector<16x512xf32>
      %266 = vector.broadcast %260 : vector<16x1xf32> to vector<16x512xf32>
      %267 = arith.mulf %266, %265 : vector<16x512xf32>
      %268 = arith.addf %259, %267 : vector<16x512xf32>
      %269 = vector.extract_strided_slice %104 {offsets = [0, 18], sizes = [16, 1], strides = [1, 1]} : vector<16x25xf32> to vector<16x1xf32>
      %c495_i32 = arith.constant 495 : i32
      %270 = tpu.dynamic_rotate %112 by %c495_i32 dim 1 : vector<16x512xf32>, i32 -> vector<16x512xf32>
      %cst_61 = arith.constant 0.000000e+00 : f32
      %271 = vector.shape_cast %89 : vector<1x512xi1> to vector<1x512xi1>
      %272 = vector.broadcast %271 : vector<1x512xi1> to vector<16x512xi1>
      %273 = vector.broadcast %cst_61 : f32 to vector<16x512xf32>
      %274 = arith.select %272, %270, %273 : vector<16x512xi1>, vector<16x512xf32>
      %275 = vector.broadcast %269 : vector<16x1xf32> to vector<16x512xf32>
      %276 = arith.mulf %275, %274 : vector<16x512xf32>
      %277 = arith.addf %268, %276 : vector<16x512xf32>
      %278 = vector.extract_strided_slice %104 {offsets = [0, 19], sizes = [16, 1], strides = [1, 1]} : vector<16x25xf32> to vector<16x1xf32>
      %c494_i32 = arith.constant 494 : i32
      %279 = tpu.dynamic_rotate %112 by %c494_i32 dim 1 : vector<16x512xf32>, i32 -> vector<16x512xf32>
      %cst_62 = arith.constant 0.000000e+00 : f32
      %280 = vector.shape_cast %90 : vector<1x512xi1> to vector<1x512xi1>
      %281 = vector.broadcast %280 : vector<1x512xi1> to vector<16x512xi1>
      %282 = vector.broadcast %cst_62 : f32 to vector<16x512xf32>
      %283 = arith.select %281, %279, %282 : vector<16x512xi1>, vector<16x512xf32>
      %284 = vector.broadcast %278 : vector<16x1xf32> to vector<16x512xf32>
      %285 = arith.mulf %284, %283 : vector<16x512xf32>
      %286 = arith.addf %277, %285 : vector<16x512xf32>
      %287 = vector.extract_strided_slice %104 {offsets = [0, 20], sizes = [16, 1], strides = [1, 1]} : vector<16x25xf32> to vector<16x1xf32>
      %c482_i32 = arith.constant 482 : i32
      %288 = tpu.dynamic_rotate %112 by %c482_i32 dim 1 : vector<16x512xf32>, i32 -> vector<16x512xf32>
      %cst_63 = arith.constant 0.000000e+00 : f32
      %289 = vector.shape_cast %91 : vector<1x512xi1> to vector<1x512xi1>
      %290 = vector.broadcast %289 : vector<1x512xi1> to vector<16x512xi1>
      %291 = vector.broadcast %cst_63 : f32 to vector<16x512xf32>
      %292 = arith.select %290, %288, %291 : vector<16x512xi1>, vector<16x512xf32>
      %293 = vector.broadcast %287 : vector<16x1xf32> to vector<16x512xf32>
      %294 = arith.mulf %293, %292 : vector<16x512xf32>
      %295 = arith.addf %286, %294 : vector<16x512xf32>
      %296 = vector.extract_strided_slice %104 {offsets = [0, 21], sizes = [16, 1], strides = [1, 1]} : vector<16x25xf32> to vector<16x1xf32>
      %c481_i32 = arith.constant 481 : i32
      %297 = tpu.dynamic_rotate %112 by %c481_i32 dim 1 : vector<16x512xf32>, i32 -> vector<16x512xf32>
      %cst_64 = arith.constant 0.000000e+00 : f32
      %298 = vector.shape_cast %92 : vector<1x512xi1> to vector<1x512xi1>
      %299 = vector.broadcast %298 : vector<1x512xi1> to vector<16x512xi1>
      %300 = vector.broadcast %cst_64 : f32 to vector<16x512xf32>
      %301 = arith.select %299, %297, %300 : vector<16x512xi1>, vector<16x512xf32>
      %302 = vector.broadcast %296 : vector<16x1xf32> to vector<16x512xf32>
      %303 = arith.mulf %302, %301 : vector<16x512xf32>
      %304 = arith.addf %295, %303 : vector<16x512xf32>
      %305 = vector.extract_strided_slice %104 {offsets = [0, 22], sizes = [16, 1], strides = [1, 1]} : vector<16x25xf32> to vector<16x1xf32>
      %c480_i32 = arith.constant 480 : i32
      %306 = tpu.dynamic_rotate %112 by %c480_i32 dim 1 : vector<16x512xf32>, i32 -> vector<16x512xf32>
      %cst_65 = arith.constant 0.000000e+00 : f32
      %307 = vector.shape_cast %42 : vector<1x512xi1> to vector<1x512xi1>
      %308 = vector.broadcast %307 : vector<1x512xi1> to vector<16x512xi1>
      %309 = vector.broadcast %cst_65 : f32 to vector<16x512xf32>
      %310 = arith.select %308, %306, %309 : vector<16x512xi1>, vector<16x512xf32>
      %311 = vector.broadcast %305 : vector<16x1xf32> to vector<16x512xf32>
      %312 = arith.mulf %311, %310 : vector<16x512xf32>
      %313 = arith.addf %304, %312 : vector<16x512xf32>
      %314 = vector.extract_strided_slice %104 {offsets = [0, 23], sizes = [16, 1], strides = [1, 1]} : vector<16x25xf32> to vector<16x1xf32>
      %c479_i32 = arith.constant 479 : i32
      %315 = tpu.dynamic_rotate %112 by %c479_i32 dim 1 : vector<16x512xf32>, i32 -> vector<16x512xf32>
      %cst_66 = arith.constant 0.000000e+00 : f32
      %316 = vector.shape_cast %93 : vector<1x512xi1> to vector<1x512xi1>
      %317 = vector.broadcast %316 : vector<1x512xi1> to vector<16x512xi1>
      %318 = vector.broadcast %cst_66 : f32 to vector<16x512xf32>
      %319 = arith.select %317, %315, %318 : vector<16x512xi1>, vector<16x512xf32>
      %320 = vector.broadcast %314 : vector<16x1xf32> to vector<16x512xf32>
      %321 = arith.mulf %320, %319 : vector<16x512xf32>
      %322 = arith.addf %313, %321 : vector<16x512xf32>
      %323 = vector.extract_strided_slice %104 {offsets = [0, 24], sizes = [16, 1], strides = [1, 1]} : vector<16x25xf32> to vector<16x1xf32>
      %c478_i32 = arith.constant 478 : i32
      %324 = tpu.dynamic_rotate %112 by %c478_i32 dim 1 : vector<16x512xf32>, i32 -> vector<16x512xf32>
      %cst_67 = arith.constant 0.000000e+00 : f32
      %325 = vector.shape_cast %94 : vector<1x512xi1> to vector<1x512xi1>
      %326 = vector.broadcast %325 : vector<1x512xi1> to vector<16x512xi1>
      %327 = vector.broadcast %cst_67 : f32 to vector<16x512xf32>
      %328 = arith.select %326, %324, %327 : vector<16x512xi1>, vector<16x512xf32>
      %329 = vector.broadcast %323 : vector<16x1xf32> to vector<16x512xf32>
      %330 = arith.mulf %329, %328 : vector<16x512xf32>
      %331 = arith.addf %322, %330 : vector<16x512xf32>
      %332 = vector.broadcast %105 : vector<16x1xf32> to vector<16x512xf32>
      %333 = arith.addf %331, %332 : vector<16x512xf32>
      %c1_i32_68 = arith.constant 1 : i32
      %334 = tpu.dynamic_rotate %333 by %c1_i32_68 dim 1 : vector<16x512xf32>, i32 -> vector<16x512xf32>
      %cst_69 = arith.constant 0.000000e+00 : f32
      %335 = vector.shape_cast %60 : vector<1x512xi1> to vector<1x512xi1>
      %336 = vector.broadcast %335 : vector<1x512xi1> to vector<16x512xi1>
      %337 = vector.broadcast %cst_69 : f32 to vector<16x512xf32>
      %338 = arith.select %336, %334, %337 : vector<16x512xi1>, vector<16x512xf32>
      %339 = arith.addf %338, %333 : vector<16x512xf32>
      %c511_i32_70 = arith.constant 511 : i32
      %340 = tpu.dynamic_rotate %333 by %c511_i32_70 dim 1 : vector<16x512xf32>, i32 -> vector<16x512xf32>
      %cst_71 = arith.constant 0.000000e+00 : f32
      %341 = vector.shape_cast %69 : vector<1x512xi1> to vector<1x512xi1>
      %342 = vector.broadcast %341 : vector<1x512xi1> to vector<16x512xi1>
      %343 = vector.broadcast %cst_71 : f32 to vector<16x512xf32>
      %344 = arith.select %342, %340, %343 : vector<16x512xi1>, vector<16x512xf32>
      %345 = arith.addf %339, %344 : vector<16x512xf32>
      %c16_i32_72 = arith.constant 16 : i32
      %346 = tpu.dynamic_rotate %345 by %c16_i32_72 dim 1 : vector<16x512xf32>, i32 -> vector<16x512xf32>
      %cst_73 = arith.constant 0.000000e+00 : f32
      %347 = vector.shape_cast %24 : vector<1x512xi1> to vector<1x512xi1>
      %348 = vector.broadcast %347 : vector<1x512xi1> to vector<16x512xi1>
      %349 = vector.broadcast %cst_73 : f32 to vector<16x512xf32>
      %350 = arith.select %348, %346, %349 : vector<16x512xi1>, vector<16x512xf32>
      %351 = arith.addf %350, %345 : vector<16x512xf32>
      %c496_i32_74 = arith.constant 496 : i32
      %352 = tpu.dynamic_rotate %345 by %c496_i32_74 dim 1 : vector<16x512xf32>, i32 -> vector<16x512xf32>
      %cst_75 = arith.constant 0.000000e+00 : f32
      %353 = vector.shape_cast %33 : vector<1x512xi1> to vector<1x512xi1>
      %354 = vector.broadcast %353 : vector<1x512xi1> to vector<16x512xi1>
      %355 = vector.broadcast %cst_75 : f32 to vector<16x512xf32>
      %356 = arith.select %354, %352, %355 : vector<16x512xi1>, vector<16x512xf32>
      %357 = arith.addf %351, %356 : vector<16x512xf32>
      %cst_76 = arith.constant 0.111111112 : f32
      %358 = vector.broadcast %cst_76 : f32 to vector<16x512xf32>
      %359 = arith.mulf %357, %358 : vector<16x512xf32>
      %360 = math.tanh %359 : vector<16x512xf32>
      %cst_77 = arith.constant dense<0.000000e+00> : vector<16x512xf32>
      %361 = tpu.matmul %106, %360, %cst_77 {dimension_numbers = #tpu.dot_dimension_numbers<[1], [0], [0], [1], [0, 0, 1, 1], [], []>} : vector<16x16xf32>, vector<16x512xf32>, vector<16x512xf32> -> vector<16x512xf32>
      %362 = vector.broadcast %107 : vector<16x1xf32> to vector<16x512xf32>
      %363 = arith.addf %361, %362 : vector<16x512xf32>
      %364 = math.tanh %363 : vector<16x512xf32>
      %cst_78 = arith.constant dense<0.000000e+00> : vector<16x512xf32>
      %365 = tpu.matmul %108, %364, %cst_78 {dimension_numbers = #tpu.dot_dimension_numbers<[1], [0], [0], [1], [0, 0, 1, 1], [], []>} : vector<16x16xf32>, vector<16x512xf32>, vector<16x512xf32> -> vector<16x512xf32>
      %366 = vector.broadcast %109 : vector<16x1xf32> to vector<16x512xf32>
      %367 = arith.addf %365, %366 : vector<16x512xf32>
      %368 = math.tanh %367 : vector<16x512xf32>
      %c0_79 = arith.constant 0 : index
      %c0_80 = arith.constant 0 : index
      %c0_81 = arith.constant 0 : index
      %369 = vector.load %arg5[%c0_79, %c0_80, %c0_81] : memref<1x32x512xf32, #tpu.memory_space<vmem>>, vector<1x16x512xf32>
      %370 = vector.shape_cast %369 : vector<1x16x512xf32> to vector<16x512xf32>
      %371 = vector.shape_cast %368 : vector<16x512xf32> to vector<1x16x512xf32>
      tpu.vector_store %arg5[%c0_79, %c0_80, %c0_81], %371 {strides = array<i32>} : memref<1x32x512xf32, #tpu.memory_space<vmem>>, vector<1x16x512xf32>,
      %c0_82 = arith.constant 0 : index
      %c16_83 = arith.constant 16 : index
      %c0_84 = arith.constant 0 : index
      %372 = vector.load %arg5[%c0_82, %c16_83, %c0_84] : memref<1x32x512xf32, #tpu.memory_space<vmem>>, vector<1x16x512xf32>
      %373 = vector.shape_cast %372 : vector<1x16x512xf32> to vector<16x512xf32>
      %374 = vector.shape_cast %360 : vector<16x512xf32> to vector<1x16x512xf32>
      tpu.vector_store %arg5[%c0_82, %c16_83, %c0_84], %374 {strides = array<i32>} : memref<1x32x512xf32, #tpu.memory_space<vmem>>, vector<1x16x512xf32>,
    } else {
    }
    %c1_i32_28 = arith.constant 1 : i32
    %98 = arith.cmpi eq, %arg0, %c1_i32_28 : i32
    %99 = arith.extui %98 : i1 to i32
    %c0_i32_29 = arith.constant 0 : i32
    %100 = arith.cmpi ne, %99, %c0_i32_29 : i32
    scf.if %100 {
      %c0 = arith.constant 0 : index
      %c0_30 = arith.constant 0 : index
      %101 = vector.load %arg2[%c0, %c0_30] : memref<6x512xf32, #tpu.memory_space<vmem>>, vector<6x512xf32>
      %c0_31 = arith.constant 0 : index
      %c0_32 = arith.constant 0 : index
      %102 = vector.load %arg4[%c0_31, %c0_32] : memref<32x29xf32, #tpu.memory_space<vmem>>, vector<8x6xf32>
      %c0_33 = arith.constant 0 : index
      %c25 = arith.constant 25 : index
      %103 = vector.load %arg4[%c0_33, %c25] : memref<32x29xf32, #tpu.memory_space<vmem>>, vector<8x1xf32>
      %c8 = arith.constant 8 : index
      %c0_34 = arith.constant 0 : index
      %104 = vector.load %arg4[%c8, %c0_34] : memref<32x29xf32, #tpu.memory_space<vmem>>, vector<8x25xf32>
      %c0_35 = arith.constant 0 : index
      %c26 = arith.constant 26 : index
      %105 = vector.load %arg4[%c0_35, %c26] : memref<32x29xf32, #tpu.memory_space<vmem>>, vector<8x1xf32>
      %c16 = arith.constant 16 : index
      %c0_36 = arith.constant 0 : index
      %106 = vector.load %arg4[%c16, %c0_36] : memref<32x29xf32, #tpu.memory_space<vmem>>, vector<8x8xf32>
      %c0_37 = arith.constant 0 : index
      %c27 = arith.constant 27 : index
      %107 = vector.load %arg4[%c0_37, %c27] : memref<32x29xf32, #tpu.memory_space<vmem>>, vector<8x1xf32>
      %c24 = arith.constant 24 : index
      %c0_38 = arith.constant 0 : index
      %108 = vector.load %arg4[%c24, %c0_38] : memref<32x29xf32, #tpu.memory_space<vmem>>, vector<8x8xf32>
      %c0_39 = arith.constant 0 : index
      %c28 = arith.constant 28 : index
      %109 = vector.load %arg4[%c0_39, %c28] : memref<32x29xf32, #tpu.memory_space<vmem>>, vector<8x1xf32>
      %cst = arith.constant dense<0.000000e+00> : vector<8x512xf32>
      %110 = tpu.matmul %102, %101, %cst {dimension_numbers = #tpu.dot_dimension_numbers<[1], [0], [0], [1], [0, 0, 1, 1], [], []>} : vector<8x6xf32>, vector<6x512xf32>, vector<8x512xf32> -> vector<8x512xf32>
      %111 = vector.broadcast %103 : vector<8x1xf32> to vector<8x512xf32>
      %112 = arith.addf %110, %111 : vector<8x512xf32>
      %113 = vector.extract_strided_slice %104 {offsets = [0, 0], sizes = [8, 1], strides = [1, 1]} : vector<8x25xf32> to vector<8x1xf32>
      %c34_i32 = arith.constant 34 : i32
      %114 = tpu.dynamic_rotate %112 by %c34_i32 dim 1 : vector<8x512xf32>, i32 -> vector<8x512xf32>
      %cst_40 = arith.constant 0.000000e+00 : f32
      %115 = vector.shape_cast %79 : vector<1x512xi1> to vector<1x512xi1>
      %116 = vector.broadcast %115 : vector<1x512xi1> to vector<8x512xi1>
      %117 = vector.broadcast %cst_40 : f32 to vector<8x512xf32>
      %118 = arith.select %116, %114, %117 : vector<8x512xi1>, vector<8x512xf32>
      %119 = vector.broadcast %113 : vector<8x1xf32> to vector<8x512xf32>
      %120 = arith.mulf %119, %118 : vector<8x512xf32>
      %121 = vector.extract_strided_slice %104 {offsets = [0, 1], sizes = [8, 1], strides = [1, 1]} : vector<8x25xf32> to vector<8x1xf32>
      %c33_i32 = arith.constant 33 : i32
      %122 = tpu.dynamic_rotate %112 by %c33_i32 dim 1 : vector<8x512xf32>, i32 -> vector<8x512xf32>
      %cst_41 = arith.constant 0.000000e+00 : f32
      %123 = vector.shape_cast %80 : vector<1x512xi1> to vector<1x512xi1>
      %124 = vector.broadcast %123 : vector<1x512xi1> to vector<8x512xi1>
      %125 = vector.broadcast %cst_41 : f32 to vector<8x512xf32>
      %126 = arith.select %124, %122, %125 : vector<8x512xi1>, vector<8x512xf32>
      %127 = vector.broadcast %121 : vector<8x1xf32> to vector<8x512xf32>
      %128 = arith.mulf %127, %126 : vector<8x512xf32>
      %129 = arith.addf %120, %128 : vector<8x512xf32>
      %130 = vector.extract_strided_slice %104 {offsets = [0, 2], sizes = [8, 1], strides = [1, 1]} : vector<8x25xf32> to vector<8x1xf32>
      %c32_i32 = arith.constant 32 : i32
      %131 = tpu.dynamic_rotate %112 by %c32_i32 dim 1 : vector<8x512xf32>, i32 -> vector<8x512xf32>
      %cst_42 = arith.constant 0.000000e+00 : f32
      %132 = vector.shape_cast %15 : vector<1x512xi1> to vector<1x512xi1>
      %133 = vector.broadcast %132 : vector<1x512xi1> to vector<8x512xi1>
      %134 = vector.broadcast %cst_42 : f32 to vector<8x512xf32>
      %135 = arith.select %133, %131, %134 : vector<8x512xi1>, vector<8x512xf32>
      %136 = vector.broadcast %130 : vector<8x1xf32> to vector<8x512xf32>
      %137 = arith.mulf %136, %135 : vector<8x512xf32>
      %138 = arith.addf %129, %137 : vector<8x512xf32>
      %139 = vector.extract_strided_slice %104 {offsets = [0, 3], sizes = [8, 1], strides = [1, 1]} : vector<8x25xf32> to vector<8x1xf32>
      %c31_i32 = arith.constant 31 : i32
      %140 = tpu.dynamic_rotate %112 by %c31_i32 dim 1 : vector<8x512xf32>, i32 -> vector<8x512xf32>
      %cst_43 = arith.constant 0.000000e+00 : f32
      %141 = vector.shape_cast %81 : vector<1x512xi1> to vector<1x512xi1>
      %142 = vector.broadcast %141 : vector<1x512xi1> to vector<8x512xi1>
      %143 = vector.broadcast %cst_43 : f32 to vector<8x512xf32>
      %144 = arith.select %142, %140, %143 : vector<8x512xi1>, vector<8x512xf32>
      %145 = vector.broadcast %139 : vector<8x1xf32> to vector<8x512xf32>
      %146 = arith.mulf %145, %144 : vector<8x512xf32>
      %147 = arith.addf %138, %146 : vector<8x512xf32>
      %148 = vector.extract_strided_slice %104 {offsets = [0, 4], sizes = [8, 1], strides = [1, 1]} : vector<8x25xf32> to vector<8x1xf32>
      %c30_i32 = arith.constant 30 : i32
      %149 = tpu.dynamic_rotate %112 by %c30_i32 dim 1 : vector<8x512xf32>, i32 -> vector<8x512xf32>
      %cst_44 = arith.constant 0.000000e+00 : f32
      %150 = vector.shape_cast %82 : vector<1x512xi1> to vector<1x512xi1>
      %151 = vector.broadcast %150 : vector<1x512xi1> to vector<8x512xi1>
      %152 = vector.broadcast %cst_44 : f32 to vector<8x512xf32>
      %153 = arith.select %151, %149, %152 : vector<8x512xi1>, vector<8x512xf32>
      %154 = vector.broadcast %148 : vector<8x1xf32> to vector<8x512xf32>
      %155 = arith.mulf %154, %153 : vector<8x512xf32>
      %156 = arith.addf %147, %155 : vector<8x512xf32>
      %157 = vector.extract_strided_slice %104 {offsets = [0, 5], sizes = [8, 1], strides = [1, 1]} : vector<8x25xf32> to vector<8x1xf32>
      %c18_i32 = arith.constant 18 : i32
      %158 = tpu.dynamic_rotate %112 by %c18_i32 dim 1 : vector<8x512xf32>, i32 -> vector<8x512xf32>
      %cst_45 = arith.constant 0.000000e+00 : f32
      %159 = vector.shape_cast %83 : vector<1x512xi1> to vector<1x512xi1>
      %160 = vector.broadcast %159 : vector<1x512xi1> to vector<8x512xi1>
      %161 = vector.broadcast %cst_45 : f32 to vector<8x512xf32>
      %162 = arith.select %160, %158, %161 : vector<8x512xi1>, vector<8x512xf32>
      %163 = vector.broadcast %157 : vector<8x1xf32> to vector<8x512xf32>
      %164 = arith.mulf %163, %162 : vector<8x512xf32>
      %165 = arith.addf %156, %164 : vector<8x512xf32>
      %166 = vector.extract_strided_slice %104 {offsets = [0, 6], sizes = [8, 1], strides = [1, 1]} : vector<8x25xf32> to vector<8x1xf32>
      %c17_i32 = arith.constant 17 : i32
      %167 = tpu.dynamic_rotate %112 by %c17_i32 dim 1 : vector<8x512xf32>, i32 -> vector<8x512xf32>
      %cst_46 = arith.constant 0.000000e+00 : f32
      %168 = vector.shape_cast %84 : vector<1x512xi1> to vector<1x512xi1>
      %169 = vector.broadcast %168 : vector<1x512xi1> to vector<8x512xi1>
      %170 = vector.broadcast %cst_46 : f32 to vector<8x512xf32>
      %171 = arith.select %169, %167, %170 : vector<8x512xi1>, vector<8x512xf32>
      %172 = vector.broadcast %166 : vector<8x1xf32> to vector<8x512xf32>
      %173 = arith.mulf %172, %171 : vector<8x512xf32>
      %174 = arith.addf %165, %173 : vector<8x512xf32>
      %175 = vector.extract_strided_slice %104 {offsets = [0, 7], sizes = [8, 1], strides = [1, 1]} : vector<8x25xf32> to vector<8x1xf32>
      %c16_i32_47 = arith.constant 16 : i32
      %176 = tpu.dynamic_rotate %112 by %c16_i32_47 dim 1 : vector<8x512xf32>, i32 -> vector<8x512xf32>
      %cst_48 = arith.constant 0.000000e+00 : f32
      %177 = vector.shape_cast %24 : vector<1x512xi1> to vector<1x512xi1>
      %178 = vector.broadcast %177 : vector<1x512xi1> to vector<8x512xi1>
      %179 = vector.broadcast %cst_48 : f32 to vector<8x512xf32>
      %180 = arith.select %178, %176, %179 : vector<8x512xi1>, vector<8x512xf32>
      %181 = vector.broadcast %175 : vector<8x1xf32> to vector<8x512xf32>
      %182 = arith.mulf %181, %180 : vector<8x512xf32>
      %183 = arith.addf %174, %182 : vector<8x512xf32>
      %184 = vector.extract_strided_slice %104 {offsets = [0, 8], sizes = [8, 1], strides = [1, 1]} : vector<8x25xf32> to vector<8x1xf32>
      %c15_i32_49 = arith.constant 15 : i32
      %185 = tpu.dynamic_rotate %112 by %c15_i32_49 dim 1 : vector<8x512xf32>, i32 -> vector<8x512xf32>
      %cst_50 = arith.constant 0.000000e+00 : f32
      %186 = vector.shape_cast %85 : vector<1x512xi1> to vector<1x512xi1>
      %187 = vector.broadcast %186 : vector<1x512xi1> to vector<8x512xi1>
      %188 = vector.broadcast %cst_50 : f32 to vector<8x512xf32>
      %189 = arith.select %187, %185, %188 : vector<8x512xi1>, vector<8x512xf32>
      %190 = vector.broadcast %184 : vector<8x1xf32> to vector<8x512xf32>
      %191 = arith.mulf %190, %189 : vector<8x512xf32>
      %192 = arith.addf %183, %191 : vector<8x512xf32>
      %193 = vector.extract_strided_slice %104 {offsets = [0, 9], sizes = [8, 1], strides = [1, 1]} : vector<8x25xf32> to vector<8x1xf32>
      %c14_i32 = arith.constant 14 : i32
      %194 = tpu.dynamic_rotate %112 by %c14_i32 dim 1 : vector<8x512xf32>, i32 -> vector<8x512xf32>
      %cst_51 = arith.constant 0.000000e+00 : f32
      %195 = vector.shape_cast %86 : vector<1x512xi1> to vector<1x512xi1>
      %196 = vector.broadcast %195 : vector<1x512xi1> to vector<8x512xi1>
      %197 = vector.broadcast %cst_51 : f32 to vector<8x512xf32>
      %198 = arith.select %196, %194, %197 : vector<8x512xi1>, vector<8x512xf32>
      %199 = vector.broadcast %193 : vector<8x1xf32> to vector<8x512xf32>
      %200 = arith.mulf %199, %198 : vector<8x512xf32>
      %201 = arith.addf %192, %200 : vector<8x512xf32>
      %202 = vector.extract_strided_slice %104 {offsets = [0, 10], sizes = [8, 1], strides = [1, 1]} : vector<8x25xf32> to vector<8x1xf32>
      %c2_i32_52 = arith.constant 2 : i32
      %203 = tpu.dynamic_rotate %112 by %c2_i32_52 dim 1 : vector<8x512xf32>, i32 -> vector<8x512xf32>
      %cst_53 = arith.constant 0.000000e+00 : f32
      %204 = vector.shape_cast %51 : vector<1x512xi1> to vector<1x512xi1>
      %205 = vector.broadcast %204 : vector<1x512xi1> to vector<8x512xi1>
      %206 = vector.broadcast %cst_53 : f32 to vector<8x512xf32>
      %207 = arith.select %205, %203, %206 : vector<8x512xi1>, vector<8x512xf32>
      %208 = vector.broadcast %202 : vector<8x1xf32> to vector<8x512xf32>
      %209 = arith.mulf %208, %207 : vector<8x512xf32>
      %210 = arith.addf %201, %209 : vector<8x512xf32>
      %211 = vector.extract_strided_slice %104 {offsets = [0, 11], sizes = [8, 1], strides = [1, 1]} : vector<8x25xf32> to vector<8x1xf32>
      %c1_i32_54 = arith.constant 1 : i32
      %212 = tpu.dynamic_rotate %112 by %c1_i32_54 dim 1 : vector<8x512xf32>, i32 -> vector<8x512xf32>
      %cst_55 = arith.constant 0.000000e+00 : f32
      %213 = vector.shape_cast %60 : vector<1x512xi1> to vector<1x512xi1>
      %214 = vector.broadcast %213 : vector<1x512xi1> to vector<8x512xi1>
      %215 = vector.broadcast %cst_55 : f32 to vector<8x512xf32>
      %216 = arith.select %214, %212, %215 : vector<8x512xi1>, vector<8x512xf32>
      %217 = vector.broadcast %211 : vector<8x1xf32> to vector<8x512xf32>
      %218 = arith.mulf %217, %216 : vector<8x512xf32>
      %219 = arith.addf %210, %218 : vector<8x512xf32>
      %220 = vector.extract_strided_slice %104 {offsets = [0, 12], sizes = [8, 1], strides = [1, 1]} : vector<8x25xf32> to vector<8x1xf32>
      %221 = vector.broadcast %220 : vector<8x1xf32> to vector<8x512xf32>
      %222 = arith.mulf %221, %112 : vector<8x512xf32>
      %223 = arith.addf %219, %222 : vector<8x512xf32>
      %224 = vector.extract_strided_slice %104 {offsets = [0, 13], sizes = [8, 1], strides = [1, 1]} : vector<8x25xf32> to vector<8x1xf32>
      %c511_i32 = arith.constant 511 : i32
      %225 = tpu.dynamic_rotate %112 by %c511_i32 dim 1 : vector<8x512xf32>, i32 -> vector<8x512xf32>
      %cst_56 = arith.constant 0.000000e+00 : f32
      %226 = vector.shape_cast %69 : vector<1x512xi1> to vector<1x512xi1>
      %227 = vector.broadcast %226 : vector<1x512xi1> to vector<8x512xi1>
      %228 = vector.broadcast %cst_56 : f32 to vector<8x512xf32>
      %229 = arith.select %227, %225, %228 : vector<8x512xi1>, vector<8x512xf32>
      %230 = vector.broadcast %224 : vector<8x1xf32> to vector<8x512xf32>
      %231 = arith.mulf %230, %229 : vector<8x512xf32>
      %232 = arith.addf %223, %231 : vector<8x512xf32>
      %233 = vector.extract_strided_slice %104 {offsets = [0, 14], sizes = [8, 1], strides = [1, 1]} : vector<8x25xf32> to vector<8x1xf32>
      %c510_i32 = arith.constant 510 : i32
      %234 = tpu.dynamic_rotate %112 by %c510_i32 dim 1 : vector<8x512xf32>, i32 -> vector<8x512xf32>
      %cst_57 = arith.constant 0.000000e+00 : f32
      %235 = vector.shape_cast %78 : vector<1x512xi1> to vector<1x512xi1>
      %236 = vector.broadcast %235 : vector<1x512xi1> to vector<8x512xi1>
      %237 = vector.broadcast %cst_57 : f32 to vector<8x512xf32>
      %238 = arith.select %236, %234, %237 : vector<8x512xi1>, vector<8x512xf32>
      %239 = vector.broadcast %233 : vector<8x1xf32> to vector<8x512xf32>
      %240 = arith.mulf %239, %238 : vector<8x512xf32>
      %241 = arith.addf %232, %240 : vector<8x512xf32>
      %242 = vector.extract_strided_slice %104 {offsets = [0, 15], sizes = [8, 1], strides = [1, 1]} : vector<8x25xf32> to vector<8x1xf32>
      %c498_i32 = arith.constant 498 : i32
      %243 = tpu.dynamic_rotate %112 by %c498_i32 dim 1 : vector<8x512xf32>, i32 -> vector<8x512xf32>
      %cst_58 = arith.constant 0.000000e+00 : f32
      %244 = vector.shape_cast %87 : vector<1x512xi1> to vector<1x512xi1>
      %245 = vector.broadcast %244 : vector<1x512xi1> to vector<8x512xi1>
      %246 = vector.broadcast %cst_58 : f32 to vector<8x512xf32>
      %247 = arith.select %245, %243, %246 : vector<8x512xi1>, vector<8x512xf32>
      %248 = vector.broadcast %242 : vector<8x1xf32> to vector<8x512xf32>
      %249 = arith.mulf %248, %247 : vector<8x512xf32>
      %250 = arith.addf %241, %249 : vector<8x512xf32>
      %251 = vector.extract_strided_slice %104 {offsets = [0, 16], sizes = [8, 1], strides = [1, 1]} : vector<8x25xf32> to vector<8x1xf32>
      %c497_i32 = arith.constant 497 : i32
      %252 = tpu.dynamic_rotate %112 by %c497_i32 dim 1 : vector<8x512xf32>, i32 -> vector<8x512xf32>
      %cst_59 = arith.constant 0.000000e+00 : f32
      %253 = vector.shape_cast %88 : vector<1x512xi1> to vector<1x512xi1>
      %254 = vector.broadcast %253 : vector<1x512xi1> to vector<8x512xi1>
      %255 = vector.broadcast %cst_59 : f32 to vector<8x512xf32>
      %256 = arith.select %254, %252, %255 : vector<8x512xi1>, vector<8x512xf32>
      %257 = vector.broadcast %251 : vector<8x1xf32> to vector<8x512xf32>
      %258 = arith.mulf %257, %256 : vector<8x512xf32>
      %259 = arith.addf %250, %258 : vector<8x512xf32>
      %260 = vector.extract_strided_slice %104 {offsets = [0, 17], sizes = [8, 1], strides = [1, 1]} : vector<8x25xf32> to vector<8x1xf32>
      %c496_i32 = arith.constant 496 : i32
      %261 = tpu.dynamic_rotate %112 by %c496_i32 dim 1 : vector<8x512xf32>, i32 -> vector<8x512xf32>
      %cst_60 = arith.constant 0.000000e+00 : f32
      %262 = vector.shape_cast %33 : vector<1x512xi1> to vector<1x512xi1>
      %263 = vector.broadcast %262 : vector<1x512xi1> to vector<8x512xi1>
      %264 = vector.broadcast %cst_60 : f32 to vector<8x512xf32>
      %265 = arith.select %263, %261, %264 : vector<8x512xi1>, vector<8x512xf32>
      %266 = vector.broadcast %260 : vector<8x1xf32> to vector<8x512xf32>
      %267 = arith.mulf %266, %265 : vector<8x512xf32>
      %268 = arith.addf %259, %267 : vector<8x512xf32>
      %269 = vector.extract_strided_slice %104 {offsets = [0, 18], sizes = [8, 1], strides = [1, 1]} : vector<8x25xf32> to vector<8x1xf32>
      %c495_i32 = arith.constant 495 : i32
      %270 = tpu.dynamic_rotate %112 by %c495_i32 dim 1 : vector<8x512xf32>, i32 -> vector<8x512xf32>
      %cst_61 = arith.constant 0.000000e+00 : f32
      %271 = vector.shape_cast %89 : vector<1x512xi1> to vector<1x512xi1>
      %272 = vector.broadcast %271 : vector<1x512xi1> to vector<8x512xi1>
      %273 = vector.broadcast %cst_61 : f32 to vector<8x512xf32>
      %274 = arith.select %272, %270, %273 : vector<8x512xi1>, vector<8x512xf32>
      %275 = vector.broadcast %269 : vector<8x1xf32> to vector<8x512xf32>
      %276 = arith.mulf %275, %274 : vector<8x512xf32>
      %277 = arith.addf %268, %276 : vector<8x512xf32>
      %278 = vector.extract_strided_slice %104 {offsets = [0, 19], sizes = [8, 1], strides = [1, 1]} : vector<8x25xf32> to vector<8x1xf32>
      %c494_i32 = arith.constant 494 : i32
      %279 = tpu.dynamic_rotate %112 by %c494_i32 dim 1 : vector<8x512xf32>, i32 -> vector<8x512xf32>
      %cst_62 = arith.constant 0.000000e+00 : f32
      %280 = vector.shape_cast %90 : vector<1x512xi1> to vector<1x512xi1>
      %281 = vector.broadcast %280 : vector<1x512xi1> to vector<8x512xi1>
      %282 = vector.broadcast %cst_62 : f32 to vector<8x512xf32>
      %283 = arith.select %281, %279, %282 : vector<8x512xi1>, vector<8x512xf32>
      %284 = vector.broadcast %278 : vector<8x1xf32> to vector<8x512xf32>
      %285 = arith.mulf %284, %283 : vector<8x512xf32>
      %286 = arith.addf %277, %285 : vector<8x512xf32>
      %287 = vector.extract_strided_slice %104 {offsets = [0, 20], sizes = [8, 1], strides = [1, 1]} : vector<8x25xf32> to vector<8x1xf32>
      %c482_i32 = arith.constant 482 : i32
      %288 = tpu.dynamic_rotate %112 by %c482_i32 dim 1 : vector<8x512xf32>, i32 -> vector<8x512xf32>
      %cst_63 = arith.constant 0.000000e+00 : f32
      %289 = vector.shape_cast %91 : vector<1x512xi1> to vector<1x512xi1>
      %290 = vector.broadcast %289 : vector<1x512xi1> to vector<8x512xi1>
      %291 = vector.broadcast %cst_63 : f32 to vector<8x512xf32>
      %292 = arith.select %290, %288, %291 : vector<8x512xi1>, vector<8x512xf32>
      %293 = vector.broadcast %287 : vector<8x1xf32> to vector<8x512xf32>
      %294 = arith.mulf %293, %292 : vector<8x512xf32>
      %295 = arith.addf %286, %294 : vector<8x512xf32>
      %296 = vector.extract_strided_slice %104 {offsets = [0, 21], sizes = [8, 1], strides = [1, 1]} : vector<8x25xf32> to vector<8x1xf32>
      %c481_i32 = arith.constant 481 : i32
      %297 = tpu.dynamic_rotate %112 by %c481_i32 dim 1 : vector<8x512xf32>, i32 -> vector<8x512xf32>
      %cst_64 = arith.constant 0.000000e+00 : f32
      %298 = vector.shape_cast %92 : vector<1x512xi1> to vector<1x512xi1>
      %299 = vector.broadcast %298 : vector<1x512xi1> to vector<8x512xi1>
      %300 = vector.broadcast %cst_64 : f32 to vector<8x512xf32>
      %301 = arith.select %299, %297, %300 : vector<8x512xi1>, vector<8x512xf32>
      %302 = vector.broadcast %296 : vector<8x1xf32> to vector<8x512xf32>
      %303 = arith.mulf %302, %301 : vector<8x512xf32>
      %304 = arith.addf %295, %303 : vector<8x512xf32>
      %305 = vector.extract_strided_slice %104 {offsets = [0, 22], sizes = [8, 1], strides = [1, 1]} : vector<8x25xf32> to vector<8x1xf32>
      %c480_i32 = arith.constant 480 : i32
      %306 = tpu.dynamic_rotate %112 by %c480_i32 dim 1 : vector<8x512xf32>, i32 -> vector<8x512xf32>
      %cst_65 = arith.constant 0.000000e+00 : f32
      %307 = vector.shape_cast %42 : vector<1x512xi1> to vector<1x512xi1>
      %308 = vector.broadcast %307 : vector<1x512xi1> to vector<8x512xi1>
      %309 = vector.broadcast %cst_65 : f32 to vector<8x512xf32>
      %310 = arith.select %308, %306, %309 : vector<8x512xi1>, vector<8x512xf32>
      %311 = vector.broadcast %305 : vector<8x1xf32> to vector<8x512xf32>
      %312 = arith.mulf %311, %310 : vector<8x512xf32>
      %313 = arith.addf %304, %312 : vector<8x512xf32>
      %314 = vector.extract_strided_slice %104 {offsets = [0, 23], sizes = [8, 1], strides = [1, 1]} : vector<8x25xf32> to vector<8x1xf32>
      %c479_i32 = arith.constant 479 : i32
      %315 = tpu.dynamic_rotate %112 by %c479_i32 dim 1 : vector<8x512xf32>, i32 -> vector<8x512xf32>
      %cst_66 = arith.constant 0.000000e+00 : f32
      %316 = vector.shape_cast %93 : vector<1x512xi1> to vector<1x512xi1>
      %317 = vector.broadcast %316 : vector<1x512xi1> to vector<8x512xi1>
      %318 = vector.broadcast %cst_66 : f32 to vector<8x512xf32>
      %319 = arith.select %317, %315, %318 : vector<8x512xi1>, vector<8x512xf32>
      %320 = vector.broadcast %314 : vector<8x1xf32> to vector<8x512xf32>
      %321 = arith.mulf %320, %319 : vector<8x512xf32>
      %322 = arith.addf %313, %321 : vector<8x512xf32>
      %323 = vector.extract_strided_slice %104 {offsets = [0, 24], sizes = [8, 1], strides = [1, 1]} : vector<8x25xf32> to vector<8x1xf32>
      %c478_i32 = arith.constant 478 : i32
      %324 = tpu.dynamic_rotate %112 by %c478_i32 dim 1 : vector<8x512xf32>, i32 -> vector<8x512xf32>
      %cst_67 = arith.constant 0.000000e+00 : f32
      %325 = vector.shape_cast %94 : vector<1x512xi1> to vector<1x512xi1>
      %326 = vector.broadcast %325 : vector<1x512xi1> to vector<8x512xi1>
      %327 = vector.broadcast %cst_67 : f32 to vector<8x512xf32>
      %328 = arith.select %326, %324, %327 : vector<8x512xi1>, vector<8x512xf32>
      %329 = vector.broadcast %323 : vector<8x1xf32> to vector<8x512xf32>
      %330 = arith.mulf %329, %328 : vector<8x512xf32>
      %331 = arith.addf %322, %330 : vector<8x512xf32>
      %332 = vector.broadcast %105 : vector<8x1xf32> to vector<8x512xf32>
      %333 = arith.addf %331, %332 : vector<8x512xf32>
      %c1_i32_68 = arith.constant 1 : i32
      %334 = tpu.dynamic_rotate %333 by %c1_i32_68 dim 1 : vector<8x512xf32>, i32 -> vector<8x512xf32>
      %cst_69 = arith.constant 0.000000e+00 : f32
      %335 = vector.shape_cast %60 : vector<1x512xi1> to vector<1x512xi1>
      %336 = vector.broadcast %335 : vector<1x512xi1> to vector<8x512xi1>
      %337 = vector.broadcast %cst_69 : f32 to vector<8x512xf32>
      %338 = arith.select %336, %334, %337 : vector<8x512xi1>, vector<8x512xf32>
      %339 = arith.addf %338, %333 : vector<8x512xf32>
      %c511_i32_70 = arith.constant 511 : i32
      %340 = tpu.dynamic_rotate %333 by %c511_i32_70 dim 1 : vector<8x512xf32>, i32 -> vector<8x512xf32>
      %cst_71 = arith.constant 0.000000e+00 : f32
      %341 = vector.shape_cast %69 : vector<1x512xi1> to vector<1x512xi1>
      %342 = vector.broadcast %341 : vector<1x512xi1> to vector<8x512xi1>
      %343 = vector.broadcast %cst_71 : f32 to vector<8x512xf32>
      %344 = arith.select %342, %340, %343 : vector<8x512xi1>, vector<8x512xf32>
      %345 = arith.addf %339, %344 : vector<8x512xf32>
      %c16_i32_72 = arith.constant 16 : i32
      %346 = tpu.dynamic_rotate %345 by %c16_i32_72 dim 1 : vector<8x512xf32>, i32 -> vector<8x512xf32>
      %cst_73 = arith.constant 0.000000e+00 : f32
      %347 = vector.shape_cast %24 : vector<1x512xi1> to vector<1x512xi1>
      %348 = vector.broadcast %347 : vector<1x512xi1> to vector<8x512xi1>
      %349 = vector.broadcast %cst_73 : f32 to vector<8x512xf32>
      %350 = arith.select %348, %346, %349 : vector<8x512xi1>, vector<8x512xf32>
      %351 = arith.addf %350, %345 : vector<8x512xf32>
      %c496_i32_74 = arith.constant 496 : i32
      %352 = tpu.dynamic_rotate %345 by %c496_i32_74 dim 1 : vector<8x512xf32>, i32 -> vector<8x512xf32>
      %cst_75 = arith.constant 0.000000e+00 : f32
      %353 = vector.shape_cast %33 : vector<1x512xi1> to vector<1x512xi1>
      %354 = vector.broadcast %353 : vector<1x512xi1> to vector<8x512xi1>
      %355 = vector.broadcast %cst_75 : f32 to vector<8x512xf32>
      %356 = arith.select %354, %352, %355 : vector<8x512xi1>, vector<8x512xf32>
      %357 = arith.addf %351, %356 : vector<8x512xf32>
      %cst_76 = arith.constant 0.111111112 : f32
      %358 = vector.broadcast %cst_76 : f32 to vector<8x512xf32>
      %359 = arith.mulf %357, %358 : vector<8x512xf32>
      %360 = math.tanh %359 : vector<8x512xf32>
      %cst_77 = arith.constant dense<0.000000e+00> : vector<8x512xf32>
      %361 = tpu.matmul %106, %360, %cst_77 {dimension_numbers = #tpu.dot_dimension_numbers<[1], [0], [0], [1], [0, 0, 1, 1], [], []>} : vector<8x8xf32>, vector<8x512xf32>, vector<8x512xf32> -> vector<8x512xf32>
      %362 = vector.broadcast %107 : vector<8x1xf32> to vector<8x512xf32>
      %363 = arith.addf %361, %362 : vector<8x512xf32>
      %364 = math.tanh %363 : vector<8x512xf32>
      %cst_78 = arith.constant dense<0.000000e+00> : vector<8x512xf32>
      %365 = tpu.matmul %108, %364, %cst_78 {dimension_numbers = #tpu.dot_dimension_numbers<[1], [0], [0], [1], [0, 0, 1, 1], [], []>} : vector<8x8xf32>, vector<8x512xf32>, vector<8x512xf32> -> vector<8x512xf32>
      %366 = vector.broadcast %109 : vector<8x1xf32> to vector<8x512xf32>
      %367 = arith.addf %365, %366 : vector<8x512xf32>
      %368 = math.tanh %367 : vector<8x512xf32>
      %c0_79 = arith.constant 0 : index
      %c0_80 = arith.constant 0 : index
      %c0_81 = arith.constant 0 : index
      %369 = vector.load %arg5[%c0_79, %c0_80, %c0_81] : memref<1x32x512xf32, #tpu.memory_space<vmem>>, vector<1x8x512xf32>
      %370 = vector.shape_cast %369 : vector<1x8x512xf32> to vector<8x512xf32>
      %371 = vector.shape_cast %368 : vector<8x512xf32> to vector<1x8x512xf32>
      tpu.vector_store %arg5[%c0_79, %c0_80, %c0_81], %371 {strides = array<i32>} : memref<1x32x512xf32, #tpu.memory_space<vmem>>, vector<1x8x512xf32>,
      %c0_82 = arith.constant 0 : index
      %c8_83 = arith.constant 8 : index
      %c0_84 = arith.constant 0 : index
      %372 = vector.load %arg5[%c0_82, %c8_83, %c0_84] : memref<1x32x512xf32, #tpu.memory_space<vmem>>, vector<1x8x512xf32>
      %373 = vector.shape_cast %372 : vector<1x8x512xf32> to vector<8x512xf32>
      %374 = vector.shape_cast %360 : vector<8x512xf32> to vector<1x8x512xf32>
      tpu.vector_store %arg5[%c0_82, %c8_83, %c0_84], %374 {strides = array<i32>} : memref<1x32x512xf32, #tpu.memory_space<vmem>>, vector<1x8x512xf32>,
    } else {
    }
    return
  }
  func.func @transform_0(%arg0: i32) -> (i32, i32) {
    %c0_i32 = arith.constant 0 : i32
    %c0_i32_0 = arith.constant 0 : i32
    %c0_i32_1 = arith.constant 0 : i32
    return %c0_i32, %c0_i32_0 : i32, i32
  }
  func.func @transform_1(%arg0: i32) -> (i32, i32) {
    %c0_i32 = arith.constant 0 : i32
    %c0_i32_0 = arith.constant 0 : i32
    %c0_i32_1 = arith.constant 0 : i32
    return %c0_i32, %c0_i32_0 : i32, i32
  }
  func.func @transform_2(%arg0: i32) -> (i32, i32) {
    %c0_i32 = arith.constant 0 : i32
    %c0_i32_0 = arith.constant 0 : i32
    %c0_i32_1 = arith.constant 0 : i32
    return %c0_i32, %c0_i32_0 : i32, i32
  }
  func.func @transform_3(%arg0: i32) -> (i32, i32) {
    %c0_i32 = arith.constant 0 : i32
    %c0_i32_0 = arith.constant 0 : i32
    %c0_i32_1 = arith.constant 0 : i32
    return %c0_i32, %c0_i32_0 : i32, i32
  }
  func.func @transform_4(%arg0: i32) -> (i32, i32, i32) {
    %c0_i32 = arith.constant 0 : i32
    %c0_i32_0 = arith.constant 0 : i32
    %c0_i32_1 = arith.constant 0 : i32
    return %arg0, %c0_i32, %c0_i32_0 : i32, i32, i32
  }
}

</mosaic_0001>

<bundles_post_ra>
// kernel: squeeze.6
= control target key start
LH: loop header
LB: loop body
LE: loop exit
PB: predicated region body
PF: predicated region fallthrough
CT: control target
= control target key end

     0   :  { %s499_s0 = inlined_call_operand.vmem [shape: f32[1,16,512], index: 0, kind: input, shape index: {}]   ;;  %s500_s1 = inlined_call_operand.vmem [shape: f32[16,2,256], index: 1, kind: output, shape index: {}]  }
   0x1   :  { %v2_v0 = vld [vmem:[%s499_s0] sm:$0xff]   ;;  %v331_v1 = vld [vmem:[%s499_s0 + $0x8] sm:$0xff]   ;;  %v332_v2 = vld [vmem:[%s499_s0 + $0x10] sm:$0xff]  }
   0x2   :  { %3 = vst [vmem:[#allocation0] ss:$16 sm:$0x3] %v2_v0   ;;  %4 = vst [vmem:[#allocation0] ss:$16 sm:$0xc] %v2_v0  }
   0x3   :  { %5 = vst [vmem:[#allocation0] ss:$16 sm:$0x30] %v2_v0   ;;  %6 = vst [vmem:[#allocation0] ss:$16 sm:$0xc0] %v2_v0  }
   0x4   :  { %10 = vst [vmem:[#allocation0 + $0x8] ss:$16 sm:$0x3] %v331_v1   ;;  %12 = vst [vmem:[#allocation0 + $0x8] ss:$16 sm:$0xc] %v331_v1  }
   0x5   :  { %14 = vst [vmem:[#allocation0 + $0x8] ss:$16 sm:$0x30] %v331_v1   ;;  %16 = vst [vmem:[#allocation0 + $0x8] ss:$16 sm:$0xc0] %v331_v1  }
   0x6   :  { %20 = vst [vmem:[#allocation0 + $0x1] ss:$16 sm:$0x3] %v332_v2   ;;  %22 = vst [vmem:[#allocation0 + $0x1] ss:$16 sm:$0xc] %v332_v2  }
   0x7   :  { %24 = vst [vmem:[#allocation0 + $0x1] ss:$16 sm:$0x30] %v332_v2   ;;  %26 = vst [vmem:[#allocation0 + $0x1] ss:$16 sm:$0xc0] %v332_v2  }
   0x8   :  { %v333_v3 = vld [vmem:[%s499_s0 + $0x18] sm:$0xff]   ;;  %v334_v4 = vld [vmem:[%s499_s0 + $0x20] sm:$0xff]   ;;  %v335_v5 = vld [vmem:[%s499_s0 + $0x28] sm:$0xff]  }
   0x9   :  { %30 = vst [vmem:[#allocation0 + $0x9] ss:$16 sm:$0x3] %v333_v3   ;;  %32 = vst [vmem:[#allocation0 + $0x9] ss:$16 sm:$0xc] %v333_v3  }
   0xa   :  { %34 = vst [vmem:[#allocation0 + $0x9] ss:$16 sm:$0x30] %v333_v3   ;;  %36 = vst [vmem:[#allocation0 + $0x9] ss:$16 sm:$0xc0] %v333_v3  }
   0xb   :  { %40 = vst [vmem:[#allocation0 + $0x80] ss:$16 sm:$0x3] %v334_v4   ;;  %42 = vst [vmem:[#allocation0 + $0x80] ss:$16 sm:$0xc] %v334_v4  }
   0xc   :  { %44 = vst [vmem:[#allocation0 + $0x80] ss:$16 sm:$0x30] %v334_v4   ;;  %46 = vst [vmem:[#allocation0 + $0x80] ss:$16 sm:$0xc0] %v334_v4  }
   0xd   :  { %50 = vst [vmem:[#allocation0 + $0x88] ss:$16 sm:$0x3] %v335_v5   ;;  %52 = vst [vmem:[#allocation0 + $0x88] ss:$16 sm:$0xc] %v335_v5  }
   0xe   :  { %54 = vst [vmem:[#allocation0 + $0x88] ss:$16 sm:$0x30] %v335_v5   ;;  %56 = vst [vmem:[#allocation0 + $0x88] ss:$16 sm:$0xc0] %v335_v5  }
   0xf   :  { %v336_v6 = vld [vmem:[%s499_s0 + $0x30] sm:$0xff]   ;;  %v337_v7 = vld [vmem:[%s499_s0 + $0x38] sm:$0xff]   ;;  %v81_v8 = vld [vmem:[#allocation0] sm:$0x3] }
  0x10   :  { %60 = vst [vmem:[#allocation0 + $0x81] ss:$16 sm:$0x3] %v336_v6   ;;  %62 = vst [vmem:[#allocation0 + $0x81] ss:$16 sm:$0xc] %v336_v6  }
  0x11   :  { %64 = vst [vmem:[#allocation0 + $0x81] ss:$16 sm:$0x30] %v336_v6   ;;  %66 = vst [vmem:[#allocation0 + $0x81] ss:$16 sm:$0xc0] %v336_v6  }
  0x12   :  { %70 = vst [vmem:[#allocation0 + $0x89] ss:$16 sm:$0x3] %v337_v7   ;;  %72 = vst [vmem:[#allocation0 + $0x89] ss:$16 sm:$0xc] %v337_v7  }
  0x13   :  { %74 = vst [vmem:[#allocation0 + $0x89] ss:$16 sm:$0x30] %v337_v7   ;;  %76 = vst [vmem:[#allocation0 + $0x89] ss:$16 sm:$0xc0] %v337_v7  }
  0x14   :  { %v92_v9 = vld [vmem:[#allocation0 + $0x10] sm:$0x3]  ;;  %v106_v10 = vld [vmem:[#allocation0 + $0x20] sm:$0x3]  ;;  %84 = vst [vmem:[%s500_s1] sm:$0x3] %v81_v8 }
  0x15   :  { %v86_v11 = vld [vmem:[#allocation0 + $0x8] sm:$0x3]  ;;  %339 = vst [vmem:[%s500_s1 + $0x4] sm:$0x3] %v92_v9  ;;  %v99_v12 = vld [vmem:[#allocation0 + $0x18] sm:$0x3] }
  0x16   :  { %341 = vst [vmem:[%s500_s1 + $0x8] sm:$0x3] %v106_v10  ;;  %v113_v13 = vld [vmem:[#allocation0 + $0x28] sm:$0x3]  ;;  %338 = vst [vmem:[%s500_s1 + $0x2] sm:$0x3] %v86_v11 }
  0x17   :  { %340 = vst [vmem:[%s500_s1 + $0x6] sm:$0x3] %v99_v12  ;;  %342 = vst [vmem:[%s500_s1 + $0xa] sm:$0x3] %v113_v13  ;;  %v120_v14 = vld [vmem:[#allocation0 + $0x30] sm:$0x3] }
  0x18   :  { %v127_v15 = vld [vmem:[#allocation0 + $0x38] sm:$0x3]  ;;  %v134_v16 = vld [vmem:[#allocation0 + $0x40] sm:$0x3]  ;;  %343 = vst [vmem:[%s500_s1 + $0xc] sm:$0x3] %v120_v14 }
  0x19   :  { %344 = vst [vmem:[%s500_s1 + $0xe] sm:$0x3] %v127_v15  ;;  %345 = vst [vmem:[%s500_s1 + $0x10] sm:$0x3] %v134_v16  ;;  %v141_v17 = vld [vmem:[#allocation0 + $0x48] sm:$0x3] }
  0x1a   :  { %v148_v18 = vld [vmem:[#allocation0 + $0x50] sm:$0x3]  ;;  %v155_v19 = vld [vmem:[#allocation0 + $0x58] sm:$0x3]  ;;  %346 = vst [vmem:[%s500_s1 + $0x12] sm:$0x3] %v141_v17 }
  0x1b   :  { %347 = vst [vmem:[%s500_s1 + $0x14] sm:$0x3] %v148_v18  ;;  %348 = vst [vmem:[%s500_s1 + $0x16] sm:$0x3] %v155_v19  ;;  %v162_v20 = vld [vmem:[#allocation0 + $0x60] sm:$0x3] }
  0x1c   :  { %v169_v21 = vld [vmem:[#allocation0 + $0x68] sm:$0x3]  ;;  %v176_v22 = vld [vmem:[#allocation0 + $0x70] sm:$0x3]  ;;  %349 = vst [vmem:[%s500_s1 + $0x18] sm:$0x3] %v162_v20 }
  0x1d   :  { %350 = vst [vmem:[%s500_s1 + $0x1a] sm:$0x3] %v169_v21  ;;  %351 = vst [vmem:[%s500_s1 + $0x1c] sm:$0x3] %v176_v22  ;;  %v183_v23 = vld [vmem:[#allocation0 + $0x78] sm:$0x3] }
  0x1e   :  { %v190_v24 = vld [vmem:[#allocation0 + $0x80] sm:$0x3]  ;;  %v197_v25 = vld [vmem:[#allocation0 + $0x88] sm:$0x3]  ;;  %352 = vst [vmem:[%s500_s1 + $0x1e] sm:$0x3] %v183_v23 }
  0x1f   :  { %353 = vst [vmem:[%s500_s1 + $0x20] sm:$0x3] %v190_v24  ;;  %354 = vst [vmem:[%s500_s1 + $0x22] sm:$0x3] %v197_v25  ;;  %v204_v26 = vld [vmem:[#allocation0 + $0x90] sm:$0x3] }
  0x20   :  { %v211_v27 = vld [vmem:[#allocation0 + $0x98] sm:$0x3]  ;;  %v218_v28 = vld [vmem:[#allocation0 + $0xa0] sm:$0x3]  ;;  %355 = vst [vmem:[%s500_s1 + $0x24] sm:$0x3] %v204_v26 }
  0x21   :  { %356 = vst [vmem:[%s500_s1 + $0x26] sm:$0x3] %v211_v27  ;;  %357 = vst [vmem:[%s500_s1 + $0x28] sm:$0x3] %v218_v28  ;;  %v225_v29 = vld [vmem:[#allocation0 + $0xa8] sm:$0x3] }
  0x22   :  { %v232_v30 = vld [vmem:[#allocation0 + $0xb0] sm:$0x3]  ;;  %v239_v31 = vld [vmem:[#allocation0 + $0xb8] sm:$0x3]  ;;  %358 = vst [vmem:[%s500_s1 + $0x2a] sm:$0x3] %v225_v29 }
  0x23   :  { %359 = vst [vmem:[%s500_s1 + $0x2c] sm:$0x3] %v232_v30  ;;  %360 = vst [vmem:[%s500_s1 + $0x2e] sm:$0x3] %v239_v31  ;;  %v246_v32 = vld [vmem:[#allocation0 + $0xc0] sm:$0x3] }
  0x24   :  { %v253_v33 = vld [vmem:[#allocation0 + $0xc8] sm:$0x3]  ;;  %v260_v34 = vld [vmem:[#allocation0 + $0xd0] sm:$0x3]  ;;  %361 = vst [vmem:[%s500_s1 + $0x30] sm:$0x3] %v246_v32 }
  0x25   :  { %362 = vst [vmem:[%s500_s1 + $0x32] sm:$0x3] %v253_v33  ;;  %363 = vst [vmem:[%s500_s1 + $0x34] sm:$0x3] %v260_v34  ;;  %v267_v35 = vld [vmem:[#allocation0 + $0xd8] sm:$0x3] }
  0x26   :  { %v274_v36 = vld [vmem:[#allocation0 + $0xe0] sm:$0x3]  ;;  %v281_v37 = vld [vmem:[#allocation0 + $0xe8] sm:$0x3]  ;;  %364 = vst [vmem:[%s500_s1 + $0x36] sm:$0x3] %v267_v35 }
  0x27   :  { %365 = vst [vmem:[%s500_s1 + $0x38] sm:$0x3] %v274_v36  ;;  %366 = vst [vmem:[%s500_s1 + $0x3a] sm:$0x3] %v281_v37  ;;  %v288_v38 = vld [vmem:[#allocation0 + $0xf0] sm:$0x3] }
  0x28   :  { %v295_v39 = vld [vmem:[#allocation0 + $0xf8] sm:$0x3]  ;;  %367 = vst [vmem:[%s500_s1 + $0x3c] sm:$0x3] %v288_v38 }
  0x29   :  { %368 = vst [vmem:[%s500_s1 + $0x3e] sm:$0x3] %v295_v39 }

// kernel: squeeze.10
= control target key start
LH: loop header
LB: loop body
LE: loop exit
PB: predicated region body
PF: predicated region fallthrough
CT: control target
= control target key end

     0   :  { %s162_s0 = inlined_call_operand.vmem [shape: f32[1,4,512], index: 0, kind: input, shape index: {}]   ;;  %s163_s1 = inlined_call_operand.vmem [shape: f32[4,2,256], index: 1, kind: output, shape index: {}]  }
   0x1   :  { %v106_v0 = vld [vmem:[%s162_s0 + $0xc] sm:$0xf]  ;;  %v107_v1 = vld [vmem:[%s162_s0 + $0x8] sm:$0xf]  ;;  %v108_v2 = vld [vmem:[%s162_s0 + $0x4] sm:$0xf] }
   0x2   :  { %9 = vst [vmem:[#allocation1 + $0x8] sm:$0xf] %v106_v0  ;;  %14 = vst [vmem:[#allocation1 + $0x18] sm:$0xf] %v107_v1  ;;  %v19_v3 = vld [vmem:[%s162_s0] sm:$0xf] }
   0x3   :  { %18 = vst [vmem:[#allocation1] sm:$0xf] %v108_v2  ;;  %20 = vst [vmem:[#allocation1 + $0x10] sm:$0xf] %v19_v3 }
   0x9   :  { %v31_v5 = vld [vmem:[#allocation1 + $0x18] sm:$0xf]   ;;  %v37_v6 = vld [vmem:[#allocation1 + $0x8] sm:$0xf]  }
   0xa   :  { %v25_v4 = vld [vmem:[#allocation1] sm:$0xf]   ;;  %v21_v7 = vld [vmem:[#allocation1 + $0x10] sm:$0xf]  }
   0xb   :  { %27 = vst [vmem:[#allocation0 + $0x8] ss:$16 sm:$0x3] %v25_v4   ;;  %29 = vst [vmem:[#allocation0 + $0x8] ss:$16 sm:$0xc] %v25_v4  }
   0xc   :  { %33 = vst [vmem:[#allocation0 + $0x1] ss:$16 sm:$0x3] %v31_v5   ;;  %35 = vst [vmem:[#allocation0 + $0x1] ss:$16 sm:$0xc] %v31_v5  }
   0xd   :  { %39 = vst [vmem:[#allocation0 + $0x9] ss:$16 sm:$0x3] %v37_v6   ;;  %41 = vst [vmem:[#allocation0 + $0x9] ss:$16 sm:$0xc] %v37_v6  }
   0xe   :  { %22 = vst [vmem:[#allocation0] ss:$16 sm:$0x3] %v21_v7   ;;  %23 = vst [vmem:[#allocation0] ss:$16 sm:$0xc] %v21_v7  }
  0x14   :  { %v51_v8 = vld [vmem:[#allocation0 + $0x8] sm:$0x3]  ;;  %v64_v9 = vld [vmem:[#allocation0 + $0x18] sm:$0x3] }
  0x15   :  { %v78_v10 = vld [vmem:[#allocation0 + $0x28] sm:$0x3]  ;;  %v46_v11 = vld [vmem:[#allocation0] sm:$0x3]  ;;  %109 = vst [vmem:[%s163_s1 + $0x2] sm:$0x3] %v51_v8 }
  0x16   :  { %v57_v12 = vld [vmem:[#allocation0 + $0x10] sm:$0x3]  ;;  %111 = vst [vmem:[%s163_s1 + $0x6] sm:$0x3] %v64_v9  ;;  %v71_v13 = vld [vmem:[#allocation0 + $0x20] sm:$0x3] }
  0x17   :  { %113 = vst [vmem:[%s163_s1 + $0xa] sm:$0x3] %v78_v10  ;;  %49 = vst [vmem:[%s163_s1] sm:$0x3] %v46_v11  ;;  %v85_v14 = vld [vmem:[#allocation0 + $0x30] sm:$0x3] }
  0x18   :  { %110 = vst [vmem:[%s163_s1 + $0x4] sm:$0x3] %v57_v12  ;;  %112 = vst [vmem:[%s163_s1 + $0x8] sm:$0x3] %v71_v13  ;;  %v92_v15 = vld [vmem:[#allocation0 + $0x38] sm:$0x3] }
  0x19   :  { %114 = vst [vmem:[%s163_s1 + $0xc] sm:$0x3] %v85_v14  ;;  %115 = vst [vmem:[%s163_s1 + $0xe] sm:$0x3] %v92_v15 }

// kernel: mcae_forward_pallas.1
= control target key start
LH: loop header
LB: loop body
LE: loop exit
PB: predicated region body
PF: predicated region fallthrough
CT: control target
= control target key end

     0   :  { %s4693_s15 = smov 0   ;;  %s9090_s0 = inlined_call_operand.vmem [shape: f32[4,512], index: 0, kind: input, shape index: {}]   ;;  %s9091_s1 = inlined_call_operand.vmem [shape: f32[6,512], index: 1, kind: input, shape index: {}]   ;;  %s9092_s2 = inlined_call_operand.vmem [shape: f32[64,29], index: 2, kind: input, shape index: {}]   ;;  %s9093_s3 = inlined_call_operand.vmem [shape: f32[32,29], index: 3, kind: input, shape index: {}]   ;;  %s9094_s4 = inlined_call_operand.vmem [shape: f32[2,32,512], index: 4, kind: output, shape index: {}]  }
   0x1 LB: > { %s4699_s16 = sadd.s32 4294967295, %s4558_s15   ;;  %p4251_p0 = scmp.ge.s32.totalorder %s4558_s15, 1  ;;  %s4558_s15 = sphi %s4693_s15, %s14_s15  }
   0x2   : > { %p152_p1 = scmp.lt.s32.totalorder %s4558_s15, 3 }
   0x4   : > { %p153_p2 = pnand %p4251_p0, %p152_p1 }
   0x6   : > { %156 = sbr.rel (%p153_p2) target bundleno = 2969 (0xb99), region = 36 }
   0xb   : > { %p173_p3 = scmp.lt.s32.totalorder %s4699_s16, 1  ;;  %v178_v0 = vlaneseq  ;;  %v9608_v25 = vmov 0  ;;  %v9611_v27 = vmov 0  ;;  %v9614_v29 = vmov 0  ;;  %p4254_p4 = scmp.ne.s32.totalorder %s4699_s16, 0 }
   0xc   : > { %v9618_v31 = vmov 0  ;;  %v9622_v33 = vmov 0  ;;  %v9625_v35 = vmov 0  ;;  %v9628_v37 = vmov 0 }
   0xd   : > { %s174_s17 = scalar_select %p173_p3, %s4699_s16, 1  ;;  %v4710_v1 = vand.u32 127, %v178_v0  ;;  %v9631_v38 = vmov 0  ;;  %v9634_v40 = vmov 0  ;;  %v9638_v43 = vmov 0 }
   0xe   : > { %v9641_v46 = vmov 0  ;;  %v9644_v48 = vmov 0  ;;  %v9647_v51 = vmov 0  ;;  %v9651_v52 = vmov 0 }
   0xf   : > { %s4284_s18 = sshll.u32 %s174_s17, 7  ;;  %v180_v2 = vadd.s32 128, %v4710_v1  ;;  %v181_v3 = vadd.s32 256, %v4710_v1  ;;  %v182_v4 = vadd.s32 384, %v4710_v1  ;;  %v183_v5 = vand.u32 255, %v4710_v1 }
  0x10   : > { %s4708_s21 = scalar_lea.vmem %s9094_s4, %s4284_s18  ;;  %v9657_v54 = vmov 0  ;;  %v9661_v55 = vmov 0  ;;  %v9666_v56 = vmov 0  ;;  %v9669_v57 = vmov 0 }
  0x11   : > { %v184_v6 = vand.u32 255, %v180_v2  ;;  %v185_v7 = vand.u32 255, %v181_v3  ;;  %v186_v8 = vand.u32 255, %v182_v4  ;;  %v4716_v9 = vshra.s32 %v183_v5, 4 }
  0x12   : > { %v4728_v22 = vand.u32 15, %v183_v5  ;;  %v9674_v58 = vmov 0  ;;  %v9677_v59 = vmov 0  ;;  %v9682_v60 = vmov 0 }
  0x13   : > { %v4718_v10 = vshra.s32 %v184_v6, 4  ;;  %v4720_v11 = vshra.s32 %v185_v7, 4  ;;  %v4722_v12 = vshra.s32 %v186_v8, 4  ;;  %v192_v13 = vand.u32 15, %v184_v6 }
  0x14   : > { %v193_v14 = vand.u32 15, %v185_v7  ;;  %v195_v15 = vadd.s32 4294967294, %v4716_v9  ;;  %v194_v16 = vand.u32 15, %v186_v8  ;;  %v4748_v32 = vadd.s32 4294967294, %v4728_v22 }
  0x15   : > { %v196_v17 = vadd.s32 4294967294, %v4718_v10  ;;  %v197_v18 = vadd.s32 4294967294, %v4720_v11  ;;  %v198_v19 = vadd.s32 4294967294, %v4722_v12  ;;  %v260_v20 = vadd.s32 4294967294, %v192_v13 }
  0x16   : > { %vm199_vm0 = vcmp.ge.s32.totalorder %v195_v15, 0  ;;  %vm203_vm1 = vcmp.lt.s32.totalorder %v195_v15, 16  ;;  %v261_v21 = vadd.s32 4294967294, %v193_v14  ;;  %v262_v23 = vadd.s32 4294967294, %v194_v16  ;;  %9621 = vst [vmem:[#allocation6_spill] sm:$0xff] %v4748_v32 }
  0x17   : > { %vm200_vm2 = vcmp.ge.s32.totalorder %v196_v17, 0  ;;  %vm204_vm3 = vcmp.lt.s32.totalorder %v196_v17, 16  ;;  %vm201_vm4 = vcmp.ge.s32.totalorder %v197_v18, 0  ;;  %vm205_vm6 = vcmp.lt.s32.totalorder %v197_v18, 16  ;;  %vm4730_vm8 = vmand %vm199_vm0, %vm203_vm1 }
  0x18   : > { %v276_v24 = vadd.s32 4294967295, %v192_v13  ;;  %vm206_vm7 = vcmp.lt.s32.totalorder %v198_v19, 16  ;;  %v9609_v25 = vsel %vm4730_vm8, 4294967295, %v9608_v25  ;;  %vm264_vm9 = vcmp.ge.s32.totalorder %v260_v20, 0  ;;  %vm4734_vm11 = vmand %vm200_vm2, %vm204_vm3 }
  0x19   : > { %9610 = vst [vmem:[#allocation2_spill] sm:$0xff] %v9609_v25  ;;  %vm268_vm10 = vcmp.lt.s32.totalorder %v260_v20, 16  ;;  %v277_v26 = vadd.s32 4294967295, %v193_v14  ;;  %v9612_v27 = vsel %vm4734_vm11, 4294967295, %v9611_v27  ;;  %vm265_vm12 = vcmp.ge.s32.totalorder %v261_v21, 0  ;;  %vm4738_vm14 = vmand %vm201_vm4, %vm205_vm6 }
  0x1a   : > { %9613 = vst [vmem:[#allocation3_spill] sm:$0xff] %v9612_v27  ;;  %vm269_vm13 = vcmp.lt.s32.totalorder %v261_v21, 16  ;;  %v278_v28 = vadd.s32 4294967295, %v194_v16  ;;  %v9615_v29 = vsel %vm4738_vm14, 4294967295, %v9614_v29  ;;  %vm266_vm15 = vcmp.ge.s32.totalorder %v262_v23, 0  ;;  %vm4750_vm2 = vmand %vm264_vm9, %vm268_vm10 }
  0x1b   : > { %9616 = vst [vmem:[#allocation4_spill] sm:$0xff] %v9615_v29  ;;  %vm270_vm5 = vcmp.lt.s32.totalorder %v262_v23, 16  ;;  %v292_v30 = vadd.s32 1, %v192_v13  ;;  %vm9617_vm0 = vcmp.ge.s32.totalorder %v198_v19, 0  ;;  %v9623_v33 = vsel %vm4750_vm2, 4294967295, %v9622_v33  ;;  %vm4754_vm6 = vmand %vm265_vm12, %vm269_vm13 }
  0x1c   : > { %vm4743_vm1 = vmand %vm9617_vm0, %vm206_vm7  ;;  %9624 = vst [vmem:[#allocation7_spill] sm:$0xff] %v9623_v33  ;;  %vm280_vm3 = vcmp.ge.s32.totalorder %v276_v24, 0  ;;  %vm284_vm4 = vcmp.lt.s32.totalorder %v276_v24, 16  ;;  %v293_v34 = vadd.s32 1, %v193_v14  ;;  %v9626_v35 = vsel %vm4754_vm6, 4294967295, %v9625_v35 }
  0x1d   : > { %v9619_v31 = vsel %vm4743_vm1, 4294967295, %v9618_v31  ;;  %9627 = vst [vmem:[#allocation8_spill] sm:$0xff] %v9626_v35  ;;  %vm281_vm14 = vcmp.ge.s32.totalorder %v277_v26, 0  ;;  %vm285_vm11 = vcmp.lt.s32.totalorder %v277_v26, 16  ;;  %v294_v36 = vadd.s32 1, %v194_v16  ;;  %vm4758_vm7 = vmand %vm266_vm15, %vm270_vm5 }
  0x1e   : > { %9620 = vst [vmem:[#allocation5_spill] sm:$0xff] %v9619_v31  ;;  %v9629_v37 = vsel %vm4758_vm7, 4294967295, %v9628_v37  ;;  %vm282_vm0 = vcmp.ge.s32.totalorder %v278_v28, 0  ;;  %vm286_vm1 = vcmp.lt.s32.totalorder %v278_v28, 16  ;;  %vm4762_vm9 = vmand %vm280_vm3, %vm284_vm4  ;;  %vm296_vm10 = vcmp.ge.s32.totalorder %v292_v30, 0 }
  0x1f   : > { %9630 = vst [vmem:[#allocation9_spill] sm:$0xff] %v9629_v37  ;;  %v9632_v38 = vsel %vm4762_vm9, 4294967295, %v9631_v38  ;;  %vm300_vm2 = vcmp.lt.s32.totalorder %v292_v30, 16  ;;  %v308_v39 = vadd.s32 2, %v192_v13  ;;  %vm4767_vm13 = vmand %vm281_vm14, %vm285_vm11  ;;  %vm297_vm6 = vcmp.ge.s32.totalorder %v293_v34, 0 }
  0x20   : > { %9633 = vst [vmem:[#allocation10_spill] sm:$0xff] %v9632_v38  ;;  %v9635_v40 = vsel %vm4767_vm13, 4294967295, %v9634_v40  ;;  %vm301_vm5 = vcmp.lt.s32.totalorder %v293_v34, 16  ;;  %v309_v41 = vadd.s32 2, %v193_v14  ;;  %v4772_v42 = vadd.s32 4294967295, %v4728_v22  ;;  %vm4774_vm15 = vmand %vm282_vm0, %vm286_vm1 }
  0x21   : > { %9636 = vst [vmem:[#allocation11_spill] sm:$0xff] %v9635_v40  ;;  %v9639_v43 = vsel %vm4774_vm15, 4294967295, %v9638_v43  ;;  %vm298_vm3 = vcmp.ge.s32.totalorder %v294_v36, 0  ;;  %vm302_vm4 = vcmp.lt.s32.totalorder %v294_v36, 16  ;;  %v310_v44 = vadd.s32 2, %v194_v16  ;;  %vm4779_vm12 = vmand %vm296_vm10, %vm300_vm2 }
  0x22   : > { %9637 = vst [vmem:[#allocation12_spill] sm:$0xff] %v4772_v42  ;;  %9640 = vst [vmem:[#allocation13_spill] sm:$0xff] %v9639_v43  ;;  %v211_v45 = vadd.s32 4294967295, %v4716_v9  ;;  %v9642_v46 = vsel %vm4779_vm12, 4294967295, %v9641_v46  ;;  %v212_v47 = vadd.s32 4294967295, %v4718_v10  ;;  %vm316_vm1 = vcmp.lt.s32.totalorder %v308_v39, 16 }
  0x23   : > { %9643 = vst [vmem:[#allocation14_spill] sm:$0xff] %v9642_v46  ;;  %vm4784_vm11 = vmand %vm297_vm6, %vm301_vm5  ;;  %v213_v49 = vadd.s32 4294967295, %v4720_v11  ;;  %v214_v50 = vadd.s32 4294967295, %v4722_v12  ;;  %vm313_vm2 = vcmp.ge.s32.totalorder %v309_v41, 0  ;;  %vm317_vm10 = vcmp.lt.s32.totalorder %v309_v41, 16 }
  0x24   : > { %v9645_v48 = vsel %vm4784_vm11, 4294967295, %v9644_v48  ;;  %vm4790_vm0 = vmand %vm298_vm3, %vm302_vm4  ;;  %vm9650_vm12 = vcmp.ge.s32.totalorder %v4748_v32, 0  ;;  %v4804_v53 = vadd.s32 1, %v4728_v22  ;;  %vm314_vm14 = vcmp.ge.s32.totalorder %v310_v44, 0 }
  0x25   : > { %9646 = vst [vmem:[#allocation15_spill] sm:$0xff] %v9645_v48  ;;  %v9648_v51 = vsel %vm4790_vm0, 4294967295, %v9647_v51  ;;  %vm4798_vm6 = vmand %vm4730_vm8, %vm9650_vm12  ;;  %vm318_vm3 = vcmp.lt.s32.totalorder %v310_v44, 16  ;;  %vm9655_vm4 = vnez %v9623_v33  ;;  %vm9656_vm0 = vnez %v9612_v27 }
  0x26   : > { %9649 = vst [vmem:[#allocation16_spill] sm:$0xff] %v9648_v51  ;;  %v9652_v52 = vsel %vm4798_vm6, 4294967295, %v9651_v52  ;;  %9654 = vst [vmem:[#allocation18_spill] sm:$0xff] %v4804_v53  ;;  %vm215_vm15 = vcmp.ge.s32.totalorder %v211_v45, 0  ;;  %vm219_vm12 = vcmp.lt.s32.totalorder %v211_v45, 16  ;;  %vm9660_vm13 = vcmp.ge.s32.totalorder %v308_v39, 0 }
  0x27   : > { %9653 = vst [vmem:[#allocation17_spill] sm:$0xff] %v9652_v52  ;;  %vm4810_vm11 = vmand %vm9656_vm0, %vm9655_vm4  ;;  %vm9664_vm5 = vnez %v9626_v35  ;;  %vm9665_vm6 = vnez %v9615_v29  ;;  %vm216_vm7 = vcmp.ge.s32.totalorder %v212_v47, 0  ;;  %vm220_vm4 = vcmp.lt.s32.totalorder %v212_v47, 16 }
  0x28   : > { %v9658_v54 = vsel %vm4810_vm11, 4294967295, %v9657_v54  ;;  %vm4815_vm9 = vmand %vm9660_vm13, %vm316_vm1  ;;  %vm9672_vm11 = vnez %v9629_v37  ;;  %vm9673_vm13 = vnez %v9619_v31  ;;  %v9685_v61 = vmov 0 }
  0x29   : > { %9659 = vst [vmem:[#allocation19_spill] sm:$0xff] %v9658_v54  ;;  %v9662_v55 = vsel %vm4815_vm9, 4294967295, %v9661_v55  ;;  %vm4823_vm8 = vmand %vm9665_vm6, %vm9664_vm5  ;;  %vm217_vm9 = vcmp.ge.s32.totalorder %v213_v49, 0  ;;  %vm221_vm5 = vcmp.lt.s32.totalorder %v213_v49, 16  ;;  %v4857_v62 = vadd.s32 2, %v4728_v22 }
  0x2a   : > { %9663 = vst [vmem:[#allocation20_spill] sm:$0xff] %v9662_v55  ;;  %v9667_v56 = vsel %vm4823_vm8, 4294967295, %v9666_v56  ;;  %vm4827_vm0 = vmand %vm313_vm2, %vm317_vm10  ;;  %vm9680_vm8 = vcmp.ge.s32.totalorder %v4772_v42, 0  ;;  %vm9681_vm2 = vnez %v9609_v25  ;;  %v9691_v63 = vmov 0 }
  0x2b   : > { %9668 = vst [vmem:[#allocation21_spill] sm:$0xff] %v9667_v56  ;;  %v9670_v57 = vsel %vm4827_vm0, 4294967295, %v9669_v57  ;;  %vm4835_vm1 = vmand %vm9673_vm13, %vm9672_vm11  ;;  %vm218_vm0 = vcmp.ge.s32.totalorder %v214_v50, 0  ;;  %vm222_vm11 = vcmp.lt.s32.totalorder %v214_v50, 16  ;;  %v9694_v0 = vmov 0 }
  0x2c   : > { %9671 = vst [vmem:[#allocation22_spill] sm:$0xff] %v9670_v57  ;;  %v9675_v58 = vsel %vm4835_vm1, 4294967295, %v9674_v58  ;;  %vm4839_vm6 = vmand %vm314_vm14, %vm318_vm3  ;;  %vm9689_vm14 = vnez %v9632_v38  ;;  %vm9690_vm3 = vnez %v9612_v27  ;;  %v9699_v2 = vmov 0 }
  0x2d   : > { %9676 = vst [vmem:[#allocation23_spill] sm:$0xff] %v9675_v58  ;;  %v9678_v59 = vsel %vm4839_vm6, 4294967295, %v9677_v59  ;;  %vm4847_vm10 = vmand %vm9681_vm2, %vm9680_vm8  ;;  %v9702_v3 = vmov 0  ;;  %v9707_v4 = vmov 0  ;;  %v9710_v5 = vmov 0 }
  0x2e   : > { %9679 = vst [vmem:[#allocation24_spill] sm:$0xff] %v9678_v59  ;;  %v9683_v60 = vsel %vm4847_vm10, 4294967295, %v9682_v60  ;;  %vm4851_vm13 = vmand %vm215_vm15, %vm219_vm12  ;;  %vm9697_vm15 = vnez %v9635_v40  ;;  %vm9698_vm12 = vnez %v9615_v29  ;;  %v9714_v6 = vmov 0 }
  0x2f   : > { %9684 = vst [vmem:[#allocation25_spill] sm:$0xff] %v9683_v60  ;;  %v9686_v61 = vsel %vm4851_vm13, 4294967295, %v9685_v61  ;;  %9688 = vst [vmem:[#allocation27_spill] sm:$0xff] %v4857_v62  ;;  %v9718_v7 = vmov 0  ;;  %v9722_v8 = vmov 0  ;;  %v9726_v13 = vmov 0 }
  0x30   : > { %9687 = vst [vmem:[#allocation26_spill] sm:$0xff] %v9686_v61  ;;  %vm4863_vm6 = vmand %vm9690_vm3, %vm9689_vm14  ;;  %vm9705_vm14 = vnez %v9639_v43  ;;  %v9730_v14 = vmov 0  ;;  %v9734_v15 = vmov 0  ;;  %v227_v16 = vadd.s32 1, %v4716_v9 }
  0x31   : > { %v9692_v63 = vsel %vm4863_vm6, 4294967295, %v9691_v63  ;;  %vm4867_vm8 = vmand %vm216_vm7, %vm220_vm4  ;;  %vm9706_vm6 = vnez %v9619_v31  ;;  %v9738_v17 = vmov 0  ;;  %v228_v18 = vadd.s32 1, %v4718_v10 }
  0x32   : > { %9693 = vst [vmem:[#allocation28_spill] sm:$0xff] %v9692_v63  ;;  %v9695_v0 = vsel %vm4867_vm8, 4294967295, %v9694_v0  ;;  %vm4875_vm1 = vmand %vm9698_vm12, %vm9697_vm15  ;;  %vm9713_vm15 = vcmp.lt.s32.totalorder %v4804_v53, 16  ;;  %v9742_v19 = vmov 0  ;;  %v229_v20 = vadd.s32 1, %v4720_v11 }
  0x33   : > { %9696 = vst [vmem:[#allocation29_spill] sm:$0xff] %v9695_v0  ;;  %v9700_v2 = vsel %vm4875_vm1, 4294967295, %v9699_v2  ;;  %vm4879_vm10 = vmand %vm217_vm9, %vm221_vm5  ;;  %vm9717_vm1 = vnez %v9642_v46  ;;  %v9746_v21 = vmov 0  ;;  %v230_v22 = vadd.s32 1, %v4722_v12 }
  0x34   : > { %9701 = vst [vmem:[#allocation30_spill] sm:$0xff] %v9700_v2  ;;  %v9703_v3 = vsel %vm4879_vm10, 4294967295, %v9702_v3  ;;  %vm4887_vm7 = vmand %vm9706_vm6, %vm9705_vm14  ;;  %v9750_v23 = vmov 0  ;;  %v9754_v24 = vmov 0  ;;  %v9758_v26 = vmov 0 }
  0x35   : > { %9704 = vst [vmem:[#allocation31_spill] sm:$0xff] %v9703_v3  ;;  %v9708_v4 = vsel %vm4887_vm7, 4294967295, %v9707_v4  ;;  %vm4891_vm4 = vmand %vm218_vm0, %vm222_vm11  ;;  %vm9721_vm11 = vnez %v9645_v48  ;;  %vm9733_vm7 = vnez %v9662_v55  ;;  %v9762_v28 = vmov 0 }
  0x36   : > { %9709 = vst [vmem:[#allocation32_spill] sm:$0xff] %v9708_v4  ;;  %v9711_v5 = vsel %vm4891_vm4, 4294967295, %v9710_v5  ;;  %vm4899_vm9 = vmand %vm9681_vm2, %vm9713_vm15  ;;  %vm9725_vm15 = vnez %v9648_v51  ;;  %v9765_v30 = vmov 0  ;;  %v9769_v34 = vmov 0 }
  0x37   : > { %9712 = vst [vmem:[#allocation33_spill] sm:$0xff] %v9711_v5  ;;  %v9715_v6 = vsel %vm4899_vm9, 4294967295, %v9714_v6  ;;  %vm4908_vm14 = vmand %vm9690_vm3, %vm9717_vm1  ;;  %vm9729_vm9 = vcmp.lt.s32.totalorder %v4857_v62, 16  ;;  %vm238_vm1 = vcmp.lt.s32.totalorder %v230_v22, 16  ;;  %v9772_v36 = vmov 0 }
  0x38   : > { %9716 = vst [vmem:[#allocation34_spill] sm:$0xff] %v9715_v6  ;;  %v9719_v7 = vsel %vm4908_vm14, 4294967295, %v9718_v7  ;;  %vm4916_vm0 = vmand %vm9698_vm12, %vm9721_vm11  ;;  %vm9761_vm11 = vcmp.ge.s32.totalorder %v4772_v42, 0  ;;  %v9777_v39 = vmov 0  ;;  %v9780_v41 = vmov 0 }
  0x39   : > { %9720 = vst [vmem:[#allocation35_spill] sm:$0xff] %v9719_v7  ;;  %v9723_v8 = vsel %vm4916_vm0, 4294967295, %v9722_v8  ;;  %vm4924_vm5 = vmand %vm9706_vm6, %vm9725_vm15  ;;  %v9785_v44 = vmov 0  ;;  %v9788_v45 = vmov 0  ;;  %v9792_v47 = vmov 0 }
  0x3a   : > { %9724 = vst [vmem:[#allocation36_spill] sm:$0xff] %v9723_v8  ;;  %v9727_v13 = vsel %vm4924_vm5, 4294967295, %v9726_v13  ;;  %vm4932_vm14 = vmand %vm9681_vm2, %vm9729_vm9  ;;  %vm9737_vm5 = vnez %v9670_v57  ;;  %vm9741_vm2 = vnez %v9678_v59  ;;  %vm9745_vm9 = vcmp.ge.s32.totalorder %v4748_v32, 0 }
  0x3b   : > { %9728 = vst [vmem:[#allocation37_spill] sm:$0xff] %v9727_v13  ;;  %v9731_v14 = vsel %vm4932_vm14, 4294967295, %v9730_v14  ;;  %vm4940_vm0 = vmand %vm9690_vm3, %vm9733_vm7  ;;  %vm9749_vm14 = vnez %v9623_v33  ;;  %vm237_vm7 = vcmp.lt.s32.totalorder %v229_v20, 16  ;;  %v9796_v49 = vmov 0 }
  0x3c   : > { %9732 = vst [vmem:[#allocation38_spill] sm:$0xff] %v9731_v14  ;;  %v9735_v15 = vsel %vm4940_vm0, 4294967295, %v9734_v15  ;;  %vm4949_vm15 = vmand %vm9698_vm12, %vm9737_vm5  ;;  %vm9753_vm0 = vnez %v9626_v35  ;;  %vm9757_vm5 = vnez %v9629_v37  ;;  %v9800_v50 = vmov 0 }
  0x3d   : > { %9736 = vst [vmem:[#allocation39_spill] sm:$0xff] %v9735_v15  ;;  %v9739_v17 = vsel %vm4949_vm15, 4294967295, %v9738_v17  ;;  %vm4958_vm3 = vmand %vm9706_vm6, %vm9741_vm2  ;;  %vm235_vm15 = vcmp.lt.s32.totalorder %v227_v16, 16  ;;  %vm236_vm2 = vcmp.lt.s32.totalorder %v228_v18, 16 }
  0x3e   : > { %9740 = vst [vmem:[#allocation40_spill] sm:$0xff] %v9739_v17  ;;  %v9743_v19 = vsel %vm4958_vm3, 4294967295, %v9742_v19  ;;  %vm4967_vm12 = vmand %vm4851_vm13, %vm9745_vm9  ;;  %vm231_vm3 = vcmp.ge.s32.totalorder %v227_v16, 0  ;;  %v9804_v16 = vmov 0 }
  0x3f   : > { %9744 = vst [vmem:[#allocation41_spill] sm:$0xff] %v9743_v19  ;;  %v9747_v21 = vsel %vm4967_vm12, 4294967295, %v9746_v21  ;;  %vm4976_vm6 = vmand %vm4867_vm8, %vm9749_vm14  ;;  %vm232_vm12 = vcmp.ge.s32.totalorder %v228_v18, 0  ;;  %v9808_v18 = vmov 0 }
  0x40   : > { %9748 = vst [vmem:[#allocation42_spill] sm:$0xff] %v9747_v21  ;;  %v9751_v23 = vsel %vm4976_vm6, 4294967295, %v9750_v23  ;;  %vm4984_vm9 = vmand %vm4879_vm10, %vm9753_vm0  ;;  %vm233_vm6 = vcmp.ge.s32.totalorder %v229_v20, 0  ;;  %v9812_v20 = vmov 0 }
  0x41   : > { %9752 = vst [vmem:[#allocation43_spill] sm:$0xff] %v9751_v23  ;;  %v9755_v24 = vsel %vm4984_vm9, 4294967295, %v9754_v24  ;;  %vm4992_vm14 = vmand %vm4891_vm4, %vm9757_vm5  ;;  %vm234_vm9 = vcmp.ge.s32.totalorder %v230_v22, 0  ;;  %vm9768_vm5 = vnez %v9632_v38  ;;  %v243_v22 = vadd.s32 2, %v4716_v9 }
  0x42   : > { %9756 = vst [vmem:[#allocation44_spill] sm:$0xff] %v9755_v24  ;;  %v9759_v26 = vsel %vm4992_vm14, 4294967295, %v9758_v26  ;;  %vm5000_vm0 = vmand %vm4851_vm13, %vm9761_vm11  ;;  %vm9775_vm11 = vnez %v9635_v40  ;;  %v245_v9 = vadd.s32 2, %v4720_v11  ;;  %v9832_v11 = vmov 0 }
  0x43   : > { %9760 = vst [vmem:[#allocation45_spill] sm:$0xff] %v9759_v26  ;;  %v9763_v28 = vsel %vm5000_vm0, 4294967295, %v9762_v28  ;;  %vm5004_vm10 = vmand %vm231_vm3, %vm235_vm15  ;;  %vm9776_vm0 = vnez %v9703_v3 }
  0x44   : > { %9764 = vst [vmem:[#allocation46_spill] sm:$0xff] %v9763_v28  ;;  %v9766_v30 = vsel %vm5004_vm10, 4294967295, %v9765_v30  ;;  %vm5012_vm14 = vmand %vm4867_vm8, %vm9768_vm5  ;;  %vm9783_vm5 = vnez %v9639_v43 }
  0x45   : > { %9767 = vst [vmem:[#allocation47_spill] sm:$0xff] %v9766_v30  ;;  %v9770_v34 = vsel %vm5012_vm14, 4294967295, %v9769_v34  ;;  %vm5016_vm4 = vmand %vm232_vm12, %vm236_vm2  ;;  %vm9784_vm14 = vnez %v9711_v5 }
  0x46   : > { %9771 = vst [vmem:[#allocation48_spill] sm:$0xff] %v9770_v34  ;;  %v9773_v36 = vsel %vm5016_vm4, 4294967295, %v9772_v36  ;;  %vm5024_vm15 = vmand %vm9776_vm0, %vm9775_vm11  ;;  %vm9791_vm11 = vcmp.lt.s32.totalorder %v4804_v53, 16 }
  0x47   : > { %9774 = vst [vmem:[#allocation49_spill] sm:$0xff] %v9773_v36  ;;  %v9778_v39 = vsel %vm5024_vm15, 4294967295, %v9777_v39  ;;  %vm5028_vm3 = vmand %vm233_vm6, %vm237_vm7  ;;  %vm9795_vm6 = vnez %v9642_v46 }
  0x48   : > { %9779 = vst [vmem:[#allocation50_spill] sm:$0xff] %v9778_v39  ;;  %v9781_v41 = vsel %vm5028_vm3, 4294967295, %v9780_v41  ;;  %vm5036_vm2 = vmand %vm9784_vm14, %vm9783_vm5 }
  0x49   : > { %9782 = vst [vmem:[#allocation51_spill] sm:$0xff] %v9781_v41  ;;  %v9786_v44 = vsel %vm5036_vm2, 4294967295, %v9785_v44  ;;  %vm5040_vm12 = vmand %vm234_vm9, %vm238_vm1  ;;  %vm9799_vm1 = vnez %v9645_v48  ;;  %vm9807_vm2 = vcmp.lt.s32.totalorder %v4857_v62, 16 }
  0x4a   : > { %9787 = vst [vmem:[#allocation52_spill] sm:$0xff] %v9786_v44  ;;  %v9789_v45 = vsel %vm5040_vm12, 4294967295, %v9788_v45  ;;  %vm5048_vm7 = vmand %vm4851_vm13, %vm9791_vm11  ;;  %vm9803_vm11 = vnez %v9648_v51 }
  0x4b   : > { %9790 = vst [vmem:[#allocation53_spill] sm:$0xff] %v9789_v45  ;;  %v9793_v47 = vsel %vm5048_vm7, 4294967295, %v9792_v47  ;;  %vm5056_vm15 = vmand %vm4867_vm8, %vm9795_vm6  ;;  %vm9839_vm6 = vcmp.ge.s32.totalorder %v4772_v42, 0 }
  0x4c   : > { %9794 = vst [vmem:[#allocation54_spill] sm:$0xff] %v9793_v47  ;;  %v9797_v49 = vsel %vm5056_vm15, 4294967295, %v9796_v49  ;;  %vm5064_vm9 = vmand %vm9776_vm0, %vm9799_vm1  ;;  %vm9811_vm1 = vnez %v9662_v55  ;;  %v9820_v47 = vmov 0 }
  0x4d   : > { %9798 = vst [vmem:[#allocation55_spill] sm:$0xff] %v9797_v49  ;;  %v9801_v50 = vsel %vm5064_vm9, 4294967295, %v9800_v50  ;;  %vm5072_vm7 = vmand %vm9784_vm14, %vm9803_vm11 }
  0x4e   : > { %9802 = vst [vmem:[#allocation56_spill] sm:$0xff] %v9801_v50  ;;  %v9805_v16 = vsel %vm5072_vm7, 4294967295, %v9804_v16  ;;  %vm5080_vm15 = vmand %vm4851_vm13, %vm9807_vm2  ;;  %vm9815_vm7 = vnez %v9670_v57  ;;  %vm9819_vm2 = vnez %v9678_v59  ;;  %vm251_vm13 = vcmp.lt.s32.totalorder %v243_v22, 16 }
  0x4f   : > { %9806 = vst [vmem:[#allocation57_spill] sm:$0xff] %v9805_v16  ;;  %v9809_v18 = vsel %vm5080_vm15, 4294967295, %v9808_v18  ;;  %vm5088_vm9 = vmand %vm4867_vm8, %vm9811_vm1  ;;  %v9816_v16 = vmov 0  ;;  %vm9831_vm8 = vnez %v9626_v35  ;;  %vm253_vm1 = vcmp.lt.s32.totalorder %v245_v9, 16 }
  0x50   : > { %9810 = vst [vmem:[#allocation58_spill] sm:$0xff] %v9809_v18  ;;  %v9813_v20 = vsel %vm5088_vm9, 4294967295, %v9812_v20  ;;  %vm5097_vm11 = vmand %vm9776_vm0, %vm9815_vm7  ;;  %v244_v18 = vadd.s32 2, %v4718_v10  ;;  %vm9823_vm9 = vcmp.ge.s32.totalorder %v4748_v32, 0  ;;  %v246_v10 = vadd.s32 2, %v4722_v12 }
  0x51   : > { %9814 = vst [vmem:[#allocation59_spill] sm:$0xff] %v9813_v20  ;;  %v9817_v16 = vsel %vm5097_vm11, 4294967295, %v9816_v16  ;;  %vm5106_vm15 = vmand %vm9784_vm14, %vm9819_vm2  ;;  %v9824_v20 = vmov 0  ;;  %vm9827_vm11 = vnez %v9623_v33  ;;  %vm9835_vm7 = vnez %v9629_v37 }
  0x52   : > { %9818 = vst [vmem:[#allocation60_spill] sm:$0xff] %v9817_v16  ;;  %v9821_v47 = vsel %vm5106_vm15, 4294967295, %v9820_v47  ;;  %vm5115_vm0 = vmand %vm5004_vm10, %vm9823_vm9  ;;  %v9828_v16 = vmov 0  ;;  %vm247_vm15 = vcmp.ge.s32.totalorder %v243_v22, 0  ;;  %vm252_vm2 = vcmp.lt.s32.totalorder %v244_v18, 16 }
  0x53   : > { %9822 = vst [vmem:[#allocation61_spill] sm:$0xff] %v9821_v47  ;;  %v9825_v20 = vsel %vm5115_vm0, 4294967295, %v9824_v20  ;;  %vm5124_vm14 = vmand %vm5016_vm4, %vm9827_vm11  ;;  %vm248_vm0 = vcmp.ge.s32.totalorder %v244_v18, 0  ;;  %v9836_v12 = vmov 0  ;;  %v9840_v22 = vmov 0 }
  0x54   : > { %9826 = vst [vmem:[#allocation62_spill] sm:$0xff] %v9825_v20  ;;  %v9829_v16 = vsel %vm5124_vm14, 4294967295, %v9828_v16  ;;  %vm5132_vm9 = vmand %vm5028_vm3, %vm9831_vm8  ;;  %vm249_vm14 = vcmp.ge.s32.totalorder %v245_v9, 0  ;;  %vm254_vm5 = vcmp.lt.s32.totalorder %v246_v10, 16  ;;  %v9843_v18 = vmov 0 }
  0x55   : > { %9830 = vst [vmem:[#allocation63_spill] sm:$0xff] %v9829_v16  ;;  %v9833_v11 = vsel %vm5132_vm9, 4294967295, %v9832_v11  ;;  %vm5140_vm11 = vmand %vm5040_vm12, %vm9835_vm7  ;;  %vm250_vm9 = vcmp.ge.s32.totalorder %v246_v10, 0  ;;  %vm9846_vm7 = vnez %v9632_v38  ;;  %v9847_v9 = vmov 0 }
  0x56   : > { %9834 = vst [vmem:[#allocation64_spill] sm:$0xff] %v9833_v11  ;;  %v9837_v12 = vsel %vm5140_vm11, 4294967295, %v9836_v12  ;;  %vm5148_vm8 = vmand %vm5004_vm10, %vm9839_vm6  ;;  %vm9853_vm6 = vnez %v9635_v40  ;;  %v9855_v10 = vmov 0  ;;  %v9866_v11 = vmov 0 }
  0x57   : > { %9838 = vst [vmem:[#allocation65_spill] sm:$0xff] %v9837_v12  ;;  %v9841_v22 = vsel %vm5148_vm8, 4294967295, %v9840_v22  ;;  %vm5152_vm3 = vmand %vm247_vm15, %vm251_vm13  ;;  %v9850_v12 = vmov 0  ;;  %vm9854_vm8 = vnez %v9781_v41  ;;  %v9874_v16 = vmov 0 }
  0x58   : > { %9842 = vst [vmem:[#allocation66_spill] sm:$0xff] %v9841_v22  ;;  %v9844_v18 = vsel %vm5152_vm3, 4294967295, %v9843_v18  ;;  %vm5160_vm11 = vmand %vm5016_vm4, %vm9846_vm7  ;;  %v9858_v22 = vmov 0  ;;  %vm9861_vm7 = vnez %v9639_v43 }
  0x59   : > { %9845 = vst [vmem:[#allocation67_spill] sm:$0xff] %v9844_v18  ;;  %v9848_v9 = vsel %vm5160_vm11, 4294967295, %v9847_v9  ;;  %vm5164_vm12 = vmand %vm248_vm0, %vm252_vm2  ;;  %vm9862_vm11 = vnez %v9789_v45 }
  0x5a   : > { %9849 = vst [vmem:[#allocation68_spill] sm:$0xff] %v9848_v9  ;;  %v9851_v12 = vsel %vm5164_vm12, 4294967295, %v9850_v12  ;;  %vm5172_vm13 = vmand %vm9854_vm8, %vm9853_vm6  ;;  %v9863_v9 = vmov 0  ;;  %vm9869_vm6 = vcmp.lt.s32.totalorder %v4804_v53, 16 }
  0x5b   : > { %9852 = vst [vmem:[#allocation69_spill] sm:$0xff] %v9851_v12  ;;  %v9856_v10 = vsel %vm5172_vm13, 4294967295, %v9855_v10  ;;  %vm5176_vm15 = vmand %vm249_vm14, %vm253_vm1  ;;  %vm9873_vm14 = vnez %v9642_v46 }
  0x5c   : > { %9857 = vst [vmem:[#allocation70_spill] sm:$0xff] %v9856_v10  ;;  %v9859_v22 = vsel %vm5176_vm15, 4294967295, %v9858_v22  ;;  %vm5184_vm2 = vmand %vm9862_vm11, %vm9861_vm7  ;;  %v9870_v10 = vmov 0 }
  0x5d   : > { %9860 = vst [vmem:[#allocation71_spill] sm:$0xff] %v9859_v22  ;;  %v9864_v9 = vsel %vm5184_vm2, 4294967295, %v9863_v9  ;;  %vm5188_vm0 = vmand %vm250_vm9, %vm254_vm5  ;;  %vm9877_vm5 = vnez %v9645_v48  ;;  %vm9885_vm2 = vcmp.lt.s32.totalorder %v4857_v62, 16 }
  0x5e   : > { %9865 = vst [vmem:[#allocation72_spill] sm:$0xff] %v9864_v9  ;;  %v9867_v11 = vsel %vm5188_vm0, 4294967295, %v9866_v11  ;;  %vm5196_vm1 = vmand %vm5004_vm10, %vm9869_vm6  ;;  %v9878_v9 = vmov 0  ;;  %vm9881_vm6 = vnez %v9648_v51 }
  0x5f   : > { %9868 = vst [vmem:[#allocation73_spill] sm:$0xff] %v9867_v11  ;;  %v9871_v10 = vsel %vm5196_vm1, 4294967295, %v9870_v10  ;;  %vm5204_vm13 = vmand %vm5016_vm4, %vm9873_vm14 }
  0x60   : > { %9872 = vst [vmem:[#allocation74_spill] sm:$0xff] %v9871_v10  ;;  %v9875_v16 = vsel %vm5204_vm13, 4294967295, %v9874_v16  ;;  %vm5212_vm9 = vmand %vm9854_vm8, %vm9877_vm5  ;;  %v9882_v10 = vmov 0  ;;  %vm9889_vm5 = vnez %v9662_v55 }
  0x61   : > { %9876 = vst [vmem:[#allocation75_spill] sm:$0xff] %v9875_v16  ;;  %v9879_v9 = vsel %vm5212_vm9, 4294967295, %v9878_v9  ;;  %vm5220_vm1 = vmand %vm9862_vm11, %vm9881_vm6  ;;  %v9886_v16 = vmov 0  ;;  %vm9893_vm6 = vnez %v9670_v57 }
  0x62   : > { %9880 = vst [vmem:[#allocation76_spill] sm:$0xff] %v9879_v9  ;;  %v9883_v10 = vsel %vm5220_vm1, 4294967295, %v9882_v10  ;;  %vm5228_vm13 = vmand %vm5004_vm10, %vm9885_vm2  ;;  %v9890_v9 = vmov 0  ;;  %vm9897_vm2 = vnez %v9678_v59  ;;  %vm9901_vm10 = vcmp.ge.s32.totalorder %v4748_v32, 0 }
  0x63   : > { %9884 = vst [vmem:[#allocation77_spill] sm:$0xff] %v9883_v10  ;;  %v9887_v16 = vsel %vm5228_vm13, 4294967295, %v9886_v16  ;;  %vm5236_vm9 = vmand %vm5016_vm4, %vm9889_vm5  ;;  %v9894_v10 = vmov 0 }
  0x64   : > { %9888 = vst [vmem:[#allocation78_spill] sm:$0xff] %v9887_v16  ;;  %v9891_v9 = vsel %vm5236_vm9, 4294967295, %v9890_v9  ;;  %vm5244_vm1 = vmand %vm9854_vm8, %vm9893_vm6  ;;  %v9898_v16 = vmov 0  ;;  %vm9905_vm8 = vnez %v9623_v33 }
  0x65   : > { %9892 = vst [vmem:[#allocation79_spill] sm:$0xff] %v9891_v9  ;;  %v9895_v10 = vsel %vm5244_vm1, 4294967295, %v9894_v10  ;;  %vm5252_vm13 = vmand %vm9862_vm11, %vm9897_vm2  ;;  %v9902_v9 = vmov 0  ;;  %vm9909_vm11 = vnez %v9626_v35 }
  0x66   : > { %9896 = vst [vmem:[#allocation80_spill] sm:$0xff] %v9895_v10  ;;  %v9899_v16 = vsel %vm5252_vm13, 4294967295, %v9898_v16  ;;  %vm5260_vm9 = vmand %vm5152_vm3, %vm9901_vm10  ;;  %v9906_v10 = vmov 0  ;;  %vm9913_vm10 = vnez %v9629_v37 }
  0x67   : > { %9900 = vst [vmem:[#allocation81_spill] sm:$0xff] %v9899_v16  ;;  %v9903_v9 = vsel %vm5260_vm9, 4294967295, %v9902_v9  ;;  %vm5268_vm1 = vmand %vm5164_vm12, %vm9905_vm8  ;;  %v9910_v16 = vmov 0  ;;  %vm9917_vm8 = vcmp.ge.s32.totalorder %v4772_v42, 0 }
  0x68   : > { %9904 = vst [vmem:[#allocation82_spill] sm:$0xff] %v9903_v9  ;;  %v9907_v10 = vsel %vm5268_vm1, 4294967295, %v9906_v10  ;;  %vm5276_vm13 = vmand %vm5176_vm15, %vm9909_vm11  ;;  %v9914_v9 = vmov 0  ;;  %vm9921_vm11 = vnez %v9632_v38 }
  0x69   : > { %9908 = vst [vmem:[#allocation83_spill] sm:$0xff] %v9907_v10  ;;  %v9911_v16 = vsel %vm5276_vm13, 4294967295, %v9910_v16  ;;  %vm5284_vm9 = vmand %vm5188_vm0, %vm9913_vm10  ;;  %v9918_v10 = vmov 0  ;;  %vm9925_vm10 = vnez %v9635_v40 }
  0x6a   : > { %9912 = vst [vmem:[#allocation84_spill] sm:$0xff] %v9911_v16  ;;  %v9915_v9 = vsel %vm5284_vm9, 4294967295, %v9914_v9  ;;  %vm5292_vm1 = vmand %vm5152_vm3, %vm9917_vm8  ;;  %v9922_v16 = vmov 0 }
  0x6b   : > { %9916 = vst [vmem:[#allocation85_spill] sm:$0xff] %v9915_v9  ;;  %v9919_v10 = vsel %vm5292_vm1, 4294967295, %v9918_v10  ;;  %vm5300_vm13 = vmand %vm5164_vm12, %vm9921_vm11  ;;  %v9926_v9 = vmov 0  ;;  %vm9932_vm11 = vcmp.lt.s32.totalorder %v4804_v53, 16 }
  0x6c   : > { %9920 = vst [vmem:[#allocation86_spill] sm:$0xff] %v9919_v10  ;;  %v9923_v16 = vsel %vm5300_vm13, 4294967295, %v9922_v16  ;;  %vm5308_vm9 = vmand %vm5176_vm15, %vm9925_vm10  ;;  %v9929_v10 = vmov 0 }
  0x6d   : > { %9924 = vst [vmem:[#allocation87_spill] sm:$0xff] %v9923_v16  ;;  %v9927_v9 = vsel %vm5308_vm9, 4294967295, %v9926_v9  ;;  %vm5316_vm8 = vmand %vm5188_vm0, %vm9861_vm7  ;;  %v9933_v16 = vmov 0  ;;  %vm9939_vm7 = vnez %v9645_v48 }
  0x6e   : > { %9928 = vst [vmem:[#allocation88_spill] sm:$0xff] %v9927_v9  ;;  %v9930_v10 = vsel %vm5316_vm8, 4294967295, %v9929_v10  ;;  %vm5324_vm13 = vmand %vm5152_vm3, %vm9932_vm11  ;;  %v9936_v9 = vmov 0  ;;  %vm9943_vm11 = vnez %v9648_v51 }
  0x6f   : > { %9931 = vst [vmem:[#allocation89_spill] sm:$0xff] %v9930_v10  ;;  %v9934_v16 = vsel %vm5324_vm13, 4294967295, %v9933_v16  ;;  %vm5332_vm10 = vmand %vm5164_vm12, %vm9873_vm14  ;;  %v9940_v10 = vmov 0  ;;  %vm9947_vm14 = vcmp.lt.s32.totalorder %v4857_v62, 16 }
  0x70   : > { %9935 = vst [vmem:[#allocation90_spill] sm:$0xff] %v9934_v16  ;;  %v9937_v9 = vsel %vm5332_vm10, 4294967295, %v9936_v9  ;;  %vm5340_vm8 = vmand %vm5176_vm15, %vm9939_vm7  ;;  %v9944_v16 = vmov 0 }
  0x71   : > { %9938 = vst [vmem:[#allocation91_spill] sm:$0xff] %v9937_v9  ;;  %v9941_v10 = vsel %vm5340_vm8, 4294967295, %v9940_v10  ;;  %vm5348_vm13 = vmand %vm5188_vm0, %vm9943_vm11  ;;  %v9948_v9 = vmov 0 }
  0x72   : > { %9942 = vst [vmem:[#allocation92_spill] sm:$0xff] %v9941_v10  ;;  %v9945_v16 = vsel %vm5348_vm13, 4294967295, %v9944_v16  ;;  %vm5356_vm10 = vmand %vm5152_vm3, %vm9947_vm14  ;;  %v9951_v10 = vmov 0 }
  0x73   : > { %9946 = vst [vmem:[#allocation93_spill] sm:$0xff] %v9945_v16  ;;  %v9949_v9 = vsel %vm5356_vm10, 4294967295, %v9948_v9  ;;  %vm5364_vm7 = vmand %vm5164_vm12, %vm9889_vm5  ;;  %v9954_v16 = vmov 0  ;;  %390 = sbr.rel (%p4254_p4) target bundleno = 1677 (0x68d), region = 40 }
  0x74   : > { %9950 = vst [vmem:[#allocation94_spill] sm:$0xff] %v9949_v9  ;;  %v9952_v10 = vsel %vm5364_vm7, 4294967295, %v9951_v10  ;;  %vm5372_vm11 = vmand %vm5176_vm15, %vm9893_vm6  ;;  %v9957_v9 = vmov 0 }
  0x75   : > { %9953 = vst [vmem:[#allocation95_spill] sm:$0xff] %v9952_v10  ;;  %v9955_v16 = vsel %vm5372_vm11, 4294967295, %v9954_v16  ;;  %vm5380_vm14 = vmand %vm5188_vm0, %vm9897_vm2 }
  0x76   : > { %9956 = vst [vmem:[#allocation96_spill] sm:$0xff] %v9955_v16  ;;  %v9958_v9 = vsel %vm5380_vm14, 4294967295, %v9957_v9 }
  0x77   : > { %9959 = vst [vmem:[#allocation97_spill] sm:$0xff] %v9958_v9 }
  0x78   : > { %v391_v10 = vld [vmem:[%s9090_s0] sm:$0xff]  ;;  %vm420_vm5 = vcmask 1043456   ;;  %v392_v16 = vld [vmem:[%s9090_s0 + $0x8] sm:$0xff]  ;;  %v9298_v22 = vmov 0.0   ;;  %vm415_vm6 = vcmask 31744   ;;  %v4561_v11 = vmov 25  }
  0x79   : > { %v413_v12 = vcombine.high %v391_v10, %v391_v10  ;;  %v414_v18 = vcombine.high %v392_v16, %v392_v16  ;;  %493 = vmatprep.mubr.f32.mxu0 %v9298_v22  ;;  %570 = vmatprep.mubr.f32.mxu1 %v9298_v22  ;;  %v393_v9 = vld [vmem:[%s9092_s2] sm:$0xff]  ;;  %v4562_v45 = vmov 0   ;;  %v5403_v22 = vld [vmem:[%s9092_s2 + $0x18] sm:$0xff]  ;;  %s4573_s8 = smov 32   ;;  %s4574_s9 = smov 34   ;;  %v9310_v36 = vmov 11  }
  0x7a   : > { %4401 = vset.pattern.permute.xlu0 %v4561_v11  ;;  %4402 = vset.pattern.permute.xlu1 %v4562_v45  ;;  %v9960_v11 = vmov 0.0   ;;  %s4575_s10 = smov 31   ;;  %s4576_s11 = smov 33   ;;  %vm9500_vm2 = vcmp.lt.s32.totalorder %v4710_v1, 33  ;;  %vm10066_vm14 = vnez %v9700_v2  ;;  %vm10067_vm11 = vnez %v9658_v54  ;;  %v10206_v2 = vld [vmem:[#allocation23_spill] sm:$0xff] }
  0x7b   : > { %4255 = vmatprep.subr.msk.mxu0 %vm420_vm5, %v413_v12  ;;  %4259 = vmatprep.subr.msk.mxu1 %vm420_vm5, %v414_v18  ;;  %v394_v12 = vld [vmem:[%s9092_s2 + $0x8] sm:$0xff]  ;;  %v5421_v18 = vld [vmem:[%s9092_s2 + $0x10] sm:$0xff]  ;;  %s4577_s12 = smov 18   ;;  %s4578_s13 = smov 17   ;;  %vm10070_vm10 = vnez %v9667_v56  ;;  %vm10072_vm8 = vnez %v9683_v60  ;;  %vm9519_vm7 = vcmp.lt.s32.totalorder %v4710_v1, 30  ;;  %vm10074_vm12 = vnez %v9708_v4 }
  0x7c   : > { %4256 = vmatpush1.msk.msra.mxu0 %vm420_vm5, %v391_v10  ;;  %4260 = vmatpush1.msk.msra.mxu1 %vm420_vm5, %v392_v16  ;;  %v4563_v16 = vmov 1   ;;  %v4564_v10 = vmov 2   ;;  %s4579_s14 = smov 30   ;;  %s4580_s17 = smov 15   ;;  %vm9498_vm5 = vcmp.lt.s32.totalorder %v4710_v1, 34  ;;  %vm10075_vm3 = vcmp.lt.s32.totalorder %v4710_v1, 32 }
  0x7d   : > { %4257 = vmatmul.mubr.msk.f32.vlgmr.msra.gmra.mxu0 %vm415_vm6, %v393_v9  ;;  %4261 = vmatmul.mubr.msk.f32.vlgmr.msra.gmra.mxu1 %vm415_vm6, %v393_v9  ;;  %s4581_s18 = smov 16   ;;  %s4583_s19 = smov 14   ;;  %vm10076_vm13 = vmmov %vm10075_vm3  ;;  %vm10082_vm15 = vcmp.lt.s32.totalorder %v4710_v1, 31  ;;  %vm10084_vm1 = vnez %v9609_v25  ;;  %vm10088_vm9 = vcmp.lt.s32.totalorder %v4710_v1, 31  ;;  %vm10089_vm4 = vnez %v9739_v17 }
  0x7e   : > { %499 = vmatprep.mubr.f32.mxu0 %v9960_v11  ;;  %576 = vmatprep.mubr.f32.mxu1 %v9960_v11  ;;  %s4584_s20 = smov 2   ;;  %s4587_s22 = smov 1   ;;  %vm10080_vm0 = vmmov %vm10075_vm3  ;;  %v10217_v54 = vmov 23  }
  0x7f   : > { %408 = vperm.xlu0 %4401, %v394_v12   ;;  %631 = vperm.xlu1 %4402, %v5403_v22   ;;  %s4588_s23 = smov 127   ;;  %s4591_s24 = smov 126  }
  0x80   : > { %s4593_s25 = smov 114   ;;  %s4595_s26 = smov 113  }
  0x81   : > { %4258 = vmatmul.mubr.msk.f32.gmra.mxu0 %vm415_vm6, %v394_v12  ;;  %4262 = vmatmul.mubr.msk.f32.gmra.mxu1 %vm415_vm6, %v394_v12  ;;  %v4566_v12 = vmov 4   ;;  %s4597_s27 = smov 112   ;;  %s4599_s28 = smov 111   ;;  %vm10065_vm6 = vnez %v9692_v63 }
  0x82   : > { %2432 = vmatprep.mubr.f32.mxu0 %v9960_v11  ;;  %2509 = vmatprep.mubr.f32.mxu1 %v9960_v11  ;;  %s4601_s29 = smov 110   ;;  %s4603_s30 = smov 98  }
  0x83   : > { %403 = vperm.xlu0 %4401, %v393_v9   ;;  %4403 = vset.pattern.permute.xlu1 %v4563_v16  ;;  %v4565_v9 = vmov 3   ;;  %v4568_v16 = vmov 6   ;;  %s4604_s5 = smov 97   ;;  %s4607_s6 = smov 96  }
  0x84   : > { %688 = vperm.xlu1 %4403, %v5403_v22  }
  0x87   : > { %4404 = vset.pattern.permute.xlu0 %v4562_v45  ;;  %v4567_v45 = vmov 5  }
  0x88   : > { %684 = vperm.xlu1 %4403, %v5421_v18   ;;  %626 = vperm.xlu0 %4404, %v5421_v18  }
  0x8c   : > { %4405 = vset.pattern.permute.xlu1 %v4564_v10  ;;  %4406 = vset.pattern.permute.xlu0 %v4564_v10  ;;  %v4569_v10 = vmov 7  }
  0x8d   : > { %753 = vperm.xlu1 %4405, %v5403_v22   ;;  %749 = vperm.xlu0 %4406, %v5421_v18  }
  0x91   : > { %4407 = vset.pattern.permute.xlu1 %v4565_v9  ;;  %4408 = vset.pattern.permute.xlu0 %v4566_v12  ;;  %v4570_v9 = vmov 8   ;;  %v4571_v12 = vmov 9  }
  0x92   : > { %818 = vperm.xlu1 %4407, %v5403_v22   ;;  %883 = vperm.xlu0 %4408, %v5403_v22  }
  0x96   : > { %814 = vperm.xlu1 %4407, %v5421_v18   ;;  %879 = vperm.xlu0 %4408, %v5421_v18  }
  0x9a   : > { %4409 = vset.pattern.permute.xlu1 %v4567_v45  ;;  %4410 = vset.pattern.permute.xlu0 %v4567_v45  ;;  %v4572_v45 = vmov 10  }
  0x9b   : > { %948 = vperm.xlu1 %4409, %v5403_v22   ;;  %944 = vperm.xlu0 %4410, %v5421_v18  }
  0x9f   : > { %4411 = vset.pattern.permute.xlu1 %v4568_v16  ;;  %4412 = vset.pattern.permute.xlu0 %v4569_v10 }
  0xa0   : > { %1013 = vperm.xlu1 %4411, %v5403_v22   ;;  %1078 = vperm.xlu0 %4412, %v5403_v22  }
  0xa4   : > { %1009 = vperm.xlu1 %4411, %v5421_v18   ;;  %1074 = vperm.xlu0 %4412, %v5421_v18  }
  0xa8   : > { %4413 = vset.pattern.permute.xlu1 %v4570_v9  ;;  %4414 = vset.pattern.permute.xlu0 %v4570_v9 }
  0xa9   : > { %1143 = vperm.xlu1 %4413, %v5403_v22   ;;  %1139 = vperm.xlu0 %4414, %v5421_v18  }
  0xad   : > { %4415 = vset.pattern.permute.xlu1 %v4571_v12  ;;  %4416 = vset.pattern.permute.xlu0 %v4572_v45 }
  0xae   : > { %1208 = vperm.xlu1 %4415, %v5403_v22   ;;  %1273 = vperm.xlu0 %4416, %v5403_v22  }
  0xb2   : > { %1204 = vperm.xlu1 %4415, %v5421_v18  }
  0xb6   : > { %4417 = vset.pattern.permute.xlu1 %v9310_v36 }
  0xfa   : > { %v5442_v16 = vpop.permute.xlu0 %408 }
  0xfe   : > { %v404_v10 = vpop.permute.xlu0 %403 }
 0x103   : > { %v5528_v59 = vpop.permute.xlu0 %626 }
 0x108   : > { %v5539_v51 = vpop.permute.xlu0 %749 }
 0x10d   : > { %v5551_v48 = vpop.permute.xlu0 %883 }
 0x10e   : > { %9965 = vst [vmem:[#allocation102_spill] sm:$0xff] %v5551_v48 }
 0x111   : > { %v5559_v53 = vpop.permute.xlu0 %879 }
 0x116   : > { %v5571_v40 = vpop.permute.xlu0 %944 }
 0x117   : > { %9968 = vst [vmem:[#allocation105_spill] sm:$0xff] %v5571_v40 }
 0x11b   : > { %v5579_v42 = vpop.permute.xlu0 %1078 }
 0x11c   : > { %9970 = vst [vmem:[#allocation107_spill] sm:$0xff] %v5579_v42 }
 0x11f   : > { %v5591_v32 = vpop.permute.xlu0 %1074 }
 0x120   : > { %9972 = vst [vmem:[#allocation109_spill] sm:$0xff] %v5591_v32 }
 0x124   : > { %v5599_v33 = vpop.permute.xlu0 %1139 }
 0x125   : > { %9974 = vst [vmem:[#allocation111_spill] sm:$0xff] %v5599_v33 }
 0x13d   : > { %v495_v11 = vpop.f32.mrf.mxu0  ;;  %v572_v30 = vpop.f32.mrf.mxu1 }
 0x13e   : > { %v5444_v9 = vadd.f32 %v495_v11, %v404_v10  ;;  %v5446_v41 = vadd.f32 %v572_v30, %v404_v10 }
 0x13f   : > { %v497_v30 = vpop.f32.mrf.mxu0  ;;  %v574_v12 = vpop.f32.mrf.mxu1 }
 0x140   : > { %715 = vrot.lane.b32.xlu0 %v5446_v41, %s4573_s8  ;;  %583 = vrot.lane.b32.xlu1 %v5444_v9, %s4574_s9  ;;  %v5476_v11 = vadd.f32 %v497_v30, %v404_v10  ;;  %v5482_v45 = vadd.f32 %v574_v12, %v404_v10  ;;  %v5497_v10 = vpop.permute.xlu1 %631 }
 0x141   : > { %9961 = vst [vmem:[#allocation98_spill] sm:$0xff] %v5497_v10  ;;  %v501_v36 = vpop.f32.mrf.mxu0  ;;  %v578_v57 = vpop.f32.mrf.mxu1 }
 0x142   : > { %v5520_v20 = vadd.f32 %v501_v36, %v5442_v16  ;;  %v5531_v62 = vadd.f32 %v578_v57, %v5442_v16 }
 0x143   : > { %v503_v47 = vpop.f32.mrf.mxu0  ;;  %v580_v42 = vpop.f32.mrf.mxu1 }
 0x144   : > { %772 = vrot.lane.b32.xlu0 %v5444_v9, %s4575_s10  ;;  %591 = vrot.lane.b32.xlu1 %v5446_v41, %s4574_s9  ;;  %v5507_v30 = vpop.permute.xlu1 %688  ;;  %v5617_v48 = vadd.f32 %v580_v42, %v5442_v16 }
 0x145   : > { %9962 = vst [vmem:[#allocation99_spill] sm:$0xff] %v5507_v30 }
 0x148   : > { %780 = vrot.lane.b32.xlu0 %v5446_v41, %s4575_s10  ;;  %642 = vrot.lane.b32.xlu1 %v5444_v9, %s4576_s11  ;;  %v5513_v12 = vpop.permute.xlu1 %684 }
 0x14c   : > { %910 = vrot.lane.b32.xlu0 %v5446_v41, %s4577_s12  ;;  %650 = vrot.lane.b32.xlu1 %v5446_v41, %s4576_s11  ;;  %v5526_v55 = vpop.permute.xlu1 %753 }
 0x14d   : > { %9963 = vst [vmem:[#allocation100_spill] sm:$0xff] %v5526_v55 }
 0x150   : > { %967 = vrot.lane.b32.xlu0 %v5444_v9, %s4578_s13  ;;  %707 = vrot.lane.b32.xlu1 %v5444_v9, %s4573_s8  ;;  %v5537_v36 = vpop.permute.xlu1 %818 }
 0x151   : > { %9964 = vst [vmem:[#allocation101_spill] sm:$0xff] %v5537_v36 }
 0x154   : > { %975 = vrot.lane.b32.xlu0 %v5446_v41, %s4578_s13  ;;  %837 = vrot.lane.b32.xlu1 %v5444_v9, %s4579_s14  ;;  %v5549_v57 = vpop.permute.xlu1 %814 }
 0x158   : > { %1105 = vrot.lane.b32.xlu0 %v5446_v41, %s4580_s17  ;;  %845 = vrot.lane.b32.xlu1 %v5446_v41, %s4579_s14  ;;  %v5557_v46 = vpop.permute.xlu1 %948 }
 0x159   : > { %9966 = vst [vmem:[#allocation103_spill] sm:$0xff] %v5557_v46 }
 0x15c   : > { %587 = vrot.lane.b32.xlu0 %v5476_v11, %s4574_s9  ;;  %902 = vrot.lane.b32.xlu1 %v5444_v9, %s4577_s12  ;;  %v5569_v43 = vpop.permute.xlu1 %1013 }
 0x15d   : > { %9967 = vst [vmem:[#allocation104_spill] sm:$0xff] %v5569_v43  ;;  %v5614_v43 = vpop.permute.xlu0 %1273 }
 0x15e   : > { %9976 = vst [vmem:[#allocation113_spill] sm:$0xff] %v5614_v43 }
 0x160   : > { %595 = vrot.lane.b32.xlu0 %v5482_v45, %s4574_s9  ;;  %1032 = vrot.lane.b32.xlu1 %v5444_v9, %s4581_s18  ;;  %v5577_v38 = vpop.permute.xlu1 %1009 }
 0x161   : > { %9969 = vst [vmem:[#allocation106_spill] sm:$0xff] %v5577_v38  ;;  %v9982_v38 = vmov 11  }
 0x164   : > { %646 = vrot.lane.b32.xlu0 %v5476_v11, %s4576_s11  ;;  %1040 = vrot.lane.b32.xlu1 %v5446_v41, %s4581_s18  ;;  %v5589_v37 = vpop.permute.xlu1 %1143 }
 0x165   : > { %9971 = vst [vmem:[#allocation108_spill] sm:$0xff] %v5589_v37  ;;  %v5606_v37 = vadd.f32 %v503_v47, %v5442_v16 }
 0x168   : > { %654 = vrot.lane.b32.xlu0 %v5482_v45, %s4576_s11  ;;  %1097 = vrot.lane.b32.xlu1 %v5444_v9, %s4580_s17  ;;  %v5597_v35 = vpop.permute.xlu1 %1208 }
 0x169   : > { %9973 = vst [vmem:[#allocation110_spill] sm:$0xff] %v5597_v35 }
 0x16c   : > { %841 = vrot.lane.b32.xlu0 %v5476_v11, %s4579_s14  ;;  %711 = vrot.lane.b32.xlu1 %v5476_v11, %s4573_s8  ;;  %v5612_v35 = vpop.permute.xlu1 %1204 }
 0x16d   : > { %9975 = vst [vmem:[#allocation112_spill] sm:$0xff] %v5612_v35 }
 0x170   : > { %849 = vrot.lane.b32.xlu0 %v5482_v45, %s4579_s14  ;;  %719 = vrot.lane.b32.xlu1 %v5482_v45, %s4573_s8 }
 0x174   : > { %1036 = vrot.lane.b32.xlu0 %v5476_v11, %s4581_s18  ;;  %776 = vrot.lane.b32.xlu1 %v5476_v11, %s4575_s10 }
 0x178   : > { %1044 = vrot.lane.b32.xlu0 %v5482_v45, %s4581_s18  ;;  %784 = vrot.lane.b32.xlu1 %v5482_v45, %s4575_s10 }
 0x17c   : > { %585 = vrot.lane.b32.xlu0 %v5520_v20, %s4574_s9  ;;  %906 = vrot.lane.b32.xlu1 %v5476_v11, %s4577_s12 }
 0x180   : > { %593 = vrot.lane.b32.xlu0 %v5531_v62, %s4574_s9  ;;  %914 = vrot.lane.b32.xlu1 %v5482_v45, %s4577_s12 }
 0x184   : > { %644 = vrot.lane.b32.xlu0 %v5520_v20, %s4576_s11  ;;  %971 = vrot.lane.b32.xlu1 %v5476_v11, %s4578_s13 }
 0x188   : > { %652 = vrot.lane.b32.xlu0 %v5531_v62, %s4576_s11  ;;  %979 = vrot.lane.b32.xlu1 %v5482_v45, %s4578_s13 }
 0x18c   : > { %774 = vrot.lane.b32.xlu0 %v5520_v20, %s4575_s10  ;;  %1101 = vrot.lane.b32.xlu1 %v5476_v11, %s4580_s17 }
 0x190   : > { %782 = vrot.lane.b32.xlu0 %v5531_v62, %s4575_s10  ;;  %1109 = vrot.lane.b32.xlu1 %v5482_v45, %s4580_s17 }
 0x194   : > { %839 = vrot.lane.b32.xlu0 %v5520_v20, %s4579_s14  ;;  %709 = vrot.lane.b32.xlu1 %v5520_v20, %s4573_s8 }
 0x198   : > { %847 = vrot.lane.b32.xlu0 %v5531_v62, %s4579_s14  ;;  %717 = vrot.lane.b32.xlu1 %v5531_v62, %s4573_s8 }
 0x19c   : > { %969 = vrot.lane.b32.xlu0 %v5520_v20, %s4578_s13  ;;  %904 = vrot.lane.b32.xlu1 %v5520_v20, %s4577_s12 }
 0x1a0   : > { %977 = vrot.lane.b32.xlu0 %v5531_v62, %s4578_s13  ;;  %912 = vrot.lane.b32.xlu1 %v5531_v62, %s4577_s12 }
 0x1a4   : > { %1034 = vrot.lane.b32.xlu0 %v5520_v20, %s4581_s18  ;;  %1099 = vrot.lane.b32.xlu1 %v5520_v20, %s4580_s17 }
 0x1a8   : > { %1042 = vrot.lane.b32.xlu0 %v5531_v62, %s4581_s18  ;;  %1107 = vrot.lane.b32.xlu1 %v5531_v62, %s4580_s17 }
 0x1ac   : > { %1164 = vrot.lane.b32.xlu0 %v5520_v20, %s4583_s19  ;;  %589 = vrot.lane.b32.xlu1 %v5606_v37, %s4574_s9 }
 0x1b0   : > { %713 = vrot.lane.b32.xlu0 %v5606_v37, %s4573_s8  ;;  %597 = vrot.lane.b32.xlu1 %v5617_v48, %s4574_s9 }
 0x1b2   : > { %v5623_v47 = vpop.permute.xlu0 %715  ;;  %v5625_v36 = vpop.permute.xlu1 %583 }
 0x1b4   : > { %721 = vrot.lane.b32.xlu0 %v5617_v48, %s4573_s8  ;;  %648 = vrot.lane.b32.xlu1 %v5606_v37, %s4576_s11 }
 0x1b6   : > { %v5631_v43 = vpop.permute.xlu0 %772  ;;  %v5633_v42 = vpop.permute.xlu1 %591 }
 0x1b8   : > { %908 = vrot.lane.b32.xlu0 %v5606_v37, %s4577_s12  ;;  %656 = vrot.lane.b32.xlu1 %v5617_v48, %s4576_s11  ;;  %s4609_s11 = smov 95  }
 0x1ba   : > { %v5639_v16 = vpop.permute.xlu0 %780  ;;  %v5641_v35 = vpop.permute.xlu1 %642 }
 0x1bc   : > { %916 = vrot.lane.b32.xlu0 %v5617_v48, %s4577_s12  ;;  %778 = vrot.lane.b32.xlu1 %v5606_v37, %s4575_s10  ;;  %s4610_s12 = smov 94  }
 0x1be   : > { %v5647_v46 = vpop.permute.xlu0 %910  ;;  %v5649_v55 = vpop.permute.xlu1 %650 }
 0x1bf   : > { %9977 = vst [vmem:[#allocation114_spill] sm:$0xff] %v5647_v46 }
 0x1c0   : > { %1103 = vrot.lane.b32.xlu0 %v5606_v37, %s4580_s17  ;;  %786 = vrot.lane.b32.xlu1 %v5617_v48, %s4575_s10 }
 0x1c2   : > { %v5655_v30 = vpop.permute.xlu0 %967  ;;  %v5657_v10 = vpop.permute.xlu1 %707 }
 0x1c3   : > { %9978 = vst [vmem:[#allocation115_spill] sm:$0xff] %v5655_v30 }
 0x1c4   : > { %1111 = vrot.lane.b32.xlu0 %v5617_v48, %s4580_s17  ;;  %843 = vrot.lane.b32.xlu1 %v5606_v37, %s4579_s14 }
 0x1c6   : > { %v5663_v33 = vpop.permute.xlu0 %975  ;;  %v5665_v5 = vpop.permute.xlu1 %837 }
 0x1c7   : > { %9979 = vst [vmem:[#allocation116_spill] sm:$0xff] %v5663_v33  ;;  %v4586_v33 = vmov 12  }
 0x1c8   : > { %1172 = vrot.lane.b32.xlu0 %v5531_v62, %s4583_s19  ;;  %851 = vrot.lane.b32.xlu1 %v5617_v48, %s4579_s14 }
 0x1ca   : > { %v5671_v32 = vpop.permute.xlu0 %1105  ;;  %v5673_v50 = vpop.permute.xlu1 %845 }
 0x1cb   : > { %9980 = vst [vmem:[#allocation117_spill] sm:$0xff] %v5671_v32 }
 0x1cc   : > { %1269 = vperm.xlu0 %4416, %v5421_v18   ;;  %973 = vrot.lane.b32.xlu1 %v5606_v37, %s4578_s13 }
 0x1ce   : > { %v5678_v49 = vpop.permute.xlu0 %587  ;;  %v5680_v61 = vpop.permute.xlu1 %902 }
 0x1cf   : > { %9981 = vst [vmem:[#allocation118_spill] sm:$0xff] %v5680_v61 }
 0x1d0   : > { %1162 = vrot.lane.b32.xlu0 %v5444_v9, %s4583_s19  ;;  %981 = vrot.lane.b32.xlu1 %v5617_v48, %s4578_s13 }
 0x1d1   : > { %4418 = vset.pattern.permute.xlu0 %v9982_v38 }
 0x1d2   : > { %v5687_v32 = vpop.permute.xlu0 %595  ;;  %v5689_v44 = vpop.permute.xlu1 %1032 }
 0x1d4   : > { %1170 = vrot.lane.b32.xlu0 %v5446_v41, %s4583_s19  ;;  %1038 = vrot.lane.b32.xlu1 %v5606_v37, %s4581_s18 }
 0x1d6   : > { %v5695_v28 = vpop.permute.xlu0 %646  ;;  %v5697_v40 = vpop.permute.xlu1 %1040 }
 0x1d8   : > { %1229 = vrot.lane.b32.xlu0 %v5520_v20, %s4584_s20  ;;  %1046 = vrot.lane.b32.xlu1 %v5617_v48, %s4581_s18 }
 0x1da   : > { %v5703_v38 = vpop.permute.xlu0 %654  ;;  %v5705_v39 = vpop.permute.xlu1 %1097 }
 0x1db   : > { %9983 = vst [vmem:[#allocation119_spill] sm:$0xff] %v5705_v39  ;;  %v4585_v39 = vmov 13  }
 0x1dc   : > { %1237 = vrot.lane.b32.xlu0 %v5531_v62, %s4584_s20  ;;  %1168 = vrot.lane.b32.xlu1 %v5606_v37, %s4583_s19 }
 0x1de   : > { %v5711_v34 = vpop.permute.xlu0 %841  ;;  %v5713_v26 = vpop.permute.xlu1 %711 }
 0x1e0   : > { %1334 = vperm.xlu0 %4418, %v5421_v18   ;;  %1176 = vrot.lane.b32.xlu1 %v5617_v48, %s4583_s19 }
 0x1e2   : > { %v5718_v21 = vpop.permute.xlu0 %849  ;;  %v5720_v24 = vpop.permute.xlu1 %719 }
 0x1e4   : > { %1231 = vrot.lane.b32.xlu0 %v5476_v11, %s4584_s20  ;;  %1338 = vperm.xlu1 %4417, %v5403_v22  }
 0x1e5   : > { %4420 = vset.pattern.permute.xlu0 %v4585_v39 }
 0x1e6   : > { %v5725_v23 = vpop.permute.xlu0 %1036  ;;  %v5727_v30 = vpop.permute.xlu1 %776 }
 0x1e8   : > { %1239 = vrot.lane.b32.xlu0 %v5482_v45, %s4584_s20  ;;  %1166 = vrot.lane.b32.xlu1 %v5476_v11, %s4583_s19 }
 0x1e9   : > { %4419 = vset.pattern.permute.xlu1 %v4586_v33 }
 0x1ea   : > { %v5733_v3 = vpop.permute.xlu0 %1044  ;;  %v5735_v61 = vpop.permute.xlu1 %784 }
 0x1eb   : > { %9984 = vst [vmem:[#allocation120_spill] sm:$0xff] %v5733_v3 }
 0x1ec   : > { %1298 = vrot.lane.b32.xlu0 %v5606_v37, %s4587_s22  ;;  %1174 = vrot.lane.b32.xlu1 %v5482_v45, %s4583_s19 }
 0x1ee   : > { %v5741_v39 = vpop.permute.xlu0 %585  ;;  %v5743_v46 = vpop.permute.xlu1 %906 }
 0x1ef   : > { %9985 = vst [vmem:[#allocation121_spill] sm:$0xff] %v5741_v39  ;;  %9986 = vst [vmem:[#allocation122_spill] sm:$0xff] %v5743_v46 }
 0x1f0   : > { %1306 = vrot.lane.b32.xlu0 %v5617_v48, %s4587_s22  ;;  %1233 = vrot.lane.b32.xlu1 %v5606_v37, %s4584_s20 }
 0x1f2   : > { %v5749_v33 = vpop.permute.xlu0 %593  ;;  %v5751_v3 = vpop.permute.xlu1 %914 }
 0x1f3   : > { %9987 = vst [vmem:[#allocation123_spill] sm:$0xff] %v5749_v33  ;;  %9988 = vst [vmem:[#allocation124_spill] sm:$0xff] %v5751_v3 }
 0x1f4   : > { %1427 = vperm.xlu0 %4420, %v5403_v22   ;;  %1241 = vrot.lane.b32.xlu1 %v5617_v48, %s4584_s20 }
 0x1f6   : > { %v5756_v0 = vpop.permute.xlu0 %644  ;;  %v5758_v39 = vpop.permute.xlu1 %971 }
 0x1f7   : > { %9989 = vst [vmem:[#allocation125_spill] sm:$0xff] %v5756_v0  ;;  %9990 = vst [vmem:[#allocation126_spill] sm:$0xff] %v5758_v39  ;;  %v4589_v0 = vmov 14  }
 0x1f8   : > { %1300 = vrot.lane.b32.xlu0 %v5446_v41, %s4587_s22  ;;  %1362 = vperm.xlu1 %4419, %v5403_v22  }
 0x1fa   : > { %v5763_v46 = vpop.permute.xlu0 %652  ;;  %v5765_v13 = vpop.permute.xlu1 %979 }
 0x1fb   : > { %9991 = vst [vmem:[#allocation127_spill] sm:$0xff] %v5763_v46  ;;  %9992 = vst [vmem:[#allocation128_spill] sm:$0xff] %v5765_v13 }
 0x1fc   : > { %1423 = vperm.xlu0 %4420, %v5421_v18   ;;  %1227 = vrot.lane.b32.xlu1 %v5444_v9, %s4584_s20 }
 0x1fe   : > { %v5770_v33 = vpop.permute.xlu0 %774  ;;  %v5772_v3 = vpop.permute.xlu1 %1101 }
 0x1ff   : > { %9993 = vst [vmem:[#allocation129_spill] sm:$0xff] %v5770_v33  ;;  %9994 = vst [vmem:[#allocation130_spill] sm:$0xff] %v5772_v3 }
 0x200   : > { %1383 = vrot.lane.b32.xlu0 %v5520_v20, %s4588_s23  ;;  %1235 = vrot.lane.b32.xlu1 %v5446_v41, %s4584_s20 }
 0x201   : > { %4422 = vset.pattern.permute.xlu0 %v4589_v0 }
 0x202   : > { %v5778_v46 = vpop.permute.xlu0 %782  ;;  %v5780_v13 = vpop.permute.xlu1 %1109 }
 0x203   : > { %9995 = vst [vmem:[#allocation131_spill] sm:$0xff] %v5778_v46  ;;  %9996 = vst [vmem:[#allocation132_spill] sm:$0xff] %v5780_v13  ;;  %v4590_v13 = vmov 16  }
 0x204   : > { %1391 = vrot.lane.b32.xlu0 %v5531_v62, %s4588_s23  ;;  %1294 = vrot.lane.b32.xlu1 %v5520_v20, %s4587_s22 }
 0x206   : > { %v5786_v33 = vpop.permute.xlu0 %839  ;;  %v5788_v3 = vpop.permute.xlu1 %709 }
 0x207   : > { %9997 = vst [vmem:[#allocation133_spill] sm:$0xff] %v5786_v33  ;;  %9998 = vst [vmem:[#allocation134_spill] sm:$0xff] %v5788_v3 }
 0x208   : > { %1488 = vperm.xlu0 %4422, %v5421_v18   ;;  %1302 = vrot.lane.b32.xlu1 %v5531_v62, %s4587_s22 }
 0x20a   : > { %v5793_v39 = vpop.permute.xlu0 %847  ;;  %v5795_v46 = vpop.permute.xlu1 %717 }
 0x20b   : > { %9999 = vst [vmem:[#allocation135_spill] sm:$0xff] %v5793_v39  ;;  %10000 = vst [vmem:[#allocation136_spill] sm:$0xff] %v5795_v46  ;;  %v4594_v46 = vmov 17  }
 0x20c   : > { %1385 = vrot.lane.b32.xlu0 %v5476_v11, %s4588_s23  ;;  %1358 = vperm.xlu1 %4419, %v5421_v18  }
 0x20d   : > { %4424 = vset.pattern.permute.xlu0 %v4590_v13 }
 0x20e   : > { %v5800_v6 = vpop.permute.xlu0 %969  ;;  %v5802_v33 = vpop.permute.xlu1 %904 }
 0x20f   : > { %10001 = vst [vmem:[#allocation137_spill] sm:$0xff] %v5800_v6  ;;  %10002 = vst [vmem:[#allocation138_spill] sm:$0xff] %v5802_v33 }
 0x210   : > { %1393 = vrot.lane.b32.xlu0 %v5482_v45, %s4588_s23  ;;  %1292 = vrot.lane.b32.xlu1 %v5444_v9, %s4587_s22 }
 0x211   : > { %4421 = vset.pattern.permute.xlu1 %v4589_v0 }
 0x212   : > { %v5808_v39 = vpop.permute.xlu0 %977  ;;  %v5810_v3 = vpop.permute.xlu1 %912 }
 0x213   : > { %10003 = vst [vmem:[#allocation139_spill] sm:$0xff] %v5808_v39  ;;  %10004 = vst [vmem:[#allocation140_spill] sm:$0xff] %v5810_v3 }
 0x214   : > { %1452 = vrot.lane.b32.xlu0 %v5606_v37, %s4591_s24  ;;  %1296 = vrot.lane.b32.xlu1 %v5476_v11, %s4587_s22 }
 0x216   : > { %v5816_v13 = vpop.permute.xlu0 %1034  ;;  %v5818_v6 = vpop.permute.xlu1 %1099 }
 0x217   : > { %10005 = vst [vmem:[#allocation141_spill] sm:$0xff] %v5816_v13  ;;  %10006 = vst [vmem:[#allocation142_spill] sm:$0xff] %v5818_v6  ;;  %v4592_v13 = vmov 15  }
 0x218   : > { %1460 = vrot.lane.b32.xlu0 %v5617_v48, %s4591_s24  ;;  %1304 = vrot.lane.b32.xlu1 %v5482_v45, %s4587_s22 }
 0x21a   : > { %v5824_v0 = vpop.permute.xlu0 %1042  ;;  %v5826_v39 = vpop.permute.xlu1 %1107 }
 0x21b   : > { %10007 = vst [vmem:[#allocation143_spill] sm:$0xff] %v5824_v0  ;;  %10008 = vst [vmem:[#allocation144_spill] sm:$0xff] %v5826_v39 }
 0x21c   : > { %1622 = vperm.xlu0 %4424, %v5403_v22   ;;  %1492 = vperm.xlu1 %4421, %v5403_v22  }
 0x21e   : > { %v5830_v33 = vpop.permute.xlu0 %1164  ;;  %v5832_v3 = vpop.permute.xlu1 %589 }
 0x21f   : > { %10009 = vst [vmem:[#allocation145_spill] sm:$0xff] %v5830_v33  ;;  %10010 = vst [vmem:[#allocation146_spill] sm:$0xff] %v5832_v3 }
 0x220   : > { %1454 = vrot.lane.b32.xlu0 %v5446_v41, %s4591_s24  ;;  %1387 = vrot.lane.b32.xlu1 %v5606_v37, %s4588_s23 }
 0x221   : > { %4423 = vset.pattern.permute.xlu1 %v4592_v13 }
 0x222   : > { %v5838_v6 = vpop.permute.xlu0 %713  ;;  %v5840_v0 = vpop.permute.xlu1 %597 }
 0x223   : > { %10011 = vst [vmem:[#allocation147_spill] sm:$0xff] %v5838_v6  ;;  %10012 = vst [vmem:[#allocation148_spill] sm:$0xff] %v5840_v0 }
 0x224   : > { %1513 = vrot.lane.b32.xlu0 %v5520_v20, %s4593_s25  ;;  %1395 = vrot.lane.b32.xlu1 %v5617_v48, %s4588_s23 }
 0x226   : > { %v5846_v33 = vpop.permute.xlu0 %721  ;;  %v5848_v39 = vpop.permute.xlu1 %648 }
 0x227   : > { %10013 = vst [vmem:[#allocation149_spill] sm:$0xff] %v5846_v33  ;;  %10014 = vst [vmem:[#allocation150_spill] sm:$0xff] %v5848_v39 }
 0x228   : > { %1521 = vrot.lane.b32.xlu0 %v5531_v62, %s4593_s25  ;;  %1557 = vperm.xlu1 %4423, %v5403_v22  }
 0x22a   : > { %v5853_v13 = vpop.permute.xlu1 %656  ;;  %v5855_v6 = vpop.permute.xlu0 %908 }
 0x22b   : > { %10015 = vst [vmem:[#allocation151_spill] sm:$0xff] %v5853_v13  ;;  %10016 = vst [vmem:[#allocation152_spill] sm:$0xff] %v5855_v6 }
 0x22c   : > { %1618 = vperm.xlu0 %4424, %v5421_v18   ;;  %1381 = vrot.lane.b32.xlu1 %v5444_v9, %s4588_s23 }
 0x22e   : > { %v5860_v0 = vpop.permute.xlu1 %778  ;;  %v5866_v33 = vpop.permute.xlu0 %916 }
 0x22f   : > { %10017 = vst [vmem:[#allocation153_spill] sm:$0xff] %v5860_v0  ;;  %10018 = vst [vmem:[#allocation154_spill] sm:$0xff] %v5866_v33 }
 0x230   : > { %1511 = vrot.lane.b32.xlu0 %v5444_v9, %s4593_s25  ;;  %1389 = vrot.lane.b32.xlu1 %v5446_v41, %s4588_s23 }
 0x231   : > { %4426 = vset.pattern.permute.xlu0 %v4594_v46 }
 0x232   : > { %v5868_v13 = vpop.permute.xlu1 %786  ;;  %v5876_v0 = vpop.permute.xlu0 %1103 }
 0x233   : > { %10019 = vst [vmem:[#allocation155_spill] sm:$0xff] %v5868_v13  ;;  %10021 = vst [vmem:[#allocation157_spill] sm:$0xff] %v5876_v0 }
 0x234   : > { %1519 = vrot.lane.b32.xlu0 %v5446_v41, %s4593_s25  ;;  %1448 = vrot.lane.b32.xlu1 %v5520_v20, %s4591_s24 }
 0x236   : > { %v5874_v6 = vpop.permute.xlu1 %843  ;;  %v5887_v13 = vpop.permute.xlu0 %1111 }
 0x237   : > { %10020 = vst [vmem:[#allocation156_spill] sm:$0xff] %v5874_v6  ;;  %10023 = vst [vmem:[#allocation159_spill] sm:$0xff] %v5887_v13 }
 0x238   : > { %1578 = vrot.lane.b32.xlu0 %v5520_v20, %s4595_s26  ;;  %1456 = vrot.lane.b32.xlu1 %v5531_v62, %s4591_s24 }
 0x23a   : > { %v5882_v33 = vpop.permute.xlu1 %851  ;;  %v5894_v0 = vpop.permute.xlu0 %1172 }
 0x23b   : > { %10022 = vst [vmem:[#allocation158_spill] sm:$0xff] %v5882_v33  ;;  %10025 = vst [vmem:[#allocation161_spill] sm:$0xff] %v5894_v0  ;;  %v4596_v33 = vmov 19  }
 0x23c   : > { %1586 = vrot.lane.b32.xlu0 %v5531_v62, %s4595_s26  ;;  %1553 = vperm.xlu1 %4423, %v5421_v18  }
 0x23e   : > { %v5889_v39 = vpop.permute.xlu1 %973 }
 0x23f   : > { %10024 = vst [vmem:[#allocation160_spill] sm:$0xff] %v5889_v39 }
 0x240   : > { %1683 = vperm.xlu0 %4426, %v5421_v18   ;;  %1446 = vrot.lane.b32.xlu1 %v5444_v9, %s4591_s24 }
 0x241   : > { %4425 = vset.pattern.permute.xlu1 %v4594_v46 }
 0x242   : > { %v5896_v6 = vpop.permute.xlu1 %981 }
 0x243   : > { %10026 = vst [vmem:[#allocation162_spill] sm:$0xff] %v5896_v6 }
 0x244   : > { %1580 = vrot.lane.b32.xlu0 %v5476_v11, %s4595_s26  ;;  %1450 = vrot.lane.b32.xlu1 %v5476_v11, %s4591_s24 }
 0x245   : > { %4428 = vset.pattern.permute.xlu0 %v4596_v33 }
 0x246   : > { %v5908_v46 = vpop.permute.xlu1 %1038 }
 0x247   : > { %v5902_v13 = vpop.permute.xlu0 %1269  ;;  %10028 = vst [vmem:[#allocation164_spill] sm:$0xff] %v5908_v46 }
 0x248   : > { %10027 = vst [vmem:[#allocation163_spill] sm:$0xff] %v5902_v13  ;;  %1588 = vrot.lane.b32.xlu0 %v5482_v45, %s4595_s26  ;;  %1458 = vrot.lane.b32.xlu1 %v5482_v45, %s4591_s24 }
 0x24a   : > { %v5916_v33 = vpop.permute.xlu1 %1046 }
 0x24b   : > { %v5910_v0 = vpop.permute.xlu0 %1162  ;;  %10030 = vst [vmem:[#allocation166_spill] sm:$0xff] %v5916_v33 }
 0x24c   : > { %10029 = vst [vmem:[#allocation165_spill] sm:$0xff] %v5910_v0  ;;  %1647 = vrot.lane.b32.xlu0 %v5606_v37, %s4597_s27  ;;  %1517 = vrot.lane.b32.xlu1 %v5606_v37, %s4593_s25 }
 0x24e   : > { %v5928_v0 = vpop.permute.xlu1 %1168 }
 0x24f   : > { %v5918_v13 = vpop.permute.xlu0 %1170  ;;  %10033 = vst [vmem:[#allocation169_spill] sm:$0xff] %v5928_v0 }
 0x250   : > { %10031 = vst [vmem:[#allocation167_spill] sm:$0xff] %v5918_v13  ;;  %1655 = vrot.lane.b32.xlu0 %v5617_v48, %s4597_s27  ;;  %1525 = vrot.lane.b32.xlu1 %v5617_v48, %s4593_s25  ;;  %v4598_v13 = vmov 18  }
 0x252   : > { %v5936_v33 = vpop.permute.xlu1 %1176 }
 0x253   : > { %v5924_v6 = vpop.permute.xlu0 %1229  ;;  %10035 = vst [vmem:[#allocation171_spill] sm:$0xff] %v5936_v33 }
 0x254   : > { %10032 = vst [vmem:[#allocation168_spill] sm:$0xff] %v5924_v6  ;;  %1817 = vperm.xlu0 %4428, %v5403_v22   ;;  %1687 = vperm.xlu1 %4425, %v5403_v22  }
 0x257   : > { %v5930_v46 = vpop.permute.xlu0 %1237 }
 0x258   : > { %10034 = vst [vmem:[#allocation170_spill] sm:$0xff] %v5930_v46  ;;  %1649 = vrot.lane.b32.xlu0 %v5446_v41, %s4597_s27  ;;  %1515 = vrot.lane.b32.xlu1 %v5476_v11, %s4593_s25 }
 0x259   : > { %4427 = vset.pattern.permute.xlu1 %v4598_v13 }
 0x25b   : > { %v5938_v39 = vpop.permute.xlu0 %1334 }
 0x25c   : > { %10036 = vst [vmem:[#allocation172_spill] sm:$0xff] %v5938_v39  ;;  %1708 = vrot.lane.b32.xlu0 %v5520_v20, %s4599_s28  ;;  %1523 = vrot.lane.b32.xlu1 %v5482_v45, %s4593_s25 }
 0x25f   : > { %v5944_v46 = vpop.permute.xlu0 %1231  ;;  %v5946_v6 = vpop.permute.xlu1 %1338 }
 0x260   : > { %10037 = vst [vmem:[#allocation173_spill] sm:$0xff] %v5944_v46  ;;  %10038 = vst [vmem:[#allocation174_spill] sm:$0xff] %v5946_v6  ;;  %1716 = vrot.lane.b32.xlu0 %v5531_v62, %s4599_s28  ;;  %1582 = vrot.lane.b32.xlu1 %v5606_v37, %s4595_s26  ;;  %v4600_v6 = vmov 20  }
 0x263   : > { %v5952_v13 = vpop.permute.xlu0 %1239  ;;  %v5954_v39 = vpop.permute.xlu1 %1166 }
 0x264   : > { %10039 = vst [vmem:[#allocation175_spill] sm:$0xff] %v5952_v13  ;;  %10040 = vst [vmem:[#allocation176_spill] sm:$0xff] %v5954_v39  ;;  %1813 = vperm.xlu0 %4428, %v5421_v18   ;;  %1590 = vrot.lane.b32.xlu1 %v5617_v48, %s4595_s26 }
 0x267   : > { %v5959_v33 = vpop.permute.xlu0 %1298  ;;  %v5961_v46 = vpop.permute.xlu1 %1174 }
 0x268   : > { %10041 = vst [vmem:[#allocation177_spill] sm:$0xff] %v5959_v33  ;;  %10042 = vst [vmem:[#allocation178_spill] sm:$0xff] %v5961_v46  ;;  %1706 = vrot.lane.b32.xlu0 %v5444_v9, %s4599_s28  ;;  %1752 = vperm.xlu1 %4427, %v5403_v22  }
 0x269   : > { %4430 = vset.pattern.permute.xlu0 %v4600_v6 }
 0x26b   : > { %v5966_v0 = vpop.permute.xlu0 %1306  ;;  %v5968_v13 = vpop.permute.xlu1 %1233 }
 0x26c   : > { %10043 = vst [vmem:[#allocation179_spill] sm:$0xff] %v5966_v0  ;;  %10044 = vst [vmem:[#allocation180_spill] sm:$0xff] %v5968_v13  ;;  %1714 = vrot.lane.b32.xlu0 %v5446_v41, %s4599_s28  ;;  %1576 = vrot.lane.b32.xlu1 %v5444_v9, %s4595_s26 }
 0x26f   : > { %v5974_v33 = vpop.permute.xlu0 %1427  ;;  %v5976_v46 = vpop.permute.xlu1 %1241 }
 0x270   : > { %10045 = vst [vmem:[#allocation181_spill] sm:$0xff] %v5974_v33  ;;  %10046 = vst [vmem:[#allocation182_spill] sm:$0xff] %v5976_v46  ;;  %1773 = vrot.lane.b32.xlu0 %v5520_v20, %s4601_s29  ;;  %1584 = vrot.lane.b32.xlu1 %v5446_v41, %s4595_s26 }
 0x273   : > { %v5982_v0 = vpop.permute.xlu0 %1300  ;;  %v5984_v13 = vpop.permute.xlu1 %1362 }
 0x274   : > { %10047 = vst [vmem:[#allocation183_spill] sm:$0xff] %v5982_v0  ;;  %10048 = vst [vmem:[#allocation184_spill] sm:$0xff] %v5984_v13  ;;  %1781 = vrot.lane.b32.xlu0 %v5531_v62, %s4601_s29  ;;  %1643 = vrot.lane.b32.xlu1 %v5520_v20, %s4597_s27  ;;  %v4602_v13 = vmov 22  }
 0x277   : > { %v5990_v33 = vpop.permute.xlu0 %1423  ;;  %v5992_v46 = vpop.permute.xlu1 %1227 }
 0x278   : > { %10049 = vst [vmem:[#allocation185_spill] sm:$0xff] %v5990_v33  ;;  %10050 = vst [vmem:[#allocation186_spill] sm:$0xff] %v5992_v46  ;;  %1878 = vperm.xlu0 %4430, %v5421_v18   ;;  %1651 = vrot.lane.b32.xlu1 %v5531_v62, %s4597_s27 }
 0x27b   : > { %v5997_v39 = vpop.permute.xlu0 %1383  ;;  %v5999_v0 = vpop.permute.xlu1 %1235 }
 0x27c   : > { %10051 = vst [vmem:[#allocation187_spill] sm:$0xff] %v5997_v39  ;;  %10052 = vst [vmem:[#allocation188_spill] sm:$0xff] %v5999_v0  ;;  %1775 = vrot.lane.b32.xlu0 %v5476_v11, %s4601_s29  ;;  %1748 = vperm.xlu1 %4427, %v5421_v18  }
 0x27d   : > { %4432 = vset.pattern.permute.xlu0 %v4602_v13 }
 0x27f   : > { %v6004_v3 = vpop.permute.xlu0 %1391  ;;  %v6006_v33 = vpop.permute.xlu1 %1294 }
 0x280   : > { %10053 = vst [vmem:[#allocation189_spill] sm:$0xff] %v6004_v3  ;;  %10054 = vst [vmem:[#allocation190_spill] sm:$0xff] %v6006_v33  ;;  %1783 = vrot.lane.b32.xlu0 %v5482_v45, %s4601_s29  ;;  %1641 = vrot.lane.b32.xlu1 %v5444_v9, %s4597_s27  ;;  %v602_v33 = vsel %vm9498_vm5, %v5678_v49, %v5633_v42 }
 0x281   : > { %4429 = vset.pattern.permute.xlu1 %v4600_v6 }
 0x283   : > { %v6012_v39 = vpop.permute.xlu0 %1488  ;;  %v6014_v0 = vpop.permute.xlu1 %1302 }
 0x284   : > { %10055 = vst [vmem:[#allocation191_spill] sm:$0xff] %v6012_v39  ;;  %10056 = vst [vmem:[#allocation192_spill] sm:$0xff] %v6014_v0  ;;  %1842 = vrot.lane.b32.xlu0 %v5606_v37, %s4603_s30  ;;  %1645 = vrot.lane.b32.xlu1 %v5476_v11, %s4597_s27  ;;  %v604_v0 = vsel %vm9498_vm5, %v5625_v36, %v5678_v49  ;;  %v600_v49 = vsel %vm9498_vm5, %v5633_v42, %v5687_v32 }
 0x287   : > { %v6020_v13 = vpop.permute.xlu0 %1385  ;;  %v6022_v3 = vpop.permute.xlu1 %1358 }
 0x288   : > { %10057 = vst [vmem:[#allocation193_spill] sm:$0xff] %v6020_v13  ;;  %10058 = vst [vmem:[#allocation194_spill] sm:$0xff] %v6022_v3  ;;  %1850 = vrot.lane.b32.xlu0 %v5617_v48, %s4603_s30  ;;  %1653 = vrot.lane.b32.xlu1 %v5482_v45, %s4597_s27 }
 0x28b   : > { %v6028_v6 = vpop.permute.xlu0 %1393  ;;  %v6030_v39 = vpop.permute.xlu1 %1292 }
 0x28c   : > { %10059 = vst [vmem:[#allocation195_spill] sm:$0xff] %v6028_v6  ;;  %10060 = vst [vmem:[#allocation196_spill] sm:$0xff] %v6030_v39  ;;  %2012 = vperm.xlu0 %4432, %v5403_v22   ;;  %1712 = vrot.lane.b32.xlu1 %v5606_v37, %s4599_s28  ;;  %v663_v6 = vsel %vm9500_vm2, %v5641_v35, %v5695_v28 }
 0x28f   : > { %v6036_v13 = vpop.permute.xlu0 %1452  ;;  %v6038_v3 = vpop.permute.xlu1 %1296 }
 0x290   : > { %10061 = vst [vmem:[#allocation197_spill] sm:$0xff] %v6036_v13  ;;  %10062 = vst [vmem:[#allocation198_spill] sm:$0xff] %v6038_v3  ;;  %1844 = vrot.lane.b32.xlu0 %v5446_v41, %s4603_s30  ;;  %1720 = vrot.lane.b32.xlu1 %v5617_v48, %s4599_s28  ;;  %v661_v13 = vsel %vm9500_vm2, %v5695_v28, %v5649_v55  ;;  %v606_v28 = vsel %vm9498_vm5, %v5687_v32, %v5625_v36  ;;  %v617_v36 = vsel %vm10067_vm11, %v604_v0, 0.0 }
 0x291   : > { %v677_v46 = vsel %vm10066_vm14, %v661_v13, 0.0  ;;  %v618_v32 = vsel %vm10070_vm10, %v602_v33, 0.0  ;;  %vm10071_vm5 = vnez %v9652_v52  ;;  %v728_v33 = vsel %vm10075_vm3, %v5657_v10, %v5713_v26 }
 0x292   : > { %v616_v42 = vsel %vm10071_vm5, %v606_v28, 0.0  ;;  %v636_v28 = vmul.f32 %v5528_v59, %v618_v32  ;;  %v858_v32 = vsel %vm9519_vm7, %v5665_v5, %v5711_v34 }
 0x293   : > { %v6053_v39 = vpop.permute.xlu0 %1460  ;;  %v6055_v3 = vpop.permute.xlu1 %1304 }
 0x294   : > { %10063 = vst [vmem:[#allocation199_spill] sm:$0xff] %v6053_v39  ;;  %10064 = vst [vmem:[#allocation200_spill] sm:$0xff] %v6055_v3  ;;  %1903 = vrot.lane.b32.xlu0 %v5520_v20, %s4604_s5  ;;  %v676_v39 = vsel %vm10065_vm6, %v663_v6, 0.0  ;;  %v665_v3 = vsel %vm9500_vm2, %v5703_v38, %v5641_v35  ;;  %1882 = vperm.xlu1 %4429, %v5403_v22   ;;  %v659_v6 = vsel %vm9500_vm2, %v5649_v55, %v5703_v38 }
 0x295   : > { %v692_v13 = vmul.f32 %v5513_v12, %v676_v39  ;;  %v675_v0 = vsel %vm10072_vm8, %v665_v3, 0.0  ;;  %vm10073_vm2 = vnez %v9675_v58  ;;  %v693_v38 = vmul.f32 %v5513_v12, %v677_v46 }
 0x296   : > { %v619_v55 = vsel %vm10073_vm2, %v600_v49, 0.0  ;;  %v635_v39 = vmul.f32 %v5528_v59, %v617_v36  ;;  %v678_v3 = vsel %vm10074_vm12, %v659_v6, 0.0  ;;  %v4605_v46 = vmov 21  }
 0x297   : > { %v6091_v35 = vpop.permute.xlu0 %1622  ;;  %v6093_v22 = vpop.permute.xlu1 %1492  ;;  %v634_v49 = vmul.f32 %v5528_v59, %v616_v42  ;;  %v726_v36 = vsel %vm10076_vm13, %v5713_v26, %v5623_v47  ;;  %v637_v58 = vmul.f32 %v5528_v59, %v619_v55  ;;  %v730_v42 = vsel %vm10075_vm3, %v5720_v24, %v5657_v10 }
 0x298   : > { %10068 = vst [vmem:[#allocation201_spill] sm:$0xff] %v6091_v35  ;;  %10069 = vst [vmem:[#allocation202_spill] sm:$0xff] %v6093_v22  ;;  %1911 = vrot.lane.b32.xlu0 %v5531_v62, %s4604_s5  ;;  %1710 = vrot.lane.b32.xlu1 %v5476_v11, %s4599_s28  ;;  %v691_v35 = vmul.f32 %v5513_v12, %v675_v0  ;;  %v700_v4 = vadd.f32 %v692_v13, %v635_v39  ;;  %vm10079_vm13 = vnez %v9612_v27 }
 0x299   : > { %4431 = vset.pattern.permute.xlu1 %v4605_v46  ;;  %v701_v26 = vadd.f32 %v693_v38, %v636_v28  ;;  %v694_v0 = vmul.f32 %v5513_v12, %v678_v3  ;;  %v741_v59 = vsel %vm10079_vm13, %v728_v33, 0.0  ;;  %v724_v13 = vsel %vm10080_vm0, %v5623_v47, %v5720_v24 }
 0x29a   : > { %v856_v10 = vsel %vm9519_vm7, %v5711_v34, %v5673_v50  ;;  %vm10081_vm3 = vnez %v9615_v29  ;;  %v793_v12 = vsel %vm10082_vm15, %v5631_v43, %v5727_v30  ;;  %v699_v55 = vadd.f32 %v691_v35, %v634_v49  ;;  %v10208_v29 = vld [vmem:[#allocation140_spill] sm:$0xff] }
 0x29b   : > { %v6126_v6 = vpop.permute.xlu0 %1454  ;;  %v6128_v22 = vpop.permute.xlu1 %1387  ;;  %vm10083_vm0 = vnez %v9735_v15  ;;  %v860_v47 = vsel %vm9519_vm7, %v5718_v21, %v5665_v5  ;;  %v740_v34 = vsel %vm10084_vm1, %v730_v42, 0.0  ;;  %v757_v3 = vmul.f32 %v5539_v51, %v741_v59 }
 0x29c   : > { %10077 = vst [vmem:[#allocation203_spill] sm:$0xff] %v6126_v6  ;;  %10078 = vst [vmem:[#allocation204_spill] sm:$0xff] %v6128_v22  ;;  %2008 = vperm.xlu0 %4432, %v5421_v18   ;;  %1718 = vrot.lane.b32.xlu1 %v5482_v45, %s4599_s28  ;;  %v742_v18 = vsel %vm10081_vm3, %v726_v36, 0.0  ;;  %v871_v24 = vsel %vm10083_vm0, %v858_v32, 0.0  ;;  %v854_v35 = vsel %vm9519_vm7, %v5673_v50, %v5718_v21  ;;  %vm10087_vm15 = vnez %v9619_v31 }
 0x29d   : > { %v743_v33 = vsel %vm10087_vm15, %v724_v13, 0.0  ;;  %v791_v5 = vsel %vm10088_vm9, %v5727_v30, %v5639_v16  ;;  %v702_v46 = vadd.f32 %v694_v0, %v637_v58  ;;  %v872_v28 = vsel %vm10089_vm4, %v856_v10, 0.0 }
 0x29e   : > { %v758_v49 = vmul.f32 %v5539_v51, %v742_v18  ;;  %vm10090_vm0 = vnez %v9719_v7  ;;  %v9520_v50 = vmov 23   ;;  %v6195_v30 = vmul.f32 %v5559_v53, %v871_v24 }
 0x29f   : > { %v6169_v38 = vpop.permute.xlu0 %1513  ;;  %v6171_v39 = vpop.permute.xlu1 %1395  ;;  %v806_v21 = vsel %vm10090_vm0, %v793_v12, 0.0  ;;  %vm10091_vm9 = vnez %v9731_v14  ;;  %v756_v36 = vmul.f32 %v5539_v51, %v740_v34  ;;  %vm10092_vm7 = vcmp.lt.s32.totalorder %v4710_v1, 31 }
 0x2a0   : > { %10085 = vst [vmem:[#allocation205_spill] sm:$0xff] %v6169_v38  ;;  %10086 = vst [vmem:[#allocation206_spill] sm:$0xff] %v6171_v39  ;;  %1901 = vrot.lane.b32.xlu0 %v5444_v9, %s4604_s5  ;;  %1777 = vrot.lane.b32.xlu1 %v5606_v37, %s4601_s29  ;;  %v870_v58 = vsel %vm10091_vm9, %v860_v47, 0.0  ;;  %v795_v32 = vsel %vm10092_vm7, %v5735_v61, %v5631_v43  ;;  %vm10093_vm4 = vnez %v9743_v19  ;;  %vm10094_vm0 = vnez %v9723_v8  ;;  %v10100_v47 = vld [vmem:[#allocation34_spill] sm:$0xff]  ;;  %v10127_v38 = vld [vmem:[#allocation128_spill] sm:$0xff] }
 0x2a1   : > { %4434 = vset.pattern.permute.xlu0 %v9520_v50  ;;  %v873_v42 = vsel %vm10093_vm4, %v854_v35, 0.0  ;;  %v759_v0 = vmul.f32 %v5539_v51, %v743_v33  ;;  %v807_v59 = vsel %vm10094_vm0, %v791_v5, 0.0  ;;  %vm10095_vm15 = vmmov %vm10092_vm7  ;;  %v888_v12 = vmul.f32 %v5559_v53, %v872_v28  ;;  %v10109_v50 = vld [vmem:[#allocation118_spill] sm:$0xff]  ;;  %v10138_v19 = vld [vmem:[#allocation48_spill] sm:$0xff] }
 0x2a2   : > { %v789_v13 = vsel %vm10095_vm15, %v5639_v16, %v5735_v61  ;;  %v765_v43 = vadd.f32 %v757_v3, %v700_v4  ;;  %vm10098_vm7 = vcmp.lt.s32.totalorder %v4710_v1, 16  ;;  %v822_v24 = vmul.f32 %v5549_v57, %v806_v21  ;;  %v10106_v21 = vld [vmem:[#allocation114_spill] sm:$0xff] }
 0x2a3   : > { %v6213_v10 = vpop.permute.xlu0 %1521  ;;  %v6215_v18 = vpop.permute.xlu1 %1557  ;;  %v6222_v51 = vsel %vm10098_vm7, %v5689_v44, %v5725_v23  ;;  %v766_v61 = vadd.f32 %v758_v49, %v701_v26  ;;  %v886_v16 = vmul.f32 %v5559_v53, %v870_v58  ;;  %vm10099_vm15 = vmmov %vm10098_vm7  ;;  %vm10101_vm9 = vnez %v10100_v47  ;;  %v10102_v26 = vld [vmem:[#allocation37_spill] sm:$0xff]  ;;  %v10107_v58 = vld [vmem:[#allocation122_spill] sm:$0xff] }
 0x2a4   : > { %10096 = vst [vmem:[#allocation207_spill] sm:$0xff] %v6213_v10  ;;  %10097 = vst [vmem:[#allocation208_spill] sm:$0xff] %v6215_v18  ;;  %1909 = vrot.lane.b32.xlu0 %v5446_v41, %s4604_s5  ;;  %v6233_v4 = vsel %vm10099_vm15, %v5725_v23, %v5697_v40  ;;  %v805_v34 = vsel %vm10101_vm9, %v795_v32, 0.0  ;;  %1785 = vrot.lane.b32.xlu1 %v5617_v48, %s4601_s29  ;;  %v889_v3 = vmul.f32 %v5559_v53, %v873_v42  ;;  %v10104_v49 = vld [vmem:[#allocation29_spill] sm:$0xff]  ;;  %v10117_v42 = vld [vmem:[#allocation116_spill] sm:$0xff] }
 0x2a5   : > { %v764_v35 = vadd.f32 %v756_v36, %v699_v55  ;;  %v823_v33 = vmul.f32 %v5549_v57, %v807_v59  ;;  %vm10103_vm7 = vnez %v10102_v26  ;;  %v767_v28 = vadd.f32 %v759_v0, %v702_v46  ;;  %v10113_v46 = vld [vmem:[#allocation31_spill] sm:$0xff]  ;;  %v6284_v18 = vld [vmem:[%s9092_s2 + $0x18] sm:$0xff] }
 0x2a6   : > { %v808_v5 = vsel %vm10103_vm7, %v789_v13, 0.0  ;;  %vm10105_vm4 = vnez %v10104_v49  ;;  %vm10108_vm15 = vcmp.lt.s32.totalorder %v4710_v1, 18  ;;  %vm10114_vm7 = vnez %v10113_v46  ;;  %v10115_v13 = vld [vmem:[#allocation124_spill] sm:$0xff]  ;;  %10122 = vst [vmem:[#allocation118_spill] sm:$0xff] %v6284_v18  ;;  %v10142_v26 = vld [vmem:[#allocation105_spill] sm:$0xff]  ;;  %v10286_v49 = vld [vmem:[#allocation46_spill] sm:$0xff] }
 0x2a7   : > { %v921_v32 = vsel %vm10108_vm15, %v10107_v58, %v10106_v21  ;;  %vm10110_vm9 = vmmov %vm10108_vm15  ;;  %v6254_v55 = vpop.permute.xlu0 %1618  ;;  %v6256_v36 = vpop.permute.xlu1 %1381  ;;  %v830_v0 = vadd.f32 %v822_v24, %v765_v43  ;;  %v821_v59 = vmul.f32 %v5549_v57, %v805_v34  ;;  %v10118_v43 = vld [vmem:[#allocation126_spill] sm:$0xff]  ;;  %vm10119_vm0 = vcmp.lt.s32.totalorder %v4710_v1, 17  ;;  %v10120_v34 = vld [vmem:[#allocation115_spill] sm:$0xff] }
 0x2a8   : > { %v923_v53 = vsel %vm10110_vm9, %v10109_v50, %v10107_v58  ;;  %10111 = vst [vmem:[#allocation114_spill] sm:$0xff] %v6254_v55  ;;  %10112 = vst [vmem:[#allocation122_spill] sm:$0xff] %v6256_v36  ;;  %1968 = vrot.lane.b32.xlu0 %v5520_v20, %s4607_s6  ;;  %v824_v58 = vmul.f32 %v5549_v57, %v808_v5  ;;  %v919_v55 = vsel %vm10110_vm9, %v10106_v21, %v10115_v13  ;;  %v10123_v5 = vld [vmem:[#allocation43_spill] sm:$0xff] }
 0x2a9   : > { %vm10116_vm15 = vmmov %vm10110_vm9  ;;  %v986_v24 = vsel %vm10119_vm0, %v10118_v43, %v10117_v42  ;;  %1947 = vperm.xlu1 %4431, %v6284_v18   ;;  %v831_v57 = vadd.f32 %v823_v33, %v766_v61  ;;  %vm10124_vm9 = vnez %v10123_v5  ;;  %v990_v6 = vsel %vm10119_vm0, %v10127_v38, %v10120_v34  ;;  %v10131_v33 = vld [vmem:[#allocation42_spill] sm:$0xff]  ;;  %v10136_v18 = vld [vmem:[#allocation45_spill] sm:$0xff] }
 0x2aa   : > { %v925_v23 = vsel %vm10116_vm15, %v10115_v13, %v10109_v50  ;;  %vm10121_vm15 = vmmov %vm10119_vm0  ;;  %v936_v21 = vsel %vm10124_vm9, %v923_v53, 0.0  ;;  %v10125_v13 = vld [vmem:[#allocation44_spill] sm:$0xff]  ;;  %vm10132_vm9 = vnez %v10131_v33  ;;  %v829_v22 = vadd.f32 %v821_v59, %v764_v35 }
 0x2ab   : > { %v988_v50 = vsel %vm10121_vm15, %v10120_v34, %v10118_v43  ;;  %vm10126_vm1 = vnez %v10125_v13  ;;  %v10128_v43 = vld [vmem:[#allocation120_spill] sm:$0xff]  ;;  %vm10129_vm15 = vcmp.lt.s32.totalorder %v4710_v1, 16  ;;  %v935_v53 = vsel %vm10132_vm9, %v925_v23, 0.0  ;;  %v6309_v39 = vpop.permute.xlu0 %1511  ;;  %v6311_v34 = vpop.permute.xlu1 %1389 }
 0x2ac   : > { %v937_v10 = vsel %vm10126_vm1, %v921_v32, 0.0  ;;  %v1049_v36 = vsel %vm10129_vm15, %v5697_v40, %v10128_v43  ;;  %vm10130_vm2 = vmmov %vm10129_vm15  ;;  %10134 = vst [vmem:[#allocation124_spill] sm:$0xff] %v6309_v39  ;;  %vm10139_vm15 = vnez %v10138_v19  ;;  %1976 = vrot.lane.b32.xlu0 %v5531_v62, %s4607_s6  ;;  %v832_v23 = vadd.f32 %v824_v58, %v767_v28  ;;  %v10143_v39 = vld [vmem:[#allocation46_spill] sm:$0xff] }
 0x2ad   : > { %v1055_v61 = vsel %vm10130_vm2, %v10128_v43, %v5689_v44  ;;  %vm10133_vm1 = vmmov %vm10119_vm0  ;;  %10135 = vst [vmem:[#allocation116_spill] sm:$0xff] %v6311_v34  ;;  %vm10137_vm0 = vnez %v10136_v18  ;;  %v1001_v14 = vsel %vm10139_vm15, %v988_v50, 0.0  ;;  %v10140_v44 = vld [vmem:[#allocation50_spill] sm:$0xff]  ;;  %1771 = vrot.lane.b32.xlu1 %v5444_v9, %s4601_s29  ;;  %v896_v59 = vadd.f32 %v888_v12, %v831_v57 }
 0x2ae   : > { %v984_v32 = vsel %vm10133_vm1, %v10117_v42, %v10127_v38  ;;  %v938_v40 = vsel %vm10137_vm0, %v919_v55, 0.0  ;;  %vm10141_vm2 = vnez %v10140_v44  ;;  %v952_v38 = vmul.f32 %v10142_v26, %v936_v21  ;;  %v10147_v58 = vld [vmem:[#allocation106_spill] sm:$0xff] }
 0x2af   : > { %v1002_v43 = vsel %vm10141_vm2, %v986_v24, 0.0  ;;  %v953_v42 = vmul.f32 %v10142_v26, %v937_v10  ;;  %vm10144_vm1 = vnez %v10143_v39  ;;  %v895_v55 = vadd.f32 %v6195_v30, %v830_v0  ;;  %v10145_v24 = vld [vmem:[#allocation52_spill] sm:$0xff]  ;;  %v10148_v44 = vld [vmem:[#allocation130_spill] sm:$0xff]  ;;  %v10149_v39 = vld [vmem:[#allocation119_spill] sm:$0xff]  ;;  %v6338_v19 = vpop.permute.xlu0 %1519  ;;  %v6340_v30 = vpop.permute.xlu1 %1448 }
 0x2b0   : > { %v1000_v35 = vsel %vm10144_vm1, %v990_v6, 0.0  ;;  %v951_v50 = vmul.f32 %v10142_v26, %v935_v53  ;;  %vm10146_vm2 = vnez %v10145_v24  ;;  %v954_v28 = vmul.f32 %v10142_v26, %v938_v40  ;;  %10151 = vst [vmem:[#allocation126_spill] sm:$0xff] %v6338_v19  ;;  %10152 = vst [vmem:[#allocation115_spill] sm:$0xff] %v6340_v30  ;;  %v10153_v12 = vld [vmem:[#allocation26_spill] sm:$0xff]  ;;  %v10155_v26 = vld [vmem:[#allocation117_spill] sm:$0xff] }
 0x2b1   : > { %v1003_v34 = vsel %vm10146_vm2, %v984_v32, 0.0  ;;  %v1017_v21 = vmul.f32 %v10147_v58, %v1001_v14  ;;  %v1018_v10 = vmul.f32 %v10147_v58, %v1002_v43  ;;  %vm10150_vm1 = vcmp.lt.s32.totalorder %v4710_v1, 15  ;;  %v6352_v32 = vld [vmem:[%s9092_s2 + $0x10] sm:$0xff]  ;;  %1779 = vrot.lane.b32.xlu1 %v5446_v41, %s4601_s29 }
 0x2b2   : > { %v1118_v6 = vsel %vm10150_vm1, %v10149_v39, %v10148_v44  ;;  %vm10154_vm15 = vnez %v10153_v12  ;;  %v894_v57 = vadd.f32 %v886_v16, %v829_v22  ;;  %v1016_v53 = vmul.f32 %v10147_v58, %v1000_v35  ;;  %vm10156_vm2 = vmmov %vm10150_vm1  ;;  %2073 = vperm.xlu0 %4434, %v6352_v32   ;;  %v10157_v16 = vld [vmem:[#allocation55_spill] sm:$0xff] }
 0x2b3   : > { %v1065_v0 = vsel %vm10154_vm15, %v1055_v61, 0.0  ;;  %v1116_v14 = vsel %vm10156_vm2, %v10148_v44, %v10155_v26  ;;  %v960_v40 = vadd.f32 %v952_v38, %v895_v55  ;;  %v961_v43 = vadd.f32 %v953_v42, %v896_v59  ;;  %v10159_v44 = vld [vmem:[#allocation132_spill] sm:$0xff]  ;;  %v10164_v55 = vld [vmem:[#allocation109_spill] sm:$0xff] }
 0x2b4   : > { %v897_v19 = vadd.f32 %v889_v3, %v832_v23  ;;  %v1019_v61 = vmul.f32 %v10147_v58, %v1003_v34  ;;  %v959_v22 = vadd.f32 %v951_v50, %v894_v57  ;;  %vm10158_vm1 = vnez %v10157_v16  ;;  %v10160_v38 = vld [vmem:[#allocation56_spill] sm:$0xff]  ;;  %v6366_v23 = vpop.permute.xlu0 %1578  ;;  %v6368_v34 = vpop.permute.xlu1 %1456  ;;  %v10165_v50 = vld [vmem:[#allocation33_spill] sm:$0xff]  ;;  %v10169_v57 = vld [vmem:[#allocation54_spill] sm:$0xff] }
 0x2b5   : > { %v1131_v35 = vsel %vm10158_vm1, %v1118_v6, 0.0  ;;  %v1120_v30 = vsel %vm10156_vm2, %v10159_v44, %v10149_v39  ;;  %v1025_v24 = vadd.f32 %v1017_v21, %v960_v40  ;;  %v1026_v47 = vadd.f32 %v1018_v10, %v961_v43  ;;  %10162 = vst [vmem:[#allocation128_spill] sm:$0xff] %v6366_v23  ;;  %v10168_v10 = vld [vmem:[#allocation111_spill] sm:$0xff]  ;;  %1838 = vrot.lane.b32.xlu1 %v5520_v20, %s4603_s30 }
 0x2b6   : > { %v962_v12 = vadd.f32 %v954_v28, %v897_v19  ;;  %vm10161_vm15 = vnez %v10160_v38  ;;  %v10163_v42 = vsel %vm10105_vm4, %v6222_v51, 0.0  ;;  %vm10166_vm1 = vnez %v10165_v50  ;;  %1970 = vrot.lane.b32.xlu0 %v5476_v11, %s4607_s6 }
 0x2b7   : > { %v1132_v3 = vsel %vm10161_vm15, %v1116_v14, 0.0  ;;  %v1082_v59 = vmul.f32 %v10164_v55, %v10163_v42  ;;  %v1068_v58 = vsel %vm10166_vm1, %v1049_v36, 0.0  ;;  %v1024_v39 = vadd.f32 %v1016_v53, %v959_v22  ;;  %v10174_v42 = vld [vmem:[#allocation123_spill] sm:$0xff] }
 0x2b8   : > { %v10167_v19 = vsel %vm10114_vm7, %v6233_v4, 0.0  ;;  %v1027_v21 = vadd.f32 %v1019_v61, %v962_v12  ;;  %v1147_v6 = vmul.f32 %v10168_v10, %v1131_v35  ;;  %vm10170_vm2 = vnez %v10169_v57  ;;  %v6396_v61 = vpop.permute.xlu0 %1586 }
 0x2b9   : > { %v1083_v28 = vmul.f32 %v10164_v55, %v10167_v19  ;;  %v1130_v51 = vsel %vm10170_vm2, %v1120_v30, 0.0  ;;  %v4608_v36 = vmov 26   ;;  %v1081_v53 = vmul.f32 %v10164_v55, %v1065_v0  ;;  %10172 = vst [vmem:[#allocation120_spill] sm:$0xff] %v6396_v61  ;;  %v6398_v30 = vpop.permute.xlu1 %1553  ;;  %v10175_v0 = vld [vmem:[#allocation146_spill] sm:$0xff]  ;;  %v10177_v19 = vld [vmem:[#allocation121_spill] sm:$0xff]  ;;  %1846 = vrot.lane.b32.xlu1 %v5531_v62, %s4603_s30 }
 0x2ba   : > { %4436 = vset.pattern.permute.xlu0 %v4608_v36  ;;  %v1148_v14 = vmul.f32 %v10168_v10, %v1132_v3  ;;  %vm10171_vm1 = vcmp.lt.s32.totalorder %v4710_v1, 15  ;;  %v1084_v12 = vmul.f32 %v10164_v55, %v1068_v58  ;;  %v1090_v40 = vadd.f32 %v1082_v59, %v1025_v24  ;;  %10173 = vst [vmem:[#allocation105_spill] sm:$0xff] %v6398_v30  ;;  %v10181_v59 = vld [vmem:[#allocation150_spill] sm:$0xff]  ;;  %v10182_v58 = vld [vmem:[#allocation125_spill] sm:$0xff]  ;;  %v10185_v36 = vld [vmem:[#allocation147_spill] sm:$0xff] }
 0x2bb   : > { %v1114_v4 = vsel %vm10171_vm1, %v10155_v26, %v10159_v44  ;;  %v1091_v43 = vadd.f32 %v1083_v28, %v1026_v47  ;;  %v1089_v22 = vadd.f32 %v1081_v53, %v1024_v39  ;;  %v1146_v35 = vmul.f32 %v10168_v10, %v1130_v51  ;;  %1978 = vrot.lane.b32.xlu0 %v5482_v45, %s4607_s6  ;;  %v10179_v44 = vld [vmem:[#allocation57_spill] sm:$0xff]  ;;  %v10184_v51 = vld [vmem:[#allocation136_spill] sm:$0xff]  ;;  %v10193_v30 = vld [vmem:[#allocation151_spill] sm:$0xff] }
 0x2bc   : > { %vm10176_vm2 = vcmp.lt.s32.totalorder %v4710_v1, 34  ;;  %v6411_v47 = vadd.f32 %v1147_v6, %v1090_v40  ;;  %v6413_v24 = vadd.f32 %v1084_v12, %v1027_v21  ;;  %vm10180_vm15 = vnez %v10179_v44  ;;  %v10187_v21 = vld [vmem:[#allocation134_spill] sm:$0xff]  ;;  %v6449_v61 = vpop.permute.xlu0 %1683 }
 0x2bd   : > { %v603_v3 = vsel %vm10176_vm2, %v10175_v0, %v10174_v42  ;;  %vm10178_vm1 = vmmov %vm10176_vm2  ;;  %v1133_v55 = vsel %vm10180_vm15, %v1114_v4, 0.0  ;;  %vm10183_vm7 = vcmp.lt.s32.totalorder %v4710_v1, 33  ;;  %v6423_v28 = vadd.f32 %v1148_v14, %v1091_v43  ;;  %v10189_v4 = vld [vmem:[#allocation127_spill] sm:$0xff]  ;;  %v10191_v43 = vld [vmem:[#allocation148_spill] sm:$0xff]  ;;  %10195 = vst [vmem:[#allocation106_spill] sm:$0xff] %v6449_v61  ;;  %v6451_v23 = vpop.permute.xlu1 %1446  ;;  %1943 = vperm.xlu1 %4431, %v6352_v32  }
 0x2be   : > { %v605_v26 = vsel %vm10178_vm1, %v10177_v19, %v10175_v0  ;;  %v664_v39 = vsel %vm10183_vm7, %v10182_v58, %v10181_v59  ;;  %vm10186_vm2 = vcmp.lt.s32.totalorder %v4710_v1, 32  ;;  %vm10190_vm15 = vmmov %vm10183_vm7  ;;  %v622_v14 = vsel %vm10070_vm10, %v603_v3, 0.0  ;;  %v10218_v61 = vld [vmem:[#allocation131_spill] sm:$0xff] }
 0x2bf   : > { %v727_v6 = vsel %vm10186_vm2, %v10185_v36, %v10184_v51  ;;  %vm10188_vm1 = vmmov %vm10186_vm2  ;;  %v662_v12 = vsel %vm10190_vm15, %v10181_v59, %v10189_v4  ;;  %v621_v40 = vsel %vm10067_vm11, %v605_v26, 0.0  ;;  %vm10192_vm7 = vcmp.lt.s32.totalorder %v4710_v1, 34  ;;  %2037 = vrot.lane.b32.xlu0 %v5606_v37, %s4609_s11 }
 0x2c0   : > { %v729_v53 = vsel %vm10188_vm1, %v10187_v21, %v10185_v36  ;;  %v607_v0 = vsel %vm10192_vm7, %v10191_v43, %v10177_v19  ;;  %vm10194_vm2 = vmmov %vm10190_vm15  ;;  %v6454_v59 = vmul.f32 %v10168_v10, %v1133_v55  ;;  %v6456_v26 = vadd.f32 %v1146_v35, %v1089_v22  ;;  %v6494_v27 = vpop.permute.xlu0 %1580 }
 0x2c1   : > { %v666_v36 = vsel %vm10194_vm2, %v10193_v30, %v10182_v58  ;;  %v680_v3 = vsel %vm10065_vm6, %v664_v39, 0.0  ;;  %vm10196_vm10 = vmmov %vm10194_vm2  ;;  %v745_v58 = vsel %vm10079_vm13, %v729_v53, 0.0  ;;  %v746_v10 = vsel %vm10081_vm3, %v727_v6, 0.0  ;;  %10204 = vst [vmem:[#allocation130_spill] sm:$0xff] %v6494_v27  ;;  %1836 = vrot.lane.b32.xlu1 %v5444_v9, %s4603_s30  ;;  %v10219_v27 = vld [vmem:[#allocation153_spill] sm:$0xff] }
 0x2c2   : > { %v660_v19 = vsel %vm10196_vm10, %v10189_v4, %v10193_v30  ;;  %vm10197_vm11 = vmmov %vm10192_vm7  ;;  %v681_v35 = vsel %vm10066_vm14, %v662_v12, 0.0  ;;  %v10198_v30 = vld [vmem:[#allocation98_spill] sm:$0xff]  ;;  %v620_v53 = vsel %vm10071_vm5, %v607_v0, 0.0  ;;  %v679_v6 = vsel %vm10072_vm8, %v666_v36, 0.0  ;;  %v10199_v4 = vld [vmem:[#allocation149_spill] sm:$0xff]  ;;  %v6496_v0 = vpop.permute.xlu1 %1450  ;;  %4433 = vset.pattern.permute.xlu1 %v10217_v54 }
 0x2c3   : > { %v601_v22 = vsel %vm10197_vm11, %v10174_v42, %v10191_v43  ;;  %v639_v55 = vmul.f32 %v10198_v30, %v621_v40  ;;  %v640_v39 = vmul.f32 %v10198_v30, %v622_v14  ;;  %vm10200_vm6 = vmmov %vm10188_vm1  ;;  %v10202_v43 = vld [vmem:[#allocation99_spill] sm:$0xff]  ;;  %v682_v14 = vsel %vm10074_vm12, %v660_v19, 0.0  ;;  %v10205_v36 = vld [vmem:[#allocation100_spill] sm:$0xff]  ;;  %2045 = vrot.lane.b32.xlu0 %v5617_v48, %s4609_s11 }
 0x2c4   : > { %v725_v42 = vsel %vm10200_vm6, %v10184_v51, %v10199_v4  ;;  %vm10201_vm14 = vmmov %vm10188_vm1  ;;  %v696_v40 = vmul.f32 %v10202_v43, %v680_v3  ;;  %v761_v52 = vmul.f32 %v10205_v36, %v745_v58  ;;  %v762_v60 = vmul.f32 %v10205_v36, %v746_v10  ;;  %v10209_v3 = vld [vmem:[#allocation152_spill] sm:$0xff] }
 0x2c5   : > { %v731_v12 = vsel %vm10201_vm14, %v10199_v4, %v10187_v21  ;;  %vm10207_vm8 = vnez %v10206_v2  ;;  %v697_v63 = vmul.f32 %v10202_v43, %v681_v35  ;;  %v638_v21 = vmul.f32 %v10198_v30, %v620_v53  ;;  %v10211_v4 = vld [vmem:[#allocation138_spill] sm:$0xff]  ;;  %1840 = vrot.lane.b32.xlu1 %v5476_v11, %s4603_s30 }
 0x2c6   : > { %v623_v51 = vsel %vm10207_vm8, %v601_v22, 0.0  ;;  %vm10210_vm12 = vcmp.lt.s32.totalorder %v4710_v1, 18  ;;  %v695_v2 = vmul.f32 %v10202_v43, %v679_v6  ;;  %vm10213_vm13 = vnez %v9609_v25  ;;  %v10215_v53 = vld [vmem:[#allocation154_spill] sm:$0xff] }
 0x2c7   : > { %v922_v19 = vsel %vm10210_vm12, %v10209_v3, %v10208_v29  ;;  %vm10212_vm5 = vmmov %vm10210_vm12  ;;  %v744_v10 = vsel %vm10213_vm13, %v731_v12, 0.0  ;;  %vm10214_vm3 = vnez %v9619_v31  ;;  %v698_v35 = vmul.f32 %v10202_v43, %v682_v14  ;;  %v10221_v31 = vld [vmem:[#allocation129_spill] sm:$0xff]  ;;  %v6536_v43 = vpop.permute.xlu0 %1588  ;;  %v6538_v14 = vpop.permute.xlu1 %1458  ;;  %2031 = vrot.lane.b32.xlu0 %v5444_v9, %s4609_s11  ;;  %v10262_v25 = vld [vmem:[#allocation38_spill] sm:$0xff] }
 0x2c8   : > { %v924_v58 = vsel %vm10212_vm5, %v10211_v4, %v10209_v3  ;;  %v747_v22 = vsel %vm10214_vm3, %v725_v42, 0.0  ;;  %vm10216_vm15 = vmmov %vm10212_vm5  ;;  %v641_v6 = vmul.f32 %v10198_v30, %v623_v51  ;;  %v704_v3 = vadd.f32 %v696_v40, %v639_v55  ;;  %10223 = vst [vmem:[#allocation119_spill] sm:$0xff] %v6536_v43 }
 0x2c9   : > { %v926_v56 = vsel %vm10216_vm15, %v10215_v53, %v10211_v4  ;;  %vm10220_vm1 = vcmp.lt.s32.totalorder %v4710_v1, 31  ;;  %v705_v4 = vadd.f32 %v697_v63, %v640_v39  ;;  %vm10224_vm2 = vnez %v10123_v5  ;;  %vm10226_vm11 = vmmov %vm10212_vm5  ;;  %1848 = vrot.lane.b32.xlu1 %v5482_v45, %s4603_s30 }
 0x2ca   : > { %v792_v12 = vsel %vm10220_vm1, %v10219_v27, %v10218_v61  ;;  %vm10222_vm7 = vmmov %vm10220_vm1  ;;  %v940_v54 = vsel %vm10224_vm2, %v924_v58, 0.0  ;;  %vm10225_vm10 = vnez %v10125_v13  ;;  %v920_v55 = vsel %vm10226_vm11, %v10208_v29, %v10215_v53  ;;  %v10229_v29 = vld [vmem:[#allocation156_spill] sm:$0xff] }
 0x2cb   : > { %v794_v42 = vsel %vm10222_vm7, %v10221_v31, %v10219_v27  ;;  %v941_v30 = vsel %vm10225_vm10, %v922_v19, 0.0  ;;  %v760_v27 = vmul.f32 %v10205_v36, %v744_v10  ;;  %v763_v40 = vmul.f32 %v10205_v36, %v747_v22  ;;  %v10230_v19 = vld [vmem:[#allocation133_spill] sm:$0xff]  ;;  %v10232_v36 = vld [vmem:[#allocation103_spill] sm:$0xff]  ;;  %v6576_v22 = vpop.permute.xlu0 %1647  ;;  %vm10237_vm12 = vmmov %vm10220_vm1  ;;  %2039 = vrot.lane.b32.xlu0 %v5446_v41, %s4609_s11 }
 0x2cc   : > { %v703_v51 = vadd.f32 %v695_v2, %v638_v21  ;;  %v939_v63 = vsel %vm10132_vm9, %v926_v56, 0.0  ;;  %v706_v5 = vadd.f32 %v698_v35, %v641_v6  ;;  %vm10227_vm6 = vnez %v9719_v7  ;;  %v10233_v2 = vld [vmem:[#allocation135_spill] sm:$0xff]  ;;  %10235 = vst [vmem:[#allocation117_spill] sm:$0xff] %v6576_v22  ;;  %v6578_v35 = vpop.permute.xlu1 %1517  ;;  %v10269_v22 = vld [vmem:[#allocation48_spill] sm:$0xff] }
 0x2cd   : > { %v810_v13 = vsel %vm10227_vm6, %v794_v42, 0.0  ;;  %vm10228_vm14 = vnez %v9723_v8  ;;  %vm10231_vm8 = vcmp.lt.s32.totalorder %v4710_v1, 30  ;;  %v6565_v21 = vmul.f32 %v10232_v36, %v940_v54  ;;  %v10236_v42 = vld [vmem:[#allocation155_spill] sm:$0xff]  ;;  %v10238_v54 = vld [vmem:[#allocation101_spill] sm:$0xff]  ;;  %1907 = vrot.lane.b32.xlu1 %v5606_v37, %s4604_s5 }
 0x2ce   : > { %v811_v39 = vsel %vm10228_vm14, %v792_v12, 0.0  ;;  %v859_v58 = vsel %vm10231_vm8, %v10230_v19, %v10229_v29  ;;  %v6568_v56 = vmul.f32 %v10232_v36, %v941_v30  ;;  %v942_v33 = vsel %vm10137_vm0, %v920_v55, 0.0  ;;  %vm10234_vm9 = vmmov %vm10231_vm8 }
 0x2cf   : > { %v857_v10 = vsel %vm10234_vm9, %v10229_v29, %v10233_v2  ;;  %v6581_v53 = vmul.f32 %v10232_v36, %v939_v63  ;;  %v769_v6 = vadd.f32 %v761_v52, %v704_v3  ;;  %v770_v12 = vadd.f32 %v762_v60, %v705_v4  ;;  %vm10239_vm0 = vmmov %vm10220_vm1  ;;  %2098 = vrot.lane.b32.xlu0 %v5520_v20, %s4610_s12 }
 0x2d0   : > { %v796_v18 = vsel %vm10237_vm12, %v10236_v42, %v10221_v31  ;;  %v826_v30 = vmul.f32 %v10238_v54, %v810_v13  ;;  %v827_v55 = vmul.f32 %v10238_v54, %v811_v39  ;;  %v790_v63 = vsel %vm10239_vm0, %v10218_v61, %v10236_v42  ;;  %v10242_v13 = vld [vmem:[#allocation144_spill] sm:$0xff]  ;;  %v10243_v39 = vld [vmem:[#allocation157_spill] sm:$0xff]  ;;  %v10245_v61 = vld [vmem:[#allocation142_spill] sm:$0xff] }
 0x2d1   : > { %vm10240_vm5 = vnez %v9735_v15  ;;  %v6600_v31 = vmul.f32 %v10232_v36, %v942_v33  ;;  %v768_v60 = vadd.f32 %v760_v27, %v703_v51  ;;  %v771_v3 = vadd.f32 %v763_v40, %v706_v5  ;;  %v10247_v42 = vld [vmem:[#allocation34_spill] sm:$0xff]  ;;  %vm10250_vm7 = vmmov %vm10231_vm8  ;;  %v6622_v51 = vpop.permute.xlu0 %1655  ;;  %v6624_v5 = vpop.permute.xlu1 %1525  ;;  %v10252_v33 = vld [vmem:[#allocation37_spill] sm:$0xff]  ;;  %1915 = vrot.lane.b32.xlu1 %v5617_v48, %s4604_s5 }
 0x2d2   : > { %v875_v52 = vsel %vm10240_vm5, %v859_v58, 0.0  ;;  %vm10241_vm13 = vnez %v9739_v17  ;;  %vm10244_vm3 = vcmp.lt.s32.totalorder %v4710_v1, 15  ;;  %vm10248_vm1 = vnez %v10247_v42  ;;  %v10249_v27 = vld [vmem:[#allocation158_spill] sm:$0xff]  ;;  %10251 = vst [vmem:[#allocation132_spill] sm:$0xff] %v6622_v51  ;;  %vm10255_vm10 = vmmov %vm10250_vm7  ;;  %v10257_v42 = vld [vmem:[#allocation137_spill] sm:$0xff] }
 0x2d3   : > { %v876_v4 = vsel %vm10241_vm13, %v857_v10, 0.0  ;;  %v6608_v29 = vsel %vm10244_vm3, %v10243_v39, %v10242_v13  ;;  %vm10246_vm15 = vmmov %vm10244_vm3  ;;  %v809_v36 = vsel %vm10248_vm1, %v796_v18, 0.0  ;;  %v861_v40 = vsel %vm10250_vm7, %v10249_v27, %v10230_v19  ;;  %v10254_v17 = vld [vmem:[#allocation102_spill] sm:$0xff]  ;;  %v10256_v18 = vld [vmem:[#allocation160_spill] sm:$0xff]  ;;  %2106 = vrot.lane.b32.xlu0 %v5531_v62, %s4610_s12 }
 0x2d4   : > { %v6614_v58 = vsel %vm10246_vm15, %v10245_v61, %v10243_v39  ;;  %vm10253_vm2 = vnez %v10252_v33  ;;  %v891_v15 = vmul.f32 %v10254_v17, %v875_v52  ;;  %v855_v39 = vsel %vm10255_vm10, %v10233_v2, %v10249_v27  ;;  %v10259_v33 = vld [vmem:[#allocation139_spill] sm:$0xff]  ;;  %vm10275_vm13 = vmmov %vm10244_vm3 }
 0x2d5   : > { %v812_v10 = vsel %vm10253_vm2, %v790_v63, 0.0  ;;  %vm10258_vm11 = vcmp.lt.s32.totalorder %v4710_v1, 17  ;;  %v834_v19 = vadd.f32 %v826_v30, %v769_v6  ;;  %v835_v7 = vadd.f32 %v827_v55, %v770_v12  ;;  %v10264_v12 = vld [vmem:[#allocation164_spill] sm:$0xff]  ;;  %v10265_v30 = vld [vmem:[#allocation141_spill] sm:$0xff] }
 0x2d6   : > { %v989_v8 = vsel %vm10258_vm11, %v10257_v42, %v10256_v18  ;;  %v892_v63 = vmul.f32 %v10254_v17, %v876_v4  ;;  %vm10260_vm6 = vmmov %vm10258_vm11  ;;  %vm10261_vm14 = vnez %v10157_v16  ;;  %v825_v27 = vmul.f32 %v10238_v54, %v809_v36  ;;  %v10271_v16 = vld [vmem:[#allocation143_spill] sm:$0xff]  ;;  %v6667_v36 = vpop.permute.xlu1 %1687 }
 0x2d7   : > { %v987_v52 = vsel %vm10260_vm6, %v10256_v18, %v10259_v33  ;;  %v1135_v2 = vsel %vm10261_vm14, %v6614_v58, 0.0  ;;  %vm10263_vm8 = vnez %v10262_v25  ;;  %vm10266_vm9 = vcmp.lt.s32.totalorder %v4710_v1, 16  ;;  %v10267_v18 = vld [vmem:[#allocation41_spill] sm:$0xff]  ;;  %v6665_v25 = vpop.permute.xlu0 %1817  ;;  %vm10279_vm7 = vmmov %vm10260_vm6 }
 0x2d8   : > { %v874_v6 = vsel %vm10263_vm8, %v861_v40, 0.0  ;;  %v1054_v55 = vsel %vm10266_vm9, %v10265_v30, %v10264_v12  ;;  %v828_v4 = vmul.f32 %v10238_v54, %v812_v10  ;;  %vm10268_vm12 = vnez %v10267_v18  ;;  %vm10272_vm5 = vmmov %vm10266_vm9  ;;  %10273 = vst [vmem:[#allocation109_spill] sm:$0xff] %v6665_v25  ;;  %v10274_v40 = vld [vmem:[#allocation159_spill] sm:$0xff]  ;;  %v10276_v10 = vld [vmem:[#allocation50_spill] sm:$0xff] }
 0x2d9   : > { %v877_v51 = vsel %vm10268_vm12, %v855_v39, 0.0  ;;  %vm10270_vm0 = vnez %v10269_v22  ;;  %v1052_v58 = vsel %vm10272_vm5, %v10264_v12, %v10271_v16  ;;  %v1115_v54 = vsel %vm10275_vm13, %v10242_v13, %v10274_v40  ;;  %v10278_v25 = vld [vmem:[#allocation162_spill] sm:$0xff]  ;;  %vm10281_vm2 = vmmov %vm10260_vm6 }
 0x2da   : > { %v1005_v43 = vsel %vm10270_vm0, %v989_v8, 0.0  ;;  %v1121_v22 = vsel %vm10244_vm3, %v10274_v40, %v10245_v61  ;;  %v899_v8 = vadd.f32 %v891_v15, %v834_v19  ;;  %vm10277_vm15 = vnez %v10276_v10  ;;  %v10280_v19 = vld [vmem:[#allocation104_spill] sm:$0xff]  ;;  %vm10284_vm11 = vmmov %vm10272_vm5 }
 0x2db   : > { %v1006_v39 = vsel %vm10277_vm15, %v987_v52, 0.0  ;;  %vm1178_vm1 = vcmp.lt.s32.totalorder %v4710_v1, 14  ;;  %v900_v12 = vadd.f32 %v892_v63, %v835_v7  ;;  %v890_v18 = vmul.f32 %v10254_v17, %v874_v6  ;;  %vm10289_vm14 = vmmov %vm10272_vm5 }
 0x2dc   : > { %v991_v13 = vsel %vm10279_vm7, %v10278_v25, %v10257_v42  ;;  %v1070_v61 = vsel %vm10105_vm4, %v1054_v55, 0.0  ;;  %v893_v15 = vmul.f32 %v10254_v17, %v877_v51  ;;  %v1021_v52 = vmul.f32 %v10280_v19, %v1005_v43  ;;  %v10283_v55 = vld [vmem:[#allocation166_spill] sm:$0xff]  ;;  %v6704_v17 = vpop.permute.xlu0 %1649  ;;  %v6706_v43 = vpop.permute.xlu1 %1515 }
 0x2dd   : > { %v985_v7 = vsel %vm10281_vm2, %v10259_v33, %v10278_v25  ;;  %vm10282_vm10 = vnez %v10113_v46  ;;  %v833_v6 = vadd.f32 %v825_v27, %v768_v60  ;;  %v836_v42 = vadd.f32 %v828_v4, %v771_v3  ;;  %10285 = vst [vmem:[#allocation111_spill] sm:$0xff] %v6704_v17  ;;  %v10288_v25 = vld [vmem:[#allocation107_spill] sm:$0xff] }
 0x2de   : > { %v1071_v63 = vsel %vm10282_vm10, %v1052_v58, 0.0  ;;  %v1022_v40 = vmul.f32 %v10280_v19, %v1006_v39  ;;  %v1056_v10 = vsel %vm10284_vm11, %v10283_v55, %v10265_v30  ;;  %v964_v51 = vadd.f32 %v6565_v21, %v899_v8  ;;  %v4493_v3 = vld [vmem:[%s9092_s2 + $0x8] sm:$0xff]  ;;  %v10290_v30 = vld [vmem:[#allocation52_spill] sm:$0xff]  ;;  %v10292_v8 = vld [vmem:[#allocation118_spill] sm:$0xff] }
 0x2df   : > { %vm10287_vm6 = vnez %v10286_v49  ;;  %v1086_v58 = vmul.f32 %v10288_v25, %v1070_v61  ;;  %v1050_v60 = vsel %vm10289_vm14, %v10271_v16, %v10283_v55  ;;  %vm1243_vm8 = vcmp.lt.s32.totalorder %v4710_v1, 2  ;;  %2166 = vperm.xlu0 %4436, %v4493_v3   ;;  %2077 = vperm.xlu1 %4433, %v10292_v8   ;;  %v10294_v61 = vld [vmem:[#allocation26_spill] sm:$0xff] }
 0x2e0   : > { %v1004_v33 = vsel %vm10287_vm6, %v991_v13, 0.0  ;;  %v898_v27 = vadd.f32 %v890_v18, %v833_v6  ;;  %v965_v21 = vadd.f32 %v6568_v56, %v900_v12  ;;  %vm10291_vm9 = vnez %v10290_v30  ;;  %v6733_v12 = vpop.permute.xlu0 %1708 }
 0x2e1   : > { %v1007_v49 = vsel %vm10291_vm9, %v985_v7, 0.0  ;;  %v1087_v4 = vmul.f32 %v10288_v25, %v1071_v63  ;;  %vm10293_vm12 = vnez %v10160_v38  ;;  %v901_v39 = vadd.f32 %v893_v15, %v836_v42  ;;  %10297 = vst [vmem:[#allocation123_spill] sm:$0xff] %v6733_v12  ;;  %v6735_v7 = vpop.permute.xlu1 %1523 }
 0x2e2   : > { %v1136_v16 = vsel %vm10293_vm12, %v6608_v29, 0.0  ;;  %v1029_v13 = vadd.f32 %v1021_v52, %v964_v51  ;;  %vm10295_vm0 = vnez %v10294_v61  ;;  %v1030_v3 = vadd.f32 %v1022_v40, %v965_v21  ;;  %v10301_v51 = vld [vmem:[#allocation169_spill] sm:$0xff] }
 0x2e3   : > { %v1069_v55 = vsel %vm10295_vm0, %v1056_v10, 0.0  ;;  %v1020_v18 = vmul.f32 %v10280_v19, %v1004_v33  ;;  %vm10296_vm5 = vnez %v10165_v50  ;;  %vm10298_vm13 = vnez %v10169_v57  ;;  %2104 = vrot.lane.b32.xlu0 %v5446_v41, %s4610_s12  ;;  %1905 = vrot.lane.b32.xlu1 %v5476_v11, %s4604_s5  ;;  %v10300_v57 = vld [vmem:[#allocation108_spill] sm:$0xff]  ;;  %v10302_v33 = vld [vmem:[#allocation145_spill] sm:$0xff] }
 0x2e4   : > { %v1072_v56 = vsel %vm10296_vm5, %v1050_v60, 0.0  ;;  %v1134_v63 = vsel %vm10298_vm13, %v1121_v22, 0.0  ;;  %vm10299_vm3 = vnez %v10179_v44  ;;  %v1023_v29 = vmul.f32 %v10280_v19, %v1007_v49  ;;  %v10303_v21 = vld [vmem:[#allocation161_spill] sm:$0xff]  ;;  %v6772_v49 = vpop.permute.xlu0 %1716 }
 0x2e5   : > { %v1137_v38 = vsel %vm10299_vm3, %v1115_v54, 0.0  ;;  %v1094_v15 = vadd.f32 %v1086_v58, %v1029_v13  ;;  %v6746_v52 = vadd.f32 %v6454_v59, %v6413_v24  ;;  %v963_v6 = vadd.f32 %v6581_v53, %v898_v27  ;;  %v6762_v60 = vpop.permute.xlu1 %1582 }
 0x2e6   : > { %v1095_v42 = vadd.f32 %v1087_v4, %v1030_v3  ;;  %v1085_v40 = vmul.f32 %v10288_v25, %v1069_v55  ;;  %v1151_v44 = vmul.f32 %v10300_v57, %v1135_v2  ;;  %v1152_v54 = vmul.f32 %v10300_v57, %v1136_v16  ;;  %v4494_v4 = vld [vmem:[%s9092_s2] sm:$0xff]  ;;  %v10305_v55 = vld [vmem:[#allocation176_spill] sm:$0xff]  ;;  %v10306_v3 = vld [vmem:[#allocation165_spill] sm:$0xff] }
 0x2e7   : > { %v966_v22 = vadd.f32 %v6600_v31, %v901_v39  ;;  %v1088_v19 = vmul.f32 %v10288_v25, %v1072_v56  ;;  %v4611_v10 = vmov 24   ;;  %v1150_v24 = vmul.f32 %v10300_v57, %v1134_v63  ;;  %v10304_v25 = vld [vmem:[#allocation171_spill] sm:$0xff]  ;;  %2162 = vperm.xlu0 %4436, %v4494_v4   ;;  %1913 = vrot.lane.b32.xlu1 %v5482_v45, %s4604_s5  ;;  %v10321_v4 = vld [vmem:[#allocation110_spill] sm:$0xff] }
 0x2e8   : > { %4435 = vset.pattern.permute.xlu1 %v4611_v10  ;;  %v1153_v59 = vmul.f32 %v10300_v57, %v1137_v38  ;;  %v1028_v53 = vadd.f32 %v1020_v18, %v963_v6  ;;  %v1184_v58 = vsel %vm1178_vm1, %v10302_v33, %v10301_v51  ;;  %v1159_v27 = vadd.f32 %v1151_v44, %v1094_v15  ;;  %v10307_v63 = vld [vmem:[#allocation59_spill] sm:$0xff]  ;;  %v10310_v6 = vld [vmem:[#allocation178_spill] sm:$0xff]  ;;  %v10316_v10 = vld [vmem:[#allocation168_spill] sm:$0xff] }
 0x2e9   : > { %v1031_v2 = vadd.f32 %v1023_v29, %v966_v22  ;;  %v1182_v31 = vsel %vm1178_vm1, %v10301_v51, %v10303_v21  ;;  %v1186_v30 = vsel %vm1178_vm1, %v10304_v25, %v10302_v33  ;;  %v1160_v39 = vadd.f32 %v1152_v54, %v1095_v42  ;;  %v10309_v29 = vld [vmem:[#allocation167_spill] sm:$0xff]  ;;  %v10313_v44 = vld [vmem:[#allocation58_spill] sm:$0xff]  ;;  %v6810_v51 = vpop.permute.xlu1 %1590  ;;  %v10317_v33 = vld [vmem:[#allocation61_spill] sm:$0xff] }
 0x2ea   : > { %v1093_v16 = vadd.f32 %v1085_v40, %v1028_v53  ;;  %v1180_v13 = vsel %vm1178_vm1, %v10303_v21, %v10304_v25  ;;  %v1183_v18 = vsel %vm1178_vm1, %v10306_v3, %v10305_v55  ;;  %vm9575_vm15 = vcmp.lt.s32.totalorder %v4710_v1, 1  ;;  %v10311_v40 = vld [vmem:[#allocation60_spill] sm:$0xff]  ;;  %v10319_v21 = vld [vmem:[#allocation170_spill] sm:$0xff] }
 0x2eb   : > { %v1096_v56 = vadd.f32 %v1088_v19, %v1031_v2  ;;  %vm10308_vm7 = vnez %v10307_v63  ;;  %v1181_v15 = vsel %vm1178_vm1, %v10305_v55, %v10309_v29  ;;  %v1185_v42 = vsel %vm1178_vm1, %v10310_v6, %v10306_v3  ;;  %v10315_v19 = vld [vmem:[#allocation180_spill] sm:$0xff]  ;;  %v10320_v25 = vld [vmem:[#allocation182_spill] sm:$0xff]  ;;  %1972 = vrot.lane.b32.xlu1 %v5606_v37, %s4607_s6 }
 0x2ec   : > { %v1200_v38 = vsel %vm10308_vm7, %v1184_v58, 0.0  ;;  %vm10312_vm2 = vnez %v10311_v40  ;;  %vm10314_vm11 = vnez %v10313_v44  ;;  %v1179_v22 = vsel %vm1178_vm1, %v10309_v29, %v10310_v6  ;;  %v10322_v6 = vld [vmem:[#allocation7_spill] sm:$0xff]  ;;  %v6841_v40 = vpop.permute.xlu0 %1813  ;;  %v10325_v44 = vld [vmem:[#allocation112_spill] sm:$0xff] }
 0x2ed   : > { %v1201_v57 = vsel %vm10312_vm2, %v1182_v31, 0.0  ;;  %v1199_v54 = vsel %vm10314_vm11, %v1186_v30, 0.0  ;;  %v1249_v53 = vsel %vm1243_vm8, %v10316_v10, %v10315_v19  ;;  %vm10318_vm6 = vnez %v10317_v33  ;;  %10324 = vst [vmem:[#allocation146_spill] sm:$0xff] %v6841_v40  ;;  %v10330_v33 = vld [vmem:[#allocation9_spill] sm:$0xff]  ;;  %v6853_v46 = vpop.permute.xlu1 %1752 }
 0x2ee   : > { %v1202_v58 = vsel %vm10318_vm6, %v1180_v13, 0.0  ;;  %v1196_v2 = vsel %vm10308_vm7, %v1183_v18, 0.0  ;;  %v1247_v31 = vsel %vm1243_vm8, %v10315_v19, %v10319_v21  ;;  %v1251_v30 = vsel %vm1243_vm8, %v10320_v25, %v10316_v10  ;;  %v10326_v10 = vld [vmem:[#allocation8_spill] sm:$0xff]  ;;  %10332 = vst [vmem:[#allocation121_spill] sm:$0xff] %v6853_v46 }
 0x2ef   : > { %v1216_v55 = vmul.f32 %v10321_v4, %v1200_v38  ;;  %v1197_v3 = vsel %vm10312_vm2, %v1181_v15, 0.0  ;;  %v1195_v13 = vsel %vm10314_vm11, %v1185_v42, 0.0  ;;  %v1245_v18 = vsel %vm1243_vm8, %v10319_v21, %v10320_v25  ;;  %v10328_v25 = vld [vmem:[#allocation6_spill] sm:$0xff]  ;;  %1980 = vrot.lane.b32.xlu1 %v5617_v48, %s4607_s6 }
 0x2f0   : > { %v1217_v63 = vmul.f32 %v10321_v4, %v1201_v57  ;;  %v1215_v29 = vmul.f32 %v10321_v4, %v1199_v54  ;;  %v1198_v38 = vsel %vm10318_vm6, %v1179_v22, 0.0  ;;  %vm10323_vm1 = vnez %v10322_v6 }
 0x2f1   : > { %v1265_v15 = vsel %vm10323_vm1, %v1249_v53, 0.0  ;;  %v1218_v42 = vmul.f32 %v10321_v4, %v1202_v58  ;;  %v1212_v19 = vmul.f32 %v10325_v44, %v1196_v2  ;;  %vm10327_vm14 = vnez %v10326_v10  ;;  %v10333_v4 = vld [vmem:[#allocation113_spill] sm:$0xff] }
 0x2f2   : > { %v1266_v21 = vsel %vm10327_vm14, %v1247_v31, 0.0  ;;  %vm10329_vm9 = vcmp.ge.s32.totalorder %v10328_v25, 0  ;;  %v1158_v50 = vadd.f32 %v1150_v24, %v1093_v16  ;;  %v1213_v54 = vmul.f32 %v10325_v44, %v1197_v3  ;;  %v10335_v3 = vld [vmem:[#allocation175_spill] sm:$0xff]  ;;  %v10344_v25 = vld [vmem:[#allocation12_spill] sm:$0xff] }
 0x2f3   : > { %v1264_v57 = vsel %vm10329_vm9, %v1251_v30, 0.0  ;;  %v1211_v22 = vmul.f32 %v10325_v44, %v1195_v13  ;;  %vm10331_vm12 = vnez %v10330_v33  ;;  %v1224_v61 = vadd.f32 %v1216_v55, %v1159_v27  ;;  %v10334_v30 = vld [vmem:[#allocation186_spill] sm:$0xff]  ;;  %vm10341_vm3 = vmmov %vm10329_vm9  ;;  %2142 = vperm.xlu1 %4435, %v10292_v8  }
 0x2f4   : > { %v1267_v53 = vsel %vm10331_vm12, %v1245_v18, 0.0  ;;  %v1161_v58 = vadd.f32 %v1153_v59, %v1096_v56  ;;  %v1214_v2 = vmul.f32 %v10325_v44, %v1198_v38  ;;  %v1281_v40 = vmul.f32 %v10333_v4, %v1265_v15  ;;  %v10337_v38 = vld [vmem:[#allocation190_spill] sm:$0xff]  ;;  %v10338_v44 = vld [vmem:[#allocation179_spill] sm:$0xff] }
 0x2f5   : > { %v1225_v31 = vadd.f32 %v1217_v63, %v1160_v39  ;;  %v1282_v24 = vmul.f32 %v10333_v4, %v1266_v21  ;;  %v1280_v16 = vmul.f32 %v10333_v4, %v1264_v57  ;;  %v1250_v13 = vsel %vm1243_vm8, %v10335_v3, %v10334_v30  ;;  %v10336_v63 = vld [vmem:[#allocation177_spill] sm:$0xff]  ;;  %v10346_v8 = vld [vmem:[#allocation10_spill] sm:$0xff] }
 0x2f6   : > { %v1223_v18 = vadd.f32 %v1215_v29, %v1158_v50  ;;  %v1226_v27 = vadd.f32 %v1218_v42, %v1161_v58  ;;  %v1220_v59 = vadd.f32 %v1212_v19, %v6411_v47  ;;  %v1283_v56 = vmul.f32 %v10333_v4, %v1267_v53  ;;  %v6880_v47 = vpop.permute.xlu0 %1706  ;;  %v6882_v29 = vpop.permute.xlu1 %1576 }
 0x2f7   : > { %v6868_v55 = vadd.f32 %v1213_v54, %v6423_v28  ;;  %v1219_v39 = vadd.f32 %v1211_v22, %v6456_v26  ;;  %v1314_v15 = vsel %vm9575_vm15, %v10337_v38, %v10336_v63  ;;  %v1316_v50 = vsel %vm9575_vm15, %v10338_v44, %v10337_v38  ;;  %10339 = vst [vmem:[#allocation150_spill] sm:$0xff] %v6880_v47  ;;  %v10340_v26 = vld [vmem:[#allocation173_spill] sm:$0xff]  ;;  %v10342_v22 = vld [vmem:[#allocation188_spill] sm:$0xff]  ;;  %v10350_v38 = vld [vmem:[#allocation198_spill] sm:$0xff] }
 0x2f8   : > { %vm9574_vm13 = vcmp.lt.s32.totalorder %v4710_v1, 127  ;;  %v1222_v28 = vadd.f32 %v1214_v2, %v6746_v52  ;;  %v1289_v42 = vadd.f32 %v1281_v40, %v1224_v61  ;;  %v1248_v19 = vsel %vm1243_vm8, %v10334_v30, %v10340_v26  ;;  %v10343_v40 = vld [vmem:[#allocation184_spill] sm:$0xff]  ;;  %1966 = vrot.lane.b32.xlu1 %v5444_v9, %s4607_s6 }
 0x2f9   : > { %v1260_v21 = vsel %vm10341_vm3, %v1250_v13, 0.0  ;;  %v1290_v57 = vadd.f32 %v1282_v24, %v1225_v31  ;;  %v1288_v54 = vadd.f32 %v1280_v16, %v1223_v18  ;;  %v1244_v53 = vsel %vm1243_vm8, %v10342_v22, %v10335_v3  ;;  %v10348_v16 = vld [vmem:[#allocation163_spill] sm:$0xff]  ;;  %v10349_v3 = vld [vmem:[#allocation192_spill] sm:$0xff] }
 0x2fa   : > { %v1246_v61 = vsel %vm1243_vm8, %v10340_v26, %v10342_v22  ;;  %v1291_v52 = vadd.f32 %v1283_v56, %v1226_v27  ;;  %v1369_v58 = vmul.f32 %v10343_v40, %v5520_v20  ;;  %vm10345_vm7 = vcmp.ge.s32.totalorder %v10344_v25, 0  ;;  %v6915_v18 = vpop.permute.xlu1 %1584  ;;  %v6941_v22 = vpop.permute.xlu0 %1714 }
 0x2fb   : > { %v1329_v2 = vsel %vm10345_vm7, %v1316_v50, 0.0  ;;  %vm10347_vm2 = vnez %v10346_v8  ;;  %v1370_v31 = vmul.f32 %v10343_v40, %v5606_v37  ;;  %v1261_v24 = vsel %vm10323_vm1, %v1248_v19, 0.0  ;;  %v10353_v19 = vld [vmem:[#allocation183_spill] sm:$0xff]  ;;  %10355 = vst [vmem:[#allocation125_spill] sm:$0xff] %v6941_v22  ;;  %vm10360_vm6 = vmmov %vm10345_vm7 }
 0x2fc   : > { %v1330_v4 = vsel %vm10347_vm2, %v1314_v15, 0.0  ;;  %v1276_v30 = vmul.f32 %v10348_v16, %v1260_v21  ;;  %v1312_v13 = vsel %vm9575_vm15, %v10336_v63, %v10349_v3  ;;  %v1262_v27 = vsel %vm10327_vm14, %v1246_v61, 0.0  ;;  %v10351_v15 = vld [vmem:[#allocation196_spill] sm:$0xff]  ;;  %v10352_v63 = vld [vmem:[#allocation174_spill] sm:$0xff]  ;;  %1974 = vrot.lane.b32.xlu1 %v5446_v41, %s4607_s6 }
 0x2fd   : > { %v1263_v56 = vsel %vm10331_vm12, %v1244_v53, 0.0  ;;  %v1310_v6 = vsel %vm9575_vm15, %v10349_v3, %v10338_v44  ;;  %v1313_v50 = vsel %vm9575_vm15, %v10351_v15, %v10350_v38  ;;  %v1345_v26 = vmul.f32 %v10352_v63, %v1329_v2  ;;  %v10354_v21 = vld [vmem:[#allocation200_spill] sm:$0xff]  ;;  %v10356_v2 = vld [vmem:[#allocation11_spill] sm:$0xff] }
 0x2fe   : > { %v1346_v10 = vmul.f32 %v10352_v63, %v1330_v4  ;;  %v1311_v33 = vsel %vm9575_vm15, %v10350_v38, %v10353_v19  ;;  %v1315_v44 = vsel %vm9575_vm15, %v10354_v21, %v10351_v15  ;;  %v1371_v53 = vmul.f32 %v10343_v40, %v5531_v62  ;;  %v10358_v15 = vld [vmem:[#allocation13_spill] sm:$0xff]  ;;  %v6958_v17 = vpop.permute.xlu1 %1643 }
 0x2ff   : > { %v1277_v61 = vmul.f32 %v10348_v16, %v1261_v24  ;;  %vm10357_vm8 = vnez %v10356_v2  ;;  %v1309_v3 = vsel %vm9575_vm15, %v10353_v19, %v10354_v21  ;;  %v1372_v38 = vmul.f32 %v10343_v40, %v5617_v48  ;;  %v10362_v21 = vld [vmem:[#allocation204_spill] sm:$0xff] }
 0x300   : > { %v1331_v4 = vsel %vm10357_vm8, %v1312_v13, 0.0  ;;  %v1284_v12 = vadd.f32 %v1276_v30, %v1219_v39  ;;  %vm10359_vm11 = vnez %v10358_v15  ;;  %v1326_v47 = vsel %vm10347_vm2, %v1313_v50, 0.0  ;;  %2033 = vrot.lane.b32.xlu1 %v5520_v20, %s4609_s11  ;;  %v10366_v15 = vld [vmem:[#allocation18_spill] sm:$0xff] }
 0x301   : > { %v1332_v22 = vsel %vm10359_vm11, %v1310_v6, 0.0  ;;  %v1278_v24 = vmul.f32 %v10348_v16, %v1262_v27  ;;  %v1279_v13 = vmul.f32 %v10348_v16, %v1263_v56  ;;  %v1327_v46 = vsel %vm10357_vm8, %v1311_v33, 0.0  ;;  %v10361_v16 = vld [vmem:[#allocation172_spill] sm:$0xff]  ;;  %v10363_v33 = vld [vmem:[#allocation187_spill] sm:$0xff] }
 0x302   : > { %v1325_v19 = vsel %vm10360_vm6, %v1315_v44, 0.0  ;;  %v1353_v39 = vadd.f32 %v1345_v26, %v1288_v54  ;;  %v1354_v40 = vadd.f32 %v1346_v10, %v1289_v42  ;;  %v1347_v30 = vmul.f32 %v10352_v63, %v1331_v4  ;;  %v10364_v26 = vld [vmem:[#allocation189_spill] sm:$0xff]  ;;  %v10365_v10 = vld [vmem:[#allocation206_spill] sm:$0xff] }
 0x303   : > { %v1328_v6 = vsel %vm10359_vm11, %v1309_v3, 0.0  ;;  %v1285_v50 = vadd.f32 %v1277_v61, %v1220_v59  ;;  %v1348_v27 = vmul.f32 %v10352_v63, %v1332_v22  ;;  %v1342_v56 = vmul.f32 %v10361_v16, %v1326_v47  ;;  %v6988_v63 = vpop.permute.xlu0 %1773  ;;  %v6990_v22 = vpop.permute.xlu1 %1651 }
 0x304   : > { %v1403_v44 = vsel %vm9574_vm13, %v10363_v33, %v10362_v21  ;;  %vm1462_vm1 = vcmp.lt.s32.totalorder %v4710_v1, 126  ;;  %v1343_v54 = vmul.f32 %v10361_v16, %v1327_v46  ;;  %v1341_v42 = vmul.f32 %v10361_v16, %v1325_v19  ;;  %2041 = vrot.lane.b32.xlu1 %v5531_v62, %s4609_s11  ;;  %v10378_v62 = vld [vmem:[#allocation195_spill] sm:$0xff] }
 0x305   : > { %v1401_v59 = vsel %vm9574_vm13, %v10362_v21, %v10364_v26  ;;  %v1399_v47 = vsel %vm9574_vm13, %v10364_v26, %v10365_v10  ;;  %v1286_v61 = vadd.f32 %v1278_v24, %v6868_v55  ;;  %v1287_v4 = vadd.f32 %v1279_v13, %v1222_v28  ;;  %v10368_v55 = vld [vmem:[#allocation14_spill] sm:$0xff]  ;;  %v10370_v24 = vld [vmem:[#allocation15_spill] sm:$0xff] }
 0x306   : > { %v1344_v46 = vmul.f32 %v10361_v16, %v1328_v6  ;;  %v1405_v3 = vsel %vm9574_vm13, %v10365_v10, %v10363_v33  ;;  %v1355_v19 = vadd.f32 %v1347_v30, %v1290_v57  ;;  %v1377_v21 = vadd.f32 %v1369_v58, %v1353_v39  ;;  %v10372_v6 = vld [vmem:[#allocation194_spill] sm:$0xff]  ;;  %v10373_v58 = vld [vmem:[#allocation16_spill] sm:$0xff]  ;;  %v10375_v30 = vld [vmem:[#allocation181_spill] sm:$0xff] }
 0x307   : > { %v1378_v26 = vadd.f32 %v1370_v31, %v1354_v40  ;;  %vm10367_vm14 = vcmp.lt.s32.totalorder %v10366_v15, 16  ;;  %v1356_v8 = vadd.f32 %v1348_v27, %v1291_v52  ;;  %v1350_v25 = vadd.f32 %v1342_v56, %v1285_v50  ;;  %v7011_v39 = vpop.permute.xlu1 %1748  ;;  %v10376_v27 = vld [vmem:[#allocation193_spill] sm:$0xff]  ;;  %v10377_v56 = vld [vmem:[#allocation122_spill] sm:$0xff] }
 0x308   : > { %v1418_v2 = vsel %vm10367_vm14, %v1403_v44, 0.0  ;;  %vm10369_vm9 = vnez %v10368_v55  ;;  %vm10371_vm12 = vnez %v10370_v24  ;;  %vm1527_vm3 = vcmp.lt.s32.totalorder %v4710_v1, 114  ;;  %vm10379_vm6 = vmmov %vm10367_vm14  ;;  %2138 = vperm.xlu1 %4435, %v6352_v32  }
 0x309   : > { %v1419_v28 = vsel %vm10369_vm9, %v1401_v59, 0.0  ;;  %v1420_v13 = vsel %vm10371_vm12, %v1399_v47, 0.0  ;;  %v1365_v16 = vmul.f32 %v10372_v6, %v5444_v9  ;;  %v1351_v20 = vadd.f32 %v1343_v54, %v1286_v61  ;;  %v7028_v59 = vpop.permute.xlu0 %1781 }
 0x30a   : > { %v1349_v57 = vadd.f32 %v1341_v42, %v1284_v12  ;;  %vm10374_vm7 = vnez %v10373_v58  ;;  %v1366_v52 = vmul.f32 %v10372_v6, %v5476_v11  ;;  %v1352_v40 = vadd.f32 %v1344_v46, %v1287_v4 }
 0x30b   : > { %v1421_v31 = vsel %vm10374_vm7, %v1405_v3, 0.0  ;;  %v1434_v50 = vmul.f32 %v10375_v30, %v1418_v2  ;;  %v1402_v33 = vsel %vm9574_vm13, %v10377_v56, %v10376_v27  ;;  %v1367_v12 = vmul.f32 %v10372_v6, %v5446_v41 }
 0x30c   : > { %v1368_v44 = vmul.f32 %v10372_v6, %v5482_v45  ;;  %v1435_v54 = vmul.f32 %v10375_v30, %v1419_v28  ;;  %v1436_v42 = vmul.f32 %v10375_v30, %v1420_v13  ;;  %v1379_v2 = vadd.f32 %v1371_v53, %v1355_v19  ;;  %v7037_v28 = vpop.permute.xlu1 %1641  ;;  %v10380_v53 = vld [vmem:[#allocation116_spill] sm:$0xff]  ;;  %2035 = vrot.lane.b32.xlu1 %v5476_v11, %s4609_s11 }
 0x30d   : > { %v1380_v10 = vadd.f32 %v1372_v38, %v1356_v8  ;;  %v1437_v47 = vmul.f32 %v10375_v30, %v1421_v31  ;;  %v1374_v61 = vadd.f32 %v1366_v52, %v1350_v25  ;;  %v1373_v4 = vadd.f32 %v1365_v16, %v1349_v57  ;;  %v10381_v16 = vld [vmem:[#allocation197_spill] sm:$0xff]  ;;  %v10383_v57 = vld [vmem:[#allocation199_spill] sm:$0xff] }
 0x30e   : > { %v1404_v41 = vsel %vm9574_vm13, %v10378_v62, %v10377_v56  ;;  %v1414_v46 = vsel %vm10379_vm6, %v1402_v33, 0.0  ;;  %v1375_v3 = vadd.f32 %v1367_v12, %v1351_v20  ;;  %v1442_v13 = vadd.f32 %v1434_v50, %v1377_v21  ;;  %v10382_v20 = vld [vmem:[#allocation115_spill] sm:$0xff]  ;;  %v10384_v30 = vld [vmem:[#allocation185_spill] sm:$0xff]  ;;  %v7075_v12 = vpop.permute.xlu0 %1878 }
 0x30f   : > { %v1376_v6 = vadd.f32 %v1368_v44, %v1352_v40  ;;  %v1398_v8 = vsel %vm9574_vm13, %v10380_v53, %v10378_v62  ;;  %v1400_v25 = vsel %vm9574_vm13, %v10376_v27, %v10380_v53  ;;  %v1443_v38 = vadd.f32 %v1435_v54, %v1378_v26  ;;  %v10385_v54 = vld [vmem:[#allocation27_spill] sm:$0xff] }
 0x310   : > { %v1444_v19 = vadd.f32 %v1436_v42, %v1379_v2  ;;  %v1468_v21 = vsel %vm1462_vm1, %v10382_v20, %v10381_v16  ;;  %v1470_v31 = vsel %vm1462_vm1, %v10383_v57, %v10382_v20  ;;  %v1445_v52 = vadd.f32 %v1437_v47, %v1380_v10  ;;  %v7077_v44 = vpop.permute.xlu1 %1645  ;;  %v10387_v2 = vld [vmem:[#allocation24_spill] sm:$0xff]  ;;  %v10389_v47 = vld [vmem:[#allocation203_spill] sm:$0xff]  ;;  %2043 = vrot.lane.b32.xlu1 %v5482_v45, %s4609_s11 }
 0x311   : > { %v1417_v40 = vsel %vm10374_vm7, %v1404_v41, 0.0  ;;  %v1430_v50 = vmul.f32 %v10384_v30, %v1414_v46  ;;  %v1466_v32 = vsel %vm1462_vm1, %v10381_v16, %v6368_v34  ;;  %v1415_v26 = vsel %vm10369_vm9, %v1400_v25, 0.0  ;;  %v10390_v46 = vld [vmem:[#allocation20_spill] sm:$0xff] }
 0x312   : > { %v1416_v27 = vsel %vm10371_vm12, %v1398_v8, 0.0  ;;  %v1464_v56 = vsel %vm1462_vm1, %v6368_v34, %v10383_v57  ;;  %v1467_v33 = vsel %vm1462_vm1, %v6451_v23, %v6496_v0  ;;  %vm10386_vm14 = vcmp.lt.s32.totalorder %v10385_v54, 16 }
 0x313   : > { %v1483_v42 = vsel %vm10386_vm14, %v1468_v21, 0.0  ;;  %vm10388_vm6 = vnez %v10387_v2  ;;  %v1465_v34 = vsel %vm1462_vm1, %v6496_v0, %v10389_v47  ;;  %v1463_v62 = vsel %vm1462_vm1, %v10389_v47, %v6538_v14  ;;  %v10392_v0 = vld [vmem:[#allocation205_spill] sm:$0xff]  ;;  %v10393_v21 = vld [vmem:[#allocation22_spill] sm:$0xff] }
 0x314   : > { %v1486_v10 = vsel %vm10388_vm6, %v1470_v31, 0.0  ;;  %v1433_v41 = vmul.f32 %v10384_v30, %v1417_v40  ;;  %vm10391_vm14 = vnez %v10390_v46  ;;  %v1469_v8 = vsel %vm1462_vm1, %v6538_v14, %v6451_v23  ;;  %v10396_v40 = vld [vmem:[#allocation202_spill] sm:$0xff]  ;;  %v7117_v58 = vpop.permute.xlu1 %1653  ;;  %2102 = vrot.lane.b32.xlu1 %v5606_v37, %s4610_s12 }
 0x315   : > { %v1484_v53 = vsel %vm10391_vm14, %v1466_v32, 0.0  ;;  %v1533_v25 = vsel %vm1527_vm3, %v10392_v0, %v6578_v35  ;;  %v1431_v16 = vmul.f32 %v10384_v30, %v1415_v26  ;;  %v1432_v20 = vmul.f32 %v10384_v30, %v1416_v27  ;;  %v10397_v27 = vld [vmem:[#allocation207_spill] sm:$0xff] }
 0x316   : > { %vm10394_vm15 = vnez %v10393_v21  ;;  %vm10395_vm5 = vcmp.lt.s32.totalorder %v10385_v54, 16  ;;  %v1499_v32 = vmul.f32 %v10396_v40, %v1483_v42  ;;  %v1502_v23 = vmul.f32 %v10396_v40, %v1486_v10 }
 0x317   : > { %v1485_v57 = vsel %vm10394_vm15, %v1464_v56, 0.0  ;;  %v1479_v31 = vsel %vm10395_vm5, %v1467_v33, 0.0  ;;  %v1480_v14 = vsel %vm10391_vm14, %v1465_v34, 0.0  ;;  %v1481_v47 = vsel %vm10394_vm15, %v1463_v62, 0.0  ;;  %v10398_v33 = vld [vmem:[#allocation62_spill] sm:$0xff]  ;;  %v10400_v62 = vld [vmem:[#allocation191_spill] sm:$0xff] }
 0x318   : > { %v1500_v30 = vmul.f32 %v10396_v40, %v1484_v53  ;;  %v1482_v26 = vsel %vm10388_vm6, %v1469_v8, 0.0  ;;  %v1531_v56 = vsel %vm1527_vm3, %v6578_v35, %v10397_v27  ;;  %vm10399_vm5 = vnez %v10398_v33  ;;  %v7132_v53 = vpop.permute.xlu0 %1775  ;;  %2110 = vrot.lane.b32.xlu1 %v5617_v48, %s4610_s12  ;;  %v10412_v33 = vld [vmem:[#allocation120_spill] sm:$0xff] }
 0x319   : > { %v1548_v54 = vsel %vm10399_vm5, %v1533_v25, 0.0  ;;  %v1438_v42 = vadd.f32 %v1430_v50, %v1373_v4  ;;  %v1441_v10 = vadd.f32 %v1433_v41, %v1376_v6  ;;  %v1501_v34 = vmul.f32 %v10396_v40, %v1485_v57  ;;  %v10401_v4 = vld [vmem:[#allocation63_spill] sm:$0xff]  ;;  %v10403_v50 = vld [vmem:[#allocation208_spill] sm:$0xff] }
 0x31a   : > { %v1495_v46 = vmul.f32 %v10400_v62, %v1479_v31  ;;  %v1439_v2 = vadd.f32 %v1431_v16, %v1374_v61  ;;  %v1496_v8 = vmul.f32 %v10400_v62, %v1480_v14  ;;  %v1497_v21 = vmul.f32 %v10400_v62, %v1481_v47  ;;  %v7148_v16 = vpop.permute.xlu1 %1712 }
 0x31b   : > { %v1529_v35 = vsel %vm1527_vm3, %v10397_v27, %v6624_v5  ;;  %v1498_v25 = vmul.f32 %v10400_v62, %v1482_v26  ;;  %vm10402_vm15 = vnez %v10401_v4  ;;  %v1564_v41 = vmul.f32 %v10403_v50, %v1548_v54  ;;  %v10404_v27 = vld [vmem:[#allocation64_spill] sm:$0xff]  ;;  %v10416_v4 = vld [vmem:[#allocation130_spill] sm:$0xff] }
 0x31c   : > { %v1549_v6 = vsel %vm10402_vm15, %v1531_v56, 0.0  ;;  %v1535_v61 = vsel %vm1527_vm3, %v6624_v5, %v10392_v0  ;;  %v1440_v57 = vadd.f32 %v1432_v20, %v1375_v3  ;;  %v1507_v31 = vadd.f32 %v1499_v32, %v1442_v13  ;;  %v10406_v54 = vld [vmem:[#allocation124_spill] sm:$0xff]  ;;  %v10407_v13 = vld [vmem:[#allocation65_spill] sm:$0xff]  ;;  %2096 = vrot.lane.b32.xlu1 %v5444_v9, %s4610_s12 }
 0x31d   : > { %v1510_v40 = vadd.f32 %v1502_v23, %v1445_v52  ;;  %v1508_v14 = vadd.f32 %v1500_v30, %v1443_v38  ;;  %v1509_v47 = vadd.f32 %v1501_v34, %v1444_v19  ;;  %v1503_v26 = vadd.f32 %v1495_v46, %v1438_v42  ;;  %v10409_v38 = vld [vmem:[#allocation126_spill] sm:$0xff]  ;;  %v7171_v23 = vpop.permute.xlu0 %1783 }
 0x31e   : > { %vm10405_vm1 = vnez %v10404_v27  ;;  %v1532_v62 = vsel %vm1527_vm3, %v10406_v54, %v6706_v43  ;;  %vm9577_vm6 = vcmp.lt.s32.totalorder %v4710_v1, 112  ;;  %v1504_v5 = vadd.f32 %v1496_v8, %v1439_v2  ;;  %v7173_v30 = vpop.permute.xlu1 %1720 }
 0x31f   : > { %v1550_v56 = vsel %vm10405_vm1, %v1529_v35, 0.0  ;;  %v1565_v3 = vmul.f32 %v10403_v50, %v1549_v6  ;;  %vm10408_vm13 = vnez %v10407_v13  ;;  %v1530_v19 = vsel %vm1527_vm3, %v6706_v43, %v10409_v38 }
 0x320   : > { %v1551_v37 = vsel %vm10408_vm13, %v1535_v61, 0.0  ;;  %v1505_v52 = vadd.f32 %v1497_v21, %v1440_v57  ;;  %v1506_v0 = vadd.f32 %v1498_v25, %v1441_v10  ;;  %v1572_v20 = vadd.f32 %v1564_v41, %v1507_v31  ;;  %v10410_v10 = vld [vmem:[#allocation128_spill] sm:$0xff]  ;;  %v10419_v61 = vld [vmem:[#allocation66_spill] sm:$0xff]  ;;  %v10421_v31 = vld [vmem:[#allocation119_spill] sm:$0xff]  ;;  %2100 = vrot.lane.b32.xlu1 %v5476_v11, %s4610_s12 }
 0x321   : > { %v1528_v32 = vsel %vm1527_vm3, %v10409_v38, %v6735_v7  ;;  %v1566_v42 = vmul.f32 %v10403_v50, %v1550_v56  ;;  %v1544_v34 = vsel %vm10399_vm5, %v1532_v62, 0.0  ;;  %v1534_v43 = vsel %vm1527_vm3, %v6735_v7, %v10406_v54  ;;  %v10423_v54 = vld [vmem:[#allocation68_spill] sm:$0xff] }
 0x322   : > { %vm10411_vm14 = vcmp.lt.s32.totalorder %v4710_v1, 113  ;;  %v1567_v2 = vmul.f32 %v10403_v50, %v1551_v37  ;;  %v1545_v8 = vsel %vm10402_vm15, %v1530_v19, 0.0  ;;  %v1573_v35 = vadd.f32 %v1565_v3, %v1508_v14  ;;  %v7218_v27 = vpop.permute.xlu1 %1882  ;;  %v10425_v3 = vld [vmem:[#allocation70_spill] sm:$0xff]  ;;  %v10427_v19 = vld [vmem:[#allocation72_spill] sm:$0xff] }
 0x323   : > { %v1598_v46 = vsel %vm10411_vm14, %v10410_v10, %v6762_v60  ;;  %vm10413_vm5 = vmmov %vm10411_vm14  ;;  %v1546_v25 = vsel %vm10405_vm1, %v1528_v32, 0.0  ;;  %v1547_v41 = vsel %vm10408_vm13, %v1534_v43, 0.0  ;;  %vm10428_vm13 = vnez %v10427_v19  ;;  %v7232_v32 = vpop.permute.xlu0 %1842 }
 0x324   : > { %v1596_v21 = vsel %vm10413_vm5, %v6762_v60, %v10412_v33  ;;  %vm10414_vm3 = vmmov %vm10413_vm5  ;;  %v10418_v60 = vld [vmem:[#allocation105_spill] sm:$0xff]  ;;  %vm10420_vm5 = vnez %v10419_v61  ;;  %v1575_v37 = vadd.f32 %v1567_v2, %v1510_v40  ;;  %2108 = vrot.lane.b32.xlu1 %v5482_v45, %s4610_s12  ;;  %vm10515_vm7 = vcmp.lt.s32.totalorder %v4710_v1, 95 }
 0x325   : > { %v1594_v7 = vsel %vm10414_vm3, %v10412_v33, %v6810_v51  ;;  %vm10415_vm14 = vmmov %vm10414_vm3  ;;  %v1560_v50 = vmul.f32 %v10418_v60, %v1544_v34  ;;  %v1613_v57 = vsel %vm10420_vm5, %v1598_v46, 0.0  ;;  %v1561_v56 = vmul.f32 %v10418_v60, %v1545_v8  ;;  %v10429_v34 = vld [vmem:[#allocation201_spill] sm:$0xff] }
 0x326   : > { %v1600_v48 = vsel %vm10415_vm14, %v6810_v51, %v10410_v10  ;;  %vm10417_vm15 = vmmov %vm10414_vm3  ;;  %v1574_v51 = vadd.f32 %v1566_v42, %v1509_v47  ;;  %vm10426_vm14 = vnez %v10425_v3  ;;  %v1562_v38 = vmul.f32 %v10418_v60, %v1546_v25  ;;  %v10430_v40 = vld [vmem:[#allocation117_spill] sm:$0xff] }
 0x327   : > { %v1597_v6 = vsel %vm10417_vm15, %v6882_v29, %v10416_v4  ;;  %vm10422_vm1 = vmmov %vm10414_vm3  ;;  %vm10424_vm3 = vnez %v10423_v54  ;;  %v1615_v13 = vsel %vm10426_vm14, %v1594_v7, 0.0  ;;  %vm9578_vm15 = vcmp.lt.s32.totalorder %v4710_v1, 110 }
 0x328   : > { %v1599_v14 = vsel %vm10422_vm1, %v10421_v31, %v6882_v29  ;;  %v1614_v62 = vsel %vm10424_vm3, %v1596_v21, 0.0  ;;  %v1616_v29 = vsel %vm10428_vm13, %v1600_v48, 0.0  ;;  %v1609_v47 = vsel %vm10420_vm5, %v1597_v6, 0.0  ;;  %vm10431_vm5 = vmmov %vm10422_vm1  ;;  %v7249_v21 = vpop.permute.xlu1 %1710  ;;  %v10432_v48 = vld [vmem:[#allocation114_spill] sm:$0xff] }
 0x329   : > { %v1563_v42 = vmul.f32 %v10418_v60, %v1547_v41  ;;  %v1629_v43 = vmul.f32 %v10429_v34, %v1613_v57  ;;  %v1612_v9 = vsel %vm10428_vm13, %v1599_v14, 0.0  ;;  %v1661_v10 = vsel %vm9577_vm6, %v10430_v40, %v6990_v22  ;;  %vm10434_vm13 = vmmov %vm10431_vm5  ;;  %v10436_v41 = vld [vmem:[#allocation49_spill] sm:$0xff] }
 0x32a   : > { %v1568_v46 = vadd.f32 %v1560_v50, %v1503_v26  ;;  %v1630_v2 = vmul.f32 %v10429_v34, %v1614_v62  ;;  %v1631_v8 = vmul.f32 %v10429_v34, %v1615_v13  ;;  %v1595_v33 = vsel %vm10431_vm5, %v10416_v4, %v6915_v18  ;;  %v10435_v4 = vld [vmem:[#allocation132_spill] sm:$0xff] }
 0x32b   : > { %v7251_v7 = vadd.f32 %v1561_v56, %v1504_v5  ;;  %v1632_v25 = vmul.f32 %v10429_v34, %v1616_v29  ;;  %v1625_v6 = vmul.f32 %v10432_v48, %v1609_v47  ;;  %vm10433_vm1 = vcmp.lt.s32.totalorder %v4710_v1, 111  ;;  %v10443_v34 = vld [vmem:[#allocation47_spill] sm:$0xff] }
 0x32c   : > { %v1726_v26 = vsel %vm10433_vm1, %v7148_v16, %v6772_v49  ;;  %v1628_v60 = vmul.f32 %v10432_v48, %v1612_v9  ;;  %v1593_v5 = vsel %vm10434_vm13, %v6915_v18, %v10421_v31  ;;  %v1659_v50 = vsel %vm9577_vm6, %v6990_v22, %v10435_v4  ;;  %v7282_v31 = vpop.permute.xlu0 %1850  ;;  %v10438_v22 = vld [vmem:[#allocation75_spill] sm:$0xff]  ;;  %v10445_v9 = vld [vmem:[#allocation121_spill] sm:$0xff] }
 0x32d   : > { %vm10437_vm5 = vnez %v10436_v41  ;;  %v7272_v57 = vadd.f32 %v1562_v38, %v1505_v52  ;;  %v1571_v14 = vadd.f32 %v1563_v42, %v1506_v0  ;;  %v7274_v56 = vadd.f32 %v1629_v43, %v1572_v20  ;;  %v1719_v52 = vpop.permute.xlu1 %1718  ;;  %v10440_v20 = vld [vmem:[#allocation51_spill] sm:$0xff] }
 0x32e   : > { %v1679_v61 = vsel %vm10437_vm5, %v1661_v10, 0.0  ;;  %v1610_v11 = vsel %vm10424_vm3, %v1595_v33, 0.0  ;;  %v1638_v62 = vadd.f32 %v1630_v2, %v1573_v35  ;;  %v1639_v13 = vadd.f32 %v1631_v8, %v1574_v51  ;;  %v10446_v10 = vld [vmem:[#allocation111_spill] sm:$0xff] }
 0x32f   : > { %v1663_v18 = vsel %vm9577_vm6, %v6958_v17, %v10430_v40  ;;  %vm10439_vm1 = vnez %v10438_v22  ;;  %v1611_v0 = vsel %vm10426_vm14, %v1593_v5, 0.0  ;;  %vm10441_vm13 = vnez %v10440_v20 }
 0x330   : > { %v1744_v19 = vsel %vm10439_vm1, %v1726_v26, 0.0  ;;  %v1680_v54 = vsel %vm10441_vm13, %v1659_v50, 0.0  ;;  %v1695_v35 = vmul.f32 %v6667_v36, %v1679_v61  ;;  %vm10442_vm3 = vcmp.lt.s32.totalorder %v4710_v1, 111  ;;  %v10451_v50 = vld [vmem:[#allocation79_spill] sm:$0xff] }
 0x331   : > { %v1724_v51 = vsel %vm10442_vm3, %v6772_v49, %v7173_v30  ;;  %v1640_v38 = vadd.f32 %v1632_v25, %v1575_v37  ;;  %v1633_v29 = vadd.f32 %v1625_v6, %v1568_v46  ;;  %v1636_v47 = vadd.f32 %v1628_v60, %v1571_v14  ;;  %v1778_v8 = vpop.permute.xlu1 %1777 }
 0x332   : > { %v1626_v42 = vmul.f32 %v10432_v48, %v1610_v11  ;;  %v1665_v3 = vsel %vm9577_vm6, %v10435_v4, %v6958_v17  ;;  %vm10444_vm14 = vnez %v10443_v34  ;;  %v1662_v49 = vsel %vm9577_vm6, %v7037_v28, %v7077_v44  ;;  %v10447_v17 = vld [vmem:[#allocation76_spill] sm:$0xff]  ;;  %v7333_v4 = vpop.permute.xlu0 %2012  ;;  %v10453_v11 = vld [vmem:[#allocation109_spill] sm:$0xff] }
 0x333   : > { %v1678_v43 = vsel %vm10444_vm14, %v1663_v18, 0.0  ;;  %v1760_v45 = vmul.f32 %v10445_v9, %v1744_v19  ;;  %v1627_v37 = vmul.f32 %v10432_v48, %v1611_v0  ;;  %v1696_v40 = vmul.f32 %v6667_v36, %v1680_v54  ;;  %v10454_v54 = vld [vmem:[#allocation150_spill] sm:$0xff] }
 0x334   : > { %v1660_v46 = vsel %vm9577_vm6, %v7077_v44, %v10446_v10  ;;  %vm10448_vm3 = vnez %v10447_v17  ;;  %v1703_v33 = vadd.f32 %v1695_v35, %v1638_v62  ;;  %v1658_v25 = vsel %vm9577_vm6, %v10446_v10, %v7117_v58  ;;  %v10449_v44 = vld [vmem:[#allocation53_spill] sm:$0xff] }
 0x335   : > { %v1745_v2 = vsel %vm10448_vm3, %v1724_v51, 0.0  ;;  %v1664_v48 = vsel %vm9577_vm6, %v7117_v58, %v7037_v28  ;;  %v1791_v6 = vsel %vm9578_vm15, %v1778_v8, %v7028_v59  ;;  %vm10450_vm10 = vnez %v10449_v44  ;;  %v1786_v51 = vpop.permute.xlu1 %1785 }
 0x336   : > { %v1681_v26 = vsel %vm10450_vm10, %v1665_v3, 0.0  ;;  %v1694_v60 = vmul.f32 %v6667_v36, %v1678_v43  ;;  %v1674_v5 = vsel %vm10444_vm14, %v1662_v49, 0.0  ;;  %vm10452_vm0 = vnez %v10451_v50 }
 0x337   : > { %v1809_v61 = vsel %vm10452_vm0, %v1791_v6, 0.0  ;;  %v1675_v58 = vsel %vm10437_vm5, %v1660_v46, 0.0  ;;  %v1768_v28 = vadd.f32 %v1760_v45, %v1703_v33  ;;  %v1761_v14 = vmul.f32 %v10445_v9, %v1745_v2  ;;  %v10460_v2 = vld [vmem:[#allocation80_spill] sm:$0xff] }
 0x338   : > { %v1825_v62 = vmul.f32 %v10453_v11, %v1809_v61  ;;  %v1704_v18 = vadd.f32 %v1696_v40, %v1639_v13  ;;  %v1676_v19 = vsel %vm10441_vm13, %v1658_v25, 0.0  ;;  %v1677_v0 = vsel %vm10450_vm10, %v1664_v48, 0.0  ;;  %v10459_v40 = vld [vmem:[#allocation106_spill] sm:$0xff]  ;;  %v7368_v61 = vpop.permute.xlu0 %1844 }
 0x339   : > { %vm10455_vm6 = vcmp.lt.s32.totalorder %v4710_v1, 111  ;;  %vm10457_vm5 = vcmp.lt.s32.totalorder %v4710_v1, 110  ;;  %v1697_v45 = vmul.f32 %v6667_v36, %v1681_v26  ;;  %v1690_v10 = vmul.f32 %v10459_v40, %v1674_v5  ;;  %v10463_v26 = vld [vmem:[#allocation74_spill] sm:$0xff] }
 0x33a   : > { %v1727_v35 = vsel %vm10455_vm6, %v10454_v54, %v7249_v21  ;;  %vm10456_vm15 = vmmov %vm10455_vm6  ;;  %v7352_v43 = vadd.f32 %v1825_v62, %v1768_v28  ;;  %v1789_v13 = vsel %vm10457_vm5, %v7028_v59, %v1786_v51  ;;  %v1691_v46 = vmul.f32 %v10459_v40, %v1675_v58  ;;  %v10462_v28 = vld [vmem:[#allocation125_spill] sm:$0xff] }
 0x33b   : > { %v1729_v3 = vsel %vm10456_vm15, %v1719_v52, %v10454_v54  ;;  %vm10458_vm13 = vmmov %vm10457_vm5  ;;  %vm10461_vm6 = vnez %v10460_v2  ;;  %v1692_v25 = vmul.f32 %v10459_v40, %v1676_v19  ;;  %v1693_v48 = vmul.f32 %v10459_v40, %v1677_v0  ;;  %v10466_v62 = vld [vmem:[#allocation77_spill] sm:$0xff]  ;;  %v10468_v54 = vld [vmem:[#allocation123_spill] sm:$0xff] }
 0x33c   : > { %v1795_v49 = vsel %vm10458_vm13, %v1786_v51, %v6988_v63  ;;  %v1810_v33 = vsel %vm10461_vm6, %v1789_v13, 0.0  ;;  %v1769_v6 = vadd.f32 %v1761_v14, %v1704_v18  ;;  %v1725_v36 = vsel %vm10456_vm15, %v7249_v21, %v10462_v28  ;;  %vm10465_vm13 = vmmov %vm10456_vm15  ;;  %v7381_v14 = vpop.permute.xlu1 %1947 }
 0x33d   : > { %v1826_v59 = vmul.f32 %v10453_v11, %v1810_v33  ;;  %vm10464_vm5 = vnez %v10463_v26  ;;  %v1723_v58 = vsel %vm10465_vm13, %v10462_v28, %v1719_v52  ;;  %vm10467_vm10 = vnez %v10466_v62  ;;  %vm10469_vm15 = vmmov %vm10465_vm13 }
 0x33e   : > { %v1739_v5 = vsel %vm10464_vm5, %v1727_v35, 0.0  ;;  %v1742_v19 = vsel %vm10467_vm10, %v1729_v3, 0.0  ;;  %v1634_v18 = vadd.f32 %v1626_v42, %v7251_v7  ;;  %v1635_v0 = vadd.f32 %v1627_v37, %v7272_v57 }
 0x33f   : > { %v1728_v21 = vsel %vm10469_vm15, %v10468_v54, %v7148_v16  ;;  %v7389_v51 = vadd.f32 %v1826_v59, %v1769_v6  ;;  %v1702_v35 = vadd.f32 %v1694_v60, %v7274_v56  ;;  %v1705_v13 = vadd.f32 %v1697_v45, %v1640_v38  ;;  %v10477_v6 = vld [vmem:[#allocation146_spill] sm:$0xff] }
 0x340   : > { %v1698_v52 = vadd.f32 %v1690_v10, %v1633_v29  ;;  %v1730_v3 = vsel %vm10465_vm13, %v7173_v30, %v10468_v54  ;;  %vm1852_vm14 = vcmp.lt.s32.totalorder %v4710_v1, 98  ;;  %v1740_v7 = vsel %vm10439_vm1, %v1725_v36, 0.0  ;;  %v1772_v60 = vpop.permute.xlu1 %1771 }
 0x341   : > { %v1755_v57 = vmul.f32 %v7011_v39, %v1739_v5  ;;  %v1741_v16 = vsel %vm10448_vm3, %v1723_v58, 0.0  ;;  %v1758_v42 = vmul.f32 %v7011_v39, %v1742_v19  ;;  %v1699_v56 = vadd.f32 %v1691_v46, %v1634_v18  ;;  %v10473_v46 = vld [vmem:[#allocation78_spill] sm:$0xff] }
 0x342   : > { %v1700_v38 = vadd.f32 %v1692_v25, %v1635_v0  ;;  %v1701_v29 = vadd.f32 %v1693_v48, %v1636_v47  ;;  %v1743_v37 = vsel %vm10464_vm5, %v1728_v21, 0.0  ;;  %v1746_v30 = vsel %vm10467_vm10, %v1730_v3, 0.0  ;;  %v7416_v47 = vpop.permute.xlu0 %1903  ;;  %v10475_v25 = vld [vmem:[#allocation81_spill] sm:$0xff] }
 0x343   : > { %vm10470_vm1 = vcmp.lt.s32.totalorder %v4710_v1, 110  ;;  %v1756_v40 = vmul.f32 %v7011_v39, %v1740_v7  ;;  %v1757_v10 = vmul.f32 %v7011_v39, %v1741_v16  ;;  %vm10474_vm10 = vnez %v10473_v46 }
 0x344   : > { %v1793_v22 = vsel %vm10470_vm1, %v6988_v63, %v1778_v8  ;;  %vm10471_vm15 = vmmov %vm10470_vm1  ;;  %vm10476_vm5 = vnez %v10475_v25  ;;  %v1763_v8 = vadd.f32 %v1755_v57, %v1698_v52  ;;  %v1766_v48 = vadd.f32 %v1758_v42, %v1701_v29  ;;  %v1780_v58 = vpop.permute.xlu1 %1779  ;;  %v10479_v29 = vld [vmem:[#allocation82_spill] sm:$0xff]  ;;  %v10483_v25 = vld [vmem:[#allocation83_spill] sm:$0xff] }
 0x345   : > { %v1792_v17 = vsel %vm10471_vm15, %v1772_v60, %v7132_v53  ;;  %vm10472_vm3 = vmmov %vm10470_vm1  ;;  %v1759_v36 = vmul.f32 %v10445_v9, %v1743_v37  ;;  %v1762_v26 = vmul.f32 %v10445_v9, %v1746_v30  ;;  %v1808_v5 = vsel %vm10474_vm10, %v1793_v22, 0.0  ;;  %v10481_v37 = vld [vmem:[#allocation85_spill] sm:$0xff] }
 0x346   : > { %v1794_v45 = vsel %vm10472_vm3, %v7171_v23, %v1772_v60  ;;  %v1804_v33 = vsel %vm10474_vm10, %v1792_v17, 0.0  ;;  %v1811_v39 = vsel %vm10476_vm5, %v1795_v49, 0.0  ;;  %vm10478_vm13 = vmmov %vm10470_vm1  ;;  %v1790_v0 = vsel %vm10470_vm1, %v7132_v53, %v1780_v58  ;;  %v1912_v42 = vpop.permute.xlu0 %1911 }
 0x347   : > { %v1807_v63 = vsel %vm10476_vm5, %v1794_v45, 0.0  ;;  %v1820_v59 = vmul.f32 %v10477_v6, %v1804_v33  ;;  %v1788_v18 = vsel %vm10478_vm13, %v1780_v58, %v7171_v23  ;;  %v1764_v54 = vadd.f32 %v1756_v40, %v1699_v56 }
 0x348   : > { %v1823_v28 = vmul.f32 %v10477_v6, %v1807_v63  ;;  %v1765_v21 = vadd.f32 %v1757_v10, %v1700_v38  ;;  %v1805_v9 = vsel %vm10452_vm0, %v1790_v0, 0.0  ;;  %v1806_v52 = vsel %vm10461_vm6, %v1788_v18, 0.0  ;;  %v1839_v53 = vpop.permute.xlu1 %1838 }
 0x349   : > { %v1828_v62 = vadd.f32 %v1820_v59, %v1763_v8  ;;  %v1824_v49 = vmul.f32 %v10453_v11, %v1808_v5  ;;  %v1827_v3 = vmul.f32 %v10453_v11, %v1811_v39  ;;  %v1821_v7 = vmul.f32 %v10477_v6, %v1805_v9  ;;  %v10485_v8 = vld [vmem:[#allocation84_spill] sm:$0xff] }
 0x34a   : > { %v1831_v19 = vadd.f32 %v1823_v28, %v1766_v48  ;;  %v1822_v23 = vmul.f32 %v10477_v6, %v1806_v52  ;;  %v1767_v57 = vadd.f32 %v1759_v36, %v1702_v35  ;;  %v1770_v16 = vadd.f32 %v1762_v26, %v1705_v13  ;;  %v7464_v33 = vpop.permute.xlu0 %2008 }
 0x34b   : > { %v1829_v56 = vadd.f32 %v1821_v7, %v1764_v54  ;;  %v1858_v50 = vsel %vm1852_vm14, %v1839_v53, %v7232_v32  ;;  %v1860_v2 = vsel %vm1852_vm14, %v7282_v31, %v1839_v53  ;;  %vm10480_vm0 = vnez %v10479_v29 }
 0x34c   : > { %v1830_v38 = vadd.f32 %v1822_v23, %v1765_v21  ;;  %v1873_v11 = vsel %vm10480_vm0, %v1858_v50, 0.0  ;;  %vm10482_vm6 = vnez %v10481_v37  ;;  %v1832_v35 = vadd.f32 %v1824_v49, %v1767_v57  ;;  %v1847_v17 = vpop.permute.xlu1 %1846 }
 0x34d   : > { %v1876_v60 = vsel %vm10482_vm6, %v1860_v2, 0.0  ;;  %v1835_v13 = vadd.f32 %v1827_v3, %v1770_v16  ;;  %v1889_v30 = vmul.f32 %v7218_v27, %v1873_v11  ;;  %v1854_v10 = vsel %vm1852_vm14, %v1847_v17, %v7282_v31  ;;  %v10487_v2 = vld [vmem:[#allocation86_spill] sm:$0xff]  ;;  %v10489_v11 = vld [vmem:[#allocation87_spill] sm:$0xff] }
 0x34e   : > { %v1892_v22 = vmul.f32 %v7218_v27, %v1876_v60  ;;  %v1856_v46 = vsel %vm1852_vm14, %v7232_v32, %v1847_v17  ;;  %vm10484_vm15 = vnez %v10483_v25  ;;  %vm10486_vm3 = vnez %v10485_v8  ;;  %v1902_v26 = vpop.permute.xlu0 %1901  ;;  %v10491_v17 = vld [vmem:[#allocation88_spill] sm:$0xff] }
 0x34f   : > { %v1897_v45 = vadd.f32 %v1889_v30, %v1832_v35  ;;  %v1874_v63 = vsel %vm10484_vm15, %v1856_v46, 0.0  ;;  %v1875_v48 = vsel %vm10486_vm3, %v1854_v10, 0.0  ;;  %vm1917_vm10 = vcmp.lt.s32.totalorder %v4710_v1, 97  ;;  %v10493_v46 = vld [vmem:[#allocation89_spill] sm:$0xff] }
 0x350   : > { %v1900_v40 = vadd.f32 %v1892_v22, %v1835_v13  ;;  %v1890_v6 = vmul.f32 %v7218_v27, %v1874_v63  ;;  %v1891_v59 = vmul.f32 %v7218_v27, %v1875_v48  ;;  %v7472_v28 = vpop.permute.xlu1 %1943  ;;  %vm10490_vm5 = vnez %v10489_v11  ;;  %v10497_v11 = vld [vmem:[#allocation71_spill] sm:$0xff] }
 0x351   : > { %vm10492_vm13 = vnez %v10491_v17  ;;  %vm10494_vm1 = vnez %v10493_v46  ;;  %v4612_v24 = vmov 27  }
 0x352   : > { %v1898_v31 = vadd.f32 %v1890_v6, %v7352_v43  ;;  %v1899_v36 = vadd.f32 %v1891_v59, %v7389_v51  ;;  %v1910_v18 = vpop.permute.xlu0 %1909  ;;  %4438 = vset.pattern.permute.xlu0 %v4612_v24  ;;  %4437 = vset.pattern.permute.xlu1 %v4612_v24 }
 0x354   : > { %v1837_v32 = vpop.permute.xlu1 %1836 }
 0x356   : > { %v7499_v57 = vpop.permute.xlu0 %1968 }
 0x358   : > { %v1841_v5 = vpop.permute.xlu1 %1840 }
 0x359   : > { %v1855_v39 = vsel %vm1852_vm14, %v1841_v5, %v7368_v61  ;;  %v1857_v58 = vsel %vm1852_vm14, %v1837_v32, %v1841_v5 }
 0x35a   : > { %v1869_v27 = vsel %vm10480_vm0, %v1857_v58, 0.0  ;;  %v1870_v0 = vsel %vm10484_vm15, %v1855_v39, 0.0  ;;  %v1977_v22 = vpop.permute.xlu0 %1976  ;;  %vm1982_vm0 = vcmp.lt.s32.totalorder %v4710_v1, 96  ;;  %vm10498_vm15 = vnez %v10497_v11 }
 0x35b   : > { %v1885_v43 = vmul.f32 %v7075_v12, %v1869_v27  ;;  %v1886_v51 = vmul.f32 %v7075_v12, %v1870_v0 }
 0x35c   : > { %v1849_v54 = vpop.permute.xlu1 %1848 }
 0x35d   : > { %v1893_v21 = vadd.f32 %v1885_v43, %v1828_v62  ;;  %v1894_v9 = vadd.f32 %v1886_v51, %v1829_v56  ;;  %v1853_v52 = vsel %vm1852_vm14, %v7368_v61, %v1849_v54  ;;  %v1859_v49 = vsel %vm1852_vm14, %v1849_v54, %v1837_v32 }
 0x35e   : > { %v1871_v3 = vsel %vm10486_vm3, %v1853_v52, 0.0  ;;  %v1872_v7 = vsel %vm10482_vm6, %v1859_v49, 0.0  ;;  %vm10488_vm14 = vnez %v10487_v2  ;;  %v7533_v6 = vpop.permute.xlu0 %2073  ;;  %vm9583_vm3 = vcmp.lt.s32.totalorder %v4710_v1, 95 }
 0x35f   : > { %v1887_v23 = vmul.f32 %v7075_v12, %v1871_v3  ;;  %v1888_v62 = vmul.f32 %v7075_v12, %v1872_v7 }
 0x360   : > { %v1908_v16 = vpop.permute.xlu1 %1907 }
 0x361   : > { %v1895_v53 = vadd.f32 %v1887_v23, %v1830_v38  ;;  %v1896_v61 = vadd.f32 %v1888_v62, %v1831_v19  ;;  %v1921_v56 = vsel %vm1917_vm10, %v1908_v16, %v1912_v42  ;;  %v1923_v50 = vsel %vm1917_vm10, %v7416_v47, %v1908_v16 }
 0x362   : > { %v1938_v29 = vsel %vm10488_vm14, %v1923_v50, 0.0  ;;  %v1939_v37 = vsel %vm10490_vm5, %v1921_v56, 0.0  ;;  %v7553_v43 = vpop.permute.xlu0 %1970  ;;  %v10495_v56 = vld [vmem:[#allocation73_spill] sm:$0xff] }
 0x363   : > { %v1954_v12 = vmul.f32 %v7381_v14, %v1938_v29  ;;  %v1955_v60 = vmul.f32 %v7381_v14, %v1939_v37  ;;  %vm10496_vm6 = vnez %v10495_v56  ;;  %v10509_v56 = vld [vmem:[#allocation92_spill] sm:$0xff] }
 0x364   : > { %v1916_v35 = vpop.permute.xlu1 %1915 }
 0x365   : > { %v7512_v38 = vadd.f32 %v1954_v12, %v1897_v45  ;;  %v7514_v19 = vadd.f32 %v1955_v60, %v1898_v31  ;;  %v1919_v13 = vsel %vm1917_vm10, %v1912_v42, %v1916_v35  ;;  %v1925_v30 = vsel %vm1917_vm10, %v1916_v35, %v7416_v47 }
 0x366   : > { %v1940_v10 = vsel %vm10492_vm13, %v1919_v13, 0.0  ;;  %v1941_v25 = vsel %vm10494_vm1, %v1925_v30, 0.0  ;;  %v1979_v7 = vpop.permute.xlu0 %1978 }
 0x367   : > { %v1956_v63 = vmul.f32 %v7381_v14, %v1940_v10  ;;  %v1957_v45 = vmul.f32 %v7381_v14, %v1941_v25 }
 0x368   : > { %v7527_v8 = vpop.permute.xlu1 %2077 }
 0x369   : > { %v7529_v48 = vadd.f32 %v1956_v63, %v1899_v36  ;;  %v7531_v42 = vadd.f32 %v1957_v45, %v1900_v40 }
 0x36c   : > { %v1906_v47 = vpop.permute.xlu1 %1905 }
 0x36d   : > { %v1920_v59 = vsel %vm1917_vm10, %v1906_v47, %v1910_v18  ;;  %v1922_v31 = vsel %vm1917_vm10, %v1902_v26, %v1906_v47  ;;  %v10499_v47 = vld [vmem:[#allocation67_spill] sm:$0xff] }
 0x36e   : > { %v1934_v32 = vsel %vm10488_vm14, %v1922_v31, 0.0  ;;  %v1935_v14 = vsel %vm10490_vm5, %v1920_v59, 0.0  ;;  %v10501_v31 = vld [vmem:[#allocation69_spill] sm:$0xff] }
 0x36f   : > { %v1950_v36 = vmul.f32 %v7472_v28, %v1934_v32  ;;  %v1951_v40 = vmul.f32 %v7472_v28, %v1935_v14  ;;  %vm10502_vm14 = vnez %v10501_v31  ;;  %v10517_v31 = vld [vmem:[#allocation96_spill] sm:$0xff] }
 0x370   : > { %v1914_v5 = vpop.permute.xlu1 %1913 }
 0x371   : > { %v7545_v39 = vadd.f32 %v1950_v36, %v1893_v21  ;;  %v7547_v58 = vadd.f32 %v1951_v40, %v1894_v9  ;;  %v1918_v27 = vsel %vm1917_vm10, %v1910_v18, %v1914_v5  ;;  %v1924_v0 = vsel %vm1917_vm10, %v1914_v5, %v1902_v26  ;;  %v2038_v26 = vpop.permute.xlu0 %2037 }
 0x372   : > { %v1936_v51 = vsel %vm10492_vm13, %v1918_v27, 0.0  ;;  %v1937_v54 = vsel %vm10494_vm1, %v1924_v0, 0.0  ;;  %vm10500_vm10 = vnez %v10499_v47 }
 0x373   : > { %v1952_v52 = vmul.f32 %v7472_v28, %v1936_v51  ;;  %v1953_v21 = vmul.f32 %v7472_v28, %v1937_v54 }
 0x374   : > { %v1973_v9 = vpop.permute.xlu1 %1972 }
 0x375   : > { %v1960_v49 = vadd.f32 %v1952_v52, %v1895_v53  ;;  %v1961_v3 = vadd.f32 %v1953_v21, %v1896_v61  ;;  %v2046_v28 = vpop.permute.xlu0 %2045  ;;  %v1986_v46 = vsel %vm1982_vm0, %v1973_v9, %v1977_v22  ;;  %v1988_v25 = vsel %vm1982_vm0, %v7499_v57, %v1973_v9  ;;  %v10503_v52 = vld [vmem:[#allocation90_spill] sm:$0xff]  ;;  %v10505_v9 = vld [vmem:[#allocation91_spill] sm:$0xff] }
 0x376   : > { %v2003_v59 = vsel %vm10500_vm10, %v1988_v25, 0.0  ;;  %v2004_v32 = vsel %vm10502_vm14, %v1986_v46, 0.0  ;;  %vm10504_vm5 = vnez %v10503_v52  ;;  %vm10506_vm13 = vnez %v10505_v9 }
 0x377   : > { %v2019_v51 = vmul.f32 %v7333_v4, %v2003_v59  ;;  %v2020_v54 = vmul.f32 %v7333_v4, %v2004_v32  ;;  %v10513_v59 = vld [vmem:[#allocation95_spill] sm:$0xff] }
 0x378   : > { %v1981_v18 = vpop.permute.xlu1 %1980  ;;  %vm10514_vm4 = vnez %v10513_v59 }
 0x379   : > { %v7578_v13 = vpop.permute.xlu0 %2031  ;;  %v1984_v63 = vsel %vm1982_vm0, %v1977_v22, %v1981_v18  ;;  %v1990_v45 = vsel %vm1982_vm0, %v1981_v18, %v7499_v57  ;;  %v2028_v11 = vadd.f32 %v2020_v54, %v7514_v19 }
 0x37a   : > { %v2005_v22 = vsel %vm10498_vm15, %v1984_v63, 0.0  ;;  %v2006_v5 = vsel %vm10496_vm6, %v1990_v45, 0.0  ;;  %v10511_v45 = vld [vmem:[#allocation94_spill] sm:$0xff] }
 0x37c   : > { %v7561_v23 = vpop.permute.xlu1 %2142 }
 0x37d   : > { %v7580_v17 = vpop.permute.xlu0 %2039 }
 0x380   : > { %v1967_v62 = vpop.permute.xlu1 %1966 }
 0x381   : > { %v1989_v16 = vsel %vm1982_vm0, %v1979_v7, %v1967_v62  ;;  %v2099_v57 = vpop.permute.xlu0 %2098  ;;  %v1987_v25 = vsel %vm1982_vm0, %v1967_v62, %v7553_v43 }
 0x382   : > { %v2002_v50 = vsel %vm10496_vm6, %v1989_v16, 0.0  ;;  %vm10510_vm6 = vnez %v10509_v56 }
 0x383   : > { %v2018_v2 = vmul.f32 %v7464_v33, %v2002_v50 }
 0x384   : > { %v1975_v29 = vpop.permute.xlu1 %1974 }
 0x385   : > { %v7569_v53 = vadd.f32 %v2018_v2, %v1961_v3  ;;  %v1983_v61 = vsel %vm1982_vm0, %v1975_v29, %v1979_v7  ;;  %v2021_v3 = vmul.f32 %v7333_v4, %v2005_v22  ;;  %v2022_v7 = vmul.f32 %v7333_v4, %v2006_v5 }
 0x386   : > { %v2001_v37 = vsel %vm10498_vm15, %v1983_v61, 0.0  ;;  %vm2112_vm15 = vcmp.lt.s32.totalorder %v4710_v1, 94  ;;  %v2027_v61 = vadd.f32 %v2019_v51, %v7512_v38  ;;  %v1985_v38 = vsel %vm1982_vm0, %v7553_v43, %v1975_v29  ;;  %vm10516_vm0 = vmmov %vm10515_vm7 }
 0x387   : > { %v2017_v12 = vmul.f32 %v7464_v33, %v2001_v37  ;;  %v2107_v37 = vpop.permute.xlu0 %2106  ;;  %v2029_v4 = vadd.f32 %v2021_v3, %v7529_v48  ;;  %v2000_v22 = vsel %vm10502_vm14, %v1985_v38, 0.0  ;;  %vm10521_vm14 = vmmov %vm10516_vm0 }
 0x388   : > { %v2034_v60 = vpop.permute.xlu1 %2033 }
 0x389   : > { %v7576_v35 = vadd.f32 %v2017_v12, %v1960_v49  ;;  %v2053_v14 = vsel %vm9583_vm3, %v2034_v60, %v2038_v26  ;;  %v2055_v27 = vsel %vm9583_vm3, %v2046_v28, %v2034_v60  ;;  %v2030_v12 = vadd.f32 %v2022_v7, %v7531_v42 }
 0x38a   : > { %v2068_v21 = vsel %vm10504_vm5, %v2053_v14, 0.0 }
 0x38b   : > { %v2084_v2 = vmul.f32 %v7527_v8, %v2068_v21 }
 0x38c   : > { %v2042_v30 = vpop.permute.xlu1 %2041 }
 0x38d   : > { %v2051_v36 = vsel %vm9583_vm3, %v2038_v26, %v2042_v30  ;;  %v2049_v0 = vsel %vm9583_vm3, %v2042_v30, %v2046_v28  ;;  %v10507_v26 = vld [vmem:[#allocation93_spill] sm:$0xff]  ;;  %v2092_v42 = vadd.f32 %v2084_v2, %v2027_v61  ;;  %vm10512_vm3 = vnez %v10511_v45 }
 0x38e   : > { %v2069_v49 = vsel %vm10506_vm13, %v2051_v36, 0.0  ;;  %vm10508_vm1 = vnez %v10507_v26  ;;  %v2070_v50 = vsel %vm10510_vm6, %v2049_v0, 0.0  ;;  %v1999_v36 = vsel %vm10500_vm10, %v1987_v25, 0.0 }
 0x38f   : > { %v2071_v16 = vsel %vm10508_vm1, %v2055_v27, 0.0  ;;  %v2085_v28 = vmul.f32 %v7527_v8, %v2069_v49  ;;  %v2086_v30 = vmul.f32 %v7527_v8, %v2070_v50  ;;  %v2167_v49 = vpop.permute.xlu0 %2166  ;;  %v2015_v52 = vmul.f32 %v7464_v33, %v1999_v36 }
 0x390   : > { %v7582_v10 = vpop.permute.xlu1 %2138  ;;  %v2087_v60 = vmul.f32 %v7527_v8, %v2071_v16  ;;  %v10519_v16 = vld [vmem:[#allocation97_spill] sm:$0xff] }
 0x391   : > { %v2093_v63 = vadd.f32 %v2085_v28, %v2028_v11  ;;  %v2094_v27 = vadd.f32 %v2086_v30, %v2029_v4  ;;  %vm10520_vm10 = vnez %v10519_v16  ;;  %v2016_v4 = vmul.f32 %v7464_v33, %v2000_v22 }
 0x392   : > { %v2095_v5 = vadd.f32 %v2087_v60, %v2030_v12  ;;  %v2023_v25 = vadd.f32 %v2015_v52, %v7545_v39 }
 0x394   : > { %v2036_v40 = vpop.permute.xlu1 %2035 }
 0x395   : > { %v2050_v62 = vsel %vm10515_vm7, %v2036_v40, %v7580_v17  ;;  %v2052_v43 = vsel %vm10516_vm0, %v7578_v13, %v2036_v40  ;;  %vm10518_vm7 = vnez %v10517_v31 }
 0x396   : > { %v2064_v3 = vsel %vm10504_vm5, %v2052_v43, 0.0  ;;  %v2065_v47 = vsel %vm10506_vm13, %v2050_v62, 0.0  ;;  %vm10522_vm5 = vmmov %vm10516_vm0  ;;  %vm10532_vm0 = vcmp.lt.s32.totalorder %v10366_v15, 16 }
 0x397   : > { %v2081_v30 = vmul.f32 %v7533_v6, %v2065_v47 }
 0x398   : > { %v2044_v18 = vpop.permute.xlu1 %2043 }
 0x399   : > { %v2048_v9 = vsel %vm10521_vm14, %v7580_v17, %v2044_v18  ;;  %v2054_v11 = vsel %vm10522_vm5, %v2044_v18, %v7578_v13 }
 0x39a   : > { %v2066_v17 = vsel %vm10510_vm6, %v2048_v9, 0.0  ;;  %v2067_v13 = vsel %vm10508_vm1, %v2054_v11, 0.0  ;;  %v10525_v9 = vld [vmem:[#allocation12_spill] sm:$0xff] }
 0x39b   : > { %v2082_v26 = vmul.f32 %v7533_v6, %v2066_v17  ;;  %vm10526_vm13 = vcmp.ge.s32.totalorder %v10525_v9, 0 }
 0x39c   : > { %v2103_v46 = vpop.permute.xlu1 %2102 }
 0x39d   : > { %v2116_v19 = vsel %vm2112_vm15, %v2103_v46, %v2107_v37  ;;  %v2118_v48 = vsel %vm2112_vm15, %v2099_v57, %v2103_v46  ;;  %v2105_v46 = vpop.permute.xlu0 %2104  ;;  %v2090_v45 = vadd.f32 %v2082_v26, %v7576_v35 }
 0x39e   : > { %v2133_v8 = vsel %vm10512_vm3, %v2118_v48, 0.0  ;;  %v2134_v32 = vsel %vm10514_vm4, %v2116_v19, 0.0  ;;  %v2024_v19 = vadd.f32 %v2016_v4, %v7547_v58 }
 0x39f   : > { %v2149_v29 = vmul.f32 %v7561_v23, %v2133_v8  ;;  %v2150_v14 = vmul.f32 %v7561_v23, %v2134_v32 }
 0x3a0   : > { %v2111_v0 = vpop.permute.xlu1 %2110  ;;  %v2089_v8 = vadd.f32 %v2081_v30, %v2024_v19 }
 0x3a1   : > { %v2157_v51 = vadd.f32 %v2149_v29, %v2092_v42  ;;  %v2158_v54 = vadd.f32 %v2150_v14, %v2093_v63  ;;  %v2114_v21 = vsel %vm2112_vm15, %v2107_v37, %v2111_v0  ;;  %v2120_v40 = vsel %vm2112_vm15, %v2111_v0, %v2099_v57  ;;  %v2163_v22 = vpop.permute.xlu0 %2162 }
 0x3a2   : > { %v2135_v7 = vsel %vm10518_vm7, %v2114_v21, 0.0  ;;  %v2136_v50 = vsel %vm10520_vm10, %v2120_v40, 0.0  ;;  %v2083_v42 = vmul.f32 %v7533_v6, %v2067_v13 }
 0x3a3   : > { %v7670_v2 = vadd.f32 %v2167_v49, %v2157_v51  ;;  %v7672_v28 = vadd.f32 %v2167_v49, %v2158_v54  ;;  %v2151_v61 = vmul.f32 %v7561_v23, %v2135_v7  ;;  %v2152_v57 = vmul.f32 %v7561_v23, %v2136_v50 }
 0x3a4   : > { %v2097_v37 = vpop.permute.xlu1 %2096  ;;  %v2080_v23 = vmul.f32 %v7533_v6, %v2064_v3  ;;  %v2091_v59 = vadd.f32 %v2083_v42, %v7569_v53 }
 0x3a5   : > { %v2159_v12 = vadd.f32 %v2151_v61, %v2094_v27  ;;  %v2160_v60 = vadd.f32 %v2152_v57, %v2095_v5  ;;  %2179 = vrot.lane.b32.xlu1 %v7670_v2, %s4587_s22  ;;  %2183 = vrot.lane.b32.xlu0 %v7672_v28, %s4587_s22 }
 0x3a6   : > { %v2088_v63 = vadd.f32 %v2080_v23, %v2023_v25 }
 0x3a7   : > { %v7694_v18 = vadd.f32 %v2167_v49, %v2159_v12  ;;  %v7696_v33 = vadd.f32 %v2167_v49, %v2160_v60 }
 0x3a8   : > { %v2101_v38 = vpop.permute.xlu1 %2100 }
 0x3a9   : > { %v2115_v48 = vsel %vm2112_vm15, %v2101_v38, %v2105_v46  ;;  %v2117_v56 = vsel %vm2112_vm15, %v2097_v37, %v2101_v38  ;;  %2191 = vrot.lane.b32.xlu0 %v7696_v33, %s4587_s22  ;;  %2187 = vrot.lane.b32.xlu1 %v7694_v18, %s4587_s22 }
 0x3aa   : > { %v2129_v39 = vsel %vm10512_vm3, %v2117_v56, 0.0  ;;  %v2130_v58 = vsel %vm10514_vm4, %v2115_v48, 0.0  ;;  %vm10523_vm4 = vcmp.lt.s32.totalorder %v4710_v1, 1 }
 0x3ab   : > { %v2145_v32 = vmul.f32 %v7582_v10, %v2129_v39  ;;  %v2146_v62 = vmul.f32 %v7582_v10, %v2130_v58  ;;  %vm10524_vm3 = vmmov %vm10523_vm4 }
 0x3ac   : > { %v2109_v43 = vpop.permute.xlu1 %2108  ;;  %vm10527_vm1 = vmmov %vm10524_vm3 }
 0x3ad   : > { %v2153_v29 = vadd.f32 %v2145_v32, %v2088_v63  ;;  %v2154_v14 = vadd.f32 %v2146_v62, %v2089_v8  ;;  %v2113_v36 = vsel %vm2112_vm15, %v2105_v46, %v2109_v43  ;;  %v2119_v6 = vsel %vm2112_vm15, %v2109_v43, %v2097_v37  ;;  %vm10529_vm6 = vmmov %vm10527_vm1 }
 0x3ae   : > { %v2131_v5 = vsel %vm10518_vm7, %v2113_v36, 0.0  ;;  %v2132_v27 = vsel %vm10520_vm10, %v2119_v6, 0.0  ;;  %vm10531_vm15 = vcmp.lt.s32.totalorder %v4710_v1, 127  ;;  %vm10533_vm7 = vmmov %vm10527_vm1 }
 0x3af   : > { %v7726_v0 = vadd.f32 %v2163_v22, %v2153_v29  ;;  %v7728_v51 = vadd.f32 %v2163_v22, %v2154_v14  ;;  %v2147_v54 = vmul.f32 %v7582_v10, %v2131_v5  ;;  %v2148_v21 = vmul.f32 %v7582_v10, %v2132_v27  ;;  %vm10535_vm10 = vmmov %vm10527_vm1 }
 0x3b0   : > { %vm10536_vm14 = vmmov %vm10531_vm15 }
 0x3b1   : > { %v2155_v40 = vadd.f32 %v2147_v54, %v2090_v45  ;;  %v2156_v49 = vadd.f32 %v2148_v21, %v2091_v59  ;;  %2177 = vrot.lane.b32.xlu1 %v7726_v0, %s4587_s22  ;;  %2181 = vrot.lane.b32.xlu0 %v7728_v51, %s4587_s22  ;;  %vm10537_vm5 = vmmov %vm10536_vm14  ;;  %v10541_v45 = vld [vmem:[#allocation16_spill] sm:$0xff] }
 0x3b3   : > { %v7736_v53 = vadd.f32 %v2163_v22, %v2155_v40  ;;  %v7738_v35 = vadd.f32 %v2163_v22, %v2156_v49 }
 0x3b5   : > { %2189 = vrot.lane.b32.xlu0 %v7738_v35, %s4587_s22  ;;  %2185 = vrot.lane.b32.xlu1 %v7736_v53, %s4587_s22 }
 0x3b9   : > { %2223 = vrot.lane.b32.xlu0 %v7672_v28, %s4588_s23  ;;  %2219 = vrot.lane.b32.xlu1 %v7670_v2, %s4588_s23 }
 0x3bd   : > { %2231 = vrot.lane.b32.xlu0 %v7696_v33, %s4588_s23  ;;  %2227 = vrot.lane.b32.xlu1 %v7694_v18, %s4588_s23 }
 0x3c1   : > { %2221 = vrot.lane.b32.xlu0 %v7728_v51, %s4588_s23  ;;  %2217 = vrot.lane.b32.xlu1 %v7726_v0, %s4588_s23 }
 0x3c5   : > { %2229 = vrot.lane.b32.xlu0 %v7738_v35, %s4588_s23  ;;  %2225 = vrot.lane.b32.xlu1 %v7736_v53, %s4588_s23 }
 0x417   : > { %v2184_v10 = vpop.permute.xlu0 %2183  ;;  %v2180_v3 = vpop.permute.xlu1 %2179 }
 0x418   : > { %v2198_v52 = vsel %vm10524_vm3, %v2180_v3, %v2184_v10  ;;  %vm10539_vm3 = vmmov %vm10526_vm13 }
 0x419   : > { %v2206_v12 = vsel %vm10347_vm2, %v2198_v52, 0.0 }
 0x41a   : > { %v2214_v56 = vadd.f32 %v2206_v12, %v7672_v28 }
 0x41b   : > { %v2192_v47 = vpop.permute.xlu0 %2191  ;;  %v2188_v31 = vpop.permute.xlu1 %2187 }
 0x41c   : > { %v2200_v50 = vsel %vm10523_vm4, %v2192_v47, %v2180_v3  ;;  %v2196_v37 = vsel %vm10527_vm1, %v2184_v10, %v2188_v31  ;;  %v2194_v17 = vsel %vm10529_vm6, %v2188_v31, %v2192_v47  ;;  %vm10538_vm4 = vmmov %vm10537_vm5 }
 0x41d   : > { %v2205_v11 = vsel %vm10526_vm13, %v2200_v50, 0.0  ;;  %v2207_v46 = vsel %vm10357_vm8, %v2196_v37, 0.0  ;;  %v2208_v26 = vsel %vm10359_vm11, %v2194_v17, 0.0  ;;  %vm10540_vm13 = vmmov %vm10527_vm1  ;;  %vm10542_vm1 = vnez %v10541_v45  ;;  %v7889_v37 = vld [vmem:[%s9092_s2 + $0x8] sm:$0xff] }
 0x41e   : > { %v2213_v30 = vadd.f32 %v2205_v11, %v7670_v2  ;;  %v2215_v42 = vadd.f32 %v2207_v46, %v7694_v18  ;;  %v2216_v6 = vadd.f32 %v2208_v26, %v7696_v33  ;;  %vm10543_vm6 = vmmov %vm10538_vm4 }
 0x423   : > { %v2182_v7 = vpop.permute.xlu0 %2181  ;;  %v2178_v16 = vpop.permute.xlu1 %2177 }
 0x424   : > { %v2197_v63 = vsel %vm10535_vm10, %v2178_v16, %v2182_v7 }
 0x425   : > { %v2202_v27 = vsel %vm10347_vm2, %v2197_v63, 0.0  ;;  %vm10546_vm2 = vmmov %vm10538_vm4 }
 0x426   : > { %v2210_v3 = vadd.f32 %v2202_v27, %v7728_v51 }
 0x427   : > { %v2190_v61 = vpop.permute.xlu0 %2189  ;;  %v2186_v57 = vpop.permute.xlu1 %2185 }
 0x428   : > { %v2199_v19 = vsel %vm10533_vm7, %v2190_v61, %v2178_v16  ;;  %v2195_v18 = vsel %vm10540_vm13, %v2182_v7, %v2186_v57 }
 0x429   : > { %v2201_v28 = vsel %vm10539_vm3, %v2199_v19, 0.0  ;;  %v2203_v21 = vsel %vm10357_vm8, %v2195_v18, 0.0  ;;  %vm10547_vm8 = vmmov %vm10546_vm2 }
 0x42a   : > { %v2209_v54 = vadd.f32 %v2201_v28, %v7726_v0  ;;  %v2211_v47 = vadd.f32 %v2203_v21, %v7736_v53 }
 0x42b   : > { %v2224_v60 = vpop.permute.xlu0 %2223  ;;  %v2220_v23 = vpop.permute.xlu1 %2219 }
 0x42c   : > { %v2238_v25 = vsel %vm10531_vm15, %v2220_v23, %v2224_v60  ;;  %vm10544_vm15 = vmmov %vm10532_vm0 }
 0x42d   : > { %v2245_v38 = vsel %vm10532_vm0, %v2238_v25, 0.0  ;;  %vm10545_vm0 = vmmov %vm10533_vm7 }
 0x42e   : > { %v7781_v48 = vadd.f32 %v2245_v38, %v2213_v30  ;;  %v2193_v49 = vsel %vm10545_vm0, %v2186_v57, %v2190_v61  ;;  %vm10548_vm7 = vmmov %vm10546_vm2  ;;  %vm10565_vm0 = vnez %v10443_v34 }
 0x42f   : > { %v2232_v39 = vpop.permute.xlu0 %2231  ;;  %v2228_v58 = vpop.permute.xlu1 %2227  ;;  %v2204_v51 = vsel %vm10359_vm11, %v2193_v49, 0.0  ;;  %vm10549_vm11 = vcmp.lt.s32.totalorder %v4710_v1, 16 }
 0x430   : > { %v2240_v8 = vsel %vm10536_vm14, %v2232_v39, %v2220_v23  ;;  %v2234_v32 = vsel %vm10537_vm5, %v2228_v58, %v2232_v39  ;;  %v2236_v62 = vsel %vm10538_vm4, %v2224_v60, %v2228_v58  ;;  %2259 = vrot.lane.b32.xlu1 %v7781_v48, %s4581_s18  ;;  %v2212_v11 = vadd.f32 %v2204_v51, %v7738_v35  ;;  %v7883_v35 = vld [vmem:[%s9092_s2] sm:$0xff] }
 0x431   : > { %v2246_v43 = vsel %vm10369_vm9, %v2236_v62, 0.0  ;;  %v2247_v29 = vsel %vm10371_vm12, %v2234_v32, 0.0  ;;  %v2248_v59 = vsel %vm10542_vm1, %v2240_v8, 0.0  ;;  %v10555_v39 = vld [vmem:[#allocation26_spill] sm:$0xff]  ;;  %v10557_v8 = vld [vmem:[#allocation31_spill] sm:$0xff]  ;;  %v10559_v62 = vld [vmem:[#allocation33_spill] sm:$0xff] }
 0x432   : > { %v7805_v14 = vadd.f32 %v2246_v43, %v2214_v56  ;;  %v7807_v36 = vadd.f32 %v2247_v29, %v2215_v42  ;;  %v7827_v10 = vadd.f32 %v2248_v59, %v2216_v6  ;;  %v10551_v56 = vld [vmem:[#allocation29_spill] sm:$0xff]  ;;  %vm10556_vm5 = vnez %v10555_v39 }
 0x433   : > { %v2222_v22 = vpop.permute.xlu0 %2221  ;;  %v2218_v5 = vpop.permute.xlu1 %2217  ;;  %vm10558_vm4 = vnez %v10557_v8  ;;  %vm10560_vm3 = vnez %v10559_v62 }
 0x434   : > { %v2237_v40 = vsel %vm10543_vm6, %v2218_v5, %v2222_v22  ;;  %2263 = vrot.lane.b32.xlu0 %v7805_v14, %s4581_s18  ;;  %2267 = vrot.lane.b32.xlu1 %v7807_v36, %s4581_s18  ;;  %vm10563_vm6 = vcmp.lt.s32.totalorder %v4710_v1, 112 }
 0x435   : > { %v2241_v33 = vsel %vm10544_vm15, %v2237_v40, 0.0  ;;  %vm10564_vm15 = vmmov %vm10563_vm6 }
 0x436   : > { %v7829_v0 = vadd.f32 %v2241_v33, %v2209_v54 }
 0x437   : > { %v2230_v31 = vpop.permute.xlu0 %2229  ;;  %v2226_v7 = vpop.permute.xlu1 %2225 }
 0x438   : > { %v2239_v16 = vsel %vm10546_vm2, %v2230_v31, %v2218_v5  ;;  %v2233_v15 = vsel %vm10547_vm8, %v2226_v7, %v2230_v31  ;;  %v2235_v50 = vsel %vm10548_vm7, %v2222_v22, %v2226_v7  ;;  %2271 = vrot.lane.b32.xlu0 %v7827_v10, %s4581_s18  ;;  %2257 = vrot.lane.b32.xlu1 %v7829_v0, %s4581_s18 }
 0x439   : > { %v2242_v53 = vsel %vm10369_vm9, %v2235_v50, 0.0  ;;  %v2243_v61 = vsel %vm10371_vm12, %v2233_v15, 0.0  ;;  %v2244_v9 = vsel %vm10542_vm1, %v2239_v16, 0.0  ;;  %vm10550_vm9 = vmmov %vm10549_vm11  ;;  %vm10552_vm12 = vnez %v10551_v56 }
 0x43a   : > { %v7849_v57 = vadd.f32 %v2242_v53, %v2210_v3  ;;  %v7851_v52 = vadd.f32 %v2243_v61, %v2211_v47  ;;  %v7860_v55 = vadd.f32 %v2244_v9, %v2212_v11  ;;  %vm10553_vm10 = vmmov %vm10550_vm9  ;;  %vm10566_vm2 = vnez %v10436_v41 }
 0x43b   : > { %vm10554_vm14 = vmmov %vm10550_vm9 }
 0x43c   : > { %2261 = vrot.lane.b32.xlu0 %v7849_v57, %s4581_s18  ;;  %2265 = vrot.lane.b32.xlu1 %v7851_v52, %s4581_s18  ;;  %vm10561_vm13 = vmmov %vm10550_vm9 }
 0x43d   : > { %vm10562_vm1 = vmmov %vm10550_vm9 }
 0x43e   : > { %vm10567_vm8 = vmmov %vm10562_vm1 }
 0x43f   : > { %vm10568_vm7 = vmmov %vm10562_vm1 }
 0x440   : > { %2269 = vrot.lane.b32.xlu0 %v7860_v55, %s4581_s18  ;;  %2299 = vrot.lane.b32.xlu1 %v7781_v48, %s4597_s27 }
 0x444   : > { %2303 = vrot.lane.b32.xlu0 %v7805_v14, %s4597_s27  ;;  %2307 = vrot.lane.b32.xlu1 %v7807_v36, %s4597_s27 }
 0x448   : > { %2311 = vrot.lane.b32.xlu0 %v7827_v10, %s4597_s27  ;;  %2297 = vrot.lane.b32.xlu1 %v7829_v0, %s4597_s27 }
 0x44c   : > { %2301 = vrot.lane.b32.xlu0 %v7849_v57, %s4597_s27  ;;  %2305 = vrot.lane.b32.xlu1 %v7851_v52, %s4597_s27 }
 0x450   : > { %2309 = vrot.lane.b32.xlu0 %v7860_v55, %s4597_s27  ;;  %2358 = vperm.xlu1 %4437, %v7889_v37  }
 0x454   : > { %2354 = vperm.xlu0 %4438, %v7883_v35  }
 0x4a2   : > { %v2260_v4 = vpop.permute.xlu1 %2259 }
 0x4a6   : > { %v2264_v12 = vpop.permute.xlu0 %2263  ;;  %v2268_v60 = vpop.permute.xlu1 %2267 }
 0x4a7   : > { %v2278_v46 = vsel %vm10549_vm11, %v2260_v4, %v2264_v12  ;;  %v2276_v26 = vsel %vm10553_vm10, %v2264_v12, %v2268_v60  ;;  %vm10569_vm11 = vmmov %vm10563_vm6  ;;  %vm10572_vm10 = vnez %v10449_v44 }
 0x4a8   : > { %v2286_v2 = vsel %vm10552_vm12, %v2278_v46, 0.0  ;;  %v2287_v32 = vsel %vm10558_vm4, %v2276_v26, 0.0 }
 0x4a9   : > { %v2294_v63 = vadd.f32 %v2286_v2, %v7805_v14  ;;  %v2295_v5 = vadd.f32 %v2287_v32, %v7807_v36 }
 0x4aa   : > { %v2272_v23 = vpop.permute.xlu0 %2271  ;;  %v2258_v30 = vpop.permute.xlu1 %2257 }
 0x4ab   : > { %v2280_v25 = vsel %vm10550_vm9, %v2272_v23, %v2260_v4  ;;  %v2274_v42 = vsel %vm10554_vm14, %v2268_v60, %v2272_v23  ;;  %vm10570_vm9 = vmmov %vm10563_vm6 }
 0x4ac   : > { %v2285_v58 = vsel %vm10556_vm5, %v2280_v25, 0.0  ;;  %v2288_v28 = vsel %vm10560_vm3, %v2274_v42, 0.0  ;;  %vm10573_vm14 = vmmov %vm10563_vm6 }
 0x4ad   : > { %v2293_v18 = vadd.f32 %v2285_v58, %v7781_v48  ;;  %v2296_v27 = vadd.f32 %v2288_v28, %v7827_v10  ;;  %v397_v28 = vld [vmem:[%s9092_s2 + $0x20] sm:$0xff] }
 0x4ae   : > { %v2262_v17 = vpop.permute.xlu0 %2261  ;;  %v2266_v13 = vpop.permute.xlu1 %2265 }
 0x4af   : > { %v2277_v6 = vsel %vm10561_vm13, %v2258_v30, %v2262_v17  ;;  %v2275_v33 = vsel %vm10567_vm8, %v2262_v17, %v2266_v13  ;;  %vm2361_vm13 = vcmask 130048  }
 0x4b0   : > { %v2282_v40 = vsel %vm10552_vm12, %v2277_v6, 0.0  ;;  %vm10571_vm12 = vnez %v10440_v20  ;;  %v2283_v51 = vsel %vm10558_vm4, %v2275_v33, 0.0  ;;  %v398_v6 = vld [vmem:[%s9092_s2 + $0x28] sm:$0xff] }
 0x4b1   : > { %v2290_v9 = vadd.f32 %v2282_v40, %v7849_v57  ;;  %v2291_v25 = vadd.f32 %v2283_v51, %v7851_v52  ;;  %v399_v51 = vld [vmem:[%s9092_s2 + $0x30] sm:$0xff] }
 0x4b2   : > { %v2270_v38 = vpop.permute.xlu0 %2269  ;;  %v2300_v19 = vpop.permute.xlu1 %2299 }
 0x4b3   : > { %v2279_v45 = vsel %vm10562_vm1, %v2270_v38, %v2258_v30  ;;  %v2273_v49 = vsel %vm10568_vm7, %v2266_v13, %v2270_v38 }
 0x4b4   : > { %v2281_v3 = vsel %vm10556_vm5, %v2279_v45, 0.0  ;;  %v2284_v11 = vsel %vm10560_vm3, %v2273_v49, 0.0  ;;  %vm10574_vm5 = vmmov %vm10563_vm6  ;;  %v4613_v45 = vmov 28  }
 0x4b5   : > { %v2289_v24 = vadd.f32 %v2281_v3, %v7829_v0  ;;  %v2292_v38 = vadd.f32 %v2284_v11, %v7860_v55  ;;  %vm10575_vm4 = vmmov %vm10574_vm5  ;;  %4439 = vset.pattern.permute.xlu1 %v4613_v45  ;;  %4440 = vset.pattern.permute.xlu0 %v4613_v45 }
 0x4b6   : > { %v2304_v43 = vpop.permute.xlu0 %2303  ;;  %v2308_v29 = vpop.permute.xlu1 %2307  ;;  %vm10576_vm3 = vmmov %vm10575_vm4  ;;  %2531 = vperm.xlu1 %4439, %v7883_v35  }
 0x4b7   : > { %v2318_v59 = vsel %vm10563_vm6, %v2300_v19, %v2304_v43  ;;  %v2316_v14 = vsel %vm10564_vm15, %v2304_v43, %v2308_v29 }
 0x4b8   : > { %v2325_v22 = vsel %vm10565_vm0, %v2318_v59, 0.0  ;;  %v2326_v48 = vsel %vm10566_vm2, %v2316_v14, 0.0 }
 0x4b9   : > { %v2333_v54 = vadd.f32 %v2325_v22, %v2293_v18  ;;  %v2334_v21 = vadd.f32 %v2326_v48, %v2294_v63 }
 0x4ba   : > { %v2312_v47 = vpop.permute.xlu0 %2311  ;;  %v2298_v31 = vpop.permute.xlu1 %2297  ;;  %2535 = vperm.xlu1 %4439, %v7889_v37  }
 0x4bb   : > { %v2341_v7 = vmul.f32 0.11111111, %v2333_v54  ;;  %v2342_v36 = vmul.f32 0.11111111, %v2334_v21  ;;  %v2314_v10 = vsel %vm10569_vm11, %v2308_v29, %v2312_v47  ;;  %v2320_v16 = vsel %vm10570_vm9, %v2312_v47, %v2300_v19 }
 0x4bc   : > { %v2327_v15 = vsel %vm10571_vm12, %v2314_v10, 0.0  ;;  %v2328_v50 = vsel %vm10572_vm10, %v2320_v16, 0.0  ;;  %v10577_v29 = vmov 0.0  }
 0x4bd   : > { %4443 = vtanh.f32 %v2341_v7  ;;  %v2335_v53 = vadd.f32 %v2327_v15, %v2295_v5  ;;  %v2336_v61 = vadd.f32 %v2328_v50, %v2296_v27 }
 0x4be   : > { %4445 = vtanh.f32 %v2342_v36  ;;  %v2302_v4 = vpop.permute.xlu0 %2301  ;;  %v2306_v12 = vpop.permute.xlu1 %2305 }
 0x4bf   : > { %v2343_v60 = vmul.f32 0.11111111, %v2335_v53  ;;  %v2344_v23 = vmul.f32 0.11111111, %v2336_v61  ;;  %v2317_v30 = vsel %vm10573_vm14, %v2298_v31, %v2302_v4  ;;  %v2315_v17 = vsel %vm10574_vm5, %v2302_v4, %v2306_v12 }
 0x4c0   : > { %v2321_v13 = vsel %vm10565_vm0, %v2317_v30, 0.0  ;;  %v2322_v57 = vsel %vm10566_vm2, %v2315_v17, 0.0 }
 0x4c1   : > { %4447 = vtanh.f32 %v2343_v60  ;;  %v2329_v46 = vadd.f32 %v2321_v13, %v2289_v24  ;;  %v2330_v0 = vadd.f32 %v2322_v57, %v2290_v9  ;;  %v400_v24 = vld [vmem:[%s9092_s2 + $0x38] sm:$0xff] }
 0x4c2   : > { %4449 = vtanh.f32 %v2344_v23  ;;  %v2310_v19 = vpop.permute.xlu0 %2309 }
 0x4c3   : > { %v2337_v56 = vmul.f32 0.11111111, %v2329_v46  ;;  %v2338_v2 = vmul.f32 0.11111111, %v2330_v0  ;;  %v2313_v34 = vsel %vm10575_vm4, %v2306_v12, %v2310_v19  ;;  %v2319_v41 = vsel %vm10576_vm3, %v2310_v19, %v2298_v31 }
 0x4c4   : > { %v2323_v26 = vsel %vm10571_vm12, %v2313_v34, 0.0  ;;  %v2324_v52 = vsel %vm10572_vm10, %v2319_v41, 0.0 }
 0x4c5   : > { %4451 = vtanh.f32 %v2337_v56  ;;  %v2331_v55 = vadd.f32 %v2323_v26, %v2291_v25  ;;  %v2332_v42 = vadd.f32 %v2324_v52, %v2292_v38 }
 0x4c6   : > { %4453 = vtanh.f32 %v2338_v2 }
 0x4c7   : > { %v2339_v39 = vmul.f32 0.11111111, %v2331_v55  ;;  %v2340_v58 = vmul.f32 0.11111111, %v2332_v42 }
 0x4c9   : > { %4455 = vtanh.f32 %v2339_v39 }
 0x4ca   : > { %v4444_v63 = vpop.eup %4443  ;;  %4457 = vtanh.f32 %v2340_v58 }
 0x4cb   : > { %v4446_v8 = vpop.eup %4445  ;;  %2718 = vst [vmem:[%s4708_s21 + $0x60] sm:$0xff] %v4444_v63  ;;  %v2359_v22 = vpop.permute.xlu1 %2358 }
 0x4cc   : > { %2719 = vst [vmem:[%s4708_s21 + $0x68] sm:$0xff] %v4446_v8  ;;  %2396 = vmatprep.subr.mxu0 %v4446_v8 }
 0x4cd   : > { %2397 = vmatpush1.msra.mxu0 %v4444_v63 }
 0x4ce   : > { %v4448_v20 = vpop.eup %4447 }
 0x4cf   : > { %v4450_v44 = vpop.eup %4449  ;;  %2720 = vst [vmem:[%s4708_s21 + $0x70] sm:$0xff] %v4448_v20  ;;  %v2355_v48 = vpop.permute.xlu0 %2354 }
 0x4d0   : > { %2721 = vst [vmem:[%s4708_s21 + $0x78] sm:$0xff] %v4450_v44  ;;  %2473 = vmatprep.subr.mxu1 %v4450_v44 }
 0x4d1   : > { %2474 = vmatpush1.msra.mxu1 %v4448_v20 }
 0x4d2   : > { %v4452_v32 = vpop.eup %4451 }
 0x4d3   : > { %v4454_v62 = vpop.eup %4453  ;;  %2714 = vst [vmem:[%s4708_s21 + $0x40] sm:$0xff] %v4452_v32 }
 0x4d4   : > { %2715 = vst [vmem:[%s4708_s21 + $0x48] sm:$0xff] %v4454_v62  ;;  %2398 = vmatprep.subr.mxu0 %v4454_v62 }
 0x4d5   : > { %2399 = vmatpush1.msra.mxu0 %v4452_v32 }
 0x4d6   : > { %v4456_v18 = vpop.eup %4455  ;;  %4263 = vmatmul.mubr.msk.f32.vlgmr.msra.gmra.mxu0 %vm2361_vm13, %v397_v28 }
 0x4d7   : > { %v4458_v43 = vpop.eup %4457  ;;  %2716 = vst [vmem:[%s4708_s21 + $0x50] sm:$0xff] %v4456_v18  ;;  %2438 = vmatprep.mubr.f32.mxu0 %v10577_v29 }
 0x4d8   : > { %2717 = vst [vmem:[%s4708_s21 + $0x58] sm:$0xff] %v4458_v43  ;;  %2475 = vmatprep.subr.mxu1 %v4458_v43 }
 0x4d9   : > { %2476 = vmatpush1.msra.mxu1 %v4456_v18 }
 0x4da   : > { %4264 = vmatmul.mubr.msk.f32.gmra.mxu0 %vm2361_vm13, %v398_v6  ;;  %4265 = vmatmul.mubr.msk.f32.vlgmr.msra.gmra.mxu1 %vm2361_vm13, %v397_v28 }
 0x4db   : > { %2515 = vmatprep.mubr.f32.mxu1 %v10577_v29  ;;  %2608 = vmatprep.mubr.f32.mxu0 %v10577_v29 }
 0x4de   : > { %4266 = vmatmul.mubr.msk.f32.gmra.mxu1 %vm2361_vm13, %v398_v6 }
 0x4df   : > { %2685 = vmatprep.mubr.f32.mxu1 %v10577_v29 }
 0x531   : > { %v2532_v4 = vpop.permute.xlu1 %2531 }
 0x535   : > { %v2536_v30 = vpop.permute.xlu1 %2535 }
 0x596   : > { %v2434_v59 = vpop.f32.mrf.mxu0 }
 0x597   : > { %v2435_v33 = vadd.f32 %v2434_v59, %v2355_v48 }
 0x598   : > { %v2436_v14 = vpop.f32.mrf.mxu0 }
 0x599   : > { %v2437_v3 = vadd.f32 %v2436_v14, %v2355_v48 }
 0x59a   : > { %v2440_v5 = vpop.f32.mrf.mxu0  ;;  %v2511_v27 = vpop.f32.mrf.mxu1 }
 0x59b   : > { %v2441_v54 = vadd.f32 %v2440_v5, %v2359_v22  ;;  %v2512_v36 = vadd.f32 %v2511_v27, %v2355_v48 }
 0x59c   : > { %v2442_v21 = vpop.f32.mrf.mxu0  ;;  %v2513_v40 = vpop.f32.mrf.mxu1 }
 0x59d   : > { %v2443_v49 = vadd.f32 %v2442_v21, %v2359_v22  ;;  %4459 = vtanh.f32 %v2441_v54  ;;  %v2514_v35 = vadd.f32 %v2513_v40, %v2355_v48 }
 0x59e   : > { %v2517_v47 = vpop.f32.mrf.mxu1 }
 0x59f   : > { %4461 = vtanh.f32 %v2443_v49  ;;  %v2518_v31 = vadd.f32 %v2517_v47, %v2359_v22 }
 0x5a0   : > { %v2519_v7 = vpop.f32.mrf.mxu1  ;;  %4463 = vtanh.f32 %v2435_v33 }
 0x5a1   : > { %v2520_v37 = vadd.f32 %v2519_v7, %v2359_v22  ;;  %4465 = vtanh.f32 %v2437_v3 }
 0x5a3   : > { %4467 = vtanh.f32 %v2520_v37 }
 0x5a4   : > { %4469 = vtanh.f32 %v2518_v31 }
 0x5a5   : > { %4471 = vtanh.f32 %v2514_v35 }
 0x5a6   : > { %4473 = vtanh.f32 %v2512_v36 }
 0x5aa   : > { %v4460_v10 = vpop.eup %4459 }
 0x5ac   : > { %v4462_v16 = vpop.eup %4461 }
 0x5ad   : > { %v4464_v15 = vpop.eup %4463  ;;  %2572 = vmatprep.subr.mxu0 %v4462_v16 }
 0x5ae   : > { %v4466_v50 = vpop.eup %4465  ;;  %2573 = vmatpush1.msra.mxu0 %v4460_v10 }
 0x5af   : > { %2574 = vmatprep.subr.mxu0 %v4466_v50 }
 0x5b0   : > { %v4468_v53 = vpop.eup %4467  ;;  %2575 = vmatpush1.msra.mxu0 %v4464_v15 }
 0x5b1   : > { %v4470_v61 = vpop.eup %4469  ;;  %2649 = vmatprep.subr.mxu1 %v4468_v53  ;;  %4267 = vmatmul.mubr.msk.f32.vlgmr.msra.gmra.mxu0 %vm2361_vm13, %v399_v51 }
 0x5b2   : > { %v4472_v9 = vpop.eup %4471  ;;  %2650 = vmatpush1.msra.mxu1 %v4470_v61  ;;  %2614 = vmatprep.mubr.f32.mxu0 %v10577_v29 }
 0x5b3   : > { %v4474_v11 = vpop.eup %4473  ;;  %2651 = vmatprep.subr.mxu1 %v4472_v9 }
 0x5b4   : > { %2652 = vmatpush1.msra.mxu1 %v4474_v11 }
 0x5b5   : > { %4269 = vmatmul.mubr.msk.f32.vlgmr.msra.gmra.mxu1 %vm2361_vm13, %v399_v51  ;;  %4268 = vmatmul.mubr.msk.f32.gmra.mxu0 %vm2361_vm13, %v400_v24 }
 0x5b6   : > { %2691 = vmatprep.mubr.f32.mxu1 %v10577_v29 }
 0x5b9   : > { %4270 = vmatmul.mubr.msk.f32.gmra.mxu1 %vm2361_vm13, %v400_v24 }
 0x671   : > { %v2610_v12 = vpop.f32.mrf.mxu0 }
 0x672   : > { %v2611_v60 = vadd.f32 %v2610_v12, %v2532_v4 }
 0x673   : > { %v2612_v23 = vpop.f32.mrf.mxu0 }
 0x674   : > { %v2613_v13 = vadd.f32 %v2612_v23, %v2532_v4  ;;  %4475 = vtanh.f32 %v2611_v60 }
 0x675   : > { %v2687_v17 = vpop.f32.mrf.mxu1  ;;  %v2616_v46 = vpop.f32.mrf.mxu0 }
 0x676   : > { %v2688_v57 = vadd.f32 %v2687_v17, %v2532_v4  ;;  %4477 = vtanh.f32 %v2613_v13  ;;  %v2617_v25 = vadd.f32 %v2616_v46, %v2536_v30 }
 0x677   : > { %v2689_v0 = vpop.f32.mrf.mxu1  ;;  %v2618_v19 = vpop.f32.mrf.mxu0 }
 0x678   : > { %v2690_v38 = vadd.f32 %v2689_v0, %v2532_v4  ;;  %4479 = vtanh.f32 %v2688_v57  ;;  %v2619_v2 = vadd.f32 %v2618_v19, %v2536_v30 }
 0x679   : > { %v2693_v56 = vpop.f32.mrf.mxu1  ;;  %4481 = vtanh.f32 %v2617_v25 }
 0x67a   : > { %4483 = vtanh.f32 %v2690_v38  ;;  %v2694_v34 = vadd.f32 %v2693_v56, %v2536_v30 }
 0x67b   : > { %v2695_v41 = vpop.f32.mrf.mxu1  ;;  %4485 = vtanh.f32 %v2619_v2 }
 0x67c   : > { %v2696_v26 = vadd.f32 %v2695_v41, %v2536_v30  ;;  %4487 = vtanh.f32 %v2694_v34 }
 0x67e   : > { %4489 = vtanh.f32 %v2696_v26 }
 0x681   : > { %v4476_v52 = vpop.eup %4475 }
 0x682   : > { %2706 = vst [vmem:[%s4708_s21] sm:$0xff] %v4476_v52 }
 0x683   : > { %v4478_v55 = vpop.eup %4477 }
 0x684   : > { %2707 = vst [vmem:[%s4708_s21 + $0x8] sm:$0xff] %v4478_v55 }
 0x685   : > { %v4480_v42 = vpop.eup %4479 }
 0x686   : > { %v4482_v39 = vpop.eup %4481  ;;  %2708 = vst [vmem:[%s4708_s21 + $0x10] sm:$0xff] %v4480_v42 }
 0x687   : > { %v4484_v58 = vpop.eup %4483  ;;  %2710 = vst [vmem:[%s4708_s21 + $0x20] sm:$0xff] %v4482_v39 }
 0x688   : > { %v4486_v63 = vpop.eup %4485  ;;  %2709 = vst [vmem:[%s4708_s21 + $0x18] sm:$0xff] %v4484_v58 }
 0x689   : > { %v4488_v8 = vpop.eup %4487  ;;  %2711 = vst [vmem:[%s4708_s21 + $0x28] sm:$0xff] %v4486_v63 }
 0x68a   : > { %2712 = vst [vmem:[%s4708_s21 + $0x30] sm:$0xff] %v4488_v8 }
 0x68b   : > { %v4490_v20 = vpop.eup %4489 }
 0x68c   : > { %2713 = vst [vmem:[%s4708_s21 + $0x38] sm:$0xff] %v4490_v20 }
 0x68d PF: > { %p4271_p5 = scmp.ne.s32.totalorder %s4699_s16, 1 }
 0x68f   : > { %2725 = sbr.rel (%p4271_p5) target bundleno = 2969 (0xb99), region = 44 }
 0x694   : > { %v2727_v44 = vld [vmem:[%s9091_s1 + $0x8] sm:$0x3f]  ;;  %vm2742_vm1 = vcmask 1045504   ;;  %v2729_v32 = vld [vmem:[%s9091_s1 + $0x18] sm:$0x3f]  ;;  %v8024_v18 = vld [vmem:[%s9093_s3] sm:$0xff] }
 0x695   : > { %4272 = vmatprep.subr.msk.mxu0 %vm2742_vm1, %v2727_v44  ;;  %4275 = vmatprep.subr.msk.mxu1 %vm2742_vm1, %v2729_v32  ;;  %v2726_v62 = vld [vmem:[%s9091_s1] sm:$0x3f]  ;;  %v2728_v28 = vld [vmem:[%s9091_s1 + $0x10] sm:$0x3f]  ;;  %vm2739_vm6 = vcmask 48128   ;;  %v9586_v43 = vmov 0.0  }
 0x696   : > { %4273 = vmatpush1.msk.msra.mxu0 %vm2742_vm1, %v2726_v62  ;;  %2819 = vmatprep.mubr.f32.mxu0 %v9586_v43  ;;  %v4615_v29 = vmov 25   ;;  %v8036_v6 = vld [vmem:[%s9093_s3 + $0x8] sm:$0xff]  ;;  %v4616_v45 = vmov 1   ;;  %v4617_v59 = vmov 0   ;;  %v4618_v14 = vmov 2   ;;  %s4636_s18 = smov 32  }
 0x697   : > { %4276 = vmatpush1.msk.msra.mxu1 %vm2742_vm1, %v2728_v28  ;;  %2890 = vmatprep.mubr.f32.mxu1 %v9586_v43  ;;  %v4619_v22 = vmov 4   ;;  %v4620_v48 = vmov 5   ;;  %v4621_v5 = vmov 3   ;;  %v4622_v27 = vmov 6   ;;  %s4637_s20 = smov 34   ;;  %s4638_s22 = smov 31  }
 0x698   : > { %4274 = vmatmul.mubr.msk.f32.vlgmr.msra.gmra.mxu0 %vm2739_vm6, %v8024_v18  ;;  %4277 = vmatmul.mubr.msk.f32.vlgmr.msra.gmra.mxu1 %vm2739_vm6, %v8024_v18  ;;  %v4623_v54 = vmov 14   ;;  %v4624_v21 = vmov 7   ;;  %v4625_v40 = vmov 15   ;;  %v4626_v33 = vmov 8   ;;  %s4639_s23 = smov 33   ;;  %s4640_s24 = smov 30  }
 0x699   : > { %4497 = vset.pattern.permute.xlu0 %v4615_v29  ;;  %3962 = vmatprep.mubr.f32.mxu0 %v9586_v43  ;;  %v4627_v49 = vmov 9   ;;  %v4628_v3 = vmov 10   ;;  %v4629_v47 = vmov 11   ;;  %v4630_v31 = vmov 12   ;;  %s4641_s25 = smov 18   ;;  %s4642_s26 = smov 17  }
 0x69a   : > { %2736 = vperm.xlu0 %4497, %v8024_v18   ;;  %4033 = vmatprep.mubr.f32.mxu1 %v9586_v43  ;;  %v4631_v7 = vmov 13   ;;  %v4632_v35 = vmov 16   ;;  %v4633_v37 = vmov 17   ;;  %v4634_v36 = vmov 18   ;;  %s4643_s27 = smov 16   ;;  %s4644_s28 = smov 15  }
 0x69b   : > { %4499 = vset.pattern.permute.xlu1 %v4616_v45  ;;  %v4635_v10 = vmov 19   ;;  %s4645_s29 = smov 14   ;;  %s4646_s30 = smov 2   ;;  %v4654_v56 = vmov 20   ;;  %v4656_v41 = vmov 21   ;;  %v4658_v39 = vmov 22  }
 0x69c   : > { %2957 = vperm.xlu1 %4499, %v8036_v6   ;;  %s4647_s5 = smov 1   ;;  %s4648_s6 = smov 126   ;;  %v4660_v8 = vmov 23   ;;  %v4662_v28 = vmov 24   ;;  %vm2905_vm15 = vcmp.lt.s32.totalorder %v4710_v1, 34  ;;  %vm2939_vm0 = vcmp.lt.s32.totalorder %v4710_v1, 33 }
 0x69d   : > { %s4649_s7 = smov 114   ;;  %s4650_s8 = smov 127   ;;  %vm2976_vm7 = vcmp.lt.s32.totalorder %v4710_v1, 32  ;;  %vm3013_vm12 = vcmp.lt.s32.totalorder %v4710_v1, 31  ;;  %vm3050_vm5 = vcmp.lt.s32.totalorder %v4710_v1, 30  ;;  %vm3087_vm13 = vcmp.lt.s32.totalorder %v4710_v1, 18 }
 0x69e   : > { %4498 = vset.pattern.permute.xlu0 %v4617_v59  ;;  %s4651_s9 = smov 113   ;;  %s4652_s10 = smov 112  }
 0x69f   : > { %2924 = vperm.xlu0 %4498, %v8036_v6   ;;  %s4653_s11 = smov 111   ;;  %s4655_s12 = smov 110  }
 0x6a0   : > { %4500 = vset.pattern.permute.xlu1 %v4618_v14  ;;  %s4657_s13 = smov 98   ;;  %s4659_s16 = smov 97  }
 0x6a1   : > { %2994 = vperm.xlu1 %4500, %v8036_v6   ;;  %s4661_s14 = smov 96   ;;  %s4663_s17 = smov 95  }
 0x6a2   : > { %s4665_s19 = smov 94  }
 0x6a3   : > { %4502 = vset.pattern.permute.xlu0 %v4619_v22  ;;  %v4664_v22 = vmov 26  }
 0x6a4   : > { %3068 = vperm.xlu0 %4502, %v8036_v6  }
 0x6a5   : > { %4501 = vset.pattern.permute.xlu1 %v4621_v5 }
 0x6a6   : > { %3031 = vperm.xlu1 %4501, %v8036_v6  }
 0x6a8   : > { %4503 = vset.pattern.permute.xlu0 %v4620_v48 }
 0x6a9   : > { %3105 = vperm.xlu0 %4503, %v8036_v6  }
 0x6aa   : > { %4512 = vset.pattern.permute.xlu1 %v4623_v54 }
 0x6ab   : > { %3413 = vperm.xlu1 %4512, %v8036_v6  }
 0x6ad   : > { %4504 = vset.pattern.permute.xlu0 %v4622_v27 }
 0x6ae   : > { %3142 = vperm.xlu0 %4504, %v8036_v6  }
 0x6af   : > { %4513 = vset.pattern.permute.xlu1 %v4625_v40 }
 0x6b0   : > { %3450 = vperm.xlu1 %4513, %v8036_v6  }
 0x6b2   : > { %4505 = vset.pattern.permute.xlu0 %v4624_v21 }
 0x6b3   : > { %3179 = vperm.xlu0 %4505, %v8036_v6  }
 0x6b7   : > { %4506 = vset.pattern.permute.xlu0 %v4626_v33 }
 0x6b8   : > { %3216 = vperm.xlu0 %4506, %v8036_v6  }
 0x6bc   : > { %4507 = vset.pattern.permute.xlu0 %v4627_v49 }
 0x6bd   : > { %3253 = vperm.xlu0 %4507, %v8036_v6  }
 0x6c1   : > { %4508 = vset.pattern.permute.xlu0 %v4628_v3 }
 0x6c2   : > { %3290 = vperm.xlu0 %4508, %v8036_v6  }
 0x6c6   : > { %4509 = vset.pattern.permute.xlu0 %v4629_v47 }
 0x6c7   : > { %3327 = vperm.xlu0 %4509, %v8036_v6  }
 0x6cb   : > { %4510 = vset.pattern.permute.xlu0 %v4630_v31 }
 0x6cc   : > { %3339 = vperm.xlu0 %4510, %v8036_v6  }
 0x6d0   : > { %4511 = vset.pattern.permute.xlu0 %v4631_v7 }
 0x6d1   : > { %3376 = vperm.xlu0 %4511, %v8036_v6  }
 0x6d5   : > { %4514 = vset.pattern.permute.xlu0 %v4632_v35 }
 0x6d6   : > { %3487 = vperm.xlu0 %4514, %v8036_v6  }
 0x6da   : > { %4515 = vset.pattern.permute.xlu0 %v4633_v37 }
 0x6db   : > { %3524 = vperm.xlu0 %4515, %v8036_v6  }
 0x6df   : > { %4516 = vset.pattern.permute.xlu0 %v4634_v36 }
 0x6e0   : > { %3561 = vperm.xlu0 %4516, %v8036_v6  }
 0x6e4   : > { %4517 = vset.pattern.permute.xlu0 %v4635_v10 }
 0x715   : > { %v8057_v16 = vpop.permute.xlu0 %2736 }
 0x717   : > { %v8177_v0 = vpop.permute.xlu1 %2957 }
 0x71a   : > { %v8097_v61 = vpop.permute.xlu0 %2924 }
 0x71c   : > { %v8186_v19 = vpop.permute.xlu1 %2994 }
 0x71f   : > { %v8107_v9 = vpop.permute.xlu0 %3068 }
 0x721   : > { %v8197_v34 = vpop.permute.xlu1 %3031 }
 0x724   : > { %v8113_v11 = vpop.permute.xlu0 %3105 }
 0x726   : > { %v8205_v52 = vpop.permute.xlu1 %3413 }
 0x727   : > { %10583 = vst [vmem:[#allocation214_spill] sm:$0xff] %v8205_v52 }
 0x729   : > { %v8123_v24 = vpop.permute.xlu0 %3142 }
 0x72b   : > { %v8216_v42 = vpop.permute.xlu1 %3450 }
 0x72c   : > { %10585 = vst [vmem:[#allocation216_spill] sm:$0xff] %v8216_v42  ;;  %v10594_v42 = vld [vmem:[#allocation19_spill] sm:$0xff] }
 0x72d   : > { %vm10595_vm2 = vnez %v10594_v42  ;;  %v10598_v42 = vld [vmem:[#allocation28_spill] sm:$0xff] }
 0x72e   : > { %v8129_v4 = vpop.permute.xlu0 %3179  ;;  %vm10599_vm11 = vnez %v10598_v42  ;;  %v10608_v42 = vld [vmem:[#allocation23_spill] sm:$0xff] }
 0x72f   : > { %vm10609_vm3 = vnez %v10608_v42 }
 0x733   : > { %v8139_v60 = vpop.permute.xlu0 %3216 }
 0x738   : > { %v8151_v13 = vpop.permute.xlu0 %3253 }
 0x73d   : > { %v8161_v57 = vpop.permute.xlu0 %3290 }
 0x742   : > { %v8167_v46 = vpop.permute.xlu0 %3327 }
 0x747   : > { %v8179_v25 = vpop.permute.xlu0 %3339 }
 0x748   : > { %10579 = vst [vmem:[#allocation210_spill] sm:$0xff] %v8179_v25  ;;  %v10618_v25 = vld [vmem:[#allocation35_spill] sm:$0xff] }
 0x74c   : > { %v8184_v38 = vpop.permute.xlu0 %3376 }
 0x74d   : > { %10580 = vst [vmem:[#allocation211_spill] sm:$0xff] %v8184_v38 }
 0x751   : > { %v8193_v2 = vpop.permute.xlu0 %3487 }
 0x752   : > { %10581 = vst [vmem:[#allocation212_spill] sm:$0xff] %v8193_v2 }
 0x756   : > { %v8203_v26 = vpop.permute.xlu0 %3524 }
 0x757   : > { %10582 = vst [vmem:[#allocation213_spill] sm:$0xff] %v8203_v26 }
 0x758   : > { %v2821_v15 = vpop.f32.mrf.mxu0  ;;  %v2892_v51 = vpop.f32.mrf.mxu1 }
 0x759   : > { %v8060_v50 = vadd.f32 %v2821_v15, %v8057_v16  ;;  %v8067_v53 = vadd.f32 %v2892_v51, %v8057_v16 }
 0x75a   : > { %v2823_v12 = vpop.f32.mrf.mxu0  ;;  %v2894_v30 = vpop.f32.mrf.mxu1 }
 0x75b   : > { %2968 = vrot.lane.b32.xlu0 %v8060_v50, %s4636_s18  ;;  %2897 = vrot.lane.b32.xlu1 %v8060_v50, %s4637_s20  ;;  %10578 = vst [vmem:[#allocation209_spill] sm:$0xff] %v8067_v53  ;;  %v8142_v23 = vadd.f32 %v2823_v12, %v8057_v16  ;;  %v8149_v17 = vadd.f32 %v2894_v30, %v8057_v16  ;;  %v8212_v55 = vpop.permute.xlu0 %3561 }
 0x75c   : > { %10584 = vst [vmem:[#allocation215_spill] sm:$0xff] %v8212_v55 }
 0x75f   : > { %2972 = vrot.lane.b32.xlu0 %v8067_v53, %s4636_s18  ;;  %2901 = vrot.lane.b32.xlu1 %v8067_v53, %s4637_s20 }
 0x763   : > { %3009 = vrot.lane.b32.xlu0 %v8067_v53, %s4638_s22  ;;  %2931 = vrot.lane.b32.xlu1 %v8060_v50, %s4639_s23 }
 0x767   : > { %3046 = vrot.lane.b32.xlu0 %v8067_v53, %s4640_s24  ;;  %2935 = vrot.lane.b32.xlu1 %v8067_v53, %s4639_s23 }
 0x76b   : > { %3083 = vrot.lane.b32.xlu0 %v8067_v53, %s4641_s25  ;;  %3005 = vrot.lane.b32.xlu1 %v8060_v50, %s4638_s22 }
 0x76f   : > { %3120 = vrot.lane.b32.xlu0 %v8067_v53, %s4642_s26  ;;  %3042 = vrot.lane.b32.xlu1 %v8060_v50, %s4640_s24 }
 0x773   : > { %3157 = vrot.lane.b32.xlu0 %v8067_v53, %s4643_s27  ;;  %3079 = vrot.lane.b32.xlu1 %v8060_v50, %s4641_s25 }
 0x777   : > { %3194 = vrot.lane.b32.xlu0 %v8067_v53, %s4644_s28  ;;  %3116 = vrot.lane.b32.xlu1 %v8060_v50, %s4642_s26 }
 0x77b   : > { %3231 = vrot.lane.b32.xlu0 %v8067_v53, %s4645_s29  ;;  %3153 = vrot.lane.b32.xlu1 %v8060_v50, %s4643_s27 }
 0x77f   : > { %3268 = vrot.lane.b32.xlu0 %v8067_v53, %s4646_s30  ;;  %3190 = vrot.lane.b32.xlu1 %v8060_v50, %s4644_s28 }
 0x783   : > { %3305 = vrot.lane.b32.xlu0 %v8067_v53, %s4647_s5  ;;  %3227 = vrot.lane.b32.xlu1 %v8060_v50, %s4645_s29 }
 0x787   : > { %3387 = vrot.lane.b32.xlu0 %v8060_v50, %s4648_s6  ;;  %3264 = vrot.lane.b32.xlu1 %v8060_v50, %s4646_s30 }
 0x78b   : > { %3391 = vrot.lane.b32.xlu0 %v8067_v53, %s4648_s6  ;;  %3301 = vrot.lane.b32.xlu1 %v8060_v50, %s4647_s5 }
 0x78f   : > { %3428 = vrot.lane.b32.xlu0 %v8067_v53, %s4649_s7  ;;  %3350 = vrot.lane.b32.xlu1 %v8060_v50, %s4650_s8 }
 0x793   : > { %3465 = vrot.lane.b32.xlu0 %v8067_v53, %s4651_s9  ;;  %3354 = vrot.lane.b32.xlu1 %v8067_v53, %s4650_s8 }
 0x797   : > { %3502 = vrot.lane.b32.xlu0 %v8067_v53, %s4652_s10  ;;  %3424 = vrot.lane.b32.xlu1 %v8060_v50, %s4649_s7 }
 0x79b   : > { %2899 = vrot.lane.b32.xlu0 %v8142_v23, %s4637_s20  ;;  %3461 = vrot.lane.b32.xlu1 %v8060_v50, %s4651_s9 }
 0x79f   : > { %2903 = vrot.lane.b32.xlu0 %v8149_v17, %s4637_s20  ;;  %3498 = vrot.lane.b32.xlu1 %v8060_v50, %s4652_s10 }
 0x7a3   : > { %2933 = vrot.lane.b32.xlu0 %v8142_v23, %s4639_s23  ;;  %2970 = vrot.lane.b32.xlu1 %v8142_v23, %s4636_s18 }
 0x7a7   : > { %2937 = vrot.lane.b32.xlu0 %v8149_v17, %s4639_s23  ;;  %2974 = vrot.lane.b32.xlu1 %v8149_v17, %s4636_s18 }
 0x7ab   : > { %3352 = vrot.lane.b32.xlu0 %v8142_v23, %s4650_s8  ;;  %3007 = vrot.lane.b32.xlu1 %v8142_v23, %s4638_s22 }
 0x7af   : > { %3356 = vrot.lane.b32.xlu0 %v8149_v17, %s4650_s8  ;;  %3011 = vrot.lane.b32.xlu1 %v8149_v17, %s4638_s22 }
 0x7b3   : > { %3598 = vperm.xlu0 %4517, %v8036_v6   ;;  %3044 = vrot.lane.b32.xlu1 %v8142_v23, %s4640_s24 }
 0x7b7   : > { %3539 = vrot.lane.b32.xlu0 %v8067_v53, %s4653_s11  ;;  %3048 = vrot.lane.b32.xlu1 %v8149_v17, %s4640_s24 }
 0x7b8   : > { %4518 = vset.pattern.permute.xlu0 %v4654_v56 }
 0x7bb   : > { %3635 = vperm.xlu0 %4518, %v8036_v6   ;;  %3081 = vrot.lane.b32.xlu1 %v8142_v23, %s4641_s25 }
 0x7bf   : > { %3576 = vrot.lane.b32.xlu0 %v8067_v53, %s4655_s12  ;;  %3085 = vrot.lane.b32.xlu1 %v8149_v17, %s4641_s25 }
 0x7c0   : > { %4519 = vset.pattern.permute.xlu0 %v4656_v41 }
 0x7c3   : > { %3672 = vperm.xlu0 %4519, %v8036_v6   ;;  %3118 = vrot.lane.b32.xlu1 %v8142_v23, %s4642_s26 }
 0x7c7   : > { %3613 = vrot.lane.b32.xlu0 %v8067_v53, %s4657_s13  ;;  %3122 = vrot.lane.b32.xlu1 %v8149_v17, %s4642_s26 }
 0x7c8   : > { %4520 = vset.pattern.permute.xlu0 %v4658_v39 }
 0x7cb   : > { %3709 = vperm.xlu0 %4520, %v8036_v6   ;;  %3155 = vrot.lane.b32.xlu1 %v8142_v23, %s4643_s27 }
 0x7cd   : > { %v8221_v58 = vpop.permute.xlu0 %2968  ;;  %v8223_v63 = vpop.permute.xlu1 %2897 }
 0x7cf   : > { %3650 = vrot.lane.b32.xlu0 %v8067_v53, %s4659_s16  ;;  %3159 = vrot.lane.b32.xlu1 %v8149_v17, %s4643_s27 }
 0x7d0   : > { %4521 = vset.pattern.permute.xlu0 %v4660_v8 }
 0x7d1   : > { %v8229_v20 = vpop.permute.xlu0 %2972  ;;  %v8231_v44 = vpop.permute.xlu1 %2901 }
 0x7d3   : > { %3746 = vperm.xlu0 %4521, %v8036_v6   ;;  %3192 = vrot.lane.b32.xlu1 %v8142_v23, %s4644_s28 }
 0x7d5   : > { %v8236_v32 = vpop.permute.xlu0 %3009  ;;  %v8238_v62 = vpop.permute.xlu1 %2931 }
 0x7d7   : > { %3687 = vrot.lane.b32.xlu0 %v8067_v53, %s4661_s14  ;;  %3196 = vrot.lane.b32.xlu1 %v8149_v17, %s4644_s28 }
 0x7d8   : > { %4522 = vset.pattern.permute.xlu0 %v4662_v28 }
 0x7d9   : > { %v8244_v29 = vpop.permute.xlu0 %3046  ;;  %v8246_v45 = vpop.permute.xlu1 %2935 }
 0x7db   : > { %3783 = vperm.xlu0 %4522, %v8036_v6   ;;  %3229 = vrot.lane.b32.xlu1 %v8142_v23, %s4645_s29 }
 0x7dd   : > { %v8251_v59 = vpop.permute.xlu0 %3083  ;;  %v8253_v14 = vpop.permute.xlu1 %3005 }
 0x7df   : > { %3724 = vrot.lane.b32.xlu0 %v8067_v53, %s4663_s17  ;;  %3233 = vrot.lane.b32.xlu1 %v8149_v17, %s4645_s29 }
 0x7e0   : > { %4523 = vset.pattern.permute.xlu0 %v4664_v22 }
 0x7e1   : > { %v8259_v48 = vpop.permute.xlu0 %3120  ;;  %v8261_v5 = vpop.permute.xlu1 %3042 }
 0x7e3   : > { %3757 = vrot.lane.b32.xlu0 %v8060_v50, %s4665_s19  ;;  %3266 = vrot.lane.b32.xlu1 %v8142_v23, %s4646_s30 }
 0x7e5   : > { %v8267_v6 = vpop.permute.xlu0 %3157  ;;  %v8269_v27 = vpop.permute.xlu1 %3079 }
 0x7e7   : > { %3761 = vrot.lane.b32.xlu0 %v8067_v53, %s4665_s19  ;;  %3270 = vrot.lane.b32.xlu1 %v8149_v17, %s4646_s30  ;;  %v10604_v53 = vld [vmem:[#allocation32_spill] sm:$0xff] }
 0x7e8   : > { %vm10605_vm14 = vnez %v10604_v53 }
 0x7e9   : > { %v8275_v54 = vpop.permute.xlu0 %3194  ;;  %v8277_v21 = vpop.permute.xlu1 %3116 }
 0x7eb   : > { %3795 = vperm.xlu0 %4523, %v8024_v18   ;;  %3303 = vrot.lane.b32.xlu1 %v8142_v23, %s4647_s5 }
 0x7ed   : > { %v8282_v40 = vpop.permute.xlu0 %3231  ;;  %v8284_v33 = vpop.permute.xlu1 %3153 }
 0x7ef   : > { %3307 = vrot.lane.b32.xlu1 %v8149_v17, %s4647_s5 }
 0x7f1   : > { %v8288_v49 = vpop.permute.xlu0 %3268  ;;  %v8290_v3 = vpop.permute.xlu1 %3190 }
 0x7f3   : > { %3389 = vrot.lane.b32.xlu1 %v8142_v23, %s4648_s6 }
 0x7f5   : > { %v8294_v47 = vpop.permute.xlu0 %3305  ;;  %v8296_v18 = vpop.permute.xlu1 %3227 }
 0x7f7   : > { %3393 = vrot.lane.b32.xlu1 %v8149_v17, %s4648_s6 }
 0x7f9   : > { %v8300_v31 = vpop.permute.xlu0 %3387  ;;  %v8302_v7 = vpop.permute.xlu1 %3264 }
 0x7fa   : > { %10586 = vst [vmem:[#allocation217_spill] sm:$0xff] %v8300_v31 }
 0x7fb   : > { %3426 = vrot.lane.b32.xlu1 %v8142_v23, %s4649_s7 }
 0x7fd   : > { %v8306_v35 = vpop.permute.xlu0 %3391  ;;  %v8308_v37 = vpop.permute.xlu1 %3301 }
 0x7fe   : > { %10587 = vst [vmem:[#allocation218_spill] sm:$0xff] %v8306_v35 }
 0x7ff   : > { %3430 = vrot.lane.b32.xlu1 %v8149_v17, %s4649_s7 }
 0x801   : > { %v8312_v36 = vpop.permute.xlu0 %3428  ;;  %v8314_v10 = vpop.permute.xlu1 %3350 }
 0x802   : > { %10588 = vst [vmem:[#allocation219_spill] sm:$0xff] %v8312_v36  ;;  %v10596_v36 = vld [vmem:[#allocation21_spill] sm:$0xff] }
 0x803   : > { %3463 = vrot.lane.b32.xlu1 %v8142_v23, %s4651_s9  ;;  %vm10597_vm8 = vnez %v10596_v36  ;;  %v10600_v36 = vld [vmem:[#allocation30_spill] sm:$0xff] }
 0x804   : > { %vm10601_vm9 = vnez %v10600_v36 }
 0x805   : > { %v8318_v16 = vpop.permute.xlu1 %3354  ;;  %v8320_v15 = vpop.permute.xlu0 %3465 }
 0x806   : > { %10589 = vst [vmem:[#allocation220_spill] sm:$0xff] %v8320_v15 }
 0x807   : > { %3467 = vrot.lane.b32.xlu1 %v8149_v17, %s4651_s9 }
 0x809   : > { %v8324_v51 = vpop.permute.xlu1 %3424  ;;  %v8328_v12 = vpop.permute.xlu0 %3502 }
 0x80a   : > { %10590 = vst [vmem:[#allocation221_spill] sm:$0xff] %v8324_v51  ;;  %10591 = vst [vmem:[#allocation222_spill] sm:$0xff] %v8328_v12 }
 0x80b   : > { %3500 = vrot.lane.b32.xlu1 %v8142_v23, %s4652_s10 }
 0x80d   : > { %v8330_v30 = vpop.permute.xlu1 %3461  ;;  %v2900_v41 = vpop.permute.xlu0 %2899 }
 0x80e   : > { %10592 = vst [vmem:[#allocation223_spill] sm:$0xff] %v8330_v30  ;;  %v2907_v26 = vsel %vm2905_vm15, %v2900_v41, %v8231_v44 }
 0x80f   : > { %3504 = vrot.lane.b32.xlu1 %v8149_v17, %s4652_s10  ;;  %v2920_v52 = vsel %vm10597_vm8, %v2907_v26, 0.0 }
 0x811   : > { %v8334_v56 = vpop.permute.xlu1 %3498  ;;  %v2904_v8 = vpop.permute.xlu0 %2903 }
 0x812   : > { %10593 = vst [vmem:[#allocation224_spill] sm:$0xff] %v8334_v56  ;;  %v2908_v56 = vsel %vm2905_vm15, %v8223_v63, %v2900_v41  ;;  %v2906_v41 = vsel %vm2905_vm15, %v8231_v44, %v2904_v8  ;;  %v10602_v44 = vld [vmem:[#allocation25_spill] sm:$0xff] }
 0x813   : > { %3535 = vrot.lane.b32.xlu1 %v8060_v50, %s4653_s11  ;;  %v2919_v51 = vsel %vm10595_vm2, %v2908_v56, 0.0  ;;  %v2929_v56 = vmul.f32 %v8097_v61, %v2920_v52  ;;  %vm10603_vm10 = vnez %v10602_v44  ;;  %vm10619_vm2 = vnez %v10618_v25 }
 0x815   : > { %v2971_v39 = vpop.permute.xlu1 %2970  ;;  %v2934_v43 = vpop.permute.xlu0 %2933 }
 0x816   : > { %v2941_v30 = vsel %vm2939_vm0, %v2934_v43, %v8246_v45  ;;  %v2942_v15 = vsel %vm2939_vm0, %v8238_v62, %v2934_v43  ;;  %v2909_v43 = vsel %vm2905_vm15, %v2904_v8, %v8223_v63  ;;  %v10606_v8 = vld [vmem:[#allocation17_spill] sm:$0xff]  ;;  %v2979_v52 = vsel %vm2976_vm7, %v8221_v58, %v2971_v39 }
 0x817   : > { %3537 = vrot.lane.b32.xlu1 %v8142_v23, %s4653_s11  ;;  %v2953_v26 = vsel %vm10599_vm11, %v2942_v15, 0.0  ;;  %vm10607_vm4 = vnez %v10606_v8 }
 0x818   : > { %v2918_v15 = vsel %vm10607_vm4, %v2909_v43, 0.0  ;;  %v2961_v53 = vmul.f32 %v8177_v0, %v2953_v26 }
 0x819   : > { %v2975_v28 = vpop.permute.xlu1 %2974  ;;  %v2938_v12 = vpop.permute.xlu0 %2937 }
 0x81a   : > { %v2940_v31 = vsel %vm2939_vm0, %v8246_v45, %v2938_v12  ;;  %v2943_v35 = vsel %vm2939_vm0, %v2938_v12, %v8238_v62  ;;  %v2954_v45 = vsel %vm10601_vm9, %v2941_v30, 0.0  ;;  %v2928_v12 = vmul.f32 %v8097_v61, %v2919_v51 }
 0x81b   : > { %3541 = vrot.lane.b32.xlu1 %v8149_v17, %s4653_s11  ;;  %v2952_v38 = vsel %vm10603_vm10, %v2943_v35, 0.0  ;;  %v2955_v63 = vsel %vm10605_vm14, %v2940_v31, 0.0  ;;  %v2921_v30 = vsel %vm10609_vm3, %v2906_v41, 0.0  ;;  %v2978_v51 = vsel %vm2976_vm7, %v2971_v39, %v8229_v20 }
 0x81c   : > { %v2962_v31 = vmul.f32 %v8177_v0, %v2954_v45  ;;  %v2977_v35 = vsel %vm2976_vm7, %v8229_v20, %v2975_v28  ;;  %v2980_v41 = vsel %vm2976_vm7, %v2975_v28, %v8221_v58  ;;  %v2960_v43 = vmul.f32 %v8177_v0, %v2952_v38  ;;  %v10610_v38 = vld [vmem:[#allocation3_spill] sm:$0xff] }
 0x81d   : > { %v3008_v22 = vpop.permute.xlu1 %3007  ;;  %v2963_v39 = vmul.f32 %v8177_v0, %v2955_v63  ;;  %v2927_v20 = vmul.f32 %v8097_v61, %v2918_v15  ;;  %v2930_v44 = vmul.f32 %v8097_v61, %v2921_v30  ;;  %vm10611_vm1 = vnez %v10610_v38  ;;  %v10612_v63 = vld [vmem:[#allocation4_spill] sm:$0xff]  ;;  %v10616_v15 = vld [vmem:[#allocation5_spill] sm:$0xff] }
 0x81e   : > { %v3015_v26 = vsel %vm3013_vm12, %v3008_v22, %v8236_v32  ;;  %v3016_v36 = vsel %vm3013_vm12, %v8253_v14, %v3008_v22  ;;  %v2990_v28 = vsel %vm10611_vm1, %v2979_v52, 0.0  ;;  %vm10613_vm6 = vnez %v10612_v63  ;;  %v10614_v22 = vld [vmem:[#allocation2_spill] sm:$0xff] }
 0x81f   : > { %3572 = vrot.lane.b32.xlu1 %v8060_v50, %s4655_s12  ;;  %v2991_v8 = vsel %vm10613_vm6, %v2978_v51, 0.0  ;;  %vm10615_vm15 = vnez %v10614_v22  ;;  %vm10617_vm0 = vnez %v10616_v15  ;;  %v2966_v30 = vadd.f32 %v2962_v31, %v2929_v56  ;;  %v10622_v63 = vld [vmem:[#allocation34_spill] sm:$0xff]  ;;  %v10624_v22 = vld [vmem:[#allocation37_spill] sm:$0xff] }
 0x820   : > { %v2989_v42 = vsel %vm10615_vm15, %v2980_v41, 0.0  ;;  %v2992_v61 = vsel %vm10617_vm0, %v2977_v35, 0.0  ;;  %vm3124_vm7 = vcmp.lt.s32.totalorder %v4710_v1, 17  ;;  %v2964_v51 = vadd.f32 %v2960_v43, %v2927_v20 }
 0x821   : > { %v3012_v55 = vpop.permute.xlu1 %3011  ;;  %v2967_v38 = vadd.f32 %v2963_v39, %v2930_v44  ;;  %vm10623_vm11 = vnez %v10622_v63  ;;  %vm10625_vm9 = vnez %v10624_v22  ;;  %v2999_v56 = vmul.f32 %v8186_v19, %v2991_v8 }
 0x822   : > { %v3014_v58 = vsel %vm3013_vm12, %v8236_v32, %v3012_v55  ;;  %v3017_v0 = vsel %vm3013_vm12, %v3012_v55, %v8253_v14  ;;  %v2965_v32 = vadd.f32 %v2961_v53, %v2928_v12  ;;  %v3027_v55 = vsel %vm10619_vm2, %v3016_v36, 0.0  ;;  %v10620_v14 = vld [vmem:[#allocation36_spill] sm:$0xff] }
 0x823   : > { %3574 = vrot.lane.b32.xlu1 %v8142_v23, %s4655_s12  ;;  %vm10621_vm8 = vnez %v10620_v14  ;;  %v3026_v41 = vsel %vm10623_vm11, %v3017_v0, 0.0  ;;  %v3029_v35 = vsel %vm10625_vm9, %v3014_v58, 0.0  ;;  %v2998_v12 = vmul.f32 %v8186_v19, %v2990_v28 }
 0x824   : > { %v3028_v52 = vsel %vm10621_vm8, %v3015_v26, 0.0  ;;  %v2997_v25 = vmul.f32 %v8186_v19, %v2989_v42  ;;  %v3000_v53 = vmul.f32 %v8186_v19, %v2992_v61  ;;  %v3035_v31 = vmul.f32 %v8197_v34, %v3027_v55  ;;  %v10626_v42 = vld [vmem:[#allocation38_spill] sm:$0xff] }
 0x825   : > { %v8354_v2 = vpop.permute.xlu1 %3044  ;;  %v3036_v43 = vmul.f32 %v8197_v34, %v3028_v52  ;;  %vm9604_vm12 = vcmp.lt.s32.totalorder %v4710_v1, 16  ;;  %v3002_v36 = vadd.f32 %v2998_v12, %v2965_v32  ;;  %v3003_v20 = vadd.f32 %v2999_v56, %v2966_v30  ;;  %v10628_v32 = vld [vmem:[#allocation41_spill] sm:$0xff] }
 0x826   : > { %v3034_v19 = vmul.f32 %v8197_v34, %v3026_v41  ;;  %v3037_v44 = vmul.f32 %v8197_v34, %v3029_v35  ;;  %v3001_v58 = vadd.f32 %v2997_v25, %v2964_v51  ;;  %v3004_v0 = vadd.f32 %v3000_v53, %v2967_v38  ;;  %v10630_v38 = vld [vmem:[#allocation39_spill] sm:$0xff]  ;;  %v10632_v41 = vld [vmem:[#allocation40_spill] sm:$0xff]  ;;  %v10636_v56 = vld [vmem:[#allocation45_spill] sm:$0xff] }
 0x827   : > { %3578 = vrot.lane.b32.xlu1 %v8149_v17, %s4655_s12  ;;  %v3052_v28 = vsel %vm3050_vm5, %v8354_v2, %v8244_v29  ;;  %vm10627_vm10 = vnez %v10626_v42  ;;  %vm10629_vm14 = vnez %v10628_v32  ;;  %v3039_v55 = vadd.f32 %v3035_v31, %v3002_v36  ;;  %v10638_v25 = vld [vmem:[#allocation43_spill] sm:$0xff]  ;;  %v10640_v31 = vld [vmem:[#allocation44_spill] sm:$0xff] }
 0x828   : > { %v3040_v14 = vadd.f32 %v3036_v43, %v3003_v20  ;;  %v3038_v52 = vadd.f32 %v3034_v19, %v3001_v58  ;;  %v3041_v51 = vadd.f32 %v3037_v44, %v3004_v0  ;;  %vm10633_vm4 = vnez %v10632_v41  ;;  %v10644_v42 = vld [vmem:[#allocation52_spill] sm:$0xff] }
 0x829   : > { %v3049_v62 = vpop.permute.xlu1 %3048  ;;  %v3065_v22 = vsel %vm10633_vm4, %v3052_v28, 0.0  ;;  %vm10639_vm1 = vnez %v10638_v25  ;;  %vm10641_vm6 = vnez %v10640_v31  ;;  %v10642_v28 = vld [vmem:[#allocation46_spill] sm:$0xff]  ;;  %vm10645_vm0 = vnez %v10644_v42 }
 0x82a   : > { %v3051_v39 = vsel %vm3050_vm5, %v8244_v29, %v3049_v62  ;;  %v3054_v26 = vsel %vm3050_vm5, %v3049_v62, %v8261_v5  ;;  %v3053_v62 = vsel %vm3050_vm5, %v8261_v5, %v8354_v2  ;;  %vm10631_vm5 = vnez %v10630_v38 }
 0x82b   : > { %3609 = vrot.lane.b32.xlu1 %v8060_v50, %s4657_s13  ;;  %v3063_v61 = vsel %vm10627_vm10, %v3054_v26, 0.0  ;;  %v3066_v30 = vsel %vm10629_vm14, %v3051_v39, 0.0  ;;  %v3064_v63 = vsel %vm10631_vm5, %v3053_v62, 0.0  ;;  %v3073_v20 = vmul.f32 %v8107_v9, %v3065_v22 }
 0x82c   : > { %v3071_v35 = vmul.f32 %v8107_v9, %v3063_v61  ;;  %v3072_v36 = vmul.f32 %v8107_v9, %v3064_v63  ;;  %vm10643_vm15 = vnez %v10642_v28 }
 0x82d   : > { %v3082_v45 = vpop.permute.xlu1 %3081  ;;  %v3077_v63 = vadd.f32 %v3073_v20, %v3040_v14 }
 0x82e   : > { %v3089_v2 = vsel %vm3087_vm13, %v3082_v45, %v8251_v59  ;;  %v3090_v5 = vsel %vm3087_vm13, %v8269_v27, %v3082_v45  ;;  %v3075_v61 = vadd.f32 %v3071_v35, %v3038_v52 }
 0x82f   : > { %3611 = vrot.lane.b32.xlu1 %v8142_v23, %s4657_s13  ;;  %v3101_v53 = vsel %vm10639_vm1, %v3090_v5, 0.0  ;;  %v3102_v43 = vsel %vm10641_vm6, %v3089_v2, 0.0  ;;  %vm3235_vm1 = vcmp.lt.s32.totalorder %v4710_v1, 14 }
 0x831   : > { %v3086_v15 = vpop.permute.xlu1 %3085 }
 0x832   : > { %v3088_v34 = vsel %vm3087_vm13, %v8251_v59, %v3086_v15  ;;  %v3091_v29 = vsel %vm3087_vm13, %v3086_v15, %v8269_v27  ;;  %v3074_v15 = vmul.f32 %v8107_v9, %v3066_v30  ;;  %v10634_v59 = vld [vmem:[#allocation42_spill] sm:$0xff]  ;;  %vm10637_vm13 = vnez %v10636_v56  ;;  %v10652_v56 = vld [vmem:[#allocation31_spill] sm:$0xff] }
 0x833   : > { %3615 = vrot.lane.b32.xlu1 %v8149_v17, %s4657_s13  ;;  %vm10635_vm3 = vnez %v10634_v59  ;;  %v3103_v27 = vsel %vm10637_vm13, %v3088_v34, 0.0  ;;  %v3110_v30 = vmul.f32 %v8113_v11, %v3102_v43  ;;  %v10650_v59 = vld [vmem:[#allocation29_spill] sm:$0xff]  ;;  %vm10653_vm9 = vnez %v10652_v56 }
 0x834   : > { %v3100_v12 = vsel %vm10635_vm3, %v3091_v29, 0.0  ;;  %v3111_v0 = vmul.f32 %v8113_v11, %v3103_v27  ;;  %v3078_v32 = vadd.f32 %v3074_v15, %v3041_v51  ;;  %v10648_v29 = vld [vmem:[#allocation50_spill] sm:$0xff]  ;;  %vm10651_vm11 = vnez %v10650_v59 }
 0x835   : > { %v3119_v8 = vpop.permute.xlu1 %3118  ;;  %v3108_v58 = vmul.f32 %v8113_v11, %v3100_v12  ;;  %vm10649_vm8 = vnez %v10648_v29 }
 0x836   : > { %v3126_v19 = vsel %vm3124_vm7, %v3119_v8, %v8259_v48  ;;  %v3127_v44 = vsel %vm3124_vm7, %v8277_v21, %v3119_v8  ;;  %v10646_v8 = vld [vmem:[#allocation48_spill] sm:$0xff]  ;;  %v3115_v22 = vadd.f32 %v3111_v0, %v3078_v32 }
 0x837   : > { %3646 = vrot.lane.b32.xlu1 %v8060_v50, %s4659_s16  ;;  %vm10647_vm2 = vnez %v10646_v8  ;;  %v3139_v2 = vsel %vm10649_vm8, %v3126_v19, 0.0  ;;  %v3112_v41 = vadd.f32 %v3108_v58, %v3075_v61  ;;  %v10658_v61 = vld [vmem:[#allocation55_spill] sm:$0xff]  ;;  %vm3272_vm8 = vcmp.lt.s32.totalorder %v4710_v1, 2 }
 0x838   : > { %v3138_v34 = vsel %vm10647_vm2, %v3127_v44, 0.0  ;;  %v3147_v15 = vmul.f32 %v8123_v24, %v3139_v2  ;;  %vm10659_vm5 = vnez %v10658_v61 }
 0x839   : > { %v3123_v45 = vpop.permute.xlu1 %3122  ;;  %v3146_v35 = vmul.f32 %v8123_v24, %v3138_v34 }
 0x83a   : > { %v3125_v39 = vsel %vm3124_vm7, %v8259_v48, %v3123_v45  ;;  %v3128_v26 = vsel %vm3124_vm7, %v3123_v45, %v8277_v21  ;;  %v3109_v48 = vmul.f32 %v8113_v11, %v3101_v53  ;;  %vm3198_vm7 = vcmp.lt.s32.totalorder %v4710_v1, 15 }
 0x83b   : > { %3648 = vrot.lane.b32.xlu1 %v8142_v23, %s4659_s16  ;;  %v3137_v62 = vsel %vm10643_vm15, %v3128_v26, 0.0  ;;  %v3140_v9 = vsel %vm10645_vm0, %v3125_v39, 0.0  ;;  %v3076_v11 = vadd.f32 %v3072_v36, %v3039_v55  ;;  %v3114_v53 = vadd.f32 %v3110_v30, %v3077_v63  ;;  %v10656_v26 = vld [vmem:[#allocation33_spill] sm:$0xff] }
 0x83c   : > { %v3145_v51 = vmul.f32 %v8123_v24, %v3137_v62  ;;  %v3148_v38 = vmul.f32 %v8123_v24, %v3140_v9  ;;  %v10654_v24 = vld [vmem:[#allocation26_spill] sm:$0xff]  ;;  %vm10657_vm14 = vnez %v10656_v26  ;;  %v10664_v63 = vld [vmem:[#allocation57_spill] sm:$0xff] }
 0x83d   : > { %v3156_v21 = vpop.permute.xlu1 %3155  ;;  %v3113_v25 = vadd.f32 %v3109_v48, %v3076_v11  ;;  %vm10655_vm10 = vnez %v10654_v24  ;;  %v3151_v58 = vadd.f32 %v3147_v15, %v3114_v53  ;;  %v10660_v48 = vld [vmem:[#allocation56_spill] sm:$0xff]  ;;  %vm10665_vm13 = vnez %v10664_v63 }
 0x83e   : > { %v3163_v5 = vsel %vm9604_vm12, %v3156_v21, %v8267_v6  ;;  %v3164_v52 = vsel %vm9604_vm12, %v8284_v33, %v3156_v21  ;;  %v3149_v31 = vadd.f32 %v3145_v51, %v3112_v41  ;;  %v3152_v43 = vadd.f32 %v3148_v38, %v3115_v22  ;;  %v10662_v38 = vld [vmem:[#allocation54_spill] sm:$0xff]  ;;  %v10668_v53 = vld [vmem:[#allocation60_spill] sm:$0xff] }
 0x83f   : > { %3652 = vrot.lane.b32.xlu1 %v8149_v17, %s4659_s16  ;;  %v3175_v12 = vsel %vm10651_vm11, %v3164_v52, 0.0  ;;  %v3176_v27 = vsel %vm10653_vm9, %v3163_v5, 0.0  ;;  %vm10661_vm4 = vnez %v10660_v48  ;;  %vm10663_vm3 = vnez %v10662_v38 }
 0x840   : > { %v3183_v20 = vmul.f32 %v8129_v4, %v3175_v12  ;;  %v3184_v19 = vmul.f32 %v8129_v4, %v3176_v27  ;;  %vm10669_vm15 = vnez %v10668_v53 }
 0x841   : > { %v3160_v45 = vpop.permute.xlu1 %3159 }
 0x842   : > { %v3162_v55 = vsel %vm9604_vm12, %v8267_v6, %v3160_v45  ;;  %v3165_v14 = vsel %vm9604_vm12, %v3160_v45, %v8284_v33  ;;  %v3150_v33 = vadd.f32 %v3146_v35, %v3113_v25  ;;  %v3188_v21 = vadd.f32 %v3184_v19, %v3151_v58  ;;  %v10666_v45 = vld [vmem:[#allocation59_spill] sm:$0xff]  ;;  %v10670_v19 = vld [vmem:[#allocation58_spill] sm:$0xff] }
 0x843   : > { %v3174_v39 = vsel %vm10655_vm10, %v3165_v14, 0.0  ;;  %v3177_v36 = vsel %vm10657_vm14, %v3162_v55, 0.0  ;;  %3683 = vrot.lane.b32.xlu1 %v8060_v50, %s4661_s14  ;;  %vm10667_vm6 = vnez %v10666_v45  ;;  %vm10671_vm0 = vnez %v10670_v19 }
 0x844   : > { %v3182_v6 = vmul.f32 %v8129_v4, %v3174_v39  ;;  %v3185_v44 = vmul.f32 %v8129_v4, %v3177_v36  ;;  %v3187_v4 = vadd.f32 %v3183_v20, %v3150_v33 }
 0x845   : > { %v3193_v0 = vpop.permute.xlu1 %3192 }
 0x846   : > { %v3186_v28 = vadd.f32 %v3182_v6, %v3149_v31  ;;  %v3189_v62 = vadd.f32 %v3185_v44, %v3152_v43  ;;  %v3200_v42 = vsel %vm3198_vm7, %v3193_v0, %v8275_v54  ;;  %v3201_v9 = vsel %vm3198_vm7, %v8290_v3, %v3193_v0  ;;  %v10672_v44 = vld [vmem:[#allocation61_spill] sm:$0xff] }
 0x847   : > { %v3212_v32 = vsel %vm10659_vm5, %v3201_v9, 0.0  ;;  %v3213_v30 = vsel %vm10661_vm4, %v3200_v42, 0.0  ;;  %3685 = vrot.lane.b32.xlu1 %v8142_v23, %s4661_s14  ;;  %vm10673_vm2 = vnez %v10672_v44  ;;  %v10674_v9 = vld [vmem:[#allocation7_spill] sm:$0xff]  ;;  %vm9605_vm4 = vcmp.lt.s32.totalorder %v4710_v1, 127 }
 0x848   : > { %v3220_v8 = vmul.f32 %v8139_v60, %v3212_v32  ;;  %v3221_v34 = vmul.f32 %v8139_v60, %v3213_v30  ;;  %v10676_v32 = vld [vmem:[#allocation8_spill] sm:$0xff] }
 0x849   : > { %v3197_v29 = vpop.permute.xlu1 %3196  ;;  %vm10677_vm5 = vnez %v10676_v32 }
 0x84a   : > { %v3224_v2 = vadd.f32 %v3220_v8, %v3187_v4  ;;  %v3225_v5 = vadd.f32 %v3221_v34, %v3188_v21  ;;  %v3199_v52 = vsel %vm3198_vm7, %v8275_v54, %v3197_v29  ;;  %v3202_v51 = vsel %vm3198_vm7, %v3197_v29, %v8290_v3  ;;  %v3353_v21 = vpop.permute.xlu0 %3352 }
 0x84b   : > { %v3211_v11 = vsel %vm10663_vm3, %v3202_v51, 0.0  ;;  %v3214_v41 = vsel %vm10665_vm13, %v3199_v52, 0.0  ;;  %3689 = vrot.lane.b32.xlu1 %v8149_v17, %s4661_s14  ;;  %vm10675_vm7 = vnez %v10674_v9  ;;  %v10680_v51 = vld [vmem:[#allocation9_spill] sm:$0xff] }
 0x84c   : > { %v3219_v22 = vmul.f32 %v8139_v60, %v3211_v11  ;;  %v3222_v35 = vmul.f32 %v8139_v60, %v3214_v41  ;;  %vm10681_vm13 = vnez %v10680_v51 }
 0x84d   : > { %v3230_v54 = vpop.permute.xlu1 %3229 }
 0x84e   : > { %v3223_v15 = vadd.f32 %v3219_v22, %v3186_v28  ;;  %v3226_v12 = vadd.f32 %v3222_v35, %v3189_v62  ;;  %v3237_v3 = vsel %vm3235_vm1, %v3230_v54, %v8282_v40  ;;  %v3238_v27 = vsel %vm3235_vm1, %v8296_v18, %v3230_v54  ;;  %v3357_v45 = vpop.permute.xlu0 %3356 }
 0x84f   : > { %v3249_v25 = vsel %vm10667_vm6, %v3238_v27, 0.0  ;;  %v3250_v55 = vsel %vm10669_vm15, %v3237_v3, 0.0  ;;  %3720 = vrot.lane.b32.xlu1 %v8060_v50, %s4663_s17  ;;  %v10684_v3 = vld [vmem:[#allocation11_spill] sm:$0xff] }
 0x850   : > { %v3257_v60 = vmul.f32 %v8151_v13, %v3249_v25  ;;  %v3258_v14 = vmul.f32 %v8151_v13, %v3250_v55  ;;  %vm10685_vm15 = vnez %v10684_v3  ;;  %v10686_v55 = vld [vmem:[#allocation210_spill] sm:$0xff] }
 0x851   : > { %v3234_v31 = vpop.permute.xlu1 %3233  ;;  %v3345_v32 = vmul.f32 %v10686_v55, %v8149_v17 }
 0x852   : > { %v3261_v43 = vadd.f32 %v3257_v60, %v3224_v2  ;;  %v3262_v39 = vadd.f32 %v3258_v14, %v3225_v5  ;;  %v3236_v36 = vsel %vm3235_vm1, %v8282_v40, %v3234_v31  ;;  %v3239_v20 = vsel %vm3235_vm1, %v3234_v31, %v8296_v18  ;;  %v10678_v5 = vld [vmem:[#allocation6_spill] sm:$0xff] }
 0x853   : > { %v3248_v6 = vsel %vm10671_vm0, %v3239_v20, 0.0  ;;  %v3251_v33 = vsel %vm10673_vm2, %v3236_v36, 0.0  ;;  %3722 = vrot.lane.b32.xlu1 %v8142_v23, %s4663_s17  ;;  %vm10679_vm3 = vcmp.ge.s32.totalorder %v10678_v5, 0  ;;  %vm9607_vm1 = vcmp.lt.s32.totalorder %v4710_v1, 1  ;;  %v10687_v14 = vld [vmem:[#allocation18_spill] sm:$0xff] }
 0x854   : > { %v3256_v58 = vmul.f32 %v8151_v13, %v3248_v6  ;;  %v3259_v0 = vmul.f32 %v8151_v13, %v3251_v33  ;;  %v3342_v60 = vmul.f32 %v10686_v55, %v8060_v50  ;;  %vm10688_vm0 = vcmp.lt.s32.totalorder %v10687_v14, 16 }
 0x855   : > { %v3267_v40 = vpop.permute.xlu1 %3266  ;;  %v3343_v36 = vmul.f32 %v10686_v55, %v8142_v23  ;;  %v3359_v33 = vsel %vm9605_vm4, %v8318_v16, %v3357_v45 }
 0x856   : > { %v3260_v28 = vadd.f32 %v3256_v58, %v3223_v15  ;;  %v3263_v62 = vadd.f32 %v3259_v0, %v3226_v12  ;;  %v3274_v18 = vsel %vm3272_vm8, %v3267_v40, %v8288_v49  ;;  %v3275_v42 = vsel %vm3272_vm8, %v8302_v7, %v3267_v40  ;;  %v10691_v58 = vld [vmem:[#allocation12_spill] sm:$0xff]  ;;  %v10693_v40 = vld [vmem:[#allocation13_spill] sm:$0xff] }
 0x857   : > { %v3286_v61 = vsel %vm10675_vm7, %v3275_v42, 0.0  ;;  %v3287_v48 = vsel %vm10677_vm5, %v3274_v18, 0.0  ;;  %3726 = vrot.lane.b32.xlu1 %v8149_v17, %s4663_s17  ;;  %vm10694_vm7 = vnez %v10693_v40  ;;  %vm3395_vm5 = vcmp.lt.s32.totalorder %v4710_v1, 126  ;;  %v10695_v18 = vld [vmem:[#allocation209_spill] sm:$0xff]  ;;  %v10696_v42 = vld [vmem:[#allocation211_spill] sm:$0xff] }
 0x858   : > { %v3294_v13 = vmul.f32 %v8161_v57, %v3286_v61  ;;  %v3295_v30 = vmul.f32 %v8161_v57, %v3287_v48 }
 0x859   : > { %v3271_v4 = vpop.permute.xlu1 %3270 }
 0x85a   : > { %v3298_v8 = vadd.f32 %v3294_v13, %v3261_v43  ;;  %v3299_v34 = vadd.f32 %v3295_v30, %v3262_v39  ;;  %v3273_v29 = vsel %vm3272_vm8, %v8288_v49, %v3271_v4  ;;  %v3276_v2 = vsel %vm3272_vm8, %v3271_v4, %v8302_v7  ;;  %v10689_v43 = vld [vmem:[#allocation14_spill] sm:$0xff]  ;;  %v10697_v13 = vld [vmem:[#allocation15_spill] sm:$0xff] }
 0x85b   : > { %v3285_v52 = vsel %vm10679_vm3, %v3276_v2, 0.0  ;;  %v3288_v38 = vsel %vm10681_vm13, %v3273_v29, 0.0  ;;  %3759 = vrot.lane.b32.xlu1 %v8142_v23, %s4665_s19  ;;  %v3360_v49 = vsel %vm9605_vm4, %v3353_v21, %v8318_v16  ;;  %v3361_v7 = vsel %vm9605_vm4, %v8314_v10, %v3353_v21  ;;  %v10699_v21 = vld [vmem:[#allocation218_spill] sm:$0xff]  ;;  %v10702_v2 = vld [vmem:[#allocation217_spill] sm:$0xff] }
 0x85c   : > { %v3293_v11 = vmul.f32 %v8161_v57, %v3285_v52  ;;  %v3296_v63 = vmul.f32 %v8161_v57, %v3288_v38  ;;  %v10682_v57 = vld [vmem:[#allocation10_spill] sm:$0xff]  ;;  %v3371_v31 = vsel %vm10688_vm0, %v3361_v7, 0.0  ;;  %vm10690_vm2 = vnez %v10689_v43  ;;  %v10703_v52 = vld [vmem:[#allocation20_spill] sm:$0xff] }
 0x85d   : > { %v3304_v41 = vpop.permute.xlu1 %3303  ;;  %vm10683_vm6 = vnez %v10682_v57  ;;  %v3372_v39 = vsel %vm10690_vm2, %v3360_v49, 0.0  ;;  %vm10692_vm8 = vcmp.ge.s32.totalorder %v10691_v58, 0  ;;  %v3344_v16 = vmul.f32 %v10686_v55, %v10695_v18  ;;  %v10707_v49 = vld [vmem:[#allocation214_spill] sm:$0xff] }
 0x85e   : > { %v3297_v22 = vadd.f32 %v3293_v11, %v3260_v28  ;;  %v3300_v35 = vadd.f32 %v3296_v63, %v3263_v62  ;;  %v3311_v54 = vsel %vm9607_vm1, %v3304_v41, %v8294_v47  ;;  %v3312_v15 = vsel %vm9607_vm1, %v8308_v37, %v3304_v41  ;;  %v10705_v11 = vld [vmem:[#allocation27_spill] sm:$0xff] }
 0x85f   : > { %v3323_v12 = vsel %vm10683_vm6, %v3312_v15, 0.0  ;;  %v3324_v27 = vsel %vm10685_vm15, %v3311_v54, 0.0  ;;  %3763 = vrot.lane.b32.xlu1 %v8149_v17, %s4665_s19  ;;  %v3379_v9 = vmul.f32 %v10696_v42, %v3371_v31  ;;  %v3380_v61 = vmul.f32 %v10696_v42, %v3372_v39  ;;  %v10710_v39 = vld [vmem:[#allocation24_spill] sm:$0xff]  ;;  %v10716_v18 = vld [vmem:[#allocation63_spill] sm:$0xff] }
 0x860   : > { %v3331_v25 = vmul.f32 %v8167_v46, %v3323_v12  ;;  %v3332_v53 = vmul.f32 %v8167_v46, %v3324_v27  ;;  %vm10698_vm3 = vnez %v10697_v13  ;;  %vm10704_vm0 = vnez %v10703_v52  ;;  %v4551_v13 = vld [vmem:[%s9093_s3] sm:$0xff] }
 0x861   : > { %v3308_v20 = vpop.permute.xlu1 %3307  ;;  %v3373_v30 = vsel %vm10698_vm3, %v3359_v33, 0.0  ;;  %vm10711_vm12 = vnez %v10710_v39  ;;  %v10712_v33 = vld [vmem:[#allocation219_spill] sm:$0xff] }
 0x862   : > { %v3335_v19 = vadd.f32 %v3331_v25, %v3298_v8  ;;  %v3336_v6 = vadd.f32 %v3332_v53, %v3299_v34  ;;  %v3310_v44 = vsel %vm9607_vm1, %v8294_v47, %v3308_v20  ;;  %v3313_v50 = vsel %vm9607_vm1, %v3308_v20, %v8308_v37  ;;  %v10700_v8 = vld [vmem:[#allocation16_spill] sm:$0xff]  ;;  %v10708_v53 = vld [vmem:[#allocation22_spill] sm:$0xff] }
 0x863   : > { %v3322_v0 = vsel %vm10692_vm8, %v3313_v50, 0.0  ;;  %v3325_v23 = vsel %vm10694_vm7, %v3310_v44, 0.0  ;;  %v3362_v47 = vsel %vm9605_vm4, %v3357_v45, %v8314_v10  ;;  %vm10701_vm13 = vnez %v10700_v8  ;;  %v10732_v39 = vld [vmem:[#allocation72_spill] sm:$0xff] }
 0x864   : > { %v3347_v28 = vadd.f32 %v3343_v36, %v3335_v19  ;;  %v3330_v62 = vmul.f32 %v8167_v46, %v3322_v0  ;;  %v3333_v37 = vmul.f32 %v8167_v46, %v3325_v23  ;;  %v3374_v34 = vsel %vm10701_vm13, %v3362_v47, 0.0  ;;  %v10713_v23 = vld [vmem:[#allocation221_spill] sm:$0xff] }
 0x865   : > { %v3390_v48 = vpop.permute.xlu1 %3389  ;;  %v3348_v29 = vadd.f32 %v3344_v16, %v3336_v6  ;;  %vm10706_vm8 = vcmp.lt.s32.totalorder %v10705_v11, 16  ;;  %v3381_v41 = vmul.f32 %v10696_v42, %v3373_v30  ;;  %v3382_v45 = vmul.f32 %v10696_v42, %v3374_v34  ;;  %v10718_v42 = vld [vmem:[#allocation216_spill] sm:$0xff] }
 0x866   : > { %v3334_v10 = vadd.f32 %v3330_v62, %v3297_v22  ;;  %v3337_v4 = vadd.f32 %v3333_v37, %v3300_v35  ;;  %v3397_v46 = vsel %vm3395_vm5, %v3390_v48, %v10699_v21  ;;  %v3398_v5 = vsel %vm3395_vm5, %v10702_v2, %v3390_v48  ;;  %v10714_v62 = vld [vmem:[#allocation62_spill] sm:$0xff]  ;;  %v10721_v34 = vld [vmem:[#allocation65_spill] sm:$0xff] }
 0x867   : > { %v3409_v17 = vsel %vm10704_vm0, %v3397_v46, 0.0  ;;  %v3384_v38 = vadd.f32 %v3380_v61, %v3347_v28  ;;  %v3408_v63 = vsel %vm10706_vm8, %v3398_v5, 0.0  ;;  %vm10709_vm0 = vnez %v10708_v53 }
 0x868   : > { %v3346_v51 = vadd.f32 %v3342_v60, %v3334_v10  ;;  %v3417_v7 = vmul.f32 %v10707_v49, %v3409_v17  ;;  %v3349_v22 = vadd.f32 %v3345_v32, %v3337_v4  ;;  %v3416_v15 = vmul.f32 %v10707_v49, %v3408_v63  ;;  %v10724_v63 = vld [vmem:[#allocation223_spill] sm:$0xff] }
 0x869   : > { %v3394_v35 = vpop.permute.xlu1 %3393  ;;  %vm3432_vm8 = vcmp.lt.s32.totalorder %v4710_v1, 114  ;;  %v3385_v31 = vadd.f32 %v3381_v41, %v3348_v29 }
 0x86a   : > { %v3383_v54 = vadd.f32 %v3379_v9, %v3346_v51  ;;  %v3421_v12 = vadd.f32 %v3417_v7, %v3384_v38  ;;  %v3396_v27 = vsel %vm3395_vm5, %v10699_v21, %v3394_v35  ;;  %v3399_v25 = vsel %vm3395_vm5, %v3394_v35, %v10702_v2  ;;  %v10719_v21 = vld [vmem:[#allocation64_spill] sm:$0xff]  ;;  %v10723_v38 = vld [vmem:[#allocation220_spill] sm:$0xff]  ;;  %v10725_v7 = vld [vmem:[#allocation66_spill] sm:$0xff] }
 0x86b   : > { %v3410_v55 = vsel %vm10709_vm0, %v3396_v27, 0.0  ;;  %v3411_v36 = vsel %vm10711_vm12, %v3399_v25, 0.0  ;;  %v3386_v19 = vadd.f32 %v3382_v45, %v3349_v22  ;;  %vm10715_vm5 = vnez %v10714_v62  ;;  %v10727_v22 = vld [vmem:[#allocation68_spill] sm:$0xff]  ;;  %v10736_v62 = vld [vmem:[#allocation47_spill] sm:$0xff] }
 0x86c   : > { %v3420_v60 = vadd.f32 %v3416_v15, %v3383_v54  ;;  %v3418_v20 = vmul.f32 %v10707_v49, %v3410_v55  ;;  %v3419_v6 = vmul.f32 %v10707_v49, %v3411_v36  ;;  %vm10717_vm12 = vnez %v10716_v18  ;;  %v10729_v54 = vld [vmem:[#allocation212_spill] sm:$0xff] }
 0x86d   : > { %v3427_v44 = vpop.permute.xlu1 %3426  ;;  %vm10720_vm0 = vnez %v10719_v21  ;;  %v10738_v18 = vld [vmem:[#allocation49_spill] sm:$0xff]  ;;  %v10741_v21 = vld [vmem:[#allocation51_spill] sm:$0xff] }
 0x86e   : > { %v3422_v50 = vadd.f32 %v3418_v20, %v3385_v31  ;;  %v3434_v0 = vsel %vm3432_vm8, %v3427_v44, %v10712_v33  ;;  %v3435_v47 = vsel %vm3432_vm8, %v10713_v23, %v3427_v44  ;;  %v3423_v28 = vadd.f32 %v3419_v6, %v3386_v19 }
 0x86f   : > { %v3445_v37 = vsel %vm10715_vm5, %v3435_v47, 0.0  ;;  %v3446_v16 = vsel %vm10717_vm12, %v3434_v0, 0.0  ;;  %vm10722_vm5 = vnez %v10721_v34  ;;  %vm3469_vm12 = vcmp.lt.s32.totalorder %v4710_v1, 113  ;;  %v10743_v34 = vld [vmem:[#allocation53_spill] sm:$0xff] }
 0x870   : > { %v3453_v9 = vmul.f32 %v10718_v42, %v3445_v37  ;;  %v3454_v61 = vmul.f32 %v10718_v42, %v3446_v16  ;;  %vm10744_vm4 = vnez %v10743_v34 }
 0x871   : > { %v3431_v32 = vpop.permute.xlu1 %3430 }
 0x872   : > { %v3457_v48 = vadd.f32 %v3453_v9, %v3420_v60  ;;  %v3458_v30 = vadd.f32 %v3454_v61, %v3421_v12  ;;  %v3433_v10 = vsel %vm3432_vm8, %v10712_v33, %v3431_v32  ;;  %v3436_v4 = vsel %vm3432_vm8, %v3431_v32, %v10713_v23  ;;  %v10730_v60 = vld [vmem:[#allocation70_spill] sm:$0xff]  ;;  %v10734_v33 = vld [vmem:[#allocation222_spill] sm:$0xff]  ;;  %v10735_v23 = vld [vmem:[#allocation224_spill] sm:$0xff] }
 0x873   : > { %v3447_v46 = vsel %vm10720_vm0, %v3433_v10, 0.0  ;;  %v3448_v29 = vsel %vm10722_vm5, %v3436_v4, 0.0  ;;  %vm10726_vm8 = vnez %v10725_v7  ;;  %vm10728_vm0 = vnez %v10727_v22 }
 0x874   : > { %v3455_v2 = vmul.f32 %v10718_v42, %v3447_v46  ;;  %v3456_v5 = vmul.f32 %v10718_v42, %v3448_v29  ;;  %vm10731_vm5 = vnez %v10730_v60  ;;  %v10740_v42 = vld [vmem:[#allocation213_spill] sm:$0xff] }
 0x875   : > { %v3464_v52 = vpop.permute.xlu1 %3463 }
 0x876   : > { %v3459_v17 = vadd.f32 %v3455_v2, %v3422_v50  ;;  %v3460_v51 = vadd.f32 %v3456_v5, %v3423_v28  ;;  %v3471_v11 = vsel %vm3469_vm12, %v3464_v52, %v10723_v38  ;;  %v3472_v49 = vsel %vm3469_vm12, %v10724_v63, %v3464_v52  ;;  %v8787_v28 = vpop.permute.xlu0 %3598 }
 0x877   : > { %v3482_v41 = vsel %vm10726_vm8, %v3472_v49, 0.0  ;;  %v3483_v35 = vsel %vm10728_vm0, %v3471_v11, 0.0  ;;  %vm10733_vm8 = vnez %v10732_v39  ;;  %vm9606_vm0 = vcmp.lt.s32.totalorder %v4710_v1, 112 }
 0x878   : > { %v3490_v15 = vmul.f32 %v10729_v54, %v3482_v41  ;;  %v3491_v12 = vmul.f32 %v10729_v54, %v3483_v35  ;;  %v10745_v41 = vld [vmem:[#allocation77_spill] sm:$0xff]  ;;  %v10747_v35 = vld [vmem:[#allocation215_spill] sm:$0xff] }
 0x879   : > { %v3468_v27 = vpop.permute.xlu1 %3467  ;;  %vm10746_vm1 = vnez %v10745_v41 }
 0x87a   : > { %v3494_v45 = vadd.f32 %v3490_v15, %v3457_v48  ;;  %v3495_v25 = vadd.f32 %v3491_v12, %v3458_v30  ;;  %v3470_v53 = vsel %vm3469_vm12, %v10723_v38, %v3468_v27  ;;  %v3473_v55 = vsel %vm3469_vm12, %v3468_v27, %v10724_v63  ;;  %v3540_v52 = vpop.permute.xlu0 %3539 }
 0x87b   : > { %v3484_v31 = vsel %vm10731_vm5, %v3470_v53, 0.0  ;;  %v3485_v36 = vsel %vm10733_vm8, %v3473_v55, 0.0  ;;  %vm10737_vm12 = vnez %v10736_v62  ;;  %vm10739_vm5 = vnez %v10738_v18 }
 0x87c   : > { %v3492_v20 = vmul.f32 %v10729_v54, %v3484_v31  ;;  %v3493_v19 = vmul.f32 %v10729_v54, %v3485_v36  ;;  %vm10742_vm8 = vnez %v10741_v21 }
 0x87d   : > { %v3501_v6 = vpop.permute.xlu1 %3500 }
 0x87e   : > { %v3496_v44 = vadd.f32 %v3492_v20, %v3459_v17  ;;  %v3497_v50 = vadd.f32 %v3493_v19, %v3460_v51  ;;  %v3508_v0 = vsel %vm9606_vm0, %v3501_v6, %v10734_v33  ;;  %v3509_v47 = vsel %vm9606_vm0, %v10735_v23, %v3501_v6  ;;  %v8813_v63 = vpop.permute.xlu0 %3635 }
 0x87f   : > { %v3519_v37 = vsel %vm10737_vm12, %v3509_v47, 0.0  ;;  %v3520_v16 = vsel %vm10739_vm5, %v3508_v0, 0.0  ;;  %vm3617_vm12 = vcmp.lt.s32.totalorder %v4710_v1, 98 }
 0x880   : > { %v3527_v9 = vmul.f32 %v10740_v42, %v3519_v37  ;;  %v3528_v61 = vmul.f32 %v10740_v42, %v3520_v16 }
 0x881   : > { %v3505_v32 = vpop.permute.xlu1 %3504 }
 0x882   : > { %v8795_v48 = vadd.f32 %v3527_v9, %v3494_v45  ;;  %v8797_v30 = vadd.f32 %v3528_v61, %v3495_v25  ;;  %v3507_v10 = vsel %vm9606_vm0, %v10734_v33, %v3505_v32  ;;  %v3510_v4 = vsel %vm9606_vm0, %v3505_v32, %v10735_v23  ;;  %v3577_v15 = vpop.permute.xlu0 %3576  ;;  %v10750_v61 = vld [vmem:[#allocation75_spill] sm:$0xff] }
 0x883   : > { %v3521_v46 = vsel %vm10742_vm8, %v3507_v10, 0.0  ;;  %v3522_v29 = vsel %vm10744_vm4, %v3510_v4, 0.0  ;;  %vm3543_vm0 = vcmp.lt.s32.totalorder %v4710_v1, 111  ;;  %vm10751_vm8 = vnez %v10750_v61 }
 0x884   : > { %v3529_v2 = vmul.f32 %v10740_v42, %v3521_v46  ;;  %v3530_v5 = vmul.f32 %v10740_v42, %v3522_v29  ;;  %v10748_v42 = vld [vmem:[#allocation74_spill] sm:$0xff]  ;;  %v10752_v46 = vld [vmem:[#allocation76_spill] sm:$0xff] }
 0x885   : > { %v3536_v17 = vpop.permute.xlu1 %3535  ;;  %vm10749_vm4 = vnez %v10748_v42  ;;  %vm10753_vm5 = vnez %v10752_v46 }
 0x886   : > { %v8811_v51 = vadd.f32 %v3529_v2, %v3496_v44  ;;  %v3534_v38 = vadd.f32 %v3530_v5, %v3497_v50  ;;  %v8823_v25 = vpop.permute.xlu0 %3672 }
 0x889   : > { %v3538_v11 = vpop.permute.xlu1 %3537 }
 0x88a   : > { %v3614_v55 = vpop.permute.xlu0 %3613  ;;  %v3545_v23 = vsel %vm3543_vm0, %v3538_v11, %v3540_v52  ;;  %v3546_v47 = vsel %vm3543_vm0, %v3536_v17, %v3538_v11 }
 0x88b   : > { %v3556_v9 = vsel %vm10749_vm4, %v3546_v47, 0.0  ;;  %v3557_v32 = vsel %vm10751_vm8, %v3545_v23, 0.0  ;;  %v10760_v23 = vld [vmem:[#allocation81_spill] sm:$0xff] }
 0x88c   : > { %v3564_v11 = vmul.f32 %v10747_v35, %v3556_v9  ;;  %vm10761_vm8 = vnez %v10760_v23 }
 0x88d   : > { %v3542_v49 = vpop.permute.xlu1 %3541 }
 0x88e   : > { %v3547_v7 = vsel %vm3543_vm0, %v3542_v49, %v3536_v17  ;;  %v8825_v39 = vpop.permute.xlu0 %3709  ;;  %v3544_v37 = vsel %vm3543_vm0, %v3540_v52, %v3542_v49  ;;  %v10754_v17 = vld [vmem:[#allocation78_spill] sm:$0xff]  ;;  %v3565_v49 = vmul.f32 %v10747_v35, %v3557_v32  ;;  %vm3654_vm0 = vcmp.lt.s32.totalorder %v4710_v1, 97 }
 0x88f   : > { %v3559_v22 = vsel %vm10746_vm1, %v3547_v7, 0.0  ;;  %vm3580_vm1 = vcmp.lt.s32.totalorder %v4710_v1, 110  ;;  %v3558_v29 = vsel %vm10753_vm5, %v3544_v37, 0.0  ;;  %vm10755_vm14 = vnez %v10754_v17  ;;  %v10756_v7 = vld [vmem:[#allocation79_spill] sm:$0xff] }
 0x890   : > { %v3567_v54 = vmul.f32 %v10747_v35, %v3559_v22  ;;  %vm10757_vm4 = vnez %v10756_v7  ;;  %v3566_v22 = vmul.f32 %v10747_v35, %v3558_v29  ;;  %v3568_v61 = vadd.f32 %v3564_v11, %v8795_v48  ;;  %v10768_v11 = vld [vmem:[#allocation85_spill] sm:$0xff]  ;;  %v10770_v7 = vld [vmem:[#allocation86_spill] sm:$0xff] }
 0x891   : > { %v3573_v12 = vpop.permute.xlu1 %3572  ;;  %v3569_v32 = vadd.f32 %v3565_v49, %v8797_v30 }
 0x892   : > { %v8821_v27 = vadd.f32 %v3567_v54, %v3534_v38  ;;  %v3651_v20 = vpop.permute.xlu0 %3650  ;;  %v10758_v54 = vld [vmem:[#allocation80_spill] sm:$0xff]  ;;  %v3570_v30 = vadd.f32 %v3566_v22, %v8811_v51 }
 0x893   : > { %vm10759_vm5 = vnez %v10758_v54 }
 0x895   : > { %v3575_v45 = vpop.permute.xlu1 %3574 }
 0x896   : > { %v8829_v44 = vpop.permute.xlu0 %3746  ;;  %v3583_v16 = vsel %vm3580_vm1, %v3573_v12, %v3575_v45  ;;  %v3582_v10 = vsel %vm3580_vm1, %v3575_v45, %v3577_v15 }
 0x897   : > { %v3593_v52 = vsel %vm10755_vm14, %v3583_v16, 0.0  ;;  %v3594_v41 = vsel %vm10757_vm4, %v3582_v10, 0.0  ;;  %vm3691_vm14 = vcmp.lt.s32.totalorder %v4710_v1, 96  ;;  %v10762_v10 = vld [vmem:[#allocation82_spill] sm:$0xff] }
 0x898   : > { %v3602_v16 = vmul.f32 %v8787_v28, %v3594_v41  ;;  %vm10763_vm4 = vnez %v10762_v10 }
 0x899   : > { %v3579_v53 = vpop.permute.xlu1 %3578 }
 0x89a   : > { %v8833_v33 = vpop.permute.xlu0 %3687  ;;  %v3581_v2 = vsel %vm3580_vm1, %v3577_v15, %v3579_v53  ;;  %v3584_v38 = vsel %vm3580_vm1, %v3579_v53, %v3573_v12  ;;  %v3601_v53 = vmul.f32 %v8787_v28, %v3593_v52  ;;  %vm3728_vm1 = vcmp.lt.s32.totalorder %v4710_v1, 95 }
 0x89b   : > { %v3595_v15 = vsel %vm10759_vm5, %v3581_v2, 0.0  ;;  %v3596_v47 = vsel %vm10761_vm8, %v3584_v38, 0.0  ;;  %v10764_v2 = vld [vmem:[#allocation83_spill] sm:$0xff]  ;;  %vm10769_vm8 = vnez %v10768_v11 }
 0x89c   : > { %v3604_v29 = vmul.f32 %v8787_v28, %v3596_v47  ;;  %v3605_v38 = vadd.f32 %v3601_v53, %v3568_v61 }
 0x89d   : > { %v3610_v60 = vpop.permute.xlu1 %3609 }
 0x89e   : > { %v8851_v5 = vpop.permute.xlu0 %3783 }
 0x8a1   : > { %v3612_v31 = vpop.permute.xlu1 %3611 }
 0x8a2   : > { %v3620_v45 = vsel %vm3617_vm12, %v3610_v60, %v3612_v31  ;;  %v3619_v37 = vsel %vm3617_vm12, %v3612_v31, %v3614_v55  ;;  %v3603_v31 = vmul.f32 %v8787_v28, %v3595_v15  ;;  %v3725_v46 = vpop.permute.xlu0 %3724  ;;  %v3606_v28 = vadd.f32 %v3602_v16, %v3569_v32  ;;  %v10776_v32 = vld [vmem:[#allocation67_spill] sm:$0xff] }
 0x8a4   : > { %v3607_v47 = vadd.f32 %v3603_v31, %v3570_v30  ;;  %v10778_v31 = vld [vmem:[#allocation69_spill] sm:$0xff] }
 0x8a5   : > { %v3616_v36 = vpop.permute.xlu1 %3615 }
 0x8a6   : > { %v3618_v35 = vsel %vm3617_vm12, %v3614_v55, %v3616_v36  ;;  %v3621_v42 = vsel %vm3617_vm12, %v3616_v36, %v3610_v60  ;;  %v3630_v55 = vsel %vm10763_vm4, %v3620_v45, 0.0  ;;  %vm10765_vm12 = vnez %v10764_v2  ;;  %v10766_v36 = vld [vmem:[#allocation84_spill] sm:$0xff]  ;;  %v10772_v45 = vld [vmem:[#allocation87_spill] sm:$0xff] }
 0x8a7   : > { %v3631_v60 = vsel %vm10765_vm12, %v3619_v37, 0.0  ;;  %vm10767_vm5 = vnez %v10766_v36  ;;  %v3633_v49 = vsel %vm10769_vm8, %v3621_v42, 0.0  ;;  %vm10771_vm4 = vnez %v10770_v7 }
 0x8a8   : > { %v3632_v17 = vsel %vm10767_vm5, %v3618_v35, 0.0  ;;  %v3638_v54 = vmul.f32 %v8813_v63, %v3630_v55  ;;  %vm3765_vm12 = vcmp.lt.s32.totalorder %v4710_v1, 94  ;;  %v3639_v51 = vmul.f32 %v8813_v63, %v3631_v60 }
 0x8a9   : > { %v8827_v19 = vpop.permute.xlu1 %3646  ;;  %v3640_v22 = vmul.f32 %v8813_v63, %v3632_v17  ;;  %vm10773_vm5 = vnez %v10772_v45  ;;  %v3641_v37 = vmul.f32 %v8813_v63, %v3633_v49  ;;  %v10780_v17 = vld [vmem:[#allocation89_spill] sm:$0xff]  ;;  %v10782_v49 = vld [vmem:[#allocation90_spill] sm:$0xff] }
 0x8aa   : > { %v3643_v2 = vadd.f32 %v3639_v51, %v3606_v28 }
 0x8ab   : > { %v3644_v60 = vadd.f32 %v3640_v22, %v3607_v47  ;;  %v10788_v22 = vld [vmem:[#allocation73_spill] sm:$0xff] }
 0x8ad   : > { %v3649_v6 = vpop.permute.xlu1 %3648 }
 0x8ae   : > { %v3657_v9 = vsel %vm3654_vm0, %v8827_v19, %v3649_v6  ;;  %v3656_v52 = vsel %vm3654_vm0, %v3649_v6, %v3651_v20 }
 0x8af   : > { %v3667_v41 = vsel %vm10771_vm4, %v3657_v9, 0.0  ;;  %v3668_v53 = vsel %vm10773_vm5, %v3656_v52, 0.0  ;;  %v10774_v9 = vld [vmem:[#allocation88_spill] sm:$0xff]  ;;  %vm10777_vm4 = vnez %v10776_v32  ;;  %vm10779_vm5 = vnez %v10778_v31 }
 0x8b0   : > { %v3675_v35 = vmul.f32 %v8823_v25, %v3667_v41  ;;  %vm10775_vm8 = vnez %v10774_v9  ;;  %v3676_v63 = vmul.f32 %v8823_v25, %v3668_v53 }
 0x8b1   : > { %v8831_v50 = vpop.permute.xlu1 %3652 }
 0x8b2   : > { %v3655_v15 = vsel %vm3654_vm0, %v3651_v20, %v8831_v50  ;;  %v3608_v20 = vadd.f32 %v3604_v29, %v8821_v27  ;;  %v3658_v42 = vsel %vm3654_vm0, %v8831_v50, %v8827_v19  ;;  %v3758_v27 = vpop.permute.xlu0 %3757  ;;  %v3642_v50 = vadd.f32 %v3638_v54, %v3605_v38  ;;  %v10784_v38 = vld [vmem:[#allocation71_spill] sm:$0xff] }
 0x8b3   : > { %v3669_v61 = vsel %vm10775_vm8, %v3655_v15, 0.0  ;;  %vm10781_vm0 = vnez %v10780_v17  ;;  %vm10783_vm8 = vnez %v10782_v49  ;;  %v10786_v54 = vld [vmem:[#allocation91_spill] sm:$0xff]  ;;  %v3680_v51 = vadd.f32 %v3676_v63, %v3643_v2 }
 0x8b4   : > { %v3670_v52 = vsel %vm10781_vm0, %v3658_v42, 0.0  ;;  %v3677_v30 = vmul.f32 %v8823_v25, %v3669_v61 }
 0x8b5   : > { %v8836_v0 = vpop.permute.xlu1 %3683  ;;  %v3678_v53 = vmul.f32 %v8823_v25, %v3670_v52 }
 0x8b6   : > { %v3762_v9 = vpop.permute.xlu0 %3761  ;;  %v3681_v61 = vadd.f32 %v3677_v30, %v3644_v60 }
 0x8b9   : > { %v3686_v4 = vpop.permute.xlu1 %3685 }
 0x8ba   : > { %v3694_v6 = vsel %vm3691_vm14, %v8836_v0, %v3686_v4  ;;  %v3693_v23 = vsel %vm3691_vm14, %v3686_v4, %v8833_v33 }
 0x8bb   : > { %v3704_v10 = vsel %vm10777_vm4, %v3694_v6, 0.0  ;;  %v3705_v55 = vsel %vm10779_vm5, %v3693_v23, 0.0  ;;  %vm10785_vm4 = vnez %v10784_v38  ;;  %vm10787_vm5 = vnez %v10786_v54  ;;  %v10798_v54 = vld [vmem:[#allocation96_spill] sm:$0xff] }
 0x8bc   : > { %v3712_v11 = vmul.f32 %v8825_v39, %v3704_v10  ;;  %v3713_v41 = vmul.f32 %v8825_v39, %v3705_v55  ;;  %v3679_v6 = vadd.f32 %v3675_v35, %v3642_v50  ;;  %v10794_v55 = vld [vmem:[#allocation94_spill] sm:$0xff] }
 0x8bd   : > { %v3690_v12 = vpop.permute.xlu1 %3689 }
 0x8be   : > { %v3692_v29 = vsel %vm3691_vm14, %v8833_v33, %v3690_v12  ;;  %v3695_v36 = vsel %vm3691_vm14, %v3690_v12, %v8836_v0  ;;  %v3645_v12 = vadd.f32 %v3641_v37, %v3608_v20  ;;  %vm10789_vm14 = vnez %v10788_v22 }
 0x8bf   : > { %v3706_v28 = vsel %vm10785_vm4, %v3692_v29, 0.0  ;;  %v3707_v45 = vsel %vm10789_vm14, %v3695_v36, 0.0  ;;  %v3716_v32 = vadd.f32 %v3712_v11, %v3679_v6  ;;  %v3717_v35 = vadd.f32 %v3713_v41, %v3680_v51  ;;  %v3796_v11 = vpop.permute.xlu0 %3795 }
 0x8c0   : > { %v3715_v10 = vmul.f32 %v8825_v39, %v3707_v45  ;;  %v3682_v36 = vadd.f32 %v3678_v53, %v3645_v12 }
 0x8c1   : > { %v3721_v48 = vpop.permute.xlu1 %3720 }
 0x8c2   : > { %v3719_v38 = vadd.f32 %v3715_v10, %v3682_v36 }
 0x8c5   : > { %v3723_v16 = vpop.permute.xlu1 %3722 }
 0x8c6   : > { %v3731_v4 = vsel %vm3728_vm1, %v3721_v48, %v3723_v16  ;;  %v3730_v19 = vsel %vm3728_vm1, %v3723_v16, %v3725_v46  ;;  %v10790_v16 = vld [vmem:[#allocation92_spill] sm:$0xff] }
 0x8c7   : > { %v3741_v33 = vsel %vm10783_vm8, %v3731_v4, 0.0  ;;  %v3742_v15 = vsel %vm10787_vm5, %v3730_v19, 0.0  ;;  %vm10791_vm0 = vnez %v10790_v16  ;;  %v10792_v4 = vld [vmem:[#allocation93_spill] sm:$0xff]  ;;  %vm10795_vm8 = vnez %v10794_v55  ;;  %v10796_v19 = vld [vmem:[#allocation95_spill] sm:$0xff] }
 0x8c8   : > { %v3749_v23 = vmul.f32 %v8829_v44, %v3741_v33  ;;  %v3750_v20 = vmul.f32 %v8829_v44, %v3742_v15  ;;  %vm10797_vm4 = vnez %v10796_v19  ;;  %vm10799_vm5 = vnez %v10798_v54 }
 0x8c9   : > { %v3727_v7 = vpop.permute.xlu1 %3726 }
 0x8ca   : > { %v3729_v0 = vsel %vm3728_vm1, %v3725_v46, %v3727_v7  ;;  %v3732_v47 = vsel %vm3728_vm1, %v3727_v7, %v3721_v48  ;;  %v3714_v46 = vmul.f32 %v8825_v39, %v3706_v28  ;;  %vm10793_vm1 = vnez %v10792_v4 }
 0x8cb   : > { %v3743_v42 = vsel %vm10791_vm0, %v3729_v0, 0.0  ;;  %v3744_v63 = vsel %vm10793_vm1, %v3732_v47, 0.0  ;;  %v3753_v2 = vadd.f32 %v3749_v23, %v3716_v32  ;;  %v3754_v52 = vadd.f32 %v3750_v20, %v3717_v35  ;;  %v10800_v0 = vld [vmem:[#allocation97_spill] sm:$0xff] }
 0x8cc   : > { %v3751_v31 = vmul.f32 %v8829_v44, %v3743_v42  ;;  %v3718_v17 = vadd.f32 %v3714_v46, %v3681_v61  ;;  %v3752_v49 = vmul.f32 %v8829_v44, %v3744_v63  ;;  %vm10801_vm14 = vnez %v10800_v0 }
 0x8cd   : > { %v3760_v37 = vpop.permute.xlu1 %3759 }
 0x8ce   : > { %v3767_v25 = vsel %vm3765_vm12, %v3760_v37, %v3762_v9  ;;  %v3768_v48 = vsel %vm3765_vm12, %v3758_v27, %v3760_v37  ;;  %v3755_v28 = vadd.f32 %v3751_v31, %v3718_v17  ;;  %v3756_v45 = vadd.f32 %v3752_v49, %v3719_v38 }
 0x8cf   : > { %v3778_v29 = vsel %vm10795_vm8, %v3768_v48, 0.0  ;;  %v3779_v50 = vsel %vm10797_vm4, %v3767_v25, 0.0  ;;  %vm10805_vm8 = vcmp.ge.s32.totalorder %v10691_v58, 0 }
 0x8d0   : > { %v3786_v39 = vmul.f32 %v8851_v5, %v3778_v29  ;;  %v3787_v60 = vmul.f32 %v8851_v5, %v3779_v50 }
 0x8d1   : > { %v3764_v30 = vpop.permute.xlu1 %3763 }
 0x8d2   : > { %v3790_v33 = vadd.f32 %v3786_v39, %v3753_v2  ;;  %v3766_v7 = vsel %vm3765_vm12, %v3762_v9, %v3764_v30  ;;  %v3769_v41 = vsel %vm3765_vm12, %v3764_v30, %v3758_v27  ;;  %v3791_v6 = vadd.f32 %v3787_v60, %v3754_v52 }
 0x8d3   : > { %v3780_v15 = vsel %vm10799_vm5, %v3766_v7, 0.0  ;;  %v3781_v12 = vsel %vm10801_vm14, %v3769_v41, 0.0  ;;  %vm10802_vm12 = vcmp.lt.s32.totalorder %v4710_v1, 1  ;;  %vm10807_vm5 = vcmp.lt.s32.totalorder %v4710_v1, 127 }
 0x8d4   : > { %v3788_v51 = vmul.f32 %v8851_v5, %v3780_v15  ;;  %v3789_v44 = vmul.f32 %v8851_v5, %v3781_v12  ;;  %v3798_v22 = vadd.f32 %v3796_v11, %v3790_v33  ;;  %v3799_v27 = vadd.f32 %v3796_v11, %v3791_v6  ;;  %vm10803_vm0 = vmmov %vm10802_vm12 }
 0x8d5   : > { %vm10804_vm1 = vmmov %vm10803_vm0 }
 0x8d6   : > { %v3792_v53 = vadd.f32 %v3788_v51, %v3755_v28  ;;  %3802 = vrot.lane.b32.xlu1 %v3798_v22, %s4647_s5  ;;  %v3793_v23 = vadd.f32 %v3789_v44, %v3756_v45  ;;  %vm10806_vm4 = vmmov %vm10803_vm0 }
 0x8d7   : > { %vm10808_vm14 = vmmov %vm10807_vm5 }
 0x8d8   : > { %v3800_v47 = vadd.f32 %v3796_v11, %v3792_v53  ;;  %v3801_v16 = vadd.f32 %v3796_v11, %v3793_v23  ;;  %v4666_v11 = vmov 27  }
 0x8d9   : > { %4524 = vset.pattern.permute.xlu0 %v4666_v11 }
 0x8da   : > { %3806 = vrot.lane.b32.xlu0 %v3800_v47, %s4647_s5  ;;  %3804 = vrot.lane.b32.xlu1 %v3799_v27, %s4647_s5 }
 0x8de   : > { %3822 = vrot.lane.b32.xlu0 %v3798_v22, %s4650_s8  ;;  %3808 = vrot.lane.b32.xlu1 %v3801_v16, %s4647_s5 }
 0x8e2   : > { %3826 = vrot.lane.b32.xlu0 %v3800_v47, %s4650_s8  ;;  %3824 = vrot.lane.b32.xlu1 %v3799_v27, %s4650_s8 }
 0x8e6   : > { %3828 = vrot.lane.b32.xlu1 %v3801_v16, %s4650_s8 }
 0x948   : > { %v3803_v5 = vpop.permute.xlu1 %3802 }
 0x94c   : > { %v3807_v42 = vpop.permute.xlu0 %3806  ;;  %v3805_v9 = vpop.permute.xlu1 %3804 }
 0x94d   : > { %v3812_v61 = vsel %vm10802_vm12, %v3803_v5, %v3805_v9  ;;  %v3811_v20 = vsel %vm10803_vm0, %v3805_v9, %v3807_v42  ;;  %vm10811_vm12 = vmmov %vm10807_vm5  ;;  %vm10816_vm0 = vnez %v10656_v26 }
 0x94e   : > { %v3815_v35 = vsel %vm10683_vm6, %v3812_v61, 0.0  ;;  %v3816_v48 = vsel %vm10685_vm15, %v3811_v20, 0.0  ;;  %vm10809_vm6 = vcmp.lt.s32.totalorder %v10687_v14, 16  ;;  %vm10810_vm15 = vmmov %vm10807_vm5 }
 0x94f   : > { %v3819_v31 = vadd.f32 %v3815_v35, %v3799_v27  ;;  %v3820_v39 = vadd.f32 %v3816_v48, %v3800_v47  ;;  %v10825_v48 = vmov 0.0  }
 0x950   : > { %v3823_v32 = vpop.permute.xlu0 %3822  ;;  %v3809_v46 = vpop.permute.xlu1 %3808 }
 0x951   : > { %v3813_v37 = vsel %vm10804_vm1, %v3809_v46, %v3803_v5  ;;  %v3810_v25 = vsel %vm10806_vm4, %v3807_v42, %v3809_v46  ;;  %vm10817_vm1 = vcmp.lt.s32.totalorder %v4710_v1, 112  ;;  %vm10822_vm4 = vnez %v10738_v18 }
 0x952   : > { %v3814_v10 = vsel %vm10805_vm8, %v3813_v37, 0.0  ;;  %v3817_v58 = vsel %vm10694_vm7, %v3810_v25, 0.0  ;;  %vm10818_vm8 = vnez %v10736_v62 }
 0x953   : > { %v3818_v55 = vadd.f32 %v3814_v10, %v3798_v22  ;;  %v3821_v36 = vadd.f32 %v3817_v58, %v3801_v16 }
 0x954   : > { %v3827_v4 = vpop.permute.xlu0 %3826  ;;  %v3825_v63 = vpop.permute.xlu1 %3824 }
 0x955   : > { %v3831_v29 = vsel %vm10807_vm5, %v3825_v63, %v3827_v4  ;;  %v3832_v57 = vsel %vm10808_vm14, %v3823_v32, %v3825_v63  ;;  %vm10823_vm5 = vnez %v10741_v21  ;;  %vm10824_vm14 = vnez %v10743_v34  ;;  %v2732_v34 = vld [vmem:[%s9093_s3 + $0x10] sm:$0xff] }
 0x956   : > { %v3834_v19 = vsel %vm10809_vm6, %v3832_v57, 0.0  ;;  %v3835_v3 = vsel %vm10690_vm2, %v3831_v29, 0.0  ;;  %vm10812_vm2 = vcmp.lt.s32.totalorder %v4710_v1, 16  ;;  %vm3894_vm6 = vcmask 64512  }
 0x957   : > { %v3838_v50 = vadd.f32 %v3834_v19, %v3818_v55  ;;  %v3839_v2 = vadd.f32 %v3835_v3, %v3819_v31  ;;  %vm10813_vm7 = vmmov %vm10812_vm2 }
 0x958   : > { %v3829_v60 = vpop.permute.xlu1 %3828 }
 0x959   : > { %v3830_v17 = vsel %vm10810_vm15, %v3827_v4, %v3829_v60  ;;  %v3833_v52 = vsel %vm10811_vm12, %v3829_v60, %v3823_v32  ;;  %3842 = vrot.lane.b32.xlu0 %v3838_v50, %s4643_s27  ;;  %3844 = vrot.lane.b32.xlu1 %v3839_v2, %s4643_s27  ;;  %v4667_v4 = vmov 28   ;;  %v2733_v60 = vld [vmem:[%s9093_s3 + $0x18] sm:$0xff] }
 0x95a   : > { %v3836_v14 = vsel %vm10698_vm3, %v3830_v17, 0.0  ;;  %v3837_v43 = vsel %vm10701_vm13, %v3833_v52, 0.0  ;;  %vm10814_vm3 = vmmov %vm10812_vm2  ;;  %4525 = vset.pattern.permute.xlu1 %v4667_v4 }
 0x95b   : > { %v3840_v40 = vadd.f32 %v3836_v14, %v3820_v39  ;;  %v3841_v30 = vadd.f32 %v3837_v43, %v3821_v36  ;;  %vm10815_vm13 = vmmov %vm10812_vm2 }
 0x95d   : > { %3848 = vrot.lane.b32.xlu1 %v3841_v30, %s4643_s27  ;;  %3846 = vrot.lane.b32.xlu0 %v3840_v40, %s4643_s27 }
 0x961   : > { %3864 = vrot.lane.b32.xlu1 %v3839_v2, %s4652_s10  ;;  %3862 = vrot.lane.b32.xlu0 %v3838_v50, %s4652_s10 }
 0x965   : > { %3868 = vrot.lane.b32.xlu1 %v3841_v30, %s4652_s10  ;;  %3866 = vrot.lane.b32.xlu0 %v3840_v40, %s4652_s10 }
 0x969   : > { %3891 = vperm.xlu0 %4524, %v4551_v13   ;;  %4045 = vperm.xlu1 %4525, %v4551_v13  }
 0x96d   : > { %4526 = vset.pattern.permute.xlu0 %v4667_v4 }
 0x9cb   : > { %v3843_v8 = vpop.permute.xlu0 %3842  ;;  %v3845_v49 = vpop.permute.xlu1 %3844 }
 0x9cc   : > { %v3852_v41 = vsel %vm10812_vm2, %v3843_v8, %v3845_v49 }
 0x9cd   : > { %v3855_v0 = vsel %vm10651_vm11, %v3852_v41, 0.0  ;;  %vm10819_vm11 = vmmov %vm10817_vm1 }
 0x9ce   : > { %v3859_v23 = vadd.f32 %v3855_v0, %v3839_v2 }
 0x9cf   : > { %v3847_v33 = vpop.permute.xlu0 %3846  ;;  %v3849_v7 = vpop.permute.xlu1 %3848 }
 0x9d0   : > { %v3853_v38 = vsel %vm10813_vm7, %v3849_v7, %v3843_v8  ;;  %v3851_v28 = vsel %vm10814_vm3, %v3845_v49, %v3847_v33  ;;  %v3850_v54 = vsel %vm10815_vm13, %v3847_v33, %v3849_v7 }
 0x9d1   : > { %v3854_v15 = vsel %vm10655_vm10, %v3853_v38, 0.0  ;;  %v3856_v51 = vsel %vm10653_vm9, %v3851_v28, 0.0  ;;  %v3857_v44 = vsel %vm10816_vm0, %v3850_v54, 0.0  ;;  %vm10820_vm9 = vmmov %vm10817_vm1 }
 0x9d2   : > { %v3858_v22 = vadd.f32 %v3854_v15, %v3838_v50  ;;  %v3860_v27 = vadd.f32 %v3856_v51, %v3840_v40  ;;  %v3861_v59 = vadd.f32 %v3857_v44, %v3841_v30  ;;  %vm10821_vm10 = vmmov %vm10817_vm1 }
 0x9d3   : > { %v3863_v12 = vpop.permute.xlu0 %3862  ;;  %v3865_v6 = vpop.permute.xlu1 %3864 }
 0x9d4   : > { %v3872_v45 = vsel %vm10817_vm1, %v3863_v12, %v3865_v6 }
 0x9d5   : > { %v3874_v53 = vsel %vm10818_vm8, %v3872_v45, 0.0 }
 0x9d6   : > { %v3878_v24 = vadd.f32 %v3874_v53, %v3858_v22 }
 0x9d7   : > { %v3867_v47 = vpop.permute.xlu0 %3866  ;;  %v3869_v16 = vpop.permute.xlu1 %3868 }
 0x9d8   : > { %v3882_v5 = vmul.f32 0.11111111, %v3878_v24  ;;  %v3871_v56 = vsel %vm10819_vm11, %v3865_v6, %v3867_v47  ;;  %v3870_v26 = vsel %vm10820_vm9, %v3867_v47, %v3869_v16  ;;  %v3873_v42 = vsel %vm10821_vm10, %v3869_v16, %v3863_v12 }
 0x9d9   : > { %v3875_v62 = vsel %vm10822_vm4, %v3871_v56, 0.0  ;;  %v3876_v9 = vsel %vm10823_vm5, %v3870_v26, 0.0  ;;  %v3877_v61 = vsel %vm10824_vm14, %v3873_v42, 0.0 }
 0x9da   : > { %4527 = vtanh.f32 %v3882_v5  ;;  %v3879_v32 = vadd.f32 %v3875_v62, %v3859_v23  ;;  %v3880_v46 = vadd.f32 %v3876_v9, %v3860_v27  ;;  %v3881_v20 = vadd.f32 %v3877_v61, %v3861_v59 }
 0x9dc   : > { %v3883_v37 = vmul.f32 0.11111111, %v3879_v32  ;;  %v3884_v35 = vmul.f32 0.11111111, %v3880_v46  ;;  %v3885_v1 = vmul.f32 0.11111111, %v3881_v20 }
 0x9de   : > { %4529 = vtanh.f32 %v3883_v37 }
 0x9df   : > { %4531 = vtanh.f32 %v3884_v35 }
 0x9e0   : > { %4533 = vtanh.f32 %v3885_v1 }
 0x9e4   : > { %v3892_v63 = vpop.permute.xlu0 %3891  ;;  %v4046_v52 = vpop.permute.xlu1 %4045 }
 0x9e7   : > { %v4528_v18 = vpop.eup %4527 }
 0x9e8   : > { %4201 = vst [vmem:[%s4708_s21 + $0x20] sm:$0xff] %v4528_v18 }
 0x9eb   : > { %v4530_v21 = vpop.eup %4529 }
 0x9ec   : > { %v4532_v10 = vpop.eup %4531  ;;  %4202 = vst [vmem:[%s4708_s21 + $0x28] sm:$0xff] %v4530_v21  ;;  %3928 = vmatprep.subr.mxu0 %v4530_v21 }
 0x9ed   : > { %v4534_v25 = vpop.eup %4533  ;;  %4203 = vst [vmem:[%s4708_s21 + $0x30] sm:$0xff] %v4532_v10  ;;  %3929 = vmatpush1.msra.mxu0 %v4528_v18 }
 0x9ee   : > { %4204 = vst [vmem:[%s4708_s21 + $0x38] sm:$0xff] %v4534_v25  ;;  %3999 = vmatprep.subr.mxu1 %v4534_v25  ;;  %4278 = vmatmul.mubr.msk.f32.vlgmr.msra.gmra.mxu0 %vm3894_vm6, %v2732_v34 }
 0x9ef   : > { %4000 = vmatpush1.msra.mxu1 %v4532_v10  ;;  %4115 = vmatprep.mubr.f32.mxu0 %v10825_v48 }
 0x9f0   : > { %4279 = vmatmul.mubr.msk.f32.vlgmr.msra.gmra.mxu1 %vm3894_vm6, %v2732_v34 }
 0x9f1   : > { %4186 = vmatprep.mubr.f32.mxu1 %v10825_v48 }
 0xaae   : > { %v3964_v31 = vpop.f32.mrf.mxu0 }
 0xaaf   : > { %v3965_v55 = vadd.f32 %v3964_v31, %v3892_v63 }
 0xab0   : > { %v4035_v29 = vpop.f32.mrf.mxu1  ;;  %v3966_v57 = vpop.f32.mrf.mxu0 }
 0xab1   : > { %v3967_v58 = vadd.f32 %v3966_v57, %v3892_v63  ;;  %v4036_v19 = vadd.f32 %v4035_v29, %v3892_v63  ;;  %4535 = vtanh.f32 %v3965_v55 }
 0xab2   : > { %v4037_v3 = vpop.f32.mrf.mxu1 }
 0xab3   : > { %v4038_v50 = vadd.f32 %v4037_v3, %v3892_v63  ;;  %4537 = vtanh.f32 %v3967_v58 }
 0xab5   : > { %4539 = vtanh.f32 %v4038_v50 }
 0xab6   : > { %4541 = vtanh.f32 %v4036_v19 }
 0xabe   : > { %v4536_v2 = vpop.eup %4535 }
 0xac0   : > { %v4538_v39 = vpop.eup %4537 }
 0xac1   : > { %4081 = vmatprep.subr.mxu0 %v4538_v39 }
 0xac2   : > { %v4540_v36 = vpop.eup %4539  ;;  %4082 = vmatpush1.msra.mxu0 %v4536_v2 }
 0xac3   : > { %v4542_v17 = vpop.eup %4541  ;;  %4152 = vmatprep.subr.mxu1 %v4540_v36  ;;  %4280 = vmatmul.mubr.msk.f32.vlgmr.msra.gmra.mxu0 %vm3894_vm6, %v2733_v60 }
 0xac4   : > { %4153 = vmatpush1.msra.mxu1 %v4542_v17 }
 0xac5   : > { %4281 = vmatmul.mubr.msk.f32.vlgmr.msra.gmra.mxu1 %vm3894_vm6, %v2733_v60 }
 0xb83   : > { %v4117_v14 = vpop.f32.mrf.mxu0 }
 0xb84   : > { %v4118_v40 = vadd.f32 %v4117_v14, %v4046_v52 }
 0xb85   : > { %v4188_v43 = vpop.f32.mrf.mxu1  ;;  %v4119_v30 = vpop.f32.mrf.mxu0 }
 0xb86   : > { %v4189_v11 = vadd.f32 %v4188_v43, %v4046_v52  ;;  %v4120_v8 = vadd.f32 %v4119_v30, %v4046_v52  ;;  %4543 = vtanh.f32 %v4118_v40 }
 0xb87   : > { %v4190_v13 = vpop.f32.mrf.mxu1 }
 0xb88   : > { %v4191_v49 = vadd.f32 %v4190_v13, %v4046_v52  ;;  %4545 = vtanh.f32 %v4189_v11 }
 0xb89   : > { %4547 = vtanh.f32 %v4120_v8 }
 0xb8a   : > { %4549 = vtanh.f32 %v4191_v49 }
 0xb93   : > { %v4544_v33 = vpop.eup %4543 }
 0xb94   : > { %4197 = vst [vmem:[%s4708_s21] sm:$0xff] %v4544_v33 }
 0xb95   : > { %v4546_v7 = vpop.eup %4545 }
 0xb96   : > { %v4548_v41 = vpop.eup %4547  ;;  %4199 = vst [vmem:[%s4708_s21 + $0x10] sm:$0xff] %v4546_v7 }
 0xb97   : > { %v4550_v38 = vpop.eup %4549  ;;  %4198 = vst [vmem:[%s4708_s21 + $0x8] sm:$0xff] %v4548_v41 }
 0xb98   : > { %4200 = vst [vmem:[%s4708_s21 + $0x18] sm:$0xff] %v4550_v38 }
 0xb99 PF: > { %s14_s15 = sadd.s32 1, %s4558_s15  }
 0xb9a   : > { %p11_p6 = scmp.ge.s32.totalorder %s14_s15, 4  }
 0xb9c   :  { %13 = sbr.rel (!%p11_p6) target bundleno = 1 (0x1), region = 71 }

</bundles_post_ra>
